<compile_context>
chip_gen: v6e
topology: v6e:2x2x1
jax: 0.10.0
libtpu: 0.0.40
codegen_flags: <defaults>
</compile_context>

<pallas_src>
import math

import jax
import jax.numpy as jnp
from jax.experimental import pallas as pl
from jax.experimental.pallas import tpu as pltpu

# --------------------------- small demo config ------------------------------
B = 16           # batch
C = 3            # RGB channels
H = 16           # image height
W = 16           # image width (even; halved by interpolate, re-doubled by cat)
PATCH = 4        # stand-in backbone patch size
EMBED = 2048     # HRNet-w32 feature dim (ClassBlock input_dim = 2048)
LINEAR = 512     # ClassBlock bottleneck (linear_num)
NCLASS = 128     # class_num (real default 751; 128 keeps the demo lane-dense)
BN_EPS = 1e-5
B_TILE = 8       # images per grid step (M>=8 matmuls, unmasked 8-sublane stores)

WD = W // 2          # downsampled width
HP = H // PATCH      # patch rows
WQ = WD // PATCH     # patch cols per concat half
WM1 = W - 1

assert W % 2 == 0 and H % PATCH == 0 and WD % PATCH == 0
assert B % B_TILE == 0 and B_TILE % 8 == 0


# ------------------------------ fused kernel ---------------------------------
def pihrnet_kernel(x_ref, wpar_ref, bpar_ref, wex_ref, bp_ref,
                   w1_ref, b1_ref, w2_ref, b2_ref, logits_ref, f_ref):
    # x_ref: (C, H, B_TILE, W) -- batch tile in sublanes, W in lanes.
    # wpar_ref/bpar_ref: SMEM scalars.  All other refs: resident bf16/f32 weights.

    # ---- (1)+(2): width/2 downsample + parsing mask -------------------------
    # xd[..., w] at even w=2k is the downsampled column k; odd lanes are unused
    # by the contraction (their weight rows are zero).
    score = jnp.zeros((H, B_TILE, WM1), jnp.float32)
    for c in range(C):                                   # C=3, static unroll
        xc = x_ref[c]                                    # (H, BT, W)
        xdc = 0.5 * (xc[..., 0:WM1] + xc[..., 1:W])      # (H, BT, W-1)
        score = score + xdc * wpar_ref[c]                # SMEM scalar * vector
    score = score + bpar_ref[0]
    # argmax over 2 logits == (fg - bg) > 0; tie -> class 0.
    # (3) cat((xd, xd*mask), 3) folded into z = xd * 0.5*(1+mask) == xd * gate.
    gate = jnp.where(score > 0.0, 1.0, 0.5)              # (H, BT, W-1)

    # ---- (4): patch embed + global mean pool, all on the MXU ----------------
    # feat[b,e] = bp[e] + sum_{c,ph} ( sum_{hp} z[c, hp*P+ph, b, :] ) @ wex[c*P+ph]
    # (even-lane selection, token-mean pool and 1/(HP*WQ) folded into wex).
    feat = jnp.zeros((B_TILE, EMBED), jnp.float32)
    for c in range(C):
        xc = x_ref[c]                                                # (H, BT, W)
        zc = (0.5 * (xc[..., 0:WM1] + xc[..., 1:W])) * gate          # (H, BT, W-1)
        zh = zc.reshape(HP, PATCH, B_TILE, WM1).sum(axis=0)          # (P, BT, W-1)
        zh = zh.astype(jnp.bfloat16)
        for ph in range(PATCH):                                      # 12 dots total
            feat = feat + jnp.dot(zh[ph], wex_ref[c * PATCH + ph],
                                  preferred_element_type=jnp.float32)
    feat = feat + bp_ref[...]                                        # (BT, EMBED)

    # ---- (5): ClassBlock (eval): Linear+BN folded, Dropout == identity ------
    f = jnp.dot(feat.astype(jnp.bfloat16), w1_ref[...],
                preferred_element_type=jnp.float32) + b1_ref[...]    # (BT, 512)
    f_ref[...] = f
    logits_ref[...] = jnp.dot(f.astype(jnp.bfloat16), w2_ref[...],
                              preferred_element_type=jnp.float32) + b2_ref[...]


# ------------------------------ wrapper --------------------------------------
@jax.jit
def pihrnet_forward(x, params):
    b = x.shape[0]
    assert b % B_TILE == 0
    # Host-side layout plumbing: (B,C,H,W) -> (C,H,B,W) so the batch tile sits
    # in sublanes and every in-kernel contraction is a plain lane-contraction.
    xt = jnp.transpose(x, (1, 2, 0, 3))
    logits, f = pl.pallas_call(
        pihrnet_kernel,
        out_shape=(jax.ShapeDtypeStruct((b, NCLASS), jnp.float32),
                   jax.ShapeDtypeStruct((b, LINEAR), jnp.float32)),
        grid=(b // B_TILE,),
        in_specs=[
            pl.BlockSpec((C, H, B_TILE, W), lambda i: (0, 0, i, 0)),      # x (CHBW)
            pl.BlockSpec(memory_space=pltpu.MemorySpace.SMEM),            # wpar
            pl.BlockSpec(memory_space=pltpu.MemorySpace.SMEM),            # bpar
            pl.BlockSpec((C * PATCH, WM1, EMBED), lambda i: (0, 0, 0)),   # wex
            pl.BlockSpec((1, EMBED), lambda i: (0, 0)),                   # bp
            pl.BlockSpec((EMBED, LINEAR), lambda i: (0, 0)),              # w1f
            pl.BlockSpec((1, LINEAR), lambda i: (0, 0)),                  # b1f
            pl.BlockSpec((LINEAR, NCLASS), lambda i: (0, 0)),             # w2
            pl.BlockSpec((1, NCLASS), lambda i: (0, 0)),                  # b2
        ],
        out_specs=(
            pl.BlockSpec((B_TILE, NCLASS), lambda i: (i, 0)),             # logits
            pl.BlockSpec((B_TILE, LINEAR), lambda i: (i, 0)),             # f
        ),
        compiler_params=pltpu.CompilerParams(
            dimension_semantics=("parallel",),          # 2 steps -> both v7x TCs
            vmem_limit_bytes=32 * 1024 * 1024),
    )(xt, params["wpar"], params["bpar"], params["wex"], params["bp"],
      params["w1f"], params["b1f"], params["w2"], params["b2"])
    return logits, f


# ------------------------------ parameters -----------------------------------
def init_params(key):
    k1, k2, k3, k4, k5 = jax.random.split(key, 5)
    pdim = C * PATCH * PATCH

    # PSPNet stand-in: per-channel 1x1 logit-difference head (fg - bg).
    # TODO(synk): full PSPNet with a loaded checkpoint is not reproduced.
    wpar = 0.5 * jax.random.normal(k1, (C,), jnp.float32)
    bpar = jnp.zeros((1,), jnp.float32)

    # HRNet-w32 stand-in: PATCHxPATCH patch embed -> 2048, token-mean pooled.
    # TODO(synk): real HRNet-w32 stem/stages/head are not reproduced.
    wp = jax.random.normal(k2, (pdim, EMBED), jnp.float32) * math.sqrt(2.0 / pdim)
    bp = jnp.zeros((1, EMBED), jnp.float32)

    # Fold patch embed + token-mean pool + even-column selection + 1/(HP*WQ)
    # into wex[(c,ph), w, :]; odd lanes (never a downsampled column) get 0.
    c_idx = jnp.repeat(jnp.arange(C), PATCH)                       # (C*P,)
    ph_idx = jnp.tile(jnp.arange(PATCH), C)                        # (C*P,)
    wd_phase = jnp.arange(WD) % PATCH                              # (WD,)
    rows = (c_idx[:, None] * PATCH * PATCH + ph_idx[:, None] * PATCH
            + wd_phase[None, :])                                   # (C*P, WD)
    wex = jnp.zeros((C * PATCH, WM1, EMBED), jnp.float32)
    wex = wex.at[:, 0::2, :].set(wp[rows] / float(HP * WQ))

    # ClassBlock add_block Linear(2048, 512): kaiming fan_out, bias 0.
    w1 = jax.random.normal(k3, (EMBED, LINEAR), jnp.float32) * math.sqrt(2.0 / LINEAR)
    b1 = jnp.zeros((LINEAR,), jnp.float32)
    # BatchNorm1d(512) eval: weight ~ N(1, 0.02), bias 0, running stats folded.
    gamma = 1.0 + 0.02 * jax.random.normal(k4, (LINEAR,), jnp.float32)
    beta = jnp.zeros((LINEAR,), jnp.float32)
    rm = jnp.zeros((LINEAR,), jnp.float32)
    rv = jnp.ones((LINEAR,), jnp.float32)
    scale = gamma / jnp.sqrt(rv + BN_EPS)
    w1f = w1 * scale[None, :]
    b1f = ((b1 - rm) * scale + beta)[None, :]

    # classifier Linear(512, class_num): normal(std=0.001), bias 0.
    w2 = jax.random.normal(k5, (LINEAR, NCLASS), jnp.float32) * 0.001
    b2 = jnp.zeros((1, NCLASS), jnp.float32)

    params = dict(
        wpar=wpar, bpar=bpar,
        wex=wex.astype(jnp.bfloat16), bp=bp,
        w1f=w1f.astype(jnp.bfloat16), b1f=b1f,
        w2=w2.astype(jnp.bfloat16), b2=b2,
    )
    raw = dict(wpar=wpar, bpar=bpar, wp=wp, bp=bp, w1=w1, b1=b1,
               gamma=gamma, beta=beta, rm=rm, rv=rv, w2=w2, b2=b2)
    return params, raw


# --------------------- pure-JAX f32 reference of the stand-in -----------------
def pihrnet_ref(x, raw):
    bsz = x.shape[0]
    xd = 0.5 * (x[..., 0::2] + x[..., 1::2])                         # (B,C,H,WD)
    score = jnp.einsum("bchw,c->bhw", xd, raw["wpar"]) + raw["bpar"][0]
    p = (score > 0.0).astype(jnp.float32)[:, None, :, :]             # (B,1,H,WD)
    xcat = jnp.concatenate([xd, xd * p], axis=3)                     # (B,C,H,2WD)
    tok = xcat.reshape(bsz, C, HP, PATCH, (2 * WD) // PATCH, PATCH)
    tok = tok.transpose(0, 2, 4, 1, 3, 5).reshape(bsz, -1, C * PATCH * PATCH)
    feat = jnp.mean(tok, axis=1) @ raw["wp"] + raw["bp"]             # (B,EMBED)
    fpre = feat @ raw["w1"] + raw["b1"]
    f = (fpre - raw["rm"]) / jnp.sqrt(raw["rv"] + BN_EPS) * raw["gamma"] + raw["beta"]
    logits = f @ raw["w2"] + raw["b2"]
    return logits, f


if __name__ == "__main__":
    key = jax.random.PRNGKey(0)
    kx, kp = jax.random.split(key)
    x = jax.random.normal(kx, (B, C, H, W), jnp.float32)   # NCHW input image
    params, raw = init_params(kp)

    logits, feats = pihrnet_forward(x, params)
    jax.block_until_ready((logits, feats))

    assert logits.shape == (B, NCLASS), logits.shape
    assert feats.shape == (B, LINEAR), feats.shape
    assert bool(jnp.all(jnp.isfinite(logits))) and bool(jnp.all(jnp.isfinite(feats)))

    # tolerance-check against the pure-JAX f32 reference (bf16 weights in-kernel)
    ref_logits, ref_f = pihrnet_ref(x, raw)
    assert bool(jnp.allclose(feats, ref_f, rtol=0.1, atol=0.05)), \
        float(jnp.max(jnp.abs(feats - ref_f)))
    assert bool(jnp.allclose(logits, ref_logits, rtol=0.1, atol=5e-3)), \
        float(jnp.max(jnp.abs(logits - ref_logits)))

    print("KERNEL_OK")
</pallas_src>

<mosaic_0001>
module attributes {stable_mosaic.version = 11 : i64} {
  func.func @pihrnet_kernel(%arg0: i32, %arg1: memref<3x16x8x16xf32, #tpu.memory_space<vmem>>, %arg2: memref<3xf32, #tpu.memory_space<smem>>, %arg3: memref<1xf32, #tpu.memory_space<smem>>, %arg4: memref<12x15x2048xbf16, #tpu.memory_space<vmem>>, %arg5: memref<1x2048xf32, #tpu.memory_space<vmem>>, %arg6: memref<2048x512xbf16, #tpu.memory_space<vmem>>, %arg7: memref<1x512xf32, #tpu.memory_space<vmem>>, %arg8: memref<512x128xbf16, #tpu.memory_space<vmem>>, %arg9: memref<1x128xf32, #tpu.memory_space<vmem>>, %arg10: memref<8x128xf32, #tpu.memory_space<vmem>>, %arg11: memref<8x512xf32, #tpu.memory_space<vmem>>) attributes {dimension_semantics = [#tpu.dimension_semantics<parallel>], iteration_bounds = array<i64: 2>, scalar_prefetch = 0 : i64, scratch_operands = 0 : i64, tpu.core_type = #tpu.core_type<tc>, window_params = [{transform_indices = @transform_0, window_bounds = array<i64: 3, 16, 8, 16>}, {transform_indices = @transform_1, window_bounds = array<i64: 3>}, {transform_indices = @transform_2, window_bounds = array<i64: 1>}, {pipeline_mode = #tpu.pipeline_mode<synchronous>, transform_indices = @transform_3, window_bounds = array<i64: 12, 15, 2048>}, {pipeline_mode = #tpu.pipeline_mode<synchronous>, transform_indices = @transform_4, window_bounds = array<i64: 1, 2048>}, {pipeline_mode = #tpu.pipeline_mode<synchronous>, transform_indices = @transform_5, window_bounds = array<i64: 2048, 512>}, {pipeline_mode = #tpu.pipeline_mode<synchronous>, transform_indices = @transform_6, window_bounds = array<i64: 1, 512>}, {pipeline_mode = #tpu.pipeline_mode<synchronous>, transform_indices = @transform_7, window_bounds = array<i64: 512, 128>}, {pipeline_mode = #tpu.pipeline_mode<synchronous>, transform_indices = @transform_8, window_bounds = array<i64: 1, 128>}, {transform_indices = @transform_9, window_bounds = array<i64: 8, 128>}, {transform_indices = @transform_10, window_bounds = array<i64: 8, 512>}]} {
    %cst = arith.constant 0.000000e+00 : f32
    %0 = vector.broadcast %cst : f32 to vector<16x8x15xf32>
    %c0 = arith.constant 0 : index
    %c0_0 = arith.constant 0 : index
    %c0_1 = arith.constant 0 : index
    %c0_2 = arith.constant 0 : index
    %1 = vector.load %arg1[%c0, %c0_0, %c0_1, %c0_2] : memref<3x16x8x16xf32, #tpu.memory_space<vmem>>, vector<1x16x8x16xf32>
    %2 = vector.shape_cast %1 : vector<1x16x8x16xf32> to vector<16x8x16xf32>
    %3 = vector.extract_strided_slice %2 {offsets = [0, 0, 0], sizes = [16, 8, 15], strides = [1, 1, 1]} : vector<16x8x16xf32> to vector<16x8x15xf32>
    %4 = vector.extract_strided_slice %2 {offsets = [0, 0, 1], sizes = [16, 8, 15], strides = [1, 1, 1]} : vector<16x8x16xf32> to vector<16x8x15xf32>
    %5 = arith.addf %3, %4 : vector<16x8x15xf32>
    %cst_3 = arith.constant 5.000000e-01 : f32
    %6 = vector.broadcast %cst_3 : f32 to vector<16x8x15xf32>
    %7 = arith.mulf %6, %5 : vector<16x8x15xf32>
    %c0_4 = arith.constant 0 : index
    %8 = memref.load %arg2[%c0_4] : memref<3xf32, #tpu.memory_space<smem>>
    %9 = vector.broadcast %8 : f32 to vector<16x8x15xf32>
    %10 = arith.mulf %7, %9 : vector<16x8x15xf32>
    %11 = arith.addf %0, %10 : vector<16x8x15xf32>
    %c1 = arith.constant 1 : index
    %c0_5 = arith.constant 0 : index
    %c0_6 = arith.constant 0 : index
    %c0_7 = arith.constant 0 : index
    %12 = vector.load %arg1[%c1, %c0_5, %c0_6, %c0_7] : memref<3x16x8x16xf32, #tpu.memory_space<vmem>>, vector<1x16x8x16xf32>
    %13 = vector.shape_cast %12 : vector<1x16x8x16xf32> to vector<16x8x16xf32>
    %14 = vector.extract_strided_slice %13 {offsets = [0, 0, 0], sizes = [16, 8, 15], strides = [1, 1, 1]} : vector<16x8x16xf32> to vector<16x8x15xf32>
    %15 = vector.extract_strided_slice %13 {offsets = [0, 0, 1], sizes = [16, 8, 15], strides = [1, 1, 1]} : vector<16x8x16xf32> to vector<16x8x15xf32>
    %16 = arith.addf %14, %15 : vector<16x8x15xf32>
    %cst_8 = arith.constant 5.000000e-01 : f32
    %17 = vector.broadcast %cst_8 : f32 to vector<16x8x15xf32>
    %18 = arith.mulf %17, %16 : vector<16x8x15xf32>
    %c1_9 = arith.constant 1 : index
    %19 = memref.load %arg2[%c1_9] : memref<3xf32, #tpu.memory_space<smem>>
    %20 = vector.broadcast %19 : f32 to vector<16x8x15xf32>
    %21 = arith.mulf %18, %20 : vector<16x8x15xf32>
    %22 = arith.addf %11, %21 : vector<16x8x15xf32>
    %c2 = arith.constant 2 : index
    %c0_10 = arith.constant 0 : index
    %c0_11 = arith.constant 0 : index
    %c0_12 = arith.constant 0 : index
    %23 = vector.load %arg1[%c2, %c0_10, %c0_11, %c0_12] : memref<3x16x8x16xf32, #tpu.memory_space<vmem>>, vector<1x16x8x16xf32>
    %24 = vector.shape_cast %23 : vector<1x16x8x16xf32> to vector<16x8x16xf32>
    %25 = vector.extract_strided_slice %24 {offsets = [0, 0, 0], sizes = [16, 8, 15], strides = [1, 1, 1]} : vector<16x8x16xf32> to vector<16x8x15xf32>
    %26 = vector.extract_strided_slice %24 {offsets = [0, 0, 1], sizes = [16, 8, 15], strides = [1, 1, 1]} : vector<16x8x16xf32> to vector<16x8x15xf32>
    %27 = arith.addf %25, %26 : vector<16x8x15xf32>
    %cst_13 = arith.constant 5.000000e-01 : f32
    %28 = vector.broadcast %cst_13 : f32 to vector<16x8x15xf32>
    %29 = arith.mulf %28, %27 : vector<16x8x15xf32>
    %c2_14 = arith.constant 2 : index
    %30 = memref.load %arg2[%c2_14] : memref<3xf32, #tpu.memory_space<smem>>
    %31 = vector.broadcast %30 : f32 to vector<16x8x15xf32>
    %32 = arith.mulf %29, %31 : vector<16x8x15xf32>
    %33 = arith.addf %22, %32 : vector<16x8x15xf32>
    %c0_15 = arith.constant 0 : index
    %34 = memref.load %arg3[%c0_15] : memref<1xf32, #tpu.memory_space<smem>>
    %35 = vector.broadcast %34 : f32 to vector<16x8x15xf32>
    %36 = arith.addf %33, %35 : vector<16x8x15xf32>
    %cst_16 = arith.constant 0.000000e+00 : f32
    %37 = vector.broadcast %cst_16 : f32 to vector<16x8x15xf32>
    %38 = arith.cmpf ogt, %36, %37 : vector<16x8x15xf32>
    %cst_17 = arith.constant 1.000000e+00 : f32
    %cst_18 = arith.constant 5.000000e-01 : f32
    %39 = vector.broadcast %cst_17 : f32 to vector<16x8x15xf32>
    %40 = vector.broadcast %cst_18 : f32 to vector<16x8x15xf32>
    %41 = arith.select %38, %39, %40 : vector<16x8x15xi1>, vector<16x8x15xf32>
    %cst_19 = arith.constant 0.000000e+00 : f32
    %42 = vector.broadcast %cst_19 : f32 to vector<8x2048xf32>
    %c0_20 = arith.constant 0 : index
    %c0_21 = arith.constant 0 : index
    %c0_22 = arith.constant 0 : index
    %c0_23 = arith.constant 0 : index
    %43 = vector.load %arg1[%c0_20, %c0_21, %c0_22, %c0_23] : memref<3x16x8x16xf32, #tpu.memory_space<vmem>>, vector<1x16x8x16xf32>
    %44 = vector.shape_cast %43 : vector<1x16x8x16xf32> to vector<16x8x16xf32>
    %45 = vector.extract_strided_slice %44 {offsets = [0, 0, 0], sizes = [16, 8, 15], strides = [1, 1, 1]} : vector<16x8x16xf32> to vector<16x8x15xf32>
    %46 = vector.extract_strided_slice %44 {offsets = [0, 0, 1], sizes = [16, 8, 15], strides = [1, 1, 1]} : vector<16x8x16xf32> to vector<16x8x15xf32>
    %47 = arith.addf %45, %46 : vector<16x8x15xf32>
    %cst_24 = arith.constant 5.000000e-01 : f32
    %48 = vector.broadcast %cst_24 : f32 to vector<16x8x15xf32>
    %49 = arith.mulf %48, %47 : vector<16x8x15xf32>
    %50 = arith.mulf %49, %41 : vector<16x8x15xf32>
    %51 = vector.shape_cast %50 : vector<16x8x15xf32> to vector<4x4x8x15xf32>
    %cst_25 = arith.constant dense<0.000000e+00> : vector<4x8x15xf32>
    %52 = vector.multi_reduction <add>, %51, %cst_25 [0] : vector<4x4x8x15xf32> to vector<4x8x15xf32>
    %53 = arith.truncf %52 : vector<4x8x15xf32> to vector<4x8x15xbf16>
    %54 = vector.extract_strided_slice %53 {offsets = [0, 0, 0], sizes = [1, 8, 15], strides = [1, 1, 1]} : vector<4x8x15xbf16> to vector<1x8x15xbf16>
    %55 = vector.shape_cast %54 : vector<1x8x15xbf16> to vector<8x15xbf16>
    %c0_26 = arith.constant 0 : index
    %c0_27 = arith.constant 0 : index
    %c0_28 = arith.constant 0 : index
    %56 = vector.load %arg4[%c0_26, %c0_27, %c0_28] : memref<12x15x2048xbf16, #tpu.memory_space<vmem>>, vector<1x15x2048xbf16>
    %57 = vector.shape_cast %56 : vector<1x15x2048xbf16> to vector<15x2048xbf16>
    %cst_29 = arith.constant dense<0.000000e+00> : vector<8x2048xf32>
    %58 = tpu.matmul %55, %57, %cst_29 {dimension_numbers = #tpu.dot_dimension_numbers<[1], [0], [0], [1], [0, 0, 1, 1], [], []>} : vector<8x15xbf16>, vector<15x2048xbf16>, vector<8x2048xf32> -> vector<8x2048xf32>
    %59 = arith.addf %42, %58 : vector<8x2048xf32>
    %60 = vector.extract_strided_slice %53 {offsets = [1, 0, 0], sizes = [1, 8, 15], strides = [1, 1, 1]} : vector<4x8x15xbf16> to vector<1x8x15xbf16>
    %61 = vector.shape_cast %60 : vector<1x8x15xbf16> to vector<8x15xbf16>
    %c1_30 = arith.constant 1 : index
    %c0_31 = arith.constant 0 : index
    %c0_32 = arith.constant 0 : index
    %62 = vector.load %arg4[%c1_30, %c0_31, %c0_32] : memref<12x15x2048xbf16, #tpu.memory_space<vmem>>, vector<1x15x2048xbf16>
    %63 = vector.shape_cast %62 : vector<1x15x2048xbf16> to vector<15x2048xbf16>
    %cst_33 = arith.constant dense<0.000000e+00> : vector<8x2048xf32>
    %64 = tpu.matmul %61, %63, %cst_33 {dimension_numbers = #tpu.dot_dimension_numbers<[1], [0], [0], [1], [0, 0, 1, 1], [], []>} : vector<8x15xbf16>, vector<15x2048xbf16>, vector<8x2048xf32> -> vector<8x2048xf32>
    %65 = arith.addf %59, %64 : vector<8x2048xf32>
    %66 = vector.extract_strided_slice %53 {offsets = [2, 0, 0], sizes = [1, 8, 15], strides = [1, 1, 1]} : vector<4x8x15xbf16> to vector<1x8x15xbf16>
    %67 = vector.shape_cast %66 : vector<1x8x15xbf16> to vector<8x15xbf16>
    %c2_34 = arith.constant 2 : index
    %c0_35 = arith.constant 0 : index
    %c0_36 = arith.constant 0 : index
    %68 = vector.load %arg4[%c2_34, %c0_35, %c0_36] : memref<12x15x2048xbf16, #tpu.memory_space<vmem>>, vector<1x15x2048xbf16>
    %69 = vector.shape_cast %68 : vector<1x15x2048xbf16> to vector<15x2048xbf16>
    %cst_37 = arith.constant dense<0.000000e+00> : vector<8x2048xf32>
    %70 = tpu.matmul %67, %69, %cst_37 {dimension_numbers = #tpu.dot_dimension_numbers<[1], [0], [0], [1], [0, 0, 1, 1], [], []>} : vector<8x15xbf16>, vector<15x2048xbf16>, vector<8x2048xf32> -> vector<8x2048xf32>
    %71 = arith.addf %65, %70 : vector<8x2048xf32>
    %72 = vector.extract_strided_slice %53 {offsets = [3, 0, 0], sizes = [1, 8, 15], strides = [1, 1, 1]} : vector<4x8x15xbf16> to vector<1x8x15xbf16>
    %73 = vector.shape_cast %72 : vector<1x8x15xbf16> to vector<8x15xbf16>
    %c3 = arith.constant 3 : index
    %c0_38 = arith.constant 0 : index
    %c0_39 = arith.constant 0 : index
    %74 = vector.load %arg4[%c3, %c0_38, %c0_39] : memref<12x15x2048xbf16, #tpu.memory_space<vmem>>, vector<1x15x2048xbf16>
    %75 = vector.shape_cast %74 : vector<1x15x2048xbf16> to vector<15x2048xbf16>
    %cst_40 = arith.constant dense<0.000000e+00> : vector<8x2048xf32>
    %76 = tpu.matmul %73, %75, %cst_40 {dimension_numbers = #tpu.dot_dimension_numbers<[1], [0], [0], [1], [0, 0, 1, 1], [], []>} : vector<8x15xbf16>, vector<15x2048xbf16>, vector<8x2048xf32> -> vector<8x2048xf32>
    %77 = arith.addf %71, %76 : vector<8x2048xf32>
    %c1_41 = arith.constant 1 : index
    %c0_42 = arith.constant 0 : index
    %c0_43 = arith.constant 0 : index
    %c0_44 = arith.constant 0 : index
    %78 = vector.load %arg1[%c1_41, %c0_42, %c0_43, %c0_44] : memref<3x16x8x16xf32, #tpu.memory_space<vmem>>, vector<1x16x8x16xf32>
    %79 = vector.shape_cast %78 : vector<1x16x8x16xf32> to vector<16x8x16xf32>
    %80 = vector.extract_strided_slice %79 {offsets = [0, 0, 0], sizes = [16, 8, 15], strides = [1, 1, 1]} : vector<16x8x16xf32> to vector<16x8x15xf32>
    %81 = vector.extract_strided_slice %79 {offsets = [0, 0, 1], sizes = [16, 8, 15], strides = [1, 1, 1]} : vector<16x8x16xf32> to vector<16x8x15xf32>
    %82 = arith.addf %80, %81 : vector<16x8x15xf32>
    %cst_45 = arith.constant 5.000000e-01 : f32
    %83 = vector.broadcast %cst_45 : f32 to vector<16x8x15xf32>
    %84 = arith.mulf %83, %82 : vector<16x8x15xf32>
    %85 = arith.mulf %84, %41 : vector<16x8x15xf32>
    %86 = vector.shape_cast %85 : vector<16x8x15xf32> to vector<4x4x8x15xf32>
    %cst_46 = arith.constant dense<0.000000e+00> : vector<4x8x15xf32>
    %87 = vector.multi_reduction <add>, %86, %cst_46 [0] : vector<4x4x8x15xf32> to vector<4x8x15xf32>
    %88 = arith.truncf %87 : vector<4x8x15xf32> to vector<4x8x15xbf16>
    %89 = vector.extract_strided_slice %88 {offsets = [0, 0, 0], sizes = [1, 8, 15], strides = [1, 1, 1]} : vector<4x8x15xbf16> to vector<1x8x15xbf16>
    %90 = vector.shape_cast %89 : vector<1x8x15xbf16> to vector<8x15xbf16>
    %c4 = arith.constant 4 : index
    %c0_47 = arith.constant 0 : index
    %c0_48 = arith.constant 0 : index
    %91 = vector.load %arg4[%c4, %c0_47, %c0_48] : memref<12x15x2048xbf16, #tpu.memory_space<vmem>>, vector<1x15x2048xbf16>
    %92 = vector.shape_cast %91 : vector<1x15x2048xbf16> to vector<15x2048xbf16>
    %cst_49 = arith.constant dense<0.000000e+00> : vector<8x2048xf32>
    %93 = tpu.matmul %90, %92, %cst_49 {dimension_numbers = #tpu.dot_dimension_numbers<[1], [0], [0], [1], [0, 0, 1, 1], [], []>} : vector<8x15xbf16>, vector<15x2048xbf16>, vector<8x2048xf32> -> vector<8x2048xf32>
    %94 = arith.addf %77, %93 : vector<8x2048xf32>
    %95 = vector.extract_strided_slice %88 {offsets = [1, 0, 0], sizes = [1, 8, 15], strides = [1, 1, 1]} : vector<4x8x15xbf16> to vector<1x8x15xbf16>
    %96 = vector.shape_cast %95 : vector<1x8x15xbf16> to vector<8x15xbf16>
    %c5 = arith.constant 5 : index
    %c0_50 = arith.constant 0 : index
    %c0_51 = arith.constant 0 : index
    %97 = vector.load %arg4[%c5, %c0_50, %c0_51] : memref<12x15x2048xbf16, #tpu.memory_space<vmem>>, vector<1x15x2048xbf16>
    %98 = vector.shape_cast %97 : vector<1x15x2048xbf16> to vector<15x2048xbf16>
    %cst_52 = arith.constant dense<0.000000e+00> : vector<8x2048xf32>
    %99 = tpu.matmul %96, %98, %cst_52 {dimension_numbers = #tpu.dot_dimension_numbers<[1], [0], [0], [1], [0, 0, 1, 1], [], []>} : vector<8x15xbf16>, vector<15x2048xbf16>, vector<8x2048xf32> -> vector<8x2048xf32>
    %100 = arith.addf %94, %99 : vector<8x2048xf32>
    %101 = vector.extract_strided_slice %88 {offsets = [2, 0, 0], sizes = [1, 8, 15], strides = [1, 1, 1]} : vector<4x8x15xbf16> to vector<1x8x15xbf16>
    %102 = vector.shape_cast %101 : vector<1x8x15xbf16> to vector<8x15xbf16>
    %c6 = arith.constant 6 : index
    %c0_53 = arith.constant 0 : index
    %c0_54 = arith.constant 0 : index
    %103 = vector.load %arg4[%c6, %c0_53, %c0_54] : memref<12x15x2048xbf16, #tpu.memory_space<vmem>>, vector<1x15x2048xbf16>
    %104 = vector.shape_cast %103 : vector<1x15x2048xbf16> to vector<15x2048xbf16>
    %cst_55 = arith.constant dense<0.000000e+00> : vector<8x2048xf32>
    %105 = tpu.matmul %102, %104, %cst_55 {dimension_numbers = #tpu.dot_dimension_numbers<[1], [0], [0], [1], [0, 0, 1, 1], [], []>} : vector<8x15xbf16>, vector<15x2048xbf16>, vector<8x2048xf32> -> vector<8x2048xf32>
    %106 = arith.addf %100, %105 : vector<8x2048xf32>
    %107 = vector.extract_strided_slice %88 {offsets = [3, 0, 0], sizes = [1, 8, 15], strides = [1, 1, 1]} : vector<4x8x15xbf16> to vector<1x8x15xbf16>
    %108 = vector.shape_cast %107 : vector<1x8x15xbf16> to vector<8x15xbf16>
    %c7 = arith.constant 7 : index
    %c0_56 = arith.constant 0 : index
    %c0_57 = arith.constant 0 : index
    %109 = vector.load %arg4[%c7, %c0_56, %c0_57] : memref<12x15x2048xbf16, #tpu.memory_space<vmem>>, vector<1x15x2048xbf16>
    %110 = vector.shape_cast %109 : vector<1x15x2048xbf16> to vector<15x2048xbf16>
    %cst_58 = arith.constant dense<0.000000e+00> : vector<8x2048xf32>
    %111 = tpu.matmul %108, %110, %cst_58 {dimension_numbers = #tpu.dot_dimension_numbers<[1], [0], [0], [1], [0, 0, 1, 1], [], []>} : vector<8x15xbf16>, vector<15x2048xbf16>, vector<8x2048xf32> -> vector<8x2048xf32>
    %112 = arith.addf %106, %111 : vector<8x2048xf32>
    %c2_59 = arith.constant 2 : index
    %c0_60 = arith.constant 0 : index
    %c0_61 = arith.constant 0 : index
    %c0_62 = arith.constant 0 : index
    %113 = vector.load %arg1[%c2_59, %c0_60, %c0_61, %c0_62] : memref<3x16x8x16xf32, #tpu.memory_space<vmem>>, vector<1x16x8x16xf32>
    %114 = vector.shape_cast %113 : vector<1x16x8x16xf32> to vector<16x8x16xf32>
    %115 = vector.extract_strided_slice %114 {offsets = [0, 0, 0], sizes = [16, 8, 15], strides = [1, 1, 1]} : vector<16x8x16xf32> to vector<16x8x15xf32>
    %116 = vector.extract_strided_slice %114 {offsets = [0, 0, 1], sizes = [16, 8, 15], strides = [1, 1, 1]} : vector<16x8x16xf32> to vector<16x8x15xf32>
    %117 = arith.addf %115, %116 : vector<16x8x15xf32>
    %cst_63 = arith.constant 5.000000e-01 : f32
    %118 = vector.broadcast %cst_63 : f32 to vector<16x8x15xf32>
    %119 = arith.mulf %118, %117 : vector<16x8x15xf32>
    %120 = arith.mulf %119, %41 : vector<16x8x15xf32>
    %121 = vector.shape_cast %120 : vector<16x8x15xf32> to vector<4x4x8x15xf32>
    %cst_64 = arith.constant dense<0.000000e+00> : vector<4x8x15xf32>
    %122 = vector.multi_reduction <add>, %121, %cst_64 [0] : vector<4x4x8x15xf32> to vector<4x8x15xf32>
    %123 = arith.truncf %122 : vector<4x8x15xf32> to vector<4x8x15xbf16>
    %124 = vector.extract_strided_slice %123 {offsets = [0, 0, 0], sizes = [1, 8, 15], strides = [1, 1, 1]} : vector<4x8x15xbf16> to vector<1x8x15xbf16>
    %125 = vector.shape_cast %124 : vector<1x8x15xbf16> to vector<8x15xbf16>
    %c8 = arith.constant 8 : index
    %c0_65 = arith.constant 0 : index
    %c0_66 = arith.constant 0 : index
    %126 = vector.load %arg4[%c8, %c0_65, %c0_66] : memref<12x15x2048xbf16, #tpu.memory_space<vmem>>, vector<1x15x2048xbf16>
    %127 = vector.shape_cast %126 : vector<1x15x2048xbf16> to vector<15x2048xbf16>
    %cst_67 = arith.constant dense<0.000000e+00> : vector<8x2048xf32>
    %128 = tpu.matmul %125, %127, %cst_67 {dimension_numbers = #tpu.dot_dimension_numbers<[1], [0], [0], [1], [0, 0, 1, 1], [], []>} : vector<8x15xbf16>, vector<15x2048xbf16>, vector<8x2048xf32> -> vector<8x2048xf32>
    %129 = arith.addf %112, %128 : vector<8x2048xf32>
    %130 = vector.extract_strided_slice %123 {offsets = [1, 0, 0], sizes = [1, 8, 15], strides = [1, 1, 1]} : vector<4x8x15xbf16> to vector<1x8x15xbf16>
    %131 = vector.shape_cast %130 : vector<1x8x15xbf16> to vector<8x15xbf16>
    %c9 = arith.constant 9 : index
    %c0_68 = arith.constant 0 : index
    %c0_69 = arith.constant 0 : index
    %132 = vector.load %arg4[%c9, %c0_68, %c0_69] : memref<12x15x2048xbf16, #tpu.memory_space<vmem>>, vector<1x15x2048xbf16>
    %133 = vector.shape_cast %132 : vector<1x15x2048xbf16> to vector<15x2048xbf16>
    %cst_70 = arith.constant dense<0.000000e+00> : vector<8x2048xf32>
    %134 = tpu.matmul %131, %133, %cst_70 {dimension_numbers = #tpu.dot_dimension_numbers<[1], [0], [0], [1], [0, 0, 1, 1], [], []>} : vector<8x15xbf16>, vector<15x2048xbf16>, vector<8x2048xf32> -> vector<8x2048xf32>
    %135 = arith.addf %129, %134 : vector<8x2048xf32>
    %136 = vector.extract_strided_slice %123 {offsets = [2, 0, 0], sizes = [1, 8, 15], strides = [1, 1, 1]} : vector<4x8x15xbf16> to vector<1x8x15xbf16>
    %137 = vector.shape_cast %136 : vector<1x8x15xbf16> to vector<8x15xbf16>
    %c10 = arith.constant 10 : index
    %c0_71 = arith.constant 0 : index
    %c0_72 = arith.constant 0 : index
    %138 = vector.load %arg4[%c10, %c0_71, %c0_72] : memref<12x15x2048xbf16, #tpu.memory_space<vmem>>, vector<1x15x2048xbf16>
    %139 = vector.shape_cast %138 : vector<1x15x2048xbf16> to vector<15x2048xbf16>
    %cst_73 = arith.constant dense<0.000000e+00> : vector<8x2048xf32>
    %140 = tpu.matmul %137, %139, %cst_73 {dimension_numbers = #tpu.dot_dimension_numbers<[1], [0], [0], [1], [0, 0, 1, 1], [], []>} : vector<8x15xbf16>, vector<15x2048xbf16>, vector<8x2048xf32> -> vector<8x2048xf32>
    %141 = arith.addf %135, %140 : vector<8x2048xf32>
    %142 = vector.extract_strided_slice %123 {offsets = [3, 0, 0], sizes = [1, 8, 15], strides = [1, 1, 1]} : vector<4x8x15xbf16> to vector<1x8x15xbf16>
    %143 = vector.shape_cast %142 : vector<1x8x15xbf16> to vector<8x15xbf16>
    %c11 = arith.constant 11 : index
    %c0_74 = arith.constant 0 : index
    %c0_75 = arith.constant 0 : index
    %144 = vector.load %arg4[%c11, %c0_74, %c0_75] : memref<12x15x2048xbf16, #tpu.memory_space<vmem>>, vector<1x15x2048xbf16>
    %145 = vector.shape_cast %144 : vector<1x15x2048xbf16> to vector<15x2048xbf16>
    %cst_76 = arith.constant dense<0.000000e+00> : vector<8x2048xf32>
    %146 = tpu.matmul %143, %145, %cst_76 {dimension_numbers = #tpu.dot_dimension_numbers<[1], [0], [0], [1], [0, 0, 1, 1], [], []>} : vector<8x15xbf16>, vector<15x2048xbf16>, vector<8x2048xf32> -> vector<8x2048xf32>
    %147 = arith.addf %141, %146 : vector<8x2048xf32>
    %c0_77 = arith.constant 0 : index
    %c0_78 = arith.constant 0 : index
    %148 = vector.load %arg5[%c0_77, %c0_78] : memref<1x2048xf32, #tpu.memory_space<vmem>>, vector<1x2048xf32>
    %149 = vector.broadcast %148 : vector<1x2048xf32> to vector<8x2048xf32>
    %150 = arith.addf %147, %149 : vector<8x2048xf32>
    %151 = arith.truncf %150 : vector<8x2048xf32> to vector<8x2048xbf16>
    %c0_79 = arith.constant 0 : index
    %c0_80 = arith.constant 0 : index
    %152 = vector.load %arg6[%c0_79, %c0_80] : memref<2048x512xbf16, #tpu.memory_space<vmem>>, vector<2048x512xbf16>
    %cst_81 = arith.constant dense<0.000000e+00> : vector<8x512xf32>
    %153 = tpu.matmul %151, %152, %cst_81 {dimension_numbers = #tpu.dot_dimension_numbers<[1], [0], [0], [1], [0, 0, 1, 1], [], []>} : vector<8x2048xbf16>, vector<2048x512xbf16>, vector<8x512xf32> -> vector<8x512xf32>
    %c0_82 = arith.constant 0 : index
    %c0_83 = arith.constant 0 : index
    %154 = vector.load %arg7[%c0_82, %c0_83] : memref<1x512xf32, #tpu.memory_space<vmem>>, vector<1x512xf32>
    %155 = vector.broadcast %154 : vector<1x512xf32> to vector<8x512xf32>
    %156 = arith.addf %153, %155 : vector<8x512xf32>
    %c0_84 = arith.constant 0 : index
    %c0_85 = arith.constant 0 : index
    %157 = vector.load %arg11[%c0_84, %c0_85] : memref<8x512xf32, #tpu.memory_space<vmem>>, vector<8x512xf32>
    tpu.vector_store %arg11[%c0_84, %c0_85], %156 {strides = array<i32>} : memref<8x512xf32, #tpu.memory_space<vmem>>, vector<8x512xf32>,
    %158 = arith.truncf %156 : vector<8x512xf32> to vector<8x512xbf16>
    %c0_86 = arith.constant 0 : index
    %c0_87 = arith.constant 0 : index
    %159 = vector.load %arg8[%c0_86, %c0_87] : memref<512x128xbf16, #tpu.memory_space<vmem>>, vector<512x128xbf16>
    %cst_88 = arith.constant dense<0.000000e+00> : vector<8x128xf32>
    %160 = tpu.matmul %158, %159, %cst_88 {dimension_numbers = #tpu.dot_dimension_numbers<[1], [0], [0], [1], [0, 0, 1, 1], [], []>} : vector<8x512xbf16>, vector<512x128xbf16>, vector<8x128xf32> -> vector<8x128xf32>
    %c0_89 = arith.constant 0 : index
    %c0_90 = arith.constant 0 : index
    %161 = vector.load %arg9[%c0_89, %c0_90] : memref<1x128xf32, #tpu.memory_space<vmem>>, vector<1x128xf32>
    %162 = vector.broadcast %161 : vector<1x128xf32> to vector<8x128xf32>
    %163 = arith.addf %160, %162 : vector<8x128xf32>
    %c0_91 = arith.constant 0 : index
    %c0_92 = arith.constant 0 : index
    %164 = vector.load %arg10[%c0_91, %c0_92] : memref<8x128xf32, #tpu.memory_space<vmem>>, vector<8x128xf32>
    tpu.vector_store %arg10[%c0_91, %c0_92], %163 {strides = array<i32>} : memref<8x128xf32, #tpu.memory_space<vmem>>, vector<8x128xf32>,
    return
  }
  func.func @transform_0(%arg0: i32) -> (i32, i32, i32, i32) {
    %c0_i32 = arith.constant 0 : i32
    %c0_i32_0 = arith.constant 0 : i32
    %c0_i32_1 = arith.constant 0 : i32
    %c0_i32_2 = arith.constant 0 : i32
    return %c0_i32, %c0_i32_0, %arg0, %c0_i32_1 : i32, i32, i32, i32
  }
  func.func @transform_1(%arg0: i32) -> i32 {
    %c0_i32 = arith.constant 0 : i32
    %c0_i32_0 = arith.constant 0 : i32
    return %c0_i32 : i32
  }
  func.func @transform_2(%arg0: i32) -> i32 {
    %c0_i32 = arith.constant 0 : i32
    %c0_i32_0 = arith.constant 0 : i32
    return %c0_i32 : i32
  }
  func.func @transform_3(%arg0: i32) -> (i32, i32, i32) {
    %c0_i32 = arith.constant 0 : i32
    %c0_i32_0 = arith.constant 0 : i32
    %c0_i32_1 = arith.constant 0 : i32
    %c0_i32_2 = arith.constant 0 : i32
    return %c0_i32, %c0_i32_0, %c0_i32_1 : i32, i32, i32
  }
  func.func @transform_4(%arg0: i32) -> (i32, i32) {
    %c0_i32 = arith.constant 0 : i32
    %c0_i32_0 = arith.constant 0 : i32
    %c0_i32_1 = arith.constant 0 : i32
    return %c0_i32, %c0_i32_0 : i32, i32
  }
  func.func @transform_5(%arg0: i32) -> (i32, i32) {
    %c0_i32 = arith.constant 0 : i32
    %c0_i32_0 = arith.constant 0 : i32
    %c0_i32_1 = arith.constant 0 : i32
    return %c0_i32, %c0_i32_0 : i32, i32
  }
  func.func @transform_6(%arg0: i32) -> (i32, i32) {
    %c0_i32 = arith.constant 0 : i32
    %c0_i32_0 = arith.constant 0 : i32
    %c0_i32_1 = arith.constant 0 : i32
    return %c0_i32, %c0_i32_0 : i32, i32
  }
  func.func @transform_7(%arg0: i32) -> (i32, i32) {
    %c0_i32 = arith.constant 0 : i32
    %c0_i32_0 = arith.constant 0 : i32
    %c0_i32_1 = arith.constant 0 : i32
    return %c0_i32, %c0_i32_0 : i32, i32
  }
  func.func @transform_8(%arg0: i32) -> (i32, i32) {
    %c0_i32 = arith.constant 0 : i32
    %c0_i32_0 = arith.constant 0 : i32
    %c0_i32_1 = arith.constant 0 : i32
    return %c0_i32, %c0_i32_0 : i32, i32
  }
  func.func @transform_9(%arg0: i32) -> (i32, i32) {
    %c0_i32 = arith.constant 0 : i32
    %c0_i32_0 = arith.constant 0 : i32
    return %arg0, %c0_i32 : i32, i32
  }
  func.func @transform_10(%arg0: i32) -> (i32, i32) {
    %c0_i32 = arith.constant 0 : i32
    %c0_i32_0 = arith.constant 0 : i32
    return %arg0, %c0_i32 : i32, i32
  }
}

</mosaic_0001>

<bundles_post_ra>
// kernel: pihrnet_forward.1
= control target key start
LH: loop header
LB: loop body
LE: loop exit
PB: predicated region body
PF: predicated region fallthrough
CT: control target
= control target key end

     0   :  { %s15861_s0 = inlined_call_operand.vmem [shape: f32[3,16,16,16], index: 0, kind: input, shape index: {}]   ;;  %s15862_s1 = inlined_call_operand.hbm [shape: f32[3], index: 1, kind: input, shape index: {}]   ;;  %s15863_s2 = inlined_call_operand.<no memory space> [shape: f32[1], index: 2, kind: input, shape index: {}]   ;;  %s15864_s3 = inlined_call_operand.hbm [shape: bf16[12,15,2048], index: 3, kind: input, shape index: {}]   ;;  %s15865_s4 = inlined_call_operand.hbm [shape: f32[1,2048], index: 4, kind: input, shape index: {}]   ;;  %s15866_s5 = inlined_call_operand.hbm [shape: bf16[2048,512], index: 5, kind: input, shape index: {}]   ;;  %s15867_s6 = inlined_call_operand.hbm [shape: f32[1,512], index: 6, kind: input, shape index: {}]   ;;  %s15868_s7 = inlined_call_operand.hbm [shape: bf16[512,128], index: 7, kind: input, shape index: {}]   ;;  %s15869_s8 = inlined_call_operand.hbm [shape: f32[1,128], index: 8, kind: input, shape index: {}]   ;;  %s15870_s9 = inlined_call_operand.hbm [shape: f32[16,128], index: 9, kind: output, shape index: {0}]   ;;  %s15871_s10 = inlined_call_operand.hbm [shape: f32[16,512], index: 10, kind: output, shape index: {1}]  }
   0x1   :  { %15877 = sst [smem:[#allocation27_spill]] %s15862_s1 }
   0x2   :  { %15878 = sst [smem:[#allocation28_spill]] %s15865_s4 }
   0x3   :  { %16 = sst [smem:[#allocation2]] %s15863_s2 }
   0x4   :  { %17 = vsyncpa [#allocation7], 0 }
   0x5   :  { %18 = vsyncpa [#allocation5], 0 }
   0x6   :  { %19 = vsyncpa [#allocation10], 0 }
   0x7   :  { %20 = vsyncpa [#allocation13], 0 }
   0x8   :  { %21 = vsyncpa [#allocation16], 0 }
   0x9   :  { %22 = vsyncpa [#allocation6], 0 }
   0xa   :  { %24 = vsyncpa [#allocation6 + $0x1], 0 }
   0xb   :  { %25 = vsyncpa [#allocation19], 0 }
   0xc   :  { %27 = vsyncpa [#allocation19 + $0x1], 0  ;;  %s13686_s15 = smov 0   ;;  %s13688_s16 = smov 0  }
   0xd   :  { %s13690_s17 = smov 0   ;;  %s13692_s18 = smov 0  }
   0xe LB: > { %s13707_s2 = sadd.s32 4294967295, %s13608_s18   ;;  %s11426_s19 = sadd.s32 4294967294, %s13608_s18   ;;  %s13608_s18 = sphi %s13692_s18, %s15907_s18   ;;  %s13604_s17 = sphi %s13690_s17, %s15906_s17   ;;  %s13600_s16 = sphi %s13688_s16, %s15905_s16   ;;  %s13596_s15 = sphi %s13686_s15, %s15904_s15  }
   0xf   : > { %s13711_s20 = sadd.s32 1, %s13608_s18   ;;  %s40_s21 = sadd.s32 1, %s13604_s17 }
  0x10   : > { %s37_s22 = ssub.s32 %s13608_s18, %s13711_s20  ;;  %p47_p0 = scmp.ne.s32.totalorder %s13604_s17, %s13600_s16 }
  0x11   : > { %p38_p1 = scmp.eq.s32.totalorder %s37_s22, 0  ;;  %p48_p2 = scmp.eq.s32.totalorder %s13608_s18, 0 }
  0x12   : > { %p245_p3 = scmp.eq.s32.totalorder %s13707_s2, 1  ;;  %p250_p4 = scmp.ne.s32.totalorder %s13600_s16, %s13596_s15 }
  0x13   : > { %s13723_s23 = scalar_select %p38_p1, %s13604_s17, %s40_s21  }
  0x14   : > { %p13725_p5 = por %p48_p2, %p47_p0  ;;  %p13729_p6 = por %p245_p3, %p47_p0 }
  0x15   : > { %p251_p7 = scmp.eq.s32.totalorder %s11426_s19, 1  ;;  %p11427_p8 = scmp.ge.s32.totalorder %s13608_s18, 1 }
  0x16   : > { %s15879_s24 = scalar_select %p13725_p5, 1, 0 }
  0x17   : > { %s15880_s25 = scalar_select %p13729_p6, 1, 0 }
  0x18   : > { %p284_p9 = scmp.lt.s32.totalorder %s13608_s18, 3  ;;  %p13735_p10 = por %p251_p7, %p250_p4 }
  0x19   : > { %p15872_p11 = scmp.eq.s32.totalorder %s13707_s2, 0  ;;  %s13610_s28 = smov [#allocation9]  }
  0x1a   : > { %s15881_s26 = scalar_select %p13735_p10, 1, 0 }
  0x1b   : > { %p13740_p12 = pnand %p11427_p8, %p284_p9  ;;  %s322_s29 = sshll.u32 %s13610_s28, 4  ;;  %s323_s29 = int_to_ptr.vmem [resolvable:$true] %s322_s29 }
  0x1c   : > { %s13611_s30 = smov [#allocation12]   ;;  %s13612_s13 = smov [#allocation8]  }
  0x1d   : > { %s15882_s27 = scalar_select %p13740_p12, 1, 0 }
  0x1e   : > { %p12400_p13 = pneg %p13740_p12  ;;  %s346_s11 = sshll.u32 %s13611_s30, 4  ;;  %s347_s11 = int_to_ptr.vmem [resolvable:$true] %s346_s11 }
  0x1f   : > { %s308_s14 = sshll.u32 %s13612_s13, 4  ;;  %s13342_s21 = scalar_lea.vmem %s323_s29, 256  ;;  %s309_s14 = int_to_ptr.vmem [resolvable:$true] %s308_s14 }
  0x20   : > { %p13748_p0 = pnand %p15872_p11, %p12400_p13  ;;  %p13343_p2 = scmp.ne.s32.totalorder %s323_s29, %s13342_s21 }
  0x21   : > { %p13350_p7 = scmp.lt.s32.totalorder %s323_s29, %s323_s29  ;;  %p13351_p8 = scmp.lt.s32.totalorder %s13342_s21, %s13342_s21 }
  0x22   : > { %p13754_p1 = pneg %p13748_p0 }
  0x23   : > { %p13352_p9 = por %p13351_p8, %p13350_p7 }
  0x24   : > { %p13345_p3 = pnand %p13343_p2, %p13754_p1 }
  0x26   : > { %p13346_p4 = pneg %p13345_p3 }
  0x28   : > { %p13353_p13 = pnand %p13352_p9, %p13346_p4 }
  0x2a   : > { %13356 = shalt.err (!%p13353_p13)
}
  0x2b   : > { %s15885_s4 = sld [smem:[#allocation28_spill]]  ;;  %s13368_s30 = scalar_lea.vmem %s347_s11, 64 }
  0x2c   : > { %p13369_p11 = scmp.ne.s32.totalorder %s347_s11, %s13368_s30  ;;  %p13376_p12 = scmp.lt.s32.totalorder %s347_s11, %s347_s11 }
  0x2d   : > { %p13377_p2 = scmp.lt.s32.totalorder %s13368_s30, %s13368_s30 }
  0x2e   : > { %p13371_p10 = pnand %p13369_p11, %p13754_p1 }
  0x2f   : > { %p13378_p3 = por %p13377_p2, %p13376_p12 }
  0x30   : > { %p13372_p6 = pneg %p13371_p10 }
  0x31   : > { %12409 = dma.hbm_to_vmem [thread:$0]  (!%p13748_p0), %s15885_s4, 256, %s323_s29, [#allocation10]  }
  0x32   : > { %p13379_p5 = pnand %p13378_p3, %p13372_p6 }
  0x34   : > { %13382 = shalt.err (!%p13379_p5)
}
  0x35   : > { %12415 = dma.hbm_to_vmem [thread:$0]  (!%p13748_p0), %s15867_s6, 64, %s347_s11, [#allocation13]  }
  0x36   : > { %s13613_s22 = smov [#allocation4]   ;;  %s15886_s1 = sld [smem:[#allocation27_spill]] }
  0x37   : > { %s13405_s4 = scalar_lea.vmem %s309_s14, 24576  ;;  %p13413_p11 = scmp.lt.s32.totalorder %s309_s14, %s309_s14 }
  0x38   : > { %p13406_p10 = scmp.ne.s32.totalorder %s309_s14, %s13405_s4  ;;  %p13414_p12 = scmp.lt.s32.totalorder %s13405_s4, %s13405_s4 }
  0x3a   : > { %p13408_p6 = pnand %p13406_p10, %p13754_p1  ;;  %p13415_p4 = por %p13414_p12, %p13413_p11 }
  0x3c   : > { %12403 = dma.hbm_to_smem (!%p13748_p0), %s15886_s1, 16, %s13613_s22, [#allocation7]  }
  0x3d   : > { %p13409_p5 = pneg %p13408_p6 }
  0x3f   : > { %p13416_p7 = pnand %p13415_p4, %p13409_p5 }
  0x41   : > { %13419 = shalt.err (!%p13416_p7)
}
  0x42   : > { %s13614_s30 = smov 1024   ;;  %s13615_s11 = smov 64  }
  0x43   : > { %12406 = dma.hbm_to_vmem [thread:$0]  (!%p13748_p0), %s15864_s3, 24576, %s309_s14, [#allocation5], %s13614_s30, %s13614_s30, %s13615_s11  }
  0x44   : > { %s13616_s22 = smov [#allocation11]  }
  0x45   : > { %s332_s29 = sshll.u32 %s13616_s22, 4  ;;  %s333_s29 = int_to_ptr.vmem [resolvable:$true] %s332_s29 }
  0x46   : > { %s13431_s28 = scalar_lea.vmem %s333_s29, 65536  ;;  %p13439_p2 = scmp.lt.s32.totalorder %s333_s29, %s333_s29 }
  0x47   : > { %p13432_p8 = scmp.ne.s32.totalorder %s333_s29, %s13431_s28  ;;  %p13440_p3 = scmp.lt.s32.totalorder %s13431_s28, %s13431_s28 }
  0x49   : > { %p13434_p9 = pnand %p13432_p8, %p13754_p1  ;;  %p13441_p10 = por %p13440_p3, %p13439_p2 }
  0x4b   : > { %p13435_p13 = pneg %p13434_p9 }
  0x4d   : > { %p13442_p6 = pnand %p13441_p10, %p13435_p13 }
  0x4f   : > { %13445 = shalt.err (!%p13442_p6)
}
  0x50   : > { %s13617_s4 = smov 256   ;;  %s13618_s1 = smov 16  }
  0x51   : > { %12412 = dma.hbm_to_vmem [thread:$0]  (!%p13748_p0), %s15866_s5, 65536, %s333_s29, [#allocation10], %s13617_s4, %s13617_s4, %s13618_s1  }
  0x52   : > { %s13619_s30 = smov [#allocation14]  }
  0x53   : > { %s356_s21 = sshll.u32 %s13619_s30, 4  ;;  %s357_s21 = int_to_ptr.vmem [resolvable:$true] %s356_s21 }
  0x54   : > { %s13457_s22 = scalar_lea.vmem %s357_s21, 4096  ;;  %p13465_p4 = scmp.lt.s32.totalorder %s357_s21, %s357_s21 }
  0x55   : > { %p13458_p5 = scmp.ne.s32.totalorder %s357_s21, %s13457_s22  ;;  %p13466_p7 = scmp.lt.s32.totalorder %s13457_s22, %s13457_s22 }
  0x57   : > { %p13460_p11 = pnand %p13458_p5, %p13754_p1  ;;  %p13467_p8 = por %p13466_p7, %p13465_p4 }
  0x59   : > { %p13461_p12 = pneg %p13460_p11 }
  0x5b   : > { %p13468_p9 = pnand %p13467_p8, %p13461_p12 }
  0x5d   : > { %13471 = shalt.err (!%p13468_p9)
}
  0x5e   : > { %s13620_s28 = smov 4   ;;  %s13621_s29 = smov [#allocation15]  }
  0x5f   : > { %12418 = dma.hbm_to_vmem [thread:$0]  (!%p13748_p0), %s15868_s7, 4096, %s357_s21, [#allocation13], %s13615_s11, %s13615_s11, %s13620_s28  }
  0x60   : > { %s370_s4 = sshll.u32 %s13621_s29, 4  ;;  %s371_s4 = int_to_ptr.vmem [resolvable:$true] %s370_s4 }
  0x61   : > { %s13483_s14 = scalar_lea.vmem %s371_s4, 16  ;;  %s13490_s30 = scalar_lea.vmem %s371_s4, 32 }
  0x62   : > { %p13484_p13 = scmp.ne.s32.totalorder %s371_s4, %s13483_s14  ;;  %p13491_p10 = scmp.lt.s32.totalorder %s371_s4, %s371_s4 }
  0x63   : > { %p13492_p6 = scmp.lt.s32.totalorder %s13490_s30, %s13483_s14 }
  0x64   : > { %p13486_p2 = pnand %p13484_p13, %p13754_p1 }
  0x65   : > { %p13493_p5 = por %p13492_p6, %p13491_p10 }
  0x66   : > { %p13487_p3 = pneg %p13486_p2 }
  0x68   : > { %p13494_p11 = pnand %p13493_p5, %p13487_p3 }
  0x6a   : > { %13497 = shalt.err (!%p13494_p11)
}
  0x6b   : > { %12421 = dma.hbm_to_vmem [thread:$0]  (!%p13748_p0), %s15869_s8, 16, %s371_s4, [#allocation16]  }
  0x6c   : > { %p11435_p12 = scmp.ge.s32.totalorder %s13608_s18, 2 }
  0x6d   : > { %p15887_p1 = scmp.ne.s32.totalorder (!%p11435_p12), %s15879_s24, 0 }
  0x6e   : > { %377 = sbr.rel (%p11435_p12) target bundleno = 143 (0x8f), region = 48 }
  0x73   : > { %380 = sbr.rel (!%p15887_p1) target bundleno = 143 (0x8f), region = 52  ;;  %s382_s19 = sand.u32 (%p15887_p1), 1, %s13604_s17  }
  0x74   : > { %s11436_s11 = sshll.u32 (%p15887_p1), %s13608_s18, 3  ;;  %s12366_s21 = smul.u32 (%p15887_p1), 384, %s382_s19 }
  0x75   : > { %s13818_s12 = scalar_lea.vmem (%p15887_p1), %s15861_s0, %s11436_s11 }
  0x76   : > { %v509_v0 = vld [vmem:[%s13818_s12] sm:$0xff] (%p15887_p1)  ;;  %v511_v1 = vld [vmem:[%s13818_s12 + $0x10] sm:$0xff] (%p15887_p1)  ;;  %s13826_s24 = scalar_lea.vmem (%p15887_p1), [#allocation3], %s12366_s21 }
  0x77   : > { %v513_v2 = vld [vmem:[%s13818_s12 + $0x20] sm:$0xff] (%p15887_p1)  ;;  %v515_v3 = vld [vmem:[%s13818_s12 + $0x30] sm:$0xff] (%p15887_p1)  ;;  %510 = vst [vmem:[%s13826_s24] sm:$0xff] (%p15887_p1), %v509_v0  ;;  %512 = vst [vmem:[%s13826_s24 + $0x8] sm:$0xff] (%p15887_p1), %v511_v1 }
  0x78   : > { %v517_v4 = vld [vmem:[%s13818_s12 + $0x40] sm:$0xff]  ;;  %v519_v5 = vld [vmem:[%s13818_s12 + $0x50] sm:$0xff]  ;;  %514 = vst [vmem:[%s13826_s24 + $0x10] sm:$0xff] %v513_v2  ;;  %516 = vst [vmem:[%s13826_s24 + $0x18] sm:$0xff] %v515_v3 }
  0x79   : > { %518 = vst [vmem:[%s13826_s24 + $0x20] sm:$0xff] %v517_v4  ;;  %520 = vst [vmem:[%s13826_s24 + $0x28] sm:$0xff] %v519_v5  ;;  %v521_v6 = vld [vmem:[%s13818_s12 + $0x60] sm:$0xff]  ;;  %v523_v7 = vld [vmem:[%s13818_s12 + $0x70] sm:$0xff] }
  0x7a   : > { %v525_v8 = vld [vmem:[%s13818_s12 + $0x80] sm:$0xff]  ;;  %522 = vst [vmem:[%s13826_s24 + $0x30] sm:$0xff] %v521_v6  ;;  %524 = vst [vmem:[%s13826_s24 + $0x38] sm:$0xff] %v523_v7  ;;  %v527_v9 = vld [vmem:[%s13818_s12 + $0x90] sm:$0xff] }
  0x7b   : > { %526 = vst [vmem:[%s13826_s24 + $0x40] sm:$0xff] %v525_v8  ;;  %v529_v10 = vld [vmem:[%s13818_s12 + $0xa0] sm:$0xff]  ;;  %v531_v11 = vld [vmem:[%s13818_s12 + $0xb0] sm:$0xff]  ;;  %528 = vst [vmem:[%s13826_s24 + $0x48] sm:$0xff] %v527_v9 }
  0x7c   : > { %530 = vst [vmem:[%s13826_s24 + $0x50] sm:$0xff] %v529_v10  ;;  %532 = vst [vmem:[%s13826_s24 + $0x58] sm:$0xff] %v531_v11  ;;  %v533_v12 = vld [vmem:[%s13818_s12 + $0xc0] sm:$0xff]  ;;  %v535_v13 = vld [vmem:[%s13818_s12 + $0xd0] sm:$0xff] }
  0x7d   : > { %v537_v14 = vld [vmem:[%s13818_s12 + $0xe0] sm:$0xff]  ;;  %534 = vst [vmem:[%s13826_s24 + $0x60] sm:$0xff] %v533_v12  ;;  %536 = vst [vmem:[%s13826_s24 + $0x68] sm:$0xff] %v535_v13  ;;  %v539_v15 = vld [vmem:[%s13818_s12 + $0xf0] sm:$0xff] }
  0x7e   : > { %538 = vst [vmem:[%s13826_s24 + $0x70] sm:$0xff] %v537_v14  ;;  %v541_v16 = vld [vmem:[%s13818_s12 + $0x100] sm:$0xff]  ;;  %v543_v17 = vld [vmem:[%s13818_s12 + $0x110] sm:$0xff]  ;;  %540 = vst [vmem:[%s13826_s24 + $0x78] sm:$0xff] %v539_v15 }
  0x7f   : > { %542 = vst [vmem:[%s13826_s24 + $0x80] sm:$0xff] %v541_v16  ;;  %544 = vst [vmem:[%s13826_s24 + $0x88] sm:$0xff] %v543_v17  ;;  %v545_v18 = vld [vmem:[%s13818_s12 + $0x120] sm:$0xff]  ;;  %v547_v19 = vld [vmem:[%s13818_s12 + $0x130] sm:$0xff] }
  0x80   : > { %v549_v20 = vld [vmem:[%s13818_s12 + $0x140] sm:$0xff]  ;;  %546 = vst [vmem:[%s13826_s24 + $0x90] sm:$0xff] %v545_v18  ;;  %548 = vst [vmem:[%s13826_s24 + $0x98] sm:$0xff] %v547_v19  ;;  %v551_v21 = vld [vmem:[%s13818_s12 + $0x150] sm:$0xff] }
  0x81   : > { %550 = vst [vmem:[%s13826_s24 + $0xa0] sm:$0xff] %v549_v20  ;;  %v553_v22 = vld [vmem:[%s13818_s12 + $0x160] sm:$0xff]  ;;  %v555_v23 = vld [vmem:[%s13818_s12 + $0x170] sm:$0xff]  ;;  %552 = vst [vmem:[%s13826_s24 + $0xa8] sm:$0xff] %v551_v21 }
  0x82   : > { %554 = vst [vmem:[%s13826_s24 + $0xb0] sm:$0xff] %v553_v22  ;;  %556 = vst [vmem:[%s13826_s24 + $0xb8] sm:$0xff] %v555_v23  ;;  %v557_v24 = vld [vmem:[%s13818_s12 + $0x180] sm:$0xff]  ;;  %v559_v25 = vld [vmem:[%s13818_s12 + $0x190] sm:$0xff] }
  0x83   : > { %v561_v26 = vld [vmem:[%s13818_s12 + $0x1a0] sm:$0xff]  ;;  %558 = vst [vmem:[%s13826_s24 + $0xc0] sm:$0xff] %v557_v24  ;;  %560 = vst [vmem:[%s13826_s24 + $0xc8] sm:$0xff] %v559_v25  ;;  %v563_v27 = vld [vmem:[%s13818_s12 + $0x1b0] sm:$0xff] }
  0x84   : > { %562 = vst [vmem:[%s13826_s24 + $0xd0] sm:$0xff] %v561_v26  ;;  %v565_v28 = vld [vmem:[%s13818_s12 + $0x1c0] sm:$0xff]  ;;  %v567_v29 = vld [vmem:[%s13818_s12 + $0x1d0] sm:$0xff]  ;;  %564 = vst [vmem:[%s13826_s24 + $0xd8] sm:$0xff] %v563_v27 }
  0x85   : > { %566 = vst [vmem:[%s13826_s24 + $0xe0] sm:$0xff] %v565_v28  ;;  %568 = vst [vmem:[%s13826_s24 + $0xe8] sm:$0xff] %v567_v29  ;;  %v569_v30 = vld [vmem:[%s13818_s12 + $0x1e0] sm:$0xff]  ;;  %v571_v31 = vld [vmem:[%s13818_s12 + $0x1f0] sm:$0xff] }
  0x86   : > { %v573_v32 = vld [vmem:[%s13818_s12 + $0x200] sm:$0xff]  ;;  %570 = vst [vmem:[%s13826_s24 + $0xf0] sm:$0xff] %v569_v30  ;;  %572 = vst [vmem:[%s13826_s24 + $0xf8] sm:$0xff] %v571_v31  ;;  %v575_v33 = vld [vmem:[%s13818_s12 + $0x210] sm:$0xff] }
  0x87   : > { %574 = vst [vmem:[%s13826_s24 + $0x100] sm:$0xff] %v573_v32  ;;  %v577_v34 = vld [vmem:[%s13818_s12 + $0x220] sm:$0xff]  ;;  %v579_v35 = vld [vmem:[%s13818_s12 + $0x230] sm:$0xff]  ;;  %576 = vst [vmem:[%s13826_s24 + $0x108] sm:$0xff] %v575_v33 }
  0x88   : > { %578 = vst [vmem:[%s13826_s24 + $0x110] sm:$0xff] %v577_v34  ;;  %580 = vst [vmem:[%s13826_s24 + $0x118] sm:$0xff] %v579_v35  ;;  %v581_v36 = vld [vmem:[%s13818_s12 + $0x240] sm:$0xff]  ;;  %v583_v37 = vld [vmem:[%s13818_s12 + $0x250] sm:$0xff] }
  0x89   : > { %v585_v38 = vld [vmem:[%s13818_s12 + $0x260] sm:$0xff]  ;;  %582 = vst [vmem:[%s13826_s24 + $0x120] sm:$0xff] %v581_v36  ;;  %584 = vst [vmem:[%s13826_s24 + $0x128] sm:$0xff] %v583_v37  ;;  %v587_v39 = vld [vmem:[%s13818_s12 + $0x270] sm:$0xff] }
  0x8a   : > { %586 = vst [vmem:[%s13826_s24 + $0x130] sm:$0xff] %v585_v38  ;;  %v589_v40 = vld [vmem:[%s13818_s12 + $0x280] sm:$0xff]  ;;  %v591_v41 = vld [vmem:[%s13818_s12 + $0x290] sm:$0xff]  ;;  %588 = vst [vmem:[%s13826_s24 + $0x138] sm:$0xff] %v587_v39 }
  0x8b   : > { %590 = vst [vmem:[%s13826_s24 + $0x140] sm:$0xff] %v589_v40  ;;  %592 = vst [vmem:[%s13826_s24 + $0x148] sm:$0xff] %v591_v41  ;;  %v593_v42 = vld [vmem:[%s13818_s12 + $0x2a0] sm:$0xff]  ;;  %v595_v43 = vld [vmem:[%s13818_s12 + $0x2b0] sm:$0xff] }
  0x8c   : > { %v597_v44 = vld [vmem:[%s13818_s12 + $0x2c0] sm:$0xff]  ;;  %594 = vst [vmem:[%s13826_s24 + $0x150] sm:$0xff] %v593_v42  ;;  %596 = vst [vmem:[%s13826_s24 + $0x158] sm:$0xff] %v595_v43  ;;  %v599_v45 = vld [vmem:[%s13818_s12 + $0x2d0] sm:$0xff] }
  0x8d   : > { %598 = vst [vmem:[%s13826_s24 + $0x160] sm:$0xff] %v597_v44  ;;  %v601_v46 = vld [vmem:[%s13818_s12 + $0x2e0] sm:$0xff]  ;;  %v603_v47 = vld [vmem:[%s13818_s12 + $0x2f0] sm:$0xff]  ;;  %600 = vst [vmem:[%s13826_s24 + $0x168] sm:$0xff] %v599_v45 }
  0x8e   : > { %602 = vst [vmem:[%s13826_s24 + $0x170] sm:$0xff] %v601_v46  ;;  %604 = vst [vmem:[%s13826_s24 + $0x178] sm:$0xff] %v603_v47 }
  0x8f PF: > { %p15888_p0 = scmp.ne.s32.totalorder %s15882_s27, 0 }
  0x90   : > { %s13921_s29 = sand.u32 (!%p15888_p0), 1, %s13600_s16   ;;  %p15889_p4 = scmp.eq.s32.totalorder (!%p15888_p0), %s13707_s2, 0 }
  0x91   : > { %613 = sbr.rel (%p15888_p0) target bundleno = 1741 (0x6cd), region = 90 }
  0x92   : > { %s12367_s4 = smul.u32 (!%p15888_p0), 384, %s13921_s29 }
  0x94   : > { %s13924_s14 = scalar_lea.vmem (!%p15888_p0), [#allocation3], %s12367_s4 }
  0x96   : > { %13567 = dma.done.wait (%p15889_p4), [#allocation7], 16   ;;  %p15890_p7 = pmov %p15889_p4 }
  0x97   : > { %p15891_p8 = pmov %p15889_p4 }
  0x98   : > { %13569 = vsyncadd (%p15890_p7), [#allocation7], 4294967280 }
  0x99   : > { %13571 = dma.done.wait (%p15891_p8), [#allocation5], 24576   ;;  %p15892_p9 = pmov %p15889_p4 }
  0x9a   : > { %p15893_p13 = pmov %p15889_p4 }
  0x9b   : > { %13573 = vsyncadd (%p15892_p9), [#allocation5], 4294942720 }
  0x9c   : > { %13575 = dma.done.wait (%p15893_p13), [#allocation10], 65792   ;;  %p15894_p2 = pmov %p15889_p4 }
  0x9e   : > { %13577 = vsyncadd (%p15894_p2), [#allocation10], 4294901504  ;;  %p15895_p3 = pmov %p15894_p2 }
  0x9f   : > { %p15896_p10 = pmov %p15894_p2 }
  0xa0   : > { %13579 = dma.done.wait (%p15895_p3), [#allocation13], 4160  }
  0xa1   : > { %13581 = vsyncadd (%p15896_p10), [#allocation13], 4294963136  ;;  %p15897_p6 = pmov %p15894_p2 }
  0xa2   : > { %p15898_p5 = pmov %p15894_p2 }
  0xa3   : > { %13583 = dma.done.wait (%p15897_p6), [#allocation16], 16  }
  0xa4   : > { %13585 = vsyncadd (%p15898_p5), [#allocation16], 4294967280 }
  0xa5   : > { %650 = sfence }
  0xa6   : > { %v13947_v48 = vld [vmem:[%s13924_s14 + $0x88] sm:$0xff]  ;;  %s13622_s27 = smov 127   ;;  %v692_v60 = vld [vmem:[%s13924_s14 + $0x20] sm:$0xff]  ;;  %vm1327_vm0 = vcmask 1046528   ;;  %vm1328_vm1 = vcmask 1047552   ;;  %v13623_v4 = vmov 65535  }
  0xa7   : > { %v13950_v49 = vld [vmem:[%s13924_s14 + $0x8] sm:$0xff]  ;;  %869 = vrot.lane.b32.xlu1 %v13947_v48, %s13622_s27  ;;  %v688_v61 = vld [vmem:[%s13924_s14] sm:$0xff]  ;;  %v1329_v5 = vsel %vm1327_vm0, 4294967295, %v13623_v4  ;;  %v15875_v17 = vmov 0   ;;  %v14017_v18 = vld [vmem:[#allocation8 + $0x90] sm:$0xff]  ;;  %s11463_s30 = sld [smem:[#allocation4 + $0x1]] }
  0xa8   : > { %722 = vrot.lane.b32.xlu0 %v13950_v49, %s13622_s27  ;;  %v13957_v50 = vld [vmem:[%s13924_s14 + $0xa8] sm:$0xff]  ;;  %v1244_v62 = vld [vmem:[#allocation8 + $0x80] sm:$0xff]  ;;  %v14006_v7 = vsel %vm1328_vm1, %v1329_v5, 0  ;;  %1411 = vmatprep.mubr.bf16.mxu0 %v15875_v17  ;;  %v14019_v19 = vld [vmem:[#allocation8 + $0xd0] sm:$0xff]  ;;  %s800_s22 = sld [smem:[#allocation4]]  ;;  %vm1194_vm2 = vcmask 121856  }
  0xa9   : > { %v13960_v51 = vld [vmem:[%s13924_s14 + $0x28] sm:$0xff]  ;;  %v1252_v63 = vld [vmem:[#allocation8 + $0xc0] sm:$0xff]  ;;  %v14021_v20 = vld [vmem:[#allocation8 + $0x98] sm:$0xff]  ;;  %1452 = vmatprep.mubr.bf16.mxu1 %v15875_v17  ;;  %v11486_v23 = vcombine.high %v14017_v18, %v14019_v19  ;;  %v11485_v25 = vcombine.low %v14017_v18, %v14019_v19  ;;  %s11480_s13 = sld [smem:[#allocation4 + $0x2]]  ;;  %s11446_s11 = sshll.u32 %s13921_s29, 5 }
  0xaa   : > { %v13967_v52 = vld [vmem:[%s13924_s14 + $0xc8] sm:$0xff]  ;;  %v11451_v1 = vld [vmem:[%s13924_s14 + $0xa0] sm:$0xff]  ;;  %v11482_v3 = vcombine.high %v1244_v62, %v1252_v63  ;;  %v11481_v8 = vcombine.low %v1244_v62, %v1252_v63  ;;  %v14028_v24 = vld [vmem:[#allocation8 + $0xd8] sm:$0xff]  ;;  %s1128_s19 = sld [smem:[#allocation2]]  ;;  %s15783_s21 = scalar_lea.vmem [#allocation18], %s11446_s11 }
  0xab   : > { %877 = vrot.lane.b32.xlu1 %v13957_v50, %s13622_s27  ;;  %v13970_v53 = vld [vmem:[%s13924_s14 + $0x48] sm:$0xff]  ;;  %v11447_v2 = vld [vmem:[%s13924_s14 + $0x80] sm:$0xff]  ;;  %v11487_v26 = vcombine.low %v14021_v20, %v14028_v24  ;;  %v11488_v27 = vcombine.high %v14021_v20, %v14028_v24  ;;  %v1347_v28 = vand.u32 %v11486_v23, %v14006_v7  ;;  %v694_v34 = vld [vmem:[%s13924_s14 + $0x30] sm:$0xff]  ;;  %s12321_s28 = sshll.u32 %s13707_s2, 9  ;;  %s11257_s4 = sshll.u32 %s15783_s21, 4  ;;  %s11258_s4 = int_to_ptr.vmem [resolvable:$true] %s11257_s4 }
  0xac   : > { %730 = vrot.lane.b32.xlu0 %v13960_v51, %s13622_s27  ;;  %v13977_v54 = vld [vmem:[%s13924_s14 + $0x128] sm:$0xff]  ;;  %v1335_v11 = vand.u32 %v11482_v3, %v14006_v7  ;;  %v1332_v12 = vand.u32 %v11481_v8, %v14006_v7  ;;  %v11455_v15 = vld [vmem:[%s13924_s14 + $0xc0] sm:$0xff]  ;;  %v690_v35 = vld [vmem:[%s13924_s14 + $0x10] sm:$0xff]  ;;  %s11255_s24 = scalar_lea.hbm %s15871_s10, %s12321_s28  ;;  %p15902_p1 = scmp.ne.s32.totalorder %s15880_s25, 0 }
  0xad   : > { %v13980_v55 = vld [vmem:[%s13924_s14 + $0x108] sm:$0xff]  ;;  %v696_v16 = vld [vmem:[%s13924_s14 + $0x40] sm:$0xff]  ;;  %v1353_v29 = vand.u32 %v11488_v27, %v14006_v7  ;;  %v11453_v36 = vld [vmem:[%s13924_s14 + $0xb0] sm:$0xff] }
  0xae   : > { %v13987_v56 = vld [vmem:[%s13924_s14 + $0xe8] sm:$0xff]  ;;  %1393 = vmatprep.subr.bf16.mxu0 %v1335_v11  ;;  %v11468_v21 = vld [vmem:[%s13924_s14 + $0x120] sm:$0xff]  ;;  %v11449_v37 = vld [vmem:[%s13924_s14 + $0x90] sm:$0xff] }
  0xaf   : > { %885 = vrot.lane.b32.xlu1 %v13967_v52, %s13622_s27  ;;  %v13990_v57 = vld [vmem:[%s13924_s14 + $0x68] sm:$0xff]  ;;  %1394 = vmatpush1.bf16.msra.mxu0 %v1332_v12  ;;  %v11464_v22 = vld [vmem:[%s13924_s14 + $0x100] sm:$0xff]  ;;  %v11457_v38 = vld [vmem:[%s13924_s14 + $0xd0] sm:$0xff] }
  0xb0   : > { %738 = vrot.lane.b32.xlu0 %v13970_v53, %s13622_s27  ;;  %v11477_v58 = vld [vmem:[%s13924_s14 + $0x168] sm:$0xff]  ;;  %v11459_v30 = vld [vmem:[%s13924_s14 + $0xe0] sm:$0xff]  ;;  %1475 = vmatprep.subr.bf16.mxu0 %v1347_v28  ;;  %v698_v39 = vld [vmem:[%s13924_s14 + $0x50] sm:$0xff] }
  0xb1   : > { %v11473_v59 = vld [vmem:[%s13924_s14 + $0x148] sm:$0xff]  ;;  %v700_v31 = vld [vmem:[%s13924_s14 + $0x60] sm:$0xff]  ;;  %v11470_v40 = vld [vmem:[%s13924_s14 + $0x130] sm:$0xff]  ;;  %v14104_v28 = vstv %s11480_s13 }
  0xb2   : > { %v1245_v0 = vld [vmem:[#allocation8 + $0x88] sm:$0xff]  ;;  %v11476_v32 = vld [vmem:[%s13924_s14 + $0x160] sm:$0xff]  ;;  %v11466_v41 = vld [vmem:[%s13924_s14 + $0x110] sm:$0xff] }
  0xb3   : > { %1024 = vrot.lane.b32.xlu1 %v13977_v54, %s13622_s27  ;;  %v1253_v6 = vld [vmem:[#allocation8 + $0xc8] sm:$0xff]  ;;  %v11472_v33 = vld [vmem:[%s13924_s14 + $0x140] sm:$0xff]  ;;  %v702_v42 = vld [vmem:[%s13924_s14 + $0x70] sm:$0xff] }
  0xb4   : > { %1016 = vrot.lane.b32.xlu0 %v13980_v55, %s13622_s27  ;;  %v11484_v9 = vcombine.high %v1245_v0, %v1253_v6  ;;  %v11483_v10 = vcombine.low %v1245_v0, %v1253_v6  ;;  %v11461_v43 = vld [vmem:[%s13924_s14 + $0xf0] sm:$0xff]  ;;  %v691_v46 = vld [vmem:[%s13924_s14 + $0x18] sm:$0xff]  ;;  %v1248_v6 = vld [vmem:[#allocation8 + $0xa0] sm:$0xff] }
  0xb5   : > { %v11474_v44 = vld [vmem:[%s13924_s14 + $0x150] sm:$0xff]  ;;  %v695_v47 = vld [vmem:[%s13924_s14 + $0x38] sm:$0xff]  ;;  %v1256_v8 = vld [vmem:[#allocation8 + $0xe0] sm:$0xff] }
  0xb6   : > { %v1341_v13 = vand.u32 %v11484_v9, %v14006_v7  ;;  %v1338_v14 = vand.u32 %v11483_v10, %v14006_v7  ;;  %v11478_v45 = vld [vmem:[%s13924_s14 + $0x170] sm:$0xff]  ;;  %v11467_v62 = vld [vmem:[%s13924_s14 + $0x118] sm:$0xff]  ;;  %v1249_v9 = vld [vmem:[#allocation8 + $0xa8] sm:$0xff] }
  0xb7   : > { %893 = vrot.lane.b32.xlu1 %v13987_v56, %s13622_s27  ;;  %v11471_v63 = vld [vmem:[%s13924_s14 + $0x138] sm:$0xff]  ;;  %v1257_v10 = vld [vmem:[#allocation8 + $0xe8] sm:$0xff]  ;;  %v1250_v11 = vld [vmem:[#allocation8 + $0xb0] sm:$0xff] }
  0xb8   : > { %746 = vrot.lane.b32.xlu0 %v13990_v57, %s13622_s27  ;;  %1434 = vmatprep.subr.bf16.mxu1 %v1341_v13  ;;  %v703_v0 = vld [vmem:[%s13924_s14 + $0x78] sm:$0xff]  ;;  %v1258_v12 = vld [vmem:[#allocation8 + $0xf0] sm:$0xff] }
  0xb9   : > { %1435 = vmatpush1.bf16.msra.mxu1 %v1338_v14  ;;  %v11479_v3 = vld [vmem:[%s13924_s14 + $0x178] sm:$0xff] }
  0xba   : > { %1516 = vmatprep.subr.bf16.mxu1 %v1353_v29  ;;  %v1251_v13 = vld [vmem:[#allocation8 + $0xb8] sm:$0xff]  ;;  %v14106_v29 = vstv %s1128_s19 }
  0xbb   : > { %1040 = vrot.lane.b32.xlu1 %v11477_v58, %s13622_s27  ;;  %v11450_v58 = vld [vmem:[%s13924_s14 + $0x98] sm:$0xff] }
  0xbc   : > { %1032 = vrot.lane.b32.xlu0 %v11473_v59, %s13622_s27  ;;  %v11454_v59 = vld [vmem:[%s13924_s14 + $0xb8] sm:$0xff] }
  0xbd   : > { %v1259_v14 = vld [vmem:[#allocation8 + $0xf8] sm:$0xff] }
  0xbf   : > { %728 = vrot.lane.b32.xlu1 %v692_v60, %s13622_s27  ;;  %v699_v60 = vld [vmem:[%s13924_s14 + $0x58] sm:$0xff] }
  0xc0   : > { %720 = vrot.lane.b32.xlu0 %v688_v61, %s13622_s27  ;;  %v11458_v61 = vld [vmem:[%s13924_s14 + $0xd8] sm:$0xff] }
  0xc3   : > { %875 = vrot.lane.b32.xlu1 %v11451_v1, %s13622_s27  ;;  %v11462_v1 = vld [vmem:[%s13924_s14 + $0xf8] sm:$0xff] }
  0xc4   : > { %867 = vrot.lane.b32.xlu0 %v11447_v2, %s13622_s27  ;;  %v11475_v2 = vld [vmem:[%s13924_s14 + $0x158] sm:$0xff] }
  0xc7   : > { %883 = vrot.lane.b32.xlu1 %v11455_v15, %s13622_s27  ;;  %v14098_v15 = vstv %s11463_s30  ;;  %s13626_s30 = smov [#allocation18]  }
  0xc8   : > { %736 = vrot.lane.b32.xlu0 %v696_v16, %s13622_s27 }
  0xcb   : > { %1022 = vrot.lane.b32.xlu1 %v11468_v21, %s13622_s27  ;;  %v14101_v21 = vstv %s800_s22  ;;  %s13502_s22 = sshll.u32 %s13626_s30, 4  ;;  %s13503_s22 = int_to_ptr.vmem [resolvable:$false] %s13502_s22 }
  0xcc   : > { %1014 = vrot.lane.b32.xlu0 %v11464_v22, %s13622_s27  ;;  %s13504_s13 = scalar_lea.vmem %s13503_s22, 1024  ;;  %p13505_p7 = scmp.lt.s32.totalorder %s11258_s4, %s13503_s22 }
  0xcf   : > { %891 = vrot.lane.b32.xlu1 %v11459_v30, %s13622_s27 }
  0xd0   : > { %744 = vrot.lane.b32.xlu0 %v700_v31, %s13622_s27 }
  0xd3   : > { %1038 = vrot.lane.b32.xlu1 %v11476_v32, %s13622_s27  ;;  %v11489_v32 = vcombine.low %v1248_v6, %v1256_v8 }
  0xd4   : > { %1030 = vrot.lane.b32.xlu0 %v11472_v33, %s13622_s27  ;;  %v11490_v33 = vcombine.high %v1248_v6, %v1256_v8 }
  0xd5   : > { %v14134_v19 = vand.u32 %v11489_v32, %v14006_v7  ;;  %v14178_v32 = vld [vmem:[#allocation8 + $0x20] sm:$0xff] }
  0xd6   : > { %v14131_v18 = vand.u32 %v11490_v33, %v14006_v7  ;;  %v14180_v33 = vld [vmem:[#allocation8 + $0x60] sm:$0xff] }
  0xd7   : > { %732 = vrot.lane.b32.xlu1 %v694_v34, %s13622_s27  ;;  %v1227_v34 = vld [vmem:[#allocation8] sm:$0xff] }
  0xd8   : > { %724 = vrot.lane.b32.xlu0 %v690_v35, %s13622_s27  ;;  %v1235_v35 = vld [vmem:[#allocation8 + $0x40] sm:$0xff] }
  0xdb   : > { %879 = vrot.lane.b32.xlu1 %v11453_v36, %s13622_s27  ;;  %v11491_v36 = vcombine.low %v1249_v9, %v1257_v10 }
  0xdc   : > { %871 = vrot.lane.b32.xlu0 %v11449_v37, %s13622_s27  ;;  %v11493_v37 = vcombine.low %v1250_v11, %v1258_v12 }
  0xde   : > { %v14146_v24 = vand.u32 %v11493_v37, %v14006_v7 }
  0xdf   : > { %887 = vrot.lane.b32.xlu1 %v11457_v38, %s13622_s27  ;;  %v11494_v38 = vcombine.high %v1250_v11, %v1258_v12 }
  0xe0   : > { %740 = vrot.lane.b32.xlu0 %v698_v39, %s13622_s27 }
  0xe1   : > { %v14143_v20 = vand.u32 %v11494_v38, %v14006_v7 }
  0xe3   : > { %1026 = vrot.lane.b32.xlu1 %v11470_v40, %s13622_s27  ;;  %v11495_v40 = vcombine.low %v1251_v13, %v1259_v14 }
  0xe4   : > { %1018 = vrot.lane.b32.xlu0 %v11466_v41, %s13622_s27  ;;  %v1228_v41 = vld [vmem:[#allocation8 + $0x8] sm:$0xff] }
  0xe7   : > { %895 = vrot.lane.b32.xlu1 %v11461_v43, %s13622_s27 }
  0xe8   : > { %748 = vrot.lane.b32.xlu0 %v702_v42, %s13622_s27 }
  0xeb   : > { %1042 = vrot.lane.b32.xlu1 %v11478_v45, %s13622_s27 }
  0xec   : > { %1034 = vrot.lane.b32.xlu0 %v11474_v44, %s13622_s27 }
  0xef   : > { %734 = vrot.lane.b32.xlu1 %v695_v47, %s13622_s27  ;;  %v14128_v47 = vand.u32 %v11487_v26, %v14006_v7 }
  0xf0   : > { %726 = vrot.lane.b32.xlu0 %v691_v46, %s13622_s27 }
  0xf3   : > { %881 = vrot.lane.b32.xlu1 %v11454_v59, %s13622_s27  ;;  %v1229_v59 = vld [vmem:[#allocation8 + $0x10] sm:$0xff] }
  0xf4   : > { %873 = vrot.lane.b32.xlu0 %v11450_v58, %s13622_s27  ;;  %v11506_v58 = vcombine.high %v1227_v34, %v1235_v35 }
  0xf6   : > { %v14165_v11 = vand.u32 %v11506_v58, %v14006_v7 }
  0xf7   : > { %889 = vrot.lane.b32.xlu1 %v11458_v61, %s13622_s27 }
  0xf8   : > { %742 = vrot.lane.b32.xlu0 %v699_v60, %s13622_s27  ;;  %v1237_v60 = vld [vmem:[#allocation8 + $0x50] sm:$0xff] }
  0xfb   : > { %1028 = vrot.lane.b32.xlu1 %v11471_v63, %s13622_s27  ;;  %v14152_v63 = vand.u32 %v11495_v40, %v14006_v7 }
  0xfc   : > { %1020 = vrot.lane.b32.xlu0 %v11467_v62, %s13622_s27  ;;  %v14140_v62 = vand.u32 %v11491_v36, %v14006_v7 }
  0xff   : > { %897 = vrot.lane.b32.xlu1 %v11462_v1, %s13622_s27 }
 0x100   : > { %750 = vrot.lane.b32.xlu0 %v703_v0, %s13622_s27 }
 0x103   : > { %1044 = vrot.lane.b32.xlu1 %v11479_v3, %s13622_s27 }
 0x104   : > { %1036 = vrot.lane.b32.xlu0 %v11475_v2, %s13622_s27  ;;  %s13498_s27 = scalar_lea.vmem %s11258_s4, 512 }
 0x105   : > { %p13499_p11 = scmp.ne.s32.totalorder %s11258_s4, %s13498_s27  ;;  %p13506_p8 = scmp.lt.s32.totalorder %s13504_s13, %s13498_s27 }
 0x107   : > { %p13500_p0 = pnand %p13499_p11, %p15902_p1  ;;  %p13507_p9 = por %p13506_p8, %p13505_p7 }
 0x109   : > { %p13501_p4 = pneg %p13500_p0 }
 0x10b   : > { %p13508_p13 = pnand %p13507_p9, %p13501_p4 }
 0x119   : > { %v870_v4 = vpop.permute.xlu1 %869 }
 0x11a   : > { %v723_v5 = vpop.permute.xlu0 %722  ;;  %v916_v16 = vadd.f32 %v13947_v48, %v870_v4  ;;  %v11492_v48 = vcombine.high %v1249_v9, %v1257_v10 }
 0x11b   : > { %v769_v22 = vadd.f32 %v723_v5, %v13950_v49  ;;  %v14116_v49 = vand.u32 %v11485_v25, %v14006_v7  ;;  %v11505_v25 = vcombine.low %v1227_v34, %v1235_v35 }
 0x11c   : > { %v14110_v39 = vmul.f32 0.5, %v916_v16  ;;  %v14137_v61 = vand.u32 %v11492_v48, %v14006_v7 }
 0x11d   : > { %v878_v23 = vpop.permute.xlu1 %877  ;;  %v14118_v42 = vmul.f32 0.5, %v769_v22  ;;  %v14168_v12 = vand.u32 %v11505_v25, %v14006_v7 }
 0x11e   : > { %v731_v27 = vpop.permute.xlu0 %730  ;;  %v920_v30 = vadd.f32 %v13957_v50, %v878_v23  ;;  %v11496_v50 = vcombine.high %v1251_v13, %v1259_v14  ;;  %v950_v2 = vmul.f32 %v14098_v15, %v14110_v39  ;;  %v1230_v13 = vld [vmem:[#allocation8 + $0x18] sm:$0xff]  ;;  %v11509_v23 = vcombine.low %v1229_v59, %v1237_v60 }
 0x11f   : > { %v773_v31 = vadd.f32 %v731_v27, %v13960_v51  ;;  %v1236_v51 = vld [vmem:[#allocation8 + $0x48] sm:$0xff]  ;;  %v803_v3 = vmul.f32 %v14101_v21, %v14118_v42  ;;  %v1238_v14 = vld [vmem:[#allocation8 + $0x58] sm:$0xff]  ;;  %v11510_v27 = vcombine.high %v1229_v59, %v1237_v60 }
 0x120   : > { %v14120_v43 = vmul.f32 0.5, %v920_v30  ;;  %v14149_v26 = vand.u32 %v11496_v50, %v14006_v7  ;;  %v11507_v0 = vcombine.low %v1228_v41, %v1236_v51  ;;  %v11508_v1 = vcombine.high %v1228_v41, %v1236_v51  ;;  %v14186_v41 = vld [vmem:[#allocation8 + $0x28] sm:$0xff] }
 0x121   : > { %v14122_v44 = vmul.f32 0.5, %v773_v31  ;;  %v886_v45 = vpop.permute.xlu1 %885  ;;  %v966_v34 = vadd.f32 %v950_v2, %v803_v3  ;;  %v11512_v48 = vcombine.high %v1230_v13, %v1238_v14  ;;  %v14188_v51 = vld [vmem:[#allocation8 + $0x68] sm:$0xff]  ;;  %v14195_v25 = vand.u32 %v11510_v27, %v14006_v7 }
 0x122   : > { %v739_v46 = vpop.permute.xlu0 %738  ;;  %v954_v4 = vmul.f32 %v14098_v15, %v14120_v43  ;;  %v924_v16 = vadd.f32 %v13967_v52, %v886_v45  ;;  %v14198_v58 = vand.u32 %v11509_v23, %v14006_v7  ;;  %v11515_v27 = vcombine.low %v14186_v41, %v14188_v51 }
 0x123   : > { %v807_v5 = vmul.f32 %v14101_v21, %v14122_v44  ;;  %v777_v22 = vadd.f32 %v739_v46, %v13970_v53  ;;  %v11511_v53 = vcombine.low %v1230_v13, %v1238_v14  ;;  %v14205_v2 = vand.u32 %v11512_v48, %v14006_v7  ;;  %v13292_v14 = vld [vmem:[%s13924_s14 + $0x168] sm:$0xff] }
 0x124   : > { %v14190_v45 = vmul.f32 0.5, %v924_v16 }
 0x125   : > { %v1025_v6 = vpop.permute.xlu1 %1024  ;;  %v970_v35 = vadd.f32 %v954_v4, %v807_v5  ;;  %v14192_v46 = vmul.f32 0.5, %v777_v22  ;;  %v14208_v3 = vand.u32 %v11511_v53, %v14006_v7  ;;  %v11513_v4 = vcombine.low %v14178_v32, %v14180_v33  ;;  %v13293_v22 = vld [vmem:[%s13924_s14 + $0x148] sm:$0xff] }
 0x126   : > { %v1017_v8 = vpop.permute.xlu0 %1016  ;;  %v1067_v9 = vadd.f32 %v13977_v54, %v1025_v6  ;;  %v14173_v54 = vand.u32 %v11508_v1, %v14006_v7  ;;  %v11514_v5 = vcombine.high %v14178_v32, %v14180_v33  ;;  %v958_v13 = vmul.f32 %v14098_v15, %v14190_v45 }
 0x127   : > { %v1063_v10 = vadd.f32 %v13980_v55, %v1017_v8  ;;  %v14176_v55 = vand.u32 %v11507_v0, %v14006_v7  ;;  %v811_v32 = vmul.f32 %v14101_v21, %v14192_v46 }
 0x128   : > { %v1083_v30 = vmul.f32 0.5, %v1067_v9 }
 0x129   : > { %v1079_v31 = vmul.f32 0.5, %v1063_v10  ;;  %v894_v52 = vpop.permute.xlu1 %893 }
 0x12a   : > { %v747_v36 = vpop.permute.xlu0 %746  ;;  %v1101_v37 = vmul.f32 %v14104_v28, %v1083_v30  ;;  %v928_v40 = vadd.f32 %v13987_v56, %v894_v52 }
 0x12b   : > { %v1097_v38 = vmul.f32 %v14104_v28, %v1079_v31  ;;  %v781_v50 = vadd.f32 %v747_v36, %v13990_v57 }
 0x12c   : > { %v1117_v59 = vadd.f32 %v1101_v37, %v970_v35  ;;  %v14200_v56 = vmul.f32 0.5, %v928_v40 }
 0x12d   : > { %v1113_v60 = vadd.f32 %v1097_v38, %v966_v34  ;;  %v14202_v57 = vmul.f32 0.5, %v781_v50  ;;  %v1041_v0 = vpop.permute.xlu1 %1040  ;;  %v13625_v34 = vmov 0.5  }
 0x12e   : > { %v1033_v1 = vpop.permute.xlu0 %1032  ;;  %v1135_v6 = vadd.f32 %v14106_v29, %v1117_v59  ;;  %v962_v9 = vmul.f32 %v14098_v15, %v14200_v56  ;;  %v1075_v16 = vadd.f32 %v13292_v14, %v1041_v0 }
 0x12f   : > { %v1131_v8 = vadd.f32 %v14106_v29, %v1113_v60  ;;  %v815_v10 = vmul.f32 %v14101_v21, %v14202_v57  ;;  %v1071_v23 = vadd.f32 %v13293_v22, %v1033_v1 }
 0x130   : > { %vm1151_vm3 = vcmp.gt.f32.partialorder %v1135_v6, 0.0  ;;  %v1091_v36 = vmul.f32 0.5, %v1075_v16 }
 0x131   : > { %vm1147_vm4 = vcmp.gt.f32.partialorder %v1131_v8, 0.0  ;;  %v978_v33 = vadd.f32 %v962_v9, %v815_v10  ;;  %v1167_v35 = vsel %vm1151_vm3, 1.0, %v13625_v34  ;;  %v1087_v53 = vmul.f32 0.5, %v1071_v23  ;;  %v729_v48 = vpop.permute.xlu1 %728  ;;  %v13294_v23 = vld [vmem:[%s13924_s14 + $0x20] sm:$0xff] }
 0x132   : > { %v1163_v52 = vsel %vm1147_vm4, 1.0, %v13625_v34  ;;  %v721_v37 = vpop.permute.xlu0 %720  ;;  %v1183_v38 = vmul.f32 %v1167_v35, %v14122_v44  ;;  %v3107_v40 = vmul.f32 %v1167_v35, %v14120_v43  ;;  %v5059_v50 = vmul.f32 %v1167_v35, %v1083_v30 }
 0x133   : > { %v1179_v59 = vmul.f32 %v1163_v52, %v14118_v42  ;;  %v3103_v60 = vmul.f32 %v1163_v52, %v14110_v39  ;;  %v5055_v0 = vmul.f32 %v1163_v52, %v1079_v31  ;;  %v1109_v1 = vmul.f32 %v14104_v28, %v1091_v36  ;;  %v13295_v52 = vld [vmem:[%s13924_s14] sm:$0xff] }
 0x134   : > { %v1105_v6 = vmul.f32 %v14104_v28, %v1087_v53  ;;  %v974_v8 = vadd.f32 %v958_v13, %v811_v32  ;;  %v1203_v9 = vsel %vm1194_vm2, %v1183_v38, 0.0  ;;  %v3126_v10 = vsel %vm1194_vm2, %v3107_v40, 0.0  ;;  %v13296_v40 = vld [vmem:[%s13924_s14 + $0xa0] sm:$0xff] }
 0x135   : > { %v5078_v43 = vsel %vm1194_vm2, %v5059_v50, 0.0  ;;  %v1202_v44 = vsel %vm1194_vm2, %v1179_v59, 0.0  ;;  %v3125_v39 = vsel %vm1194_vm2, %v3103_v60, 0.0  ;;  %v5077_v42 = vsel %vm1194_vm2, %v5055_v0, 0.0  ;;  %v876_v31 = vpop.permute.xlu1 %875  ;;  %v13297_v59 = vld [vmem:[%s13924_s14 + $0x80] sm:$0xff] }
 0x136   : > { %v1125_v30 = vadd.f32 %v1109_v1, %v978_v33  ;;  %v868_v14 = vpop.permute.xlu0 %867  ;;  %v3127_v16 = vadd.f32 %v3126_v10, %v3125_v39  ;;  %v5079_v13 = vadd.f32 %v5078_v43, %v5077_v42  ;;  %v1121_v22 = vadd.f32 %v1105_v6, %v974_v8 }
 0x137   : > { %v772_v32 = vadd.f32 %v13294_v23, %v729_v48  ;;  %v768_v38 = vadd.f32 %v13295_v52, %v721_v37  ;;  %v919_v50 = vadd.f32 %v13296_v40, %v876_v31  ;;  %v915_v17 = vadd.f32 %v13297_v59, %v868_v14 }
 0x138   : > { %v1143_v35 = vadd.f32 %v14106_v29, %v1125_v30  ;;  %v1139_v60 = vadd.f32 %v14106_v29, %v1121_v22  ;;  %v14249_v0 = vand.u32 %v11514_v5, %v14006_v7  ;;  %v14252_v33 = vand.u32 %v11513_v4, %v14006_v7 }
 0x139   : > { %v11516_v1 = vcombine.high %v14186_v41, %v14188_v51  ;;  %v14256_v48 = vmul.f32 0.5, %v772_v32  ;;  %v14258_v37 = vmul.f32 0.5, %v768_v38  ;;  %v14260_v6 = vmul.f32 0.5, %v919_v50  ;;  %v884_v8 = vpop.permute.xlu1 %883  ;;  %v13298_v32 = vld [vmem:[%s13924_s14 + $0xc0] sm:$0xff] }
 0x13a   : > { %vm1159_vm5 = vcmp.gt.f32.partialorder %v1143_v35, 0.0  ;;  %v737_v10 = vpop.permute.xlu0 %736  ;;  %v1204_v43 = vadd.f32 %v1203_v9, %v1202_v44  ;;  %vm1155_vm6 = vcmp.gt.f32.partialorder %v1139_v60, 0.0  ;;  %v14263_v39 = vmul.f32 0.5, %v915_v17 }
 0x13b   : > { %v1175_v5 = vsel %vm1159_vm5, 1.0, %v13625_v34  ;;  %v1171_v31 = vsel %vm1155_vm6, 1.0, %v13625_v34  ;;  %v923_v35 = vadd.f32 %v13298_v32, %v884_v8  ;;  %v953_v52 = vmul.f32 %v14098_v15, %v14260_v6 }
 0x13c   : > { %v1191_v4 = vmul.f32 %v1175_v5, %v14202_v57  ;;  %v3115_v42 = vmul.f32 %v1175_v5, %v14200_v56  ;;  %v5067_v30 = vmul.f32 %v1175_v5, %v1091_v36  ;;  %v1187_v14 = vmul.f32 %v1171_v31, %v14192_v46  ;;  %v13299_v5 = vld [vmem:[%s13924_s14 + $0x40] sm:$0xff] }
 0x13d   : > { %v3111_v22 = vmul.f32 %v1171_v31, %v14190_v45  ;;  %v5063_v23 = vmul.f32 %v1171_v31, %v1087_v53  ;;  %v806_v57 = vmul.f32 %v14101_v21, %v14256_v48  ;;  %v802_v56 = vmul.f32 %v14101_v21, %v14258_v37  ;;  %v1023_v36 = vpop.permute.xlu1 %1022 }
 0x13e   : > { %v1207_v9 = vsel %vm1194_vm2, %v1191_v4, 0.0  ;;  %v3130_v17 = vsel %vm1194_vm2, %v3115_v42, 0.0  ;;  %v1015_v44 = vpop.permute.xlu0 %1014  ;;  %v1205_v46 = vsel %vm1194_vm2, %v1187_v14, 0.0  ;;  %v5082_v38 = vsel %vm1194_vm2, %v5067_v30, 0.0  ;;  %v13300_v42 = vld [vmem:[%s13924_s14 + $0x120] sm:$0xff]  ;;  %v14289_v14 = vld [vmem:[#allocation8 + $0x30] sm:$0xff] }
 0x13f   : > { %v3128_v45 = vsel %vm1194_vm2, %v3111_v22, 0.0  ;;  %v5080_v53 = vsel %vm1194_vm2, %v5063_v23, 0.0  ;;  %v1206_v40 = vadd.f32 %v1205_v46, %v1204_v43  ;;  %v949_v60 = vmul.f32 %v14098_v15, %v14263_v39  ;;  %v14291_v22 = vld [vmem:[#allocation8 + $0x70] sm:$0xff] }
 0x140   : > { %v3129_v50 = vadd.f32 %v3128_v45, %v3127_v16  ;;  %v5081_v59 = vadd.f32 %v5080_v53, %v5079_v13  ;;  %v14285_v8 = vmul.f32 0.5, %v923_v35  ;;  %v776_v4 = vadd.f32 %v13299_v5, %v737_v10  ;;  %v13301_v16 = vld [vmem:[%s13924_s14 + $0x100] sm:$0xff] }
 0x141   : > { %v1066_v31 = vadd.f32 %v13300_v42, %v1023_v36  ;;  %v1208_v23 = vadd.f32 %v1207_v9, %v1206_v40  ;;  %v1062_v13 = vadd.f32 %v13301_v16, %v1015_v44  ;;  %v892_v30 = vpop.permute.xlu1 %891  ;;  %v969_v46 = vadd.f32 %v953_v52, %v806_v57  ;;  %v13302_v53 = vld [vmem:[%s13924_s14 + $0xe0] sm:$0xff] }
 0x142   : > { %v14293_v32 = vadd.f32 %v3130_v17, %v3129_v50  ;;  %v14295_v43 = vadd.f32 %v5082_v38, %v5081_v59  ;;  %v745_v35 = vpop.permute.xlu0 %744  ;;  %v14298_v45 = vmul.f32 0.5, %v776_v4  ;;  %v927_v36 = vadd.f32 %v13302_v53, %v892_v30  ;;  %v13303_v52 = vld [vmem:[%s13924_s14 + $0x60] sm:$0xff] }
 0x143   : > { %v1082_v10 = vmul.f32 0.5, %v1066_v31  ;;  %v14301_v5 = vpack.c.bf16 %v1208_v23, %v1208_v23  ;;  %v1078_v42 = vmul.f32 0.5, %v1062_v13  ;;  %v14304_v9 = vand.u32 %v11516_v1, %v14006_v7  ;;  %v14333_v31 = vld [vmem:[#allocation8 + $0x38] sm:$0xff]  ;;  %v13304_v13 = vld [vmem:[%s13924_s14 + $0x160] sm:$0xff] }
 0x144   : > { %v14310_v17 = vand.u32 %v11515_v27, %v14006_v7  ;;  %v14313_v57 = vmul.f32 0.5, %v927_v36  ;;  %v780_v38 = vadd.f32 %v13303_v52, %v745_v35  ;;  %v11518_v40 = vcombine.high %v14289_v14, %v14291_v22  ;;  %v14335_v23 = vld [vmem:[#allocation8 + $0x78] sm:$0xff]  ;;  %v13305_v35 = vld [vmem:[%s13924_s14 + $0x140] sm:$0xff] }
 0x145   : > { %v1100_v44 = vmul.f32 %v14104_v28, %v1082_v10  ;;  %v965_v50 = vadd.f32 %v949_v60, %v802_v56  ;;  %v957_v1 = vmul.f32 %v14098_v15, %v14285_v8  ;;  %v1096_v59 = vmul.f32 %v14104_v28, %v1078_v42  ;;  %11497 = vmatmul.mubr.msk.bf16.vlgmr.msra.gmra.mxu0 %vm1194_vm2, %v14301_v5  ;;  %v1039_v41 = vpop.permute.xlu1 %1038 }
 0x146   : > { %11498 = vmatmul.mubr.msk.bf16.vlgmr.msra.gmra.mxu1 %vm1194_vm2, %v14301_v5  ;;  %v1031_v51 = vpop.permute.xlu0 %1030  ;;  %v810_v27 = vmul.f32 %v14101_v21, %v14298_v45  ;;  %v961_v56 = vmul.f32 %v14098_v15, %v14313_v57  ;;  %v14329_v60 = vmul.f32 0.5, %v780_v38  ;;  %1476 = vmatpush1.bf16.msra.mxu0 %v14116_v49  ;;  %v1074_v30 = vadd.f32 %v13304_v13, %v1039_v41  ;;  %v13306_v13 = vld [vmem:[%s13924_s14 + $0x30] sm:$0xff] }
 0x147   : > { %v1116_v4 = vadd.f32 %v1100_v44, %v969_v46  ;;  %1517 = vmatpush1.bf16.msra.mxu1 %v14128_v47  ;;  %v1112_v16 = vadd.f32 %v1096_v59, %v965_v50  ;;  %v1070_v53 = vadd.f32 %v13305_v35, %v1031_v51  ;;  %v15899_v36 = vmov 0   ;;  %1557 = vmatprep.subr.bf16.mxu0 %v14131_v18 }
 0x148   : > { %1493 = vmatprep.mubr.bf16.mxu0 %v15899_v36  ;;  %1534 = vmatprep.mubr.bf16.mxu1 %v15899_v36  ;;  %v814_v49 = vmul.f32 %v14101_v21, %v14329_v60  ;;  %v1090_v52 = vmul.f32 0.5, %v1074_v30  ;;  %v973_v51 = vadd.f32 %v957_v1, %v810_v27 }
 0x149   : > { %v1134_v46 = vadd.f32 %v14106_v29, %v1116_v4  ;;  %1598 = vmatprep.subr.bf16.mxu1 %v14137_v61  ;;  %v1130_v44 = vadd.f32 %v14106_v29, %v1112_v16  ;;  %v14349_v38 = vmul.f32 0.5, %v1070_v53  ;;  %v733_v50 = vpop.permute.xlu1 %732 }
 0x14a   : > { %v725_v59 = vpop.permute.xlu0 %724  ;;  %v977_v4 = vadd.f32 %v961_v56, %v814_v49  ;;  %v774_v18 = vadd.f32 %v13306_v13, %v733_v50  ;;  %v1108_v35 = vmul.f32 %v14104_v28, %v1090_v52 }
 0x14b   : > { %vm1150_vm7 = vcmp.gt.f32.partialorder %v1134_v46, 0.0  ;;  %vm1146_vm8 = vcmp.gt.f32.partialorder %v1130_v44, 0.0  ;;  %v1104_v16 = vmul.f32 %v14104_v28, %v14349_v38 }
 0x14c   : > { %v1166_v61 = vsel %vm1150_vm7, 1.0, %v13625_v34  ;;  %v1162_v1 = vsel %vm1146_vm8, 1.0, %v13625_v34  ;;  %v1124_v49 = vadd.f32 %v1108_v35, %v977_v4  ;;  %v14382_v35 = vmul.f32 0.5, %v774_v18  ;;  %v13308_v18 = vld [vmem:[%s13924_s14 + $0xb0] sm:$0xff] }
 0x14d   : > { %v1182_v30 = vmul.f32 %v1166_v61, %v14256_v48  ;;  %v3106_v53 = vmul.f32 %v1166_v61, %v14260_v6  ;;  %v5058_v47 = vmul.f32 %v1166_v61, %v1082_v10  ;;  %v1178_v27 = vmul.f32 %v1162_v1, %v14258_v37  ;;  %11499 = vmatmul.mubr.msk.bf16.vlgmr.msra.gmra.mxu0 %vm1194_vm2, %v14301_v5  ;;  %v880_v44 = vpop.permute.xlu1 %879  ;;  %v13307_v6 = vld [vmem:[%s13924_s14 + $0x10] sm:$0xff] }
 0x14e   : > { %v3102_v56 = vmul.f32 %v1162_v1, %v14263_v39  ;;  %v5054_v46 = vmul.f32 %v1162_v1, %v1078_v42  ;;  %v872_v50 = vpop.permute.xlu0 %871  ;;  %v1120_v41 = vadd.f32 %v1104_v16, %v973_v51  ;;  %v770_v10 = vadd.f32 %v13307_v6, %v725_v59  ;;  %11500 = vmatmul.mubr.msk.bf16.vlgmr.msra.gmra.mxu1 %vm1194_vm2, %v14301_v5 }
 0x14f   : > { %v3119_v13 = vsel %vm1194_vm2, %v3106_v53, 0.0  ;;  %v5071_v48 = vsel %vm1194_vm2, %v5058_v47, 0.0  ;;  %1558 = vmatpush1.bf16.msra.mxu0 %v14134_v19  ;;  %v1142_v42 = vadd.f32 %v14106_v29, %v1124_v49  ;;  %1599 = vmatpush1.bf16.msra.mxu1 %v14140_v62  ;;  %v11520_v47 = vcombine.high %v14333_v31, %v14335_v23 }
 0x150   : > { %v3118_v37 = vsel %vm1194_vm2, %v3102_v56, 0.0  ;;  %v5070_v39 = vsel %vm1194_vm2, %v5054_v46, 0.0  ;;  %1575 = vmatprep.mubr.bf16.mxu0 %v15899_v36  ;;  %v1196_v59 = vsel %vm1194_vm2, %v1182_v30, 0.0  ;;  %v1138_v19 = vadd.f32 %v14106_v29, %v1120_v41  ;;  %1616 = vmatprep.mubr.bf16.mxu1 %v15899_v36 }
 0x151   : > { %v3120_v51 = vadd.f32 %v3119_v13, %v3118_v37  ;;  %v5072_v4 = vadd.f32 %v5071_v48, %v5070_v39  ;;  %v1195_v61 = vsel %vm1194_vm2, %v1178_v27, 0.0  ;;  %vm1158_vm9 = vcmp.gt.f32.partialorder %v1142_v42, 0.0  ;;  %v888_v62 = vpop.permute.xlu1 %887  ;;  %1639 = vmatprep.subr.bf16.mxu0 %v14143_v20  ;;  %1680 = vmatprep.subr.bf16.mxu1 %v14149_v26  ;;  %v13309_v26 = vld [vmem:[%s13924_s14 + $0x90] sm:$0xff] }
 0x152   : > { %v741_v16 = vpop.permute.xlu0 %740  ;;  %v14390_v30 = vand.u32 %v11518_v40, %v14006_v7  ;;  %v1174_v41 = vsel %vm1158_vm9, 1.0, %v13625_v34  ;;  %vm1154_vm10 = vcmp.gt.f32.partialorder %v1138_v19, 0.0  ;;  %v14393_v53 = vmul.f32 0.5, %v770_v10 }
 0x153   : > { %v921_v1 = vadd.f32 %v13308_v18, %v880_v44  ;;  %v3114_v27 = vmul.f32 %v1174_v41, %v14313_v57  ;;  %v5066_v56 = vmul.f32 %v1174_v41, %v1090_v52  ;;  %v1170_v20 = vsel %vm1154_vm10, 1.0, %v13625_v34  ;;  %v13310_v57 = vld [vmem:[%s13924_s14 + $0xd0] sm:$0xff] }
 0x154   : > { %v917_v46 = vadd.f32 %v13309_v26, %v872_v50  ;;  %v1197_v49 = vadd.f32 %v1196_v59, %v1195_v61  ;;  %v1186_v13 = vmul.f32 %v1170_v20, %v14298_v45  ;;  %v3110_v40 = vmul.f32 %v1170_v20, %v14285_v8 }
 0x155   : > { %v5062_v48 = vmul.f32 %v1170_v20, %v14349_v38  ;;  %v1190_v6 = vmul.f32 %v1174_v41, %v14329_v60  ;;  %v5075_v10 = vsel %vm1194_vm2, %v5066_v56, 0.0  ;;  %v808_v44 = vmul.f32 %v14101_v21, %v14382_v35  ;;  %11501 = vmatmul.mubr.msk.bf16.vlgmr.msra.gmra.mxu0 %vm1194_vm2, %v14301_v5  ;;  %v1027_v50 = vpop.permute.xlu1 %1026  ;;  %v13311_v41 = vld [vmem:[%s13924_s14 + $0x50] sm:$0xff] }
 0x156   : > { %v925_v52 = vadd.f32 %v13310_v57, %v888_v62  ;;  %v1019_v37 = vpop.permute.xlu0 %1018  ;;  %v1198_v45 = vsel %vm1194_vm2, %v1186_v13, 0.0  ;;  %v3121_v8 = vsel %vm1194_vm2, %v3110_v40, 0.0  ;;  %v14412_v38 = vmul.f32 0.5, %v921_v1  ;;  %11502 = vmatmul.mubr.msk.bf16.vlgmr.msra.gmra.mxu1 %vm1194_vm2, %v14301_v5  ;;  %1640 = vmatpush1.bf16.msra.mxu0 %v14146_v24  ;;  %v13312_v1 = vld [vmem:[%s13924_s14 + $0x130] sm:$0xff] }
 0x157   : > { %v5073_v60 = vsel %vm1194_vm2, %v5062_v48, 0.0  ;;  %v3122_v39 = vadd.f32 %v3121_v8, %v3120_v51  ;;  %v804_v59 = vmul.f32 %v14101_v21, %v14393_v53  ;;  %v14419_v19 = vmul.f32 0.5, %v917_v46  ;;  %1681 = vmatpush1.bf16.msra.mxu1 %v14152_v63  ;;  %1657 = vmatprep.mubr.bf16.mxu0 %v15899_v36  ;;  %v14430_v51 = vld [vmem:[#allocation8 + $0x100] sm:$0xff] }
 0x158   : > { %v5074_v42 = vadd.f32 %v5073_v60, %v5072_v4  ;;  %v3123_v61 = vsel %vm1194_vm2, %v3114_v27, 0.0  ;;  %v955_v62 = vmul.f32 %v14098_v15, %v14412_v38  ;;  %v778_v18 = vadd.f32 %v13311_v41, %v741_v16  ;;  %1698 = vmatprep.mubr.bf16.mxu1 %v15899_v36  ;;  %1836 = vmatprep.subr.bf16.mxu0 %v14165_v11  ;;  %v14432_v4 = vld [vmem:[#allocation8 + $0x140] sm:$0xff] }
 0x159   : > { %v1068_v24 = vadd.f32 %v13312_v1, %v1027_v50  ;;  %v1199_v63 = vadd.f32 %v1198_v45, %v1197_v49  ;;  %v14434_v56 = vadd.f32 %v3123_v61, %v3122_v39  ;;  %v14438_v20 = vmul.f32 0.5, %v925_v52  ;;  %v896_v26 = vpop.permute.xlu1 %895  ;;  %1877 = vmatprep.subr.bf16.mxu1 %v14173_v54  ;;  %v13314_v45 = vld [vmem:[%s13924_s14 + $0x70] sm:$0xff]  ;;  %v14483_v1 = vld [vmem:[#allocation8 + $0x148] sm:$0xff] }
 0x15a   : > { %v14436_v27 = vadd.f32 %v5075_v10, %v5074_v42  ;;  %v749_v16 = vpop.permute.xlu0 %748  ;;  %v971_v46 = vadd.f32 %v955_v62, %v808_v44  ;;  %v951_v11 = vmul.f32 %v14098_v15, %v14419_v19  ;;  %v14443_v13 = vmul.f32 0.5, %v778_v18  ;;  %v14481_v18 = vld [vmem:[#allocation8 + $0x108] sm:$0xff] }
 0x15b   : > { %v1084_v49 = vmul.f32 0.5, %v1068_v24  ;;  %v15900_v40 = vcombine.low %v14289_v14, %v14291_v22  ;;  %v14455_v10 = vand.u32 %v11520_v47, %v14006_v7  ;;  %v15901_v54 = vcombine.low %v14333_v31, %v14335_v23  ;;  %v13313_v22 = vld [vmem:[%s13924_s14 + $0x110] sm:$0xff] }
 0x15c   : > { %v11530_v57 = vcombine.high %v14430_v51, %v14432_v4  ;;  %v1200_v52 = vsel %vm1194_vm2, %v1190_v6, 0.0  ;;  %v1064_v50 = vadd.f32 %v13313_v22, %v1019_v37  ;;  %v782_v8 = vadd.f32 %v13314_v45, %v749_v16  ;;  %v13315_v23 = vld [vmem:[%s13924_s14 + $0xf0] sm:$0xff] }
 0x15d   : > { %v14449_v48 = vand.u32 %v15900_v40, %v14006_v7  ;;  %v14461_v44 = vand.u32 %v15901_v54, %v14006_v7  ;;  %v1102_v14 = vmul.f32 %v14104_v28, %v1084_v49  ;;  %v1201_v60 = vadd.f32 %v1200_v52, %v1199_v63  ;;  %11503 = vmatmul.mubr.msk.bf16.vlgmr.msra.gmra.mxu0 %vm1194_vm2, %v14301_v5  ;;  %v1043_v42 = vpop.permute.xlu1 %1042  ;;  %v13316_v63 = vld [vmem:[%s13924_s14 + $0x150] sm:$0xff] }
 0x15e   : > { %v959_v47 = vmul.f32 %v14098_v15, %v14438_v20  ;;  %v812_v31 = vmul.f32 %v14101_v21, %v14443_v13  ;;  %v929_v39 = vadd.f32 %v13315_v23, %v896_v26  ;;  %v1035_v6 = vpop.permute.xlu0 %1034  ;;  %v967_v61 = vadd.f32 %v951_v11, %v804_v59  ;;  %11504 = vmatmul.mubr.msk.bf16.vlgmr.msra.gmra.mxu1 %vm1194_vm2, %v14301_v5  ;;  %v13317_v59 = vld [vmem:[%s13924_s14 + $0x170] sm:$0xff] }
 0x15f   : > { %v1118_v37 = vadd.f32 %v1102_v14, %v971_v46  ;;  %v1080_v62 = vmul.f32 0.5, %v1064_v50  ;;  %v14476_v41 = vmul.f32 0.5, %v782_v8  ;;  %1837 = vmatpush1.bf16.msra.mxu0 %v14168_v12  ;;  %1878 = vmatpush1.bf16.msra.mxu1 %v14176_v55  ;;  %v1072_v16 = vadd.f32 %v13316_v63, %v1035_v6 }
 0x160   : > { %v14485_v24 = vmul.f32 0.5, %v929_v39  ;;  %v1076_v26 = vadd.f32 %v13317_v59, %v1043_v42  ;;  %1854 = vmatprep.mubr.bf16.mxu0 %v15899_v36  ;;  %v11529_v46 = vcombine.low %v14430_v51, %v14432_v4  ;;  %1895 = vmatprep.mubr.bf16.mxu1 %v15899_v36  ;;  %v975_v55 = vadd.f32 %v959_v47, %v812_v31  ;;  %v13318_v42 = vld [vmem:[%s13924_s14 + $0x18] sm:$0xff] }
 0x161   : > { %v1136_v5 = vadd.f32 %v14106_v29, %v1118_v37  ;;  %v1098_v12 = vmul.f32 %v14104_v28, %v1080_v62  ;;  %v816_v11 = vmul.f32 %v14101_v21, %v14476_v41  ;;  %1918 = vmatprep.subr.bf16.mxu0 %v14195_v25  ;;  %v1088_v54 = vmul.f32 0.5, %v1072_v16  ;;  %v735_v51 = vpop.permute.xlu1 %734  ;;  %1959 = vmatprep.subr.bf16.mxu1 %v14205_v2 }
 0x162   : > { %v963_v40 = vmul.f32 %v14098_v15, %v14485_v24  ;;  %v14501_v52 = vmul.f32 0.5, %v1076_v26  ;;  %v727_v14 = vpop.permute.xlu0 %726  ;;  %v14504_v4 = vpack.c.bf16 %v1201_v60, %v1201_v60  ;;  %v11532_v50 = vcombine.high %v14481_v18, %v14483_v1 }
 0x163   : > { %vm1152_vm11 = vcmp.gt.f32.partialorder %v1136_v5, 0.0  ;;  %v1114_v22 = vadd.f32 %v1098_v12, %v967_v61  ;;  %v1106_v8 = vmul.f32 %v14104_v28, %v1088_v54  ;;  %v11531_v60 = vcombine.low %v14481_v18, %v14483_v1 }
 0x164   : > { %v1168_v25 = vsel %vm1152_vm11, 1.0, %v13625_v34  ;;  %v979_v45 = vadd.f32 %v963_v40, %v816_v11  ;;  %v1110_v47 = vmul.f32 %v14104_v28, %v14501_v52  ;;  %v771_v61 = vadd.f32 %v13318_v42, %v727_v14 }
 0x165   : > { %v3108_v31 = vmul.f32 %v1168_v25, %v14412_v38  ;;  %v5060_v23 = vmul.f32 %v1168_v25, %v1084_v49  ;;  %v1132_v2 = vadd.f32 %v14106_v29, %v1114_v22  ;;  %v1122_v39 = vadd.f32 %v1106_v8, %v975_v55  ;;  %11521 = vmatmul.mubr.msk.bf16.vlgmr.msra.gmra.mxu0 %vm1194_vm2, %v14504_v4  ;;  %v882_v63 = vpop.permute.xlu1 %881  ;;  %v13319_v38 = vld [vmem:[%s13924_s14 + $0x38] sm:$0xff] }
 0x166   : > { %v1126_v6 = vadd.f32 %v1110_v47, %v979_v45  ;;  %v874_v37 = vpop.permute.xlu0 %873  ;;  %v14520_v16 = vand.u32 %v11530_v57, %v14006_v7  ;;  %v775_v49 = vadd.f32 %v13319_v38, %v735_v51  ;;  %11522 = vmatmul.mubr.msk.bf16.vlgmr.msra.gmra.mxu1 %vm1194_vm2, %v14504_v4  ;;  %1919 = vmatpush1.bf16.msra.mxu0 %v14198_v58  ;;  %v13320_v55 = vld [vmem:[%s13924_s14 + $0x98] sm:$0xff] }
 0x167   : > { %vm1148_vm12 = vcmp.gt.f32.partialorder %v1132_v2, 0.0  ;;  %v14527_v18 = vand.u32 %v11529_v46, %v14006_v7  ;;  %v14530_v1 = vand.u32 %v11532_v50, %v14006_v7  ;;  %v1184_v59 = vmul.f32 %v1168_v25, %v14382_v35  ;;  %1960 = vmatpush1.bf16.msra.mxu1 %v14208_v3  ;;  %1936 = vmatprep.mubr.bf16.mxu0 %v15899_v36  ;;  %v13321_v8 = vld [vmem:[%s13924_s14 + $0xb8] sm:$0xff] }
 0x168   : > { %v1164_v57 = vsel %vm1148_vm12, 1.0, %v13625_v34  ;;  %v1140_v26 = vadd.f32 %v14106_v29, %v1122_v39  ;;  %v1144_v5 = vadd.f32 %v14106_v29, %v1126_v6  ;;  %v3133_v58 = vsel %vm1194_vm2, %v3108_v31, 0.0  ;;  %1977 = vmatprep.mubr.bf16.mxu1 %v15899_v36  ;;  %2000 = vmatprep.subr.bf16.mxu0 %v14249_v0 }
 0x169   : > { %v5085_v46 = vsel %vm1194_vm2, %v5060_v23, 0.0  ;;  %v3104_v12 = vmul.f32 %v1164_v57, %v14419_v19  ;;  %v5056_v11 = vmul.f32 %v1164_v57, %v1080_v62  ;;  %v14542_v35 = vmul.f32 0.5, %v771_v61  ;;  %v890_v3 = vpop.permute.xlu1 %889  ;;  %2041 = vmatprep.subr.bf16.mxu1 %v14304_v9 }
 0x16a   : > { %vm1156_vm13 = vcmp.gt.f32.partialorder %v1140_v26, 0.0  ;;  %vm1160_vm14 = vcmp.gt.f32.partialorder %v1144_v5, 0.0  ;;  %v918_v40 = vadd.f32 %v13320_v55, %v874_v37  ;;  %v743_v14 = vpop.permute.xlu0 %742  ;;  %v14550_v22 = vmul.f32 0.5, %v775_v49 }
 0x16b   : > { %v3132_v51 = vsel %vm1194_vm2, %v3104_v12, 0.0  ;;  %v5084_v19 = vsel %vm1194_vm2, %v5056_v11, 0.0  ;;  %v1172_v62 = vsel %vm1156_vm13, 1.0, %v13625_v34  ;;  %v1180_v50 = vmul.f32 %v1164_v57, %v14393_v53  ;;  %v13323_v11 = vld [vmem:[%s13924_s14 + $0xd8] sm:$0xff] }
 0x16c   : > { %v3134_v25 = vadd.f32 %v3133_v58, %v3132_v51  ;;  %v5086_v45 = vadd.f32 %v5085_v46, %v5084_v19  ;;  %v922_v47 = vadd.f32 %v13321_v8, %v882_v63  ;;  %v3112_v31 = vmul.f32 %v1172_v62, %v14438_v20  ;;  %v13324_v19 = vld [vmem:[%s13924_s14 + $0x118] sm:$0xff] }
 0x16d   : > { %v5064_v0 = vmul.f32 %v1172_v62, %v1088_v54  ;;  %v14557_v9 = vsel %vm1160_vm14, 1.0, %v13625_v34  ;;  %v14559_v23 = vmul.f32 0.5, %v918_v40  ;;  %v1210_v2 = vsel %vm1194_vm2, %v1184_v59, 0.0  ;;  %11523 = vmatmul.mubr.msk.bf16.vlgmr.msra.gmra.mxu0 %vm1194_vm2, %v14504_v4  ;;  %v1029_v20 = vpop.permute.xlu1 %1028 }
 0x16e   : > { %v3116_v39 = vmul.f32 %v14557_v9, %v14485_v24  ;;  %v5068_v53 = vmul.f32 %v14557_v9, %v14501_v52  ;;  %v1021_v6 = vpop.permute.xlu0 %1020  ;;  %v14569_v54 = vand.u32 %v11531_v60, %v14006_v7  ;;  %v3135_v42 = vsel %vm1194_vm2, %v3112_v31, 0.0  ;;  %11524 = vmatmul.mubr.msk.bf16.vlgmr.msra.gmra.mxu1 %vm1194_vm2, %v14504_v4  ;;  %2001 = vmatpush1.bf16.msra.mxu0 %v14252_v33  ;;  %v14580_v52 = vld [vmem:[#allocation8 + $0x110] sm:$0xff] }
 0x16f   : > { %v5087_v61 = vsel %vm1194_vm2, %v5064_v0, 0.0  ;;  %v805_v37 = vmul.f32 %v14101_v21, %v14542_v35  ;;  %v809_v24 = vmul.f32 %v14101_v21, %v14550_v22  ;;  %v14582_v60 = vld [vmem:[#allocation8 + $0x150] sm:$0xff]  ;;  %v3136_v63 = vadd.f32 %v3135_v42, %v3134_v25  ;;  %2042 = vmatpush1.bf16.msra.mxu1 %v14310_v17  ;;  %2018 = vmatprep.mubr.bf16.mxu0 %v15899_v36  ;;  %v13322_v17 = vld [vmem:[%s13924_s14 + $0x58] sm:$0xff] }
 0x170   : > { %v5088_v38 = vadd.f32 %v5087_v61, %v5086_v45  ;;  %v3137_v49 = vsel %vm1194_vm2, %v3116_v39, 0.0  ;;  %v952_v59 = vmul.f32 %v14098_v15, %v14559_v23  ;;  %v1209_v57 = vsel %vm1194_vm2, %v1180_v50, 0.0  ;;  %2059 = vmatprep.mubr.bf16.mxu1 %v15899_v36  ;;  %2082 = vmatprep.subr.bf16.mxu0 %v14390_v30  ;;  %v13325_v30 = vld [vmem:[%s13924_s14 + $0x138] sm:$0xff] }
 0x171   : > { %v1188_v33 = vmul.f32 %v1172_v62, %v14443_v13  ;;  %v5089_v26 = vsel %vm1194_vm2, %v5068_v53, 0.0  ;;  %v14592_v5 = vmul.f32 0.5, %v922_v47  ;;  %v14596_v58 = vadd.f32 %v3137_v49, %v3136_v63  ;;  %v898_v13 = vpop.permute.xlu1 %897  ;;  %2123 = vmatprep.subr.bf16.mxu1 %v14455_v10  ;;  %v13326_v0 = vld [vmem:[%s13924_s14 + $0x78] sm:$0xff] }
 0x172   : > { %v14598_v46 = vadd.f32 %v5089_v26, %v5088_v38  ;;  %v779_v12 = vadd.f32 %v13322_v17, %v743_v14  ;;  %v926_v55 = vadd.f32 %v13323_v11, %v890_v3  ;;  %v751_v40 = vpop.permute.xlu0 %750  ;;  %v1065_v62 = vadd.f32 %v13324_v19, %v1021_v6  ;;  %v13328_v49 = vld [vmem:[%s13924_s14 + $0x158] sm:$0xff] }
 0x173   : > { %v956_v51 = vmul.f32 %v14098_v15, %v14592_v5  ;;  %v1069_v50 = vadd.f32 %v13325_v30, %v1029_v20  ;;  %v11534_v25 = vcombine.high %v14580_v52, %v14582_v60  ;;  %v1211_v45 = vadd.f32 %v1210_v2, %v1209_v57  ;;  %v13327_v20 = vld [vmem:[%s13924_s14 + $0xf8] sm:$0xff] }
 0x174   : > { %v968_v14 = vadd.f32 %v952_v59, %v805_v37  ;;  %v14609_v8 = vmul.f32 0.5, %v779_v12  ;;  %v14611_v3 = vmul.f32 0.5, %v926_v55  ;;  %v1081_v31 = vmul.f32 0.5, %v1065_v62  ;;  %v2154_v57 = vld [vmem:[#allocation8 + $0x118] sm:$0xff] }
 0x175   : > { %v972_v47 = vadd.f32 %v956_v51, %v809_v24  ;;  %v14613_v10 = vmul.f32 0.5, %v1069_v50  ;;  %v783_v39 = vadd.f32 %v13326_v0, %v751_v40  ;;  %v1212_v53 = vsel %vm1194_vm2, %v1188_v33, 0.0  ;;  %11525 = vmatmul.mubr.msk.bf16.vlgmr.msra.gmra.mxu0 %vm1194_vm2, %v14504_v4  ;;  %v1045_v37 = vpop.permute.xlu1 %1044  ;;  %v2162_v33 = vld [vmem:[#allocation8 + $0x158] sm:$0xff] }
 0x176   : > { %v813_v6 = vmul.f32 %v14101_v21, %v14609_v8  ;;  %v960_v2 = vmul.f32 %v14098_v15, %v14611_v3  ;;  %v930_v42 = vadd.f32 %v13327_v20, %v898_v13  ;;  %v1037_v61 = vpop.permute.xlu0 %1036  ;;  %v1099_v24 = vmul.f32 %v14104_v28, %v1081_v31  ;;  %11526 = vmatmul.mubr.msk.bf16.vlgmr.msra.gmra.mxu1 %vm1194_vm2, %v14504_v4  ;;  %v13329_v11 = vld [vmem:[%s13924_s14 + $0x178] sm:$0xff]  ;;  %s11230_s14 = scalar_lea.sflag [#allocation19], %s13921_s29 }
 0x177   : > { %v1103_v63 = vmul.f32 %v14104_v28, %v14613_v10  ;;  %v14627_v38 = vmul.f32 0.5, %v783_v39  ;;  %2083 = vmatpush1.bf16.msra.mxu0 %v14449_v48  ;;  %v1073_v59 = vadd.f32 %v13328_v49, %v1037_v61  ;;  %v1192_v26 = vmul.f32 %v14557_v9, %v14476_v41  ;;  %2124 = vmatpush1.bf16.msra.mxu1 %v14461_v44  ;;  %v14644_v41 = vld [vmem:[#allocation8 + $0x120] sm:$0xff]  ;;  %v2164_v61 = vld [vmem:[#allocation8 + $0x168] sm:$0xff] }
 0x178   : > { %v976_v17 = vadd.f32 %v960_v2, %v813_v6  ;;  %v14635_v12 = vmul.f32 0.5, %v930_v42  ;;  %v1077_v55 = vadd.f32 %v13329_v11, %v1045_v37  ;;  %2100 = vmatprep.mubr.bf16.mxu0 %v15899_v36  ;;  %v1115_v40 = vadd.f32 %v1099_v24, %v968_v14  ;;  %2141 = vmatprep.mubr.bf16.mxu1 %v15899_v36  ;;  %v14646_v9 = vld [vmem:[#allocation8 + $0x160] sm:$0xff]  ;;  %v2156_v42 = vld [vmem:[#allocation8 + $0x128] sm:$0xff] }
 0x179   : > { %v1119_v13 = vadd.f32 %v1103_v63, %v972_v47  ;;  %v817_v48 = vmul.f32 %v14101_v21, %v14627_v38  ;;  %v1089_v51 = vmul.f32 0.5, %v1073_v59  ;;  %2296 = vmatprep.subr.bf16.mxu0 %v14520_v16  ;;  %2337 = vmatprep.subr.bf16.mxu1 %v14530_v1  ;;  %v11533_v62 = vcombine.low %v14580_v52, %v14582_v60 }
 0x17a   : > { %v964_v44 = vmul.f32 %v14098_v15, %v14635_v12  ;;  %v1093_v19 = vmul.f32 0.5, %v1077_v55  ;;  %v11536_v30 = vcombine.high %v2154_v57, %v2162_v33  ;;  %v1213_v21 = vadd.f32 %v1212_v53, %v1211_v45 }
 0x17b   : > { %v1133_v50 = vadd.f32 %v14106_v29, %v1115_v40  ;;  %v1137_v14 = vadd.f32 %v14106_v29, %v1119_v13  ;;  %v1107_v16 = vmul.f32 %v14104_v28, %v1089_v51  ;;  %v1214_v47 = vsel %vm1194_vm2, %v1192_v26, 0.0 }
 0x17c   : > { %v980_v0 = vadd.f32 %v964_v44, %v817_v48  ;;  %v1111_v39 = vmul.f32 %v14104_v28, %v1093_v19  ;;  %v11535_v15 = vcombine.low %v2154_v57, %v2162_v33  ;;  %v2250_v6 = vand.u32 %v11534_v25, %v14006_v7 }
 0x17d   : > { %vm1149_vm15 = vcmp.gt.f32.partialorder %v1133_v50, 0.0  ;;  %vm1153_vm0 = vcmp.gt.f32.partialorder %v1137_v14, 0.0  ;;  %v1123_v1 = vadd.f32 %v1107_v16, %v976_v17  ;;  %11527 = vmatmul.mubr.msk.bf16.vlgmr.msra.gmra.mxu0 %vm1194_vm2, %v14504_v4  ;;  %v2256_v45 = vand.u32 %v11536_v30, %v14006_v7 }
 0x17e   : > { %v14660_v52 = vsel %vm1149_vm15, 1.0, %v13625_v34  ;;  %v1127_v60 = vadd.f32 %v1111_v39, %v980_v0  ;;  %v11538_v53 = vcombine.high %v14644_v41, %v14646_v9  ;;  %v1215_v2 = vadd.f32 %v1214_v47, %v1213_v21  ;;  %11528 = vmatmul.mubr.msk.bf16.vlgmr.msra.gmra.mxu1 %vm1194_vm2, %v14504_v4  ;;  %2297 = vmatpush1.bf16.msra.mxu0 %v14527_v18  ;;  %v2166_v21 = vld [vmem:[#allocation8 + $0x178] sm:$0xff] }
 0x17f   : > { %v3105_v28 = vmul.f32 %v14660_v52, %v14559_v23  ;;  %v5057_v20 = vmul.f32 %v14660_v52, %v1081_v31  ;;  %v14671_v25 = vsel %vm1153_vm0, 1.0, %v13625_v34  ;;  %v1141_v63 = vadd.f32 %v14106_v29, %v1123_v1  ;;  %2338 = vmatpush1.bf16.msra.mxu1 %v14569_v54  ;;  %2314 = vmatprep.mubr.bf16.mxu0 %v15899_v36  ;;  %v2627_v1 = vld [vmem:[#allocation8 + $0x180] sm:$0xff] }
 0x180   : > { %v3109_v37 = vmul.f32 %v14671_v25, %v14592_v5  ;;  %v5061_v24 = vmul.f32 %v14671_v25, %v14613_v10  ;;  %v1145_v23 = vadd.f32 %v14106_v29, %v1127_v60  ;;  %v2247_v4 = vand.u32 %v11533_v62, %v14006_v7  ;;  %2355 = vmatprep.mubr.bf16.mxu1 %v15899_v36  ;;  %v2165_v62 = vld [vmem:[#allocation8 + $0x170] sm:$0xff] }
 0x181   : > { %v3139_v31 = vsel %vm1194_vm2, %v3105_v28, 0.0  ;;  %v5091_v49 = vsel %vm1194_vm2, %v5057_v20, 0.0  ;;  %v2253_v5 = vand.u32 %v11535_v15, %v14006_v7  ;;  %vm1157_vm1 = vcmp.gt.f32.partialorder %v1141_v63, 0.0  ;;  %2378 = vmatprep.subr.bf16.mxu0 %v2250_v6  ;;  %2419 = vmatprep.subr.bf16.mxu1 %v2256_v45  ;;  %v2635_v6 = vld [vmem:[#allocation8 + $0x1c0] sm:$0xff]  ;;  %v2636_v28 = vld [vmem:[#allocation8 + $0x1c8] sm:$0xff] }
 0x182   : > { %v3140_v10 = vsel %vm1194_vm2, %v3109_v37, 0.0  ;;  %v5092_v59 = vsel %vm1194_vm2, %v5061_v24, 0.0  ;;  %v11540_v29 = vcombine.high %v2156_v42, %v2164_v61  ;;  %v1173_v33 = vsel %vm1157_vm1, 1.0, %v13625_v34 }
 0x183   : > { %v3141_v18 = vadd.f32 %v3140_v10, %v3139_v31  ;;  %v5093_v57 = vadd.f32 %v5092_v59, %v5091_v49  ;;  %vm1161_vm3 = vcmp.gt.f32.partialorder %v1145_v23, 0.0  ;;  %v14692_v54 = vpack.c.bf16 %v1215_v2, %v1215_v2  ;;  %v2628_v2 = vld [vmem:[#allocation8 + $0x188] sm:$0xff]  ;;  %v2629_v49 = vld [vmem:[#allocation8 + $0x190] sm:$0xff]  ;;  %v2630_v10 = vld [vmem:[#allocation8 + $0x198] sm:$0xff] }
 0x184   : > { %v3113_v26 = vmul.f32 %v1173_v33, %v14611_v3  ;;  %v5065_v17 = vmul.f32 %v1173_v33, %v1089_v51  ;;  %v14696_v11 = vsel %vm1161_vm3, 1.0, %v13625_v34  ;;  %v2262_v13 = vand.u32 %v11538_v53, %v14006_v7  ;;  %v2157_v51 = vld [vmem:[#allocation8 + $0x130] sm:$0xff] }
 0x185   : > { %v3117_v55 = vmul.f32 %v14696_v11, %v14635_v12  ;;  %v5069_v40 = vmul.f32 %v14696_v11, %v1093_v19  ;;  %11545 = vmatmul.mubr.msk.bf16.vlgmr.msra.gmra.mxu0 %vm1194_vm2, %v14692_v54  ;;  %v2268_v3 = vand.u32 %v11540_v29, %v14006_v7  ;;  %v11537_v12 = vcombine.low %v14644_v41, %v14646_v9  ;;  %v2158_v19 = vld [vmem:[#allocation8 + $0x138] sm:$0xff] }
 0x186   : > { %v3142_v48 = vsel %vm1194_vm2, %v3113_v26, 0.0  ;;  %v5094_v44 = vsel %vm1194_vm2, %v5065_v17, 0.0  ;;  %11546 = vmatmul.mubr.msk.bf16.vlgmr.msra.gmra.mxu1 %vm1194_vm2, %v14692_v54  ;;  %2379 = vmatpush1.bf16.msra.mxu0 %v2247_v4  ;;  %v11539_v16 = vcombine.low %v2156_v42, %v2164_v61  ;;  %v11542_v39 = vcombine.high %v2157_v51, %v2165_v62 }
 0x187   : > { %v3143_v34 = vadd.f32 %v3142_v48, %v3141_v18  ;;  %v5095_v30 = vadd.f32 %v5094_v44, %v5093_v57  ;;  %v3144_v50 = vsel %vm1194_vm2, %v3117_v55, 0.0  ;;  %v5096_v14 = vsel %vm1194_vm2, %v5069_v40, 0.0  ;;  %2420 = vmatpush1.bf16.msra.mxu1 %v2253_v5  ;;  %2396 = vmatprep.mubr.bf16.mxu0 %v15899_v36  ;;  %v2637_v5 = vld [vmem:[#allocation8 + $0x1d0] sm:$0xff]  ;;  %v2631_v44 = vld [vmem:[#allocation8 + $0x1a0] sm:$0xff] }
 0x188   : > { %2437 = vmatprep.mubr.bf16.mxu1 %v15899_v36  ;;  %2460 = vmatprep.subr.bf16.mxu0 %v2262_v13  ;;  %v11544_v41 = vcombine.high %v2158_v19, %v2166_v21  ;;  %v2259_v9 = vand.u32 %v11537_v12, %v14006_v7  ;;  %v2265_v15 = vand.u32 %v11539_v16, %v14006_v7 }
 0x189   : > { %v14714_v47 = vadd.f32 %v3144_v50, %v3143_v34  ;;  %v14716_v0 = vadd.f32 %v5096_v14, %v5095_v30  ;;  %2501 = vmatprep.subr.bf16.mxu1 %v2268_v3  ;;  %v2274_v60 = vand.u32 %v11542_v39, %v14006_v7  ;;  %v11541_v53 = vcombine.low %v2157_v51, %v2165_v62  ;;  %v2639_v3 = vld [vmem:[#allocation8 + $0x1e0] sm:$0xff]  ;;  %v2632_v51 = vld [vmem:[#allocation8 + $0x1a8] sm:$0xff]  ;;  %v2633_v39 = vld [vmem:[#allocation8 + $0x1b0] sm:$0xff] }
 0x18a   : > { %v2280_v45 = vand.u32 %v11544_v41, %v14006_v7  ;;  %v11543_v20 = vcombine.low %v2158_v19, %v2166_v21  ;;  %v11554_v42 = vcombine.high %v2627_v1, %v2635_v6  ;;  %v11556_v61 = vcombine.high %v2628_v2, %v2636_v28  ;;  %v2640_v62 = vld [vmem:[#allocation8 + $0x1e8] sm:$0xff]  ;;  %v2641_v41 = vld [vmem:[#allocation8 + $0x1f0] sm:$0xff] }
 0x18b   : > { %v1181_v37 = vmul.f32 %v14660_v52, %v14542_v35  ;;  %v1185_v24 = vmul.f32 %v14671_v25, %v14550_v22  ;;  %v1189_v63 = vmul.f32 %v1173_v33, %v14609_v8  ;;  %v2271_v23 = vand.u32 %v11541_v53, %v14006_v7  ;;  %v2638_v25 = vld [vmem:[#allocation8 + $0x1d8] sm:$0xff] }
 0x18c   : > { %v2277_v31 = vand.u32 %v11543_v20, %v14006_v7  ;;  %v2714_v4 = vand.u32 %v11554_v42, %v14006_v7  ;;  %v2720_v59 = vand.u32 %v11556_v61, %v14006_v7  ;;  %v11553_v52 = vcombine.low %v2627_v1, %v2635_v6  ;;  %v2642_v1 = vld [vmem:[#allocation8 + $0x1f8] sm:$0xff]  ;;  %v3151_v42 = vld [vmem:[#allocation8 + $0x200] sm:$0xff] }
 0x18d   : > { %11547 = vmatmul.mubr.msk.bf16.vlgmr.msra.gmra.mxu0 %vm1194_vm2, %v14692_v54  ;;  %v1216_v35 = vsel %vm1194_vm2, %v1181_v37, 0.0  ;;  %v1217_v22 = vsel %vm1194_vm2, %v1185_v24, 0.0  ;;  %v1219_v8 = vsel %vm1194_vm2, %v1189_v63, 0.0  ;;  %v11555_v29 = vcombine.low %v2628_v2, %v2636_v28  ;;  %v3159_v61 = vld [vmem:[#allocation8 + $0x240] sm:$0xff]  ;;  %v3152_v24 = vld [vmem:[#allocation8 + $0x208] sm:$0xff] }
 0x18e   : > { %11548 = vmatmul.mubr.msk.bf16.vlgmr.msra.gmra.mxu1 %vm1194_vm2, %v14692_v54  ;;  %2461 = vmatpush1.bf16.msra.mxu0 %v2259_v9  ;;  %v1193_v18 = vmul.f32 %v14696_v11, %v14627_v38  ;;  %v11558_v57 = vcombine.high %v2629_v49, %v2637_v5  ;;  %v1218_v33 = vadd.f32 %v1217_v22, %v1216_v35  ;;  %v3160_v63 = vld [vmem:[#allocation8 + $0x248] sm:$0xff]  ;;  %v3153_v35 = vld [vmem:[#allocation8 + $0x210] sm:$0xff] }
 0x18f   : > { %2502 = vmatpush1.bf16.msra.mxu1 %v2265_v15  ;;  %2478 = vmatprep.mubr.bf16.mxu0 %v15899_v36  ;;  %v11560_v26 = vcombine.high %v2630_v10, %v2638_v25  ;;  %v2711_v17 = vand.u32 %v11553_v52, %v14006_v7  ;;  %v2717_v40 = vand.u32 %v11555_v29, %v14006_v7  ;;  %v2634_v15 = vld [vmem:[#allocation8 + $0x1b8] sm:$0xff]  ;;  %v3161_v22 = vld [vmem:[#allocation8 + $0x250] sm:$0xff] }
 0x190   : > { %2519 = vmatprep.mubr.bf16.mxu1 %v15899_v36  ;;  %2542 = vmatprep.subr.bf16.mxu0 %v2274_v60  ;;  %v1220_v55 = vadd.f32 %v1219_v8, %v1218_v33  ;;  %v1221_v13 = vsel %vm1194_vm2, %v1193_v18, 0.0  ;;  %v2726_v48 = vand.u32 %v11558_v57, %v14006_v7  ;;  %v11557_v11 = vcombine.low %v2629_v49, %v2637_v5  ;;  %v3154_v52 = vld [vmem:[#allocation8 + $0x218] sm:$0xff] }
 0x191   : > { %2583 = vmatprep.subr.bf16.mxu1 %v2280_v45  ;;  %v2732_v38 = vand.u32 %v11560_v26, %v14006_v7  ;;  %v11559_v30 = vcombine.low %v2630_v10, %v2638_v25  ;;  %v11562_v12 = vcombine.high %v2631_v44, %v2639_v3  ;;  %v11564_v19 = vcombine.high %v2632_v51, %v2640_v62  ;;  %v3162_v25 = vld [vmem:[#allocation8 + $0x258] sm:$0xff] }
 0x192   : > { %v1222_v34 = vadd.f32 %v1221_v13, %v1220_v55  ;;  %v2723_v21 = vand.u32 %v11557_v11, %v14006_v7  ;;  %v11561_v9 = vcombine.low %v2631_v44, %v2639_v3  ;;  %v11563_v6 = vcombine.low %v2632_v51, %v2640_v62  ;;  %v3163_v13 = vld [vmem:[#allocation8 + $0x260] sm:$0xff]  ;;  %v3156_v44 = vld [vmem:[#allocation8 + $0x228] sm:$0xff] }
 0x193   : > { %v2738_v14 = vand.u32 %v11562_v12, %v14006_v7  ;;  %v2744_v16 = vand.u32 %v11564_v19, %v14006_v7  ;;  %v11566_v60 = vcombine.high %v2633_v39, %v2641_v41  ;;  %v11568_v45 = vcombine.high %v2634_v15, %v2642_v1  ;;  %v3164_v3 = vld [vmem:[#allocation8 + $0x268] sm:$0xff] }
 0x194   : > { %v14761_v50 = vpack.c.bf16 %v1222_v34, %v1222_v34  ;;  %v2735_v53 = vand.u32 %v11561_v9, %v14006_v7  ;;  %v2741_v2 = vand.u32 %v11563_v6, %v14006_v7  ;;  %v11565_v37 = vcombine.low %v2633_v39, %v2641_v41 }
 0x195   : > { %11549 = vmatmul.mubr.msk.bf16.vlgmr.msra.gmra.mxu0 %vm1194_vm2, %v14692_v54  ;;  %v2750_v28 = vand.u32 %v11566_v60, %v14006_v7  ;;  %v2756_v20 = vand.u32 %v11568_v45, %v14006_v7  ;;  %v11580_v49 = vcombine.high %v3152_v24, %v3160_v63  ;;  %v11577_v8 = vcombine.low %v3151_v42, %v3159_v61  ;;  %v3627_v60 = vld [vmem:[#allocation8 + $0x280] sm:$0xff] }
 0x196   : > { %11550 = vmatmul.mubr.msk.bf16.vlgmr.msra.gmra.mxu1 %vm1194_vm2, %v14692_v54  ;;  %2543 = vmatpush1.bf16.msra.mxu0 %v2271_v23  ;;  %v11567_v23 = vcombine.low %v2634_v15, %v2642_v1  ;;  %v11579_v29 = vcombine.low %v3152_v24, %v3160_v63  ;;  %v11582_v18 = vcombine.high %v3153_v35, %v3161_v22  ;;  %v3635_v45 = vld [vmem:[#allocation8 + $0x2c0] sm:$0xff] }
 0x197   : > { %2584 = vmatpush1.bf16.msra.mxu1 %v2277_v31  ;;  %2560 = vmatprep.mubr.bf16.mxu0 %v15899_v36  ;;  %v11578_v31 = vcombine.high %v3151_v42, %v3159_v61  ;;  %v11584_v57 = vcombine.high %v3154_v52, %v3162_v25  ;;  %v3235_v33 = vand.u32 %v11577_v8, %v14006_v7 }
 0x198   : > { %2601 = vmatprep.mubr.bf16.mxu1 %v15899_v36  ;;  %2772 = vmatprep.subr.bf16.mxu0 %v2714_v4  ;;  %v2747_v4 = vand.u32 %v11565_v37, %v14006_v7  ;;  %v2753_v5 = vand.u32 %v11567_v23, %v14006_v7  ;;  %v3241_v26 = vand.u32 %v11579_v29, %v14006_v7 }
 0x199   : > { %2813 = vmatprep.subr.bf16.mxu1 %v2720_v59  ;;  %v3238_v10 = vand.u32 %v11578_v31, %v14006_v7  ;;  %v3244_v59 = vand.u32 %v11580_v49, %v14006_v7  ;;  %v3256_v55 = vand.u32 %v11584_v57, %v14006_v7  ;;  %v11588_v51 = vcombine.high %v3156_v44, %v3164_v3  ;;  %v3629_v31 = vld [vmem:[#allocation8 + $0x290] sm:$0xff]  ;;  %v3639_v57 = vld [vmem:[#allocation8 + $0x2e0] sm:$0xff] }
 0x19a   : > { %v14805_v34 = vpack.c.bf16 %v14434_v56, %v14434_v56  ;;  %v11587_v56 = vcombine.low %v3156_v44, %v3164_v3  ;;  %v11602_v42 = vcombine.high %v3627_v60, %v3635_v45  ;;  %v3637_v49 = vld [vmem:[#allocation8 + $0x2d0] sm:$0xff]  ;;  %v14849_v44 = vpack.c.bf16 %v14293_v32, %v14293_v32 }
 0x19b   : > { %v3268_v19 = vand.u32 %v11588_v51, %v14006_v7  ;;  %v3633_v51 = vld [vmem:[#allocation8 + $0x2b0] sm:$0xff] }
 0x19c   : > { %v3265_v15 = vand.u32 %v11587_v56, %v14006_v7  ;;  %v3714_v63 = vand.u32 %v11602_v42, %v14006_v7  ;;  %v4103_v56 = vld [vmem:[#allocation8 + $0x300] sm:$0xff]  ;;  %v4113_v42 = vld [vmem:[#allocation8 + $0x350] sm:$0xff] }
 0x19d   : > { %11551 = vmatmul.mubr.msk.bf16.vlgmr.msra.gmra.mxu0 %vm1194_vm2, %v14692_v54 }
 0x19e   : > { %11552 = vmatmul.mubr.msk.bf16.vlgmr.msra.gmra.mxu1 %vm1194_vm2, %v14692_v54  ;;  %2773 = vmatpush1.bf16.msra.mxu0 %v2711_v17  ;;  %v2729_v54 = vand.u32 %v11559_v30, %v14006_v7  ;;  %v3250_v17 = vand.u32 %v11582_v18, %v14006_v7  ;;  %v3631_v18 = vld [vmem:[#allocation8 + $0x2a0] sm:$0xff] }
 0x19f   : > { %2814 = vmatpush1.bf16.msra.mxu1 %v2717_v40  ;;  %2790 = vmatprep.mubr.bf16.mxu0 %v15899_v36  ;;  %v3155_v40 = vld [vmem:[#allocation8 + $0x220] sm:$0xff] }
 0x1a0   : > { %2831 = vmatprep.mubr.bf16.mxu1 %v15899_v36  ;;  %2854 = vmatprep.subr.bf16.mxu0 %v2726_v48  ;;  %v11581_v48 = vcombine.low %v3153_v35, %v3161_v22  ;;  %v11586_v11 = vcombine.high %v3155_v40, %v3163_v13  ;;  %v11606_v35 = vcombine.high %v3629_v31, %v3637_v49 }
 0x1a1   : > { %2895 = vmatprep.subr.bf16.mxu1 %v2732_v38  ;;  %v11583_v38 = vcombine.low %v3154_v52, %v3162_v25 }
 0x1a2   : > { %v3247_v62 = vand.u32 %v11581_v48, %v14006_v7  ;;  %v3262_v12 = vand.u32 %v11586_v11, %v14006_v7  ;;  %v3726_v25 = vand.u32 %v11606_v35, %v14006_v7  ;;  %v4115_v35 = vld [vmem:[#allocation8 + $0x360] sm:$0xff] }
 0x1a3   : > { %v3253_v30 = vand.u32 %v11583_v38, %v14006_v7 }
 0x1a5   : > { %11569 = vmatmul.mubr.msk.bf16.vlgmr.msra.gmra.mxu0 %vm1194_vm2, %v14761_v50 }
 0x1a6   : > { %11570 = vmatmul.mubr.msk.bf16.vlgmr.msra.gmra.mxu1 %vm1194_vm2, %v14761_v50  ;;  %2855 = vmatpush1.bf16.msra.mxu0 %v2723_v21  ;;  %v3157_v21 = vld [vmem:[#allocation8 + $0x230] sm:$0xff] }
 0x1a7   : > { %2896 = vmatpush1.bf16.msra.mxu1 %v2729_v54  ;;  %2872 = vmatprep.mubr.bf16.mxu0 %v15899_v36  ;;  %v11585_v54 = vcombine.low %v3155_v40, %v3163_v13  ;;  %v11610_v40 = vcombine.high %v3631_v18, %v3639_v57 }
 0x1a8   : > { %2913 = vmatprep.mubr.bf16.mxu1 %v15899_v36  ;;  %2936 = vmatprep.subr.bf16.mxu0 %v2738_v14  ;;  %v3158_v14 = vld [vmem:[#allocation8 + $0x238] sm:$0xff] }
 0x1a9   : > { %2977 = vmatprep.subr.bf16.mxu1 %v2744_v16  ;;  %v3166_v16 = vld [vmem:[#allocation8 + $0x278] sm:$0xff]  ;;  %v3259_v9 = vand.u32 %v11585_v54, %v14006_v7  ;;  %v3738_v38 = vand.u32 %v11610_v40, %v14006_v7 }
 0x1aa   : > { %v11592_v41 = vcombine.high %v3158_v14, %v3166_v16 }
 0x1ac   : > { %v3280_v6 = vand.u32 %v11592_v41, %v14006_v7 }
 0x1ad   : > { %11571 = vmatmul.mubr.msk.bf16.vlgmr.msra.gmra.mxu0 %vm1194_vm2, %v14761_v50 }
 0x1ae   : > { %11572 = vmatmul.mubr.msk.bf16.vlgmr.msra.gmra.mxu1 %vm1194_vm2, %v14761_v50  ;;  %2937 = vmatpush1.bf16.msra.mxu0 %v2735_v53 }
 0x1af   : > { %2978 = vmatpush1.bf16.msra.mxu1 %v2741_v2  ;;  %2954 = vmatprep.mubr.bf16.mxu0 %v15899_v36  ;;  %v3628_v2 = vld [vmem:[#allocation8 + $0x288] sm:$0xff] }
 0x1b0   : > { %2995 = vmatprep.mubr.bf16.mxu1 %v15899_v36  ;;  %3018 = vmatprep.subr.bf16.mxu0 %v2750_v28  ;;  %v3636_v28 = vld [vmem:[#allocation8 + $0x2c8] sm:$0xff] }
 0x1b1   : > { %3059 = vmatprep.subr.bf16.mxu1 %v2756_v20  ;;  %v11591_v20 = vcombine.low %v3158_v14, %v3166_v16  ;;  %v11604_v61 = vcombine.high %v3628_v2, %v3636_v28 }
 0x1b3   : > { %v3277_v24 = vand.u32 %v11591_v20, %v14006_v7  ;;  %v3720_v23 = vand.u32 %v11604_v61, %v14006_v7  ;;  %v4105_v20 = vld [vmem:[#allocation8 + $0x310] sm:$0xff] }
 0x1b5   : > { %11573 = vmatmul.mubr.msk.bf16.vlgmr.msra.gmra.mxu0 %vm1194_vm2, %v14761_v50 }
 0x1b6   : > { %11574 = vmatmul.mubr.msk.bf16.vlgmr.msra.gmra.mxu1 %vm1194_vm2, %v14761_v50  ;;  %3019 = vmatpush1.bf16.msra.mxu0 %v2747_v4  ;;  %v11601_v4 = vcombine.low %v3627_v60, %v3635_v45 }
 0x1b7   : > { %3060 = vmatpush1.bf16.msra.mxu1 %v2753_v5  ;;  %3036 = vmatprep.mubr.bf16.mxu0 %v15899_v36  ;;  %v3630_v5 = vld [vmem:[#allocation8 + $0x298] sm:$0xff] }
 0x1b8   : > { %3077 = vmatprep.mubr.bf16.mxu1 %v15899_v36  ;;  %3296 = vmatprep.subr.bf16.mxu0 %v3238_v10  ;;  %v3638_v10 = vld [vmem:[#allocation8 + $0x2d8] sm:$0xff]  ;;  %v3711_v8 = vand.u32 %v11601_v4, %v14006_v7 }
 0x1b9   : > { %3337 = vmatprep.subr.bf16.mxu1 %v3244_v59  ;;  %v11603_v59 = vcombine.low %v3628_v2, %v3636_v28  ;;  %v11608_v22 = vcombine.high %v3630_v5, %v3638_v10 }
 0x1bb   : > { %v3717_v52 = vand.u32 %v11603_v59, %v14006_v7  ;;  %v3732_v29 = vand.u32 %v11608_v22, %v14006_v7  ;;  %v4107_v59 = vld [vmem:[#allocation8 + $0x320] sm:$0xff]  ;;  %v11629_v22 = vcombine.low %v4105_v20, %v4113_v42 }
 0x1bd   : > { %11575 = vmatmul.mubr.msk.bf16.vlgmr.msra.gmra.mxu0 %vm1194_vm2, %v14761_v50 }
 0x1be   : > { %11576 = vmatmul.mubr.msk.bf16.vlgmr.msra.gmra.mxu1 %vm1194_vm2, %v14761_v50  ;;  %3297 = vmatpush1.bf16.msra.mxu0 %v3235_v33  ;;  %v3165_v50 = vld [vmem:[#allocation8 + $0x270] sm:$0xff]  ;;  %v11605_v33 = vcombine.low %v3629_v31, %v3637_v49 }
 0x1bf   : > { %3338 = vmatpush1.bf16.msra.mxu1 %v3241_v26  ;;  %3314 = vmatprep.mubr.bf16.mxu0 %v15899_v36  ;;  %v11590_v39 = vcombine.high %v3157_v21, %v3165_v50  ;;  %v11589_v53 = vcombine.low %v3157_v21, %v3165_v50  ;;  %v3632_v26 = vld [vmem:[#allocation8 + $0x2a8] sm:$0xff] }
 0x1c0   : > { %3355 = vmatprep.mubr.bf16.mxu1 %v15899_v36  ;;  %3378 = vmatprep.subr.bf16.mxu0 %v3250_v17  ;;  %v3640_v17 = vld [vmem:[#allocation8 + $0x2e8] sm:$0xff]  ;;  %v3723_v48 = vand.u32 %v11605_v33, %v14006_v7  ;;  %v14893_v33 = vpack.c.bf16 %v14596_v58, %v14596_v58  ;;  %v11633_v58 = vcombine.low %v4107_v59, %v4115_v35 }
 0x1c1   : > { %3419 = vmatprep.subr.bf16.mxu1 %v3256_v55  ;;  %v3274_v1 = vand.u32 %v11590_v39, %v14006_v7  ;;  %v3271_v37 = vand.u32 %v11589_v53, %v14006_v7  ;;  %v11607_v55 = vcombine.low %v3630_v5, %v3638_v10  ;;  %v11612_v13 = vcombine.high %v3632_v26, %v3640_v17  ;;  %v4111_v39 = vld [vmem:[#allocation8 + $0x340] sm:$0xff] }
 0x1c2   : > { %v11611_v32 = vcombine.low %v3632_v26, %v3640_v17  ;;  %v11625_v61 = vcombine.low %v4103_v56, %v4111_v39 }
 0x1c3   : > { %v3729_v3 = vand.u32 %v11607_v55, %v14006_v7  ;;  %v3744_v11 = vand.u32 %v11612_v13, %v14006_v7 }
 0x1c4   : > { %v3741_v54 = vand.u32 %v11611_v32, %v14006_v7  ;;  %v4187_v49 = vand.u32 %v11625_v61, %v14006_v7 }
 0x1c5   : > { %11593 = vmatmul.mubr.msk.bf16.vlgmr.msra.gmra.mxu0 %vm1194_vm2, %v14805_v34 }
 0x1c6   : > { %11594 = vmatmul.mubr.msk.bf16.vlgmr.msra.gmra.mxu1 %vm1194_vm2, %v14805_v34  ;;  %3379 = vmatpush1.bf16.msra.mxu0 %v3247_v62  ;;  %v3641_v62 = vld [vmem:[#allocation8 + $0x2f0] sm:$0xff] }
 0x1c7   : > { %3420 = vmatpush1.bf16.msra.mxu1 %v3253_v30  ;;  %3396 = vmatprep.mubr.bf16.mxu0 %v15899_v36  ;;  %v3634_v30 = vld [vmem:[#allocation8 + $0x2b8] sm:$0xff]  ;;  %v11613_v41 = vcombine.low %v3633_v51, %v3641_v62 }
 0x1c8   : > { %3437 = vmatprep.mubr.bf16.mxu1 %v15899_v36  ;;  %3460 = vmatprep.subr.bf16.mxu0 %v3262_v12  ;;  %v3642_v12 = vld [vmem:[#allocation8 + $0x2f8] sm:$0xff] }
 0x1c9   : > { %3501 = vmatprep.subr.bf16.mxu1 %v3268_v19  ;;  %v11614_v19 = vcombine.high %v3633_v51, %v3641_v62  ;;  %v11616_v21 = vcombine.high %v3634_v30, %v3642_v12  ;;  %v3747_v45 = vand.u32 %v11613_v41, %v14006_v7  ;;  %v4587_v41 = vld [vmem:[#allocation8 + $0x3c0] sm:$0xff] }
 0x1cb   : > { %v3750_v14 = vand.u32 %v11614_v19, %v14006_v7  ;;  %v3756_v16 = vand.u32 %v11616_v21, %v14006_v7  ;;  %v4211_v19 = vand.u32 %v11633_v58, %v14006_v7 }
 0x1cd   : > { %11595 = vmatmul.mubr.msk.bf16.vlgmr.msra.gmra.mxu0 %vm1194_vm2, %v14805_v34 }
 0x1ce   : > { %11596 = vmatmul.mubr.msk.bf16.vlgmr.msra.gmra.mxu1 %vm1194_vm2, %v14805_v34  ;;  %3461 = vmatpush1.bf16.msra.mxu0 %v3259_v9  ;;  %v4104_v9 = vld [vmem:[#allocation8 + $0x308] sm:$0xff] }
 0x1cf   : > { %3502 = vmatpush1.bf16.msra.mxu1 %v3265_v15  ;;  %3478 = vmatprep.mubr.bf16.mxu0 %v15899_v36  ;;  %v4112_v15 = vld [vmem:[#allocation8 + $0x348] sm:$0xff] }
 0x1d0   : > { %3519 = vmatprep.mubr.bf16.mxu1 %v15899_v36  ;;  %3542 = vmatprep.subr.bf16.mxu0 %v3274_v1  ;;  %v11615_v1 = vcombine.low %v3634_v30, %v3642_v12  ;;  %v11628_v60 = vcombine.high %v4104_v9, %v4112_v15 }
 0x1d1   : > { %3583 = vmatprep.subr.bf16.mxu1 %v3280_v6  ;;  %v11626_v6 = vcombine.high %v4103_v56, %v4111_v39  ;;  %v4579_v39 = vld [vmem:[#allocation8 + $0x380] sm:$0xff] }
 0x1d2   : > { %v3753_v53 = vand.u32 %v11615_v1, %v14006_v7  ;;  %v4196_v28 = vand.u32 %v11628_v60, %v14006_v7  ;;  %v4580_v1 = vld [vmem:[#allocation8 + $0x388] sm:$0xff] }
 0x1d3   : > { %v4190_v2 = vand.u32 %v11626_v6, %v14006_v7  ;;  %v4588_v6 = vld [vmem:[#allocation8 + $0x3c8] sm:$0xff] }
 0x1d5   : > { %11597 = vmatmul.mubr.msk.bf16.vlgmr.msra.gmra.mxu0 %vm1194_vm2, %v14805_v34 }
 0x1d6   : > { %11598 = vmatmul.mubr.msk.bf16.vlgmr.msra.gmra.mxu1 %vm1194_vm2, %v14805_v34  ;;  %3543 = vmatpush1.bf16.msra.mxu0 %v3271_v37  ;;  %v4106_v37 = vld [vmem:[#allocation8 + $0x318] sm:$0xff] }
 0x1d7   : > { %3584 = vmatpush1.bf16.msra.mxu1 %v3277_v24  ;;  %3560 = vmatprep.mubr.bf16.mxu0 %v15899_v36  ;;  %v4114_v24 = vld [vmem:[#allocation8 + $0x358] sm:$0xff] }
 0x1d8   : > { %3601 = vmatprep.mubr.bf16.mxu1 %v15899_v36  ;;  %3772 = vmatprep.subr.bf16.mxu0 %v3714_v63  ;;  %v11627_v63 = vcombine.low %v4104_v9, %v4112_v15  ;;  %v11632_v31 = vcombine.high %v4106_v37, %v4114_v24 }
 0x1d9   : > { %3813 = vmatprep.subr.bf16.mxu1 %v3720_v23  ;;  %v11630_v23 = vcombine.high %v4105_v20, %v4113_v42  ;;  %v11652_v20 = vcombine.high %v4580_v1, %v4588_v6 }
 0x1da   : > { %v4193_v4 = vand.u32 %v11627_v63, %v14006_v7  ;;  %v4208_v10 = vand.u32 %v11632_v31, %v14006_v7 }
 0x1db   : > { %v4202_v5 = vand.u32 %v11630_v23, %v14006_v7 }
 0x1dd   : > { %11599 = vmatmul.mubr.msk.bf16.vlgmr.msra.gmra.mxu0 %vm1194_vm2, %v14805_v34 }
 0x1de   : > { %11600 = vmatmul.mubr.msk.bf16.vlgmr.msra.gmra.mxu1 %vm1194_vm2, %v14805_v34  ;;  %3773 = vmatpush1.bf16.msra.mxu0 %v3711_v8  ;;  %v11609_v34 = vcombine.low %v3631_v18, %v3639_v57  ;;  %v4108_v8 = vld [vmem:[#allocation8 + $0x328] sm:$0xff]  ;;  %v4199_v57 = vand.u32 %v11629_v22, %v14006_v7  ;;  %v4590_v22 = vld [vmem:[#allocation8 + $0x3d8] sm:$0xff] }
 0x1df   : > { %3814 = vmatpush1.bf16.msra.mxu1 %v3717_v52  ;;  %3790 = vmatprep.mubr.bf16.mxu0 %v15899_v36  ;;  %v4116_v52 = vld [vmem:[#allocation8 + $0x368] sm:$0xff] }
 0x1e0   : > { %3831 = vmatprep.mubr.bf16.mxu1 %v15899_v36  ;;  %3854 = vmatprep.subr.bf16.mxu0 %v3726_v25  ;;  %v3735_v50 = vand.u32 %v11609_v34, %v14006_v7  ;;  %v11631_v25 = vcombine.low %v4106_v37, %v4114_v24  ;;  %v11636_v18 = vcombine.high %v4108_v8, %v4116_v52 }
 0x1e1   : > { %3895 = vmatprep.subr.bf16.mxu1 %v3732_v29  ;;  %v11634_v29 = vcombine.high %v4107_v59, %v4115_v35  ;;  %v11635_v62 = vcombine.low %v4108_v8, %v4116_v52  ;;  %v11649_v59 = vcombine.low %v4579_v39, %v4587_v41  ;;  %v4582_v35 = vld [vmem:[#allocation8 + $0x398] sm:$0xff]  ;;  %v11651_v52 = vcombine.low %v4580_v1, %v4588_v6 }
 0x1e2   : > { %v4205_v26 = vand.u32 %v11631_v25, %v14006_v7  ;;  %v4220_v13 = vand.u32 %v11636_v18, %v14006_v7 }
 0x1e3   : > { %v4214_v17 = vand.u32 %v11634_v29, %v14006_v7 }
 0x1e5   : > { %11617 = vmatmul.mubr.msk.bf16.vlgmr.msra.gmra.mxu0 %vm1194_vm2, %v14849_v44 }
 0x1e6   : > { %11618 = vmatmul.mubr.msk.bf16.vlgmr.msra.gmra.mxu1 %vm1194_vm2, %v14849_v44  ;;  %3855 = vmatpush1.bf16.msra.mxu0 %v3723_v48  ;;  %v4109_v48 = vld [vmem:[#allocation8 + $0x330] sm:$0xff] }
 0x1e7   : > { %3896 = vmatpush1.bf16.msra.mxu1 %v3729_v3  ;;  %3872 = vmatprep.mubr.bf16.mxu0 %v15899_v36  ;;  %v4110_v3 = vld [vmem:[#allocation8 + $0x338] sm:$0xff] }
 0x1e8   : > { %3913 = vmatprep.mubr.bf16.mxu1 %v15899_v36  ;;  %3936 = vmatprep.subr.bf16.mxu0 %v3738_v38  ;;  %v4118_v38 = vld [vmem:[#allocation8 + $0x378] sm:$0xff] }
 0x1e9   : > { %3977 = vmatprep.subr.bf16.mxu1 %v3744_v11  ;;  %v11640_v32 = vcombine.high %v4110_v3, %v4118_v38 }
 0x1eb   : > { %v4232_v56 = vand.u32 %v11640_v32, %v14006_v7  ;;  %v4584_v32 = vld [vmem:[#allocation8 + $0x3a8] sm:$0xff] }
 0x1ed   : > { %11619 = vmatmul.mubr.msk.bf16.vlgmr.msra.gmra.mxu0 %vm1194_vm2, %v14849_v44 }
 0x1ee   : > { %11620 = vmatmul.mubr.msk.bf16.vlgmr.msra.gmra.mxu1 %vm1194_vm2, %v14849_v44  ;;  %3937 = vmatpush1.bf16.msra.mxu0 %v3735_v50 }
 0x1ef   : > { %3978 = vmatpush1.bf16.msra.mxu1 %v3741_v54  ;;  %3954 = vmatprep.mubr.bf16.mxu0 %v15899_v36  ;;  %v4217_v54 = vand.u32 %v11635_v62, %v14006_v7  ;;  %v4583_v62 = vld [vmem:[#allocation8 + $0x3a0] sm:$0xff] }
 0x1f0   : > { %3995 = vmatprep.mubr.bf16.mxu1 %v15899_v36  ;;  %4018 = vmatprep.subr.bf16.mxu0 %v3750_v14 }
 0x1f1   : > { %4059 = vmatprep.subr.bf16.mxu1 %v3756_v16 }
 0x1f5   : > { %11621 = vmatmul.mubr.msk.bf16.vlgmr.msra.gmra.mxu0 %vm1194_vm2, %v14849_v44 }
 0x1f6   : > { %11622 = vmatmul.mubr.msk.bf16.vlgmr.msra.gmra.mxu1 %vm1194_vm2, %v14849_v44  ;;  %4019 = vmatpush1.bf16.msra.mxu0 %v3747_v45  ;;  %v11639_v45 = vcombine.low %v4110_v3, %v4118_v38 }
 0x1f7   : > { %4060 = vmatpush1.bf16.msra.mxu1 %v3753_v53  ;;  %4036 = vmatprep.mubr.bf16.mxu0 %v15899_v36 }
 0x1f8   : > { %4077 = vmatprep.mubr.bf16.mxu1 %v15899_v36  ;;  %4248 = vmatprep.subr.bf16.mxu0 %v4190_v2  ;;  %v11650_v2 = vcombine.high %v4579_v39, %v4587_v41  ;;  %v4229_v24 = vand.u32 %v11639_v45, %v14006_v7 }
 0x1f9   : > { %4289 = vmatprep.subr.bf16.mxu1 %v4196_v28 }
 0x1fa   : > { %v4666_v23 = vand.u32 %v11650_v2, %v14006_v7 }
 0x1fd   : > { %11623 = vmatmul.mubr.msk.bf16.vlgmr.msra.gmra.mxu0 %vm1194_vm2, %v14849_v44 }
 0x1fe   : > { %11624 = vmatmul.mubr.msk.bf16.vlgmr.msra.gmra.mxu1 %vm1194_vm2, %v14849_v44  ;;  %4249 = vmatpush1.bf16.msra.mxu0 %v4187_v49  ;;  %v4117_v44 = vld [vmem:[#allocation8 + $0x370] sm:$0xff]  ;;  %v4672_v49 = vand.u32 %v11652_v20, %v14006_v7 }
 0x1ff   : > { %4290 = vmatpush1.bf16.msra.mxu1 %v4193_v4  ;;  %4266 = vmatprep.mubr.bf16.mxu0 %v15899_v36  ;;  %v11638_v34 = vcombine.high %v4109_v48, %v4117_v44  ;;  %v11637_v15 = vcombine.low %v4109_v48, %v4117_v44  ;;  %v4581_v4 = vld [vmem:[#allocation8 + $0x390] sm:$0xff]  ;;  %v4669_v48 = vand.u32 %v11651_v52, %v14006_v7 }
 0x200   : > { %4307 = vmatprep.mubr.bf16.mxu1 %v15899_v36  ;;  %4330 = vmatprep.subr.bf16.mxu0 %v4202_v5  ;;  %v4589_v5 = vld [vmem:[#allocation8 + $0x3d0] sm:$0xff] }
 0x201   : > { %4371 = vmatprep.subr.bf16.mxu1 %v4208_v10  ;;  %v4226_v14 = vand.u32 %v11638_v34, %v14006_v7  ;;  %v4223_v61 = vand.u32 %v11637_v15, %v14006_v7  ;;  %v11654_v29 = vcombine.high %v4581_v4, %v4589_v5  ;;  %v4591_v34 = vld [vmem:[#allocation8 + $0x3e0] sm:$0xff]  ;;  %v14969_v15 = vpack.c.bf16 %v14714_v47, %v14714_v47 }
 0x202   : > { %v11657_v47 = vcombine.low %v4583_v62, %v4591_v34 }
 0x203   : > { %v4678_v58 = vand.u32 %v11654_v29, %v14006_v7 }
 0x205   : > { %v14897_v55 = vpop.f32.mrf.mxu0  ;;  %11641 = vmatmul.mubr.msk.bf16.vlgmr.msra.gmra.mxu0 %vm1194_vm2, %v14893_v33 }
 0x206   : > { %v14899_v40 = vpop.f32.mrf.mxu1  ;;  %11642 = vmatmul.mubr.msk.bf16.vlgmr.msra.gmra.mxu1 %vm1194_vm2, %v14893_v33  ;;  %4331 = vmatpush1.bf16.msra.mxu0 %v4199_v57  ;;  %v11656_v57 = vcombine.high %v4582_v35, %v4590_v22 }
 0x207   : > { %v14906_v11 = vpop.f32.mrf.mxu0  ;;  %4372 = vmatpush1.bf16.msra.mxu1 %v4205_v26  ;;  %4348 = vmatprep.mubr.bf16.mxu0 %v15899_v36 }
 0x208   : > { %v14908_v51 = vpop.f32.mrf.mxu1  ;;  %4389 = vmatprep.mubr.bf16.mxu1 %v15899_v36  ;;  %4412 = vmatprep.subr.bf16.mxu0 %v4214_v17  ;;  %v4663_v17 = vand.u32 %v11649_v59, %v14006_v7  ;;  %v4684_v38 = vand.u32 %v11656_v57, %v14006_v7 }
 0x209   : > { %v1417_v30 = vpop.f32.mrf.mxu0  ;;  %4453 = vmatprep.subr.bf16.mxu1 %v4220_v13 }
 0x20a   : > { %v1458_v12 = vpop.f32.mrf.mxu1 }
 0x20b   : > { %v1418_v21 = vpop.f32.mrf.mxu0  ;;  %v11653_v12 = vcombine.low %v4581_v4, %v4589_v5 }
 0x20c   : > { %v1459_v50 = vpop.f32.mrf.mxu1 }
 0x20d   : > { %v14915_v16 = vpop.f32.mrf.mxu0  ;;  %11643 = vmatmul.mubr.msk.bf16.vlgmr.msra.gmra.mxu0 %vm1194_vm2, %v14893_v33  ;;  %v11655_v50 = vcombine.low %v4582_v35, %v4590_v22  ;;  %v4675_v41 = vand.u32 %v11653_v12, %v14006_v7  ;;  %v5112_v12 = vld [vmem:[#allocation8 + $0x448] sm:$0xff] }
 0x20e   : > { %v14920_v9 = vpop.f32.mrf.mxu1  ;;  %11644 = vmatmul.mubr.msk.bf16.vlgmr.msra.gmra.mxu1 %vm1194_vm2, %v14893_v33  ;;  %4413 = vmatpush1.bf16.msra.mxu0 %v4211_v19  ;;  %v4592_v19 = vld [vmem:[#allocation8 + $0x3e8] sm:$0xff] }
 0x20f   : > { %v14924_v60 = vpop.f32.mrf.mxu0  ;;  %4454 = vmatpush1.bf16.msra.mxu1 %v4217_v54  ;;  %4430 = vmatprep.mubr.bf16.mxu0 %v15899_v36  ;;  %v11660_v39 = vcombine.high %v4584_v32, %v4592_v19  ;;  %v4681_v6 = vand.u32 %v11655_v50, %v14006_v7  ;;  %v11659_v5 = vcombine.low %v4584_v32, %v4592_v19 }
 0x210   : > { %v14927_v53 = vpop.f32.mrf.mxu1  ;;  %4471 = vmatprep.mubr.bf16.mxu1 %v15899_v36  ;;  %4494 = vmatprep.subr.bf16.mxu0 %v4226_v14  ;;  %v11658_v14 = vcombine.high %v4583_v62, %v4591_v34  ;;  %v5104_v34 = vld [vmem:[#allocation8 + $0x408] sm:$0xff] }
 0x211   : > { %v1499_v28 = vpop.f32.mrf.mxu0  ;;  %4535 = vmatprep.subr.bf16.mxu1 %v4232_v56  ;;  %v4696_v20 = vand.u32 %v11660_v39, %v14006_v7 }
 0x212   : > { %v1540_v42 = vpop.f32.mrf.mxu1  ;;  %v4690_v2 = vand.u32 %v11658_v14, %v14006_v7 }
 0x213   : > { %v1500_v37 = vpop.f32.mrf.mxu0  ;;  %v4585_v42 = vld [vmem:[#allocation8 + $0x3b0] sm:$0xff] }
 0x214   : > { %v1541_v63 = vpop.f32.mrf.mxu1 }
 0x215   : > { %v14933_v31 = vpop.f32.mrf.mxu0  ;;  %11645 = vmatmul.mubr.msk.bf16.vlgmr.msra.gmra.mxu0 %vm1194_vm2, %v14893_v33  ;;  %v4586_v63 = vld [vmem:[#allocation8 + $0x3b8] sm:$0xff] }
 0x216   : > { %v14938_v10 = vpop.f32.mrf.mxu1  ;;  %11646 = vmatmul.mubr.msk.bf16.vlgmr.msra.gmra.mxu1 %vm1194_vm2, %v14893_v33  ;;  %4495 = vmatpush1.bf16.msra.mxu0 %v4223_v61  ;;  %v4593_v61 = vld [vmem:[#allocation8 + $0x3f0] sm:$0xff] }
 0x217   : > { %v14942_v8 = vpop.f32.mrf.mxu0  ;;  %4536 = vmatpush1.bf16.msra.mxu1 %v4229_v24  ;;  %4512 = vmatprep.mubr.bf16.mxu0 %v15899_v36  ;;  %v11662_v35 = vcombine.high %v4585_v42, %v4593_v61  ;;  %v11661_v62 = vcombine.low %v4585_v42, %v4593_v61  ;;  %v5113_v42 = vld [vmem:[#allocation8 + $0x450] sm:$0xff] }
 0x218   : > { %v14945_v25 = vpop.f32.mrf.mxu1  ;;  %4553 = vmatprep.mubr.bf16.mxu1 %v15899_v36  ;;  %4724 = vmatprep.subr.bf16.mxu0 %v4666_v23  ;;  %v4594_v23 = vld [vmem:[#allocation8 + $0x3f8] sm:$0xff] }
 0x219   : > { %v1581_v18 = vpop.f32.mrf.mxu0  ;;  %4765 = vmatprep.subr.bf16.mxu1 %v4672_v49  ;;  %v11663_v50 = vcombine.low %v4586_v63, %v4594_v23 }
 0x21a   : > { %v1622_v26 = vpop.f32.mrf.mxu1  ;;  %v4687_v18 = vand.u32 %v11657_v47, %v14006_v7 }
 0x21b   : > { %v1582_v13 = vpop.f32.mrf.mxu0  ;;  %v4693_v26 = vand.u32 %v11659_v5, %v14006_v7 }
 0x21c   : > { %v1623_v44 = vpop.f32.mrf.mxu1 }
 0x21d   : > { %v14951_v3 = vpop.f32.mrf.mxu0  ;;  %11647 = vmatmul.mubr.msk.bf16.vlgmr.msra.gmra.mxu0 %vm1194_vm2, %v14893_v33  ;;  %v5111_v44 = vld [vmem:[#allocation8 + $0x440] sm:$0xff] }
 0x21e   : > { %v14956_v30 = vpop.f32.mrf.mxu1  ;;  %11648 = vmatmul.mubr.msk.bf16.vlgmr.msra.gmra.mxu1 %vm1194_vm2, %v14893_v33  ;;  %4725 = vmatpush1.bf16.msra.mxu0 %v4663_v17 }
 0x21f   : > { %v14960_v21 = vpop.f32.mrf.mxu0  ;;  %4766 = vmatpush1.bf16.msra.mxu1 %v4669_v48  ;;  %4742 = vmatprep.mubr.bf16.mxu0 %v15899_v36 }
 0x220   : > { %v14963_v54 = vpop.f32.mrf.mxu1  ;;  %4783 = vmatprep.mubr.bf16.mxu1 %v15899_v36  ;;  %4806 = vmatprep.subr.bf16.mxu0 %v4678_v58 }
 0x221   : > { %v1663_v56 = vpop.f32.mrf.mxu0  ;;  %4847 = vmatprep.subr.bf16.mxu1 %v4684_v38 }
 0x222   : > { %v1704_v33 = vpop.f32.mrf.mxu1 }
 0x223   : > { %v1664_v1 = vpop.f32.mrf.mxu0 }
 0x224   : > { %v1705_v45 = vpop.f32.mrf.mxu1  ;;  %v4699_v1 = vand.u32 %v11661_v62, %v14006_v7 }
 0x225   : > { %v1856_v28 = vpop.f32.mrf.mxu0  ;;  %11665 = vmatmul.mubr.msk.bf16.vlgmr.msra.gmra.mxu0 %vm1194_vm2, %v14969_v15  ;;  %v4705_v45 = vand.u32 %v11663_v50, %v14006_v7 }
 0x226   : > { %v14977_v37 = vadd.f32 %v1856_v28, %v14897_v55  ;;  %v1897_v24 = vpop.f32.mrf.mxu1  ;;  %11666 = vmatmul.mubr.msk.bf16.vlgmr.msra.gmra.mxu1 %vm1194_vm2, %v14969_v15  ;;  %4807 = vmatpush1.bf16.msra.mxu0 %v4675_v41 }
 0x227   : > { %v14982_v49 = vadd.f32 %v1897_v24, %v14899_v40  ;;  %v1858_v4 = vpop.f32.mrf.mxu0  ;;  %4848 = vmatpush1.bf16.msra.mxu1 %v4681_v6  ;;  %4824 = vmatprep.mubr.bf16.mxu0 %v15899_v36  ;;  %v11664_v40 = vcombine.high %v4586_v63, %v4594_v23  ;;  %v5106_v63 = vld [vmem:[#allocation8 + $0x418] sm:$0xff] }
 0x228   : > { %v14986_v59 = vadd.f32 %v1858_v4, %v14906_v11  ;;  %v1899_v55 = vpop.f32.mrf.mxu1  ;;  %4865 = vmatprep.mubr.bf16.mxu1 %v15899_v36  ;;  %4888 = vmatprep.subr.bf16.mxu0 %v4690_v2  ;;  %v4702_v11 = vand.u32 %v11662_v35, %v14006_v7  ;;  %v5114_v23 = vld [vmem:[#allocation8 + $0x458] sm:$0xff] }
 0x229   : > { %v14990_v22 = vadd.f32 %v1899_v55, %v14908_v51  ;;  %v1860_v52 = vpop.f32.mrf.mxu0  ;;  %4929 = vmatprep.subr.bf16.mxu1 %v4696_v20  ;;  %v4708_v48 = vand.u32 %v11664_v40, %v14006_v7  ;;  %v5103_v51 = vld [vmem:[#allocation8 + $0x400] sm:$0xff]  ;;  %v11675_v55 = vcombine.low %v5104_v34, %v5112_v12 }
 0x22a   : > { %v1901_v29 = vpop.f32.mrf.mxu1  ;;  %v11674_v56 = vcombine.high %v5103_v51, %v5111_v44  ;;  %v11673_v47 = vcombine.low %v5103_v51, %v5111_v44  ;;  %v5115_v51 = vld [vmem:[#allocation8 + $0x460] sm:$0xff] }
 0x22b   : > { %v1861_v57 = vpop.f32.mrf.mxu0 }
 0x22c   : > { %v1902_v17 = vpop.f32.mrf.mxu1  ;;  %v5187_v57 = vand.u32 %v11673_v47, %v14006_v7  ;;  %v5110_v47 = vld [vmem:[#allocation8 + $0x438] sm:$0xff] }
 0x22d   : > { %v1938_v13 = vpop.f32.mrf.mxu0  ;;  %11667 = vmatmul.mubr.msk.bf16.vlgmr.msra.gmra.mxu0 %vm1194_vm2, %v14969_v15  ;;  %v5193_v17 = vand.u32 %v11675_v55, %v14006_v7 }
 0x22e   : > { %v14999_v58 = vadd.f32 %v1938_v13, %v14915_v16  ;;  %v1979_v38 = vpop.f32.mrf.mxu1  ;;  %11668 = vmatmul.mubr.msk.bf16.vlgmr.msra.gmra.mxu1 %vm1194_vm2, %v14969_v15  ;;  %4889 = vmatpush1.bf16.msra.mxu0 %v4687_v18 }
 0x22f   : > { %v15004_v32 = vadd.f32 %v1979_v38, %v14920_v9  ;;  %v1940_v19 = vpop.f32.mrf.mxu0  ;;  %4930 = vmatpush1.bf16.msra.mxu1 %v4693_v26  ;;  %4906 = vmatprep.mubr.bf16.mxu0 %v15899_v36  ;;  %v11676_v9 = vcombine.high %v5104_v34, %v5112_v12  ;;  %v5108_v34 = vld [vmem:[#allocation8 + $0x428] sm:$0xff] }
 0x230   : > { %v15008_v14 = vadd.f32 %v1940_v19, %v14924_v60  ;;  %v1981_v16 = vpop.f32.mrf.mxu1  ;;  %4947 = vmatprep.mubr.bf16.mxu1 %v15899_v36  ;;  %4970 = vmatprep.subr.bf16.mxu0 %v4702_v11  ;;  %v5190_v60 = vand.u32 %v11674_v56, %v14006_v7  ;;  %v5116_v12 = vld [vmem:[#allocation8 + $0x468] sm:$0xff] }
 0x231   : > { %v15012_v39 = vadd.f32 %v1981_v16, %v14927_v53  ;;  %v1942_v33 = vpop.f32.mrf.mxu0  ;;  %5011 = vmatprep.subr.bf16.mxu1 %v4708_v48  ;;  %v5196_v20 = vand.u32 %v11676_v9, %v14006_v7  ;;  %v5105_v53 = vld [vmem:[#allocation8 + $0x410] sm:$0xff]  ;;  %v11679_v16 = vcombine.low %v5106_v63, %v5114_v23  ;;  %v11683_v55 = vcombine.low %v5108_v34, %v5116_v12 }
 0x232   : > { %v1983_v41 = vpop.f32.mrf.mxu1  ;;  %v11678_v52 = vcombine.high %v5105_v53, %v5113_v42  ;;  %v11677_v62 = vcombine.low %v5105_v53, %v5113_v42  ;;  %v5117_v53 = vld [vmem:[#allocation8 + $0x470] sm:$0xff] }
 0x233   : > { %v1943_v6 = vpop.f32.mrf.mxu0 }
 0x234   : > { %v1984_v2 = vpop.f32.mrf.mxu1  ;;  %v15061_v6 = vpack.c.bf16 %v14436_v27, %v14436_v27 }
 0x235   : > { %v2020_v28 = vpop.f32.mrf.mxu0  ;;  %11669 = vmatmul.mubr.msk.bf16.vlgmr.msra.gmra.mxu0 %vm1194_vm2, %v14969_v15 }
 0x236   : > { %v15021_v61 = vadd.f32 %v2020_v28, %v14933_v31  ;;  %v2061_v24 = vpop.f32.mrf.mxu1  ;;  %11670 = vmatmul.mubr.msk.bf16.vlgmr.msra.gmra.mxu1 %vm1194_vm2, %v14969_v15  ;;  %4971 = vmatpush1.bf16.msra.mxu0 %v4699_v1  ;;  %v5199_v1 = vand.u32 %v11677_v62, %v14006_v7  ;;  %v5580_v62 = vld [vmem:[#allocation8 + $0x488] sm:$0xff] }
 0x237   : > { %v15026_v4 = vadd.f32 %v2061_v24, %v14938_v10  ;;  %v2022_v5 = vpop.f32.mrf.mxu0  ;;  %5012 = vmatpush1.bf16.msra.mxu1 %v4705_v45  ;;  %4988 = vmatprep.mubr.bf16.mxu0 %v15899_v36  ;;  %v11680_v10 = vcombine.high %v5106_v63, %v5114_v23  ;;  %v5205_v45 = vand.u32 %v11679_v16, %v14006_v7  ;;  %v5118_v63 = vld [vmem:[#allocation8 + $0x478] sm:$0xff] }
 0x238   : > { %v15030_v35 = vadd.f32 %v2022_v5, %v14942_v8  ;;  %v2063_v31 = vpop.f32.mrf.mxu1  ;;  %5029 = vmatprep.mubr.bf16.mxu1 %v15899_v36  ;;  %5248 = vmatprep.subr.bf16.mxu0 %v5190_v60  ;;  %v5202_v8 = vand.u32 %v11678_v52, %v14006_v7  ;;  %v11687_v16 = vcombine.low %v5110_v47, %v5118_v63 }
 0x239   : > { %v15034_v40 = vadd.f32 %v2063_v31, %v14945_v25  ;;  %v2024_v29 = vpop.f32.mrf.mxu0  ;;  %5289 = vmatprep.subr.bf16.mxu1 %v5196_v20  ;;  %v5208_v48 = vand.u32 %v11680_v10, %v14006_v7  ;;  %v5107_v25 = vld [vmem:[#allocation8 + $0x420] sm:$0xff]  ;;  %v5109_v20 = vld [vmem:[#allocation8 + $0x430] sm:$0xff] }
 0x23a   : > { %v2065_v18 = vpop.f32.mrf.mxu1  ;;  %v11681_v27 = vcombine.low %v5107_v25, %v5115_v51  ;;  %v11686_v52 = vcombine.high %v5109_v20, %v5117_v53 }
 0x23b   : > { %v2025_v26 = vpop.f32.mrf.mxu0 }
 0x23c   : > { %v2066_v11 = vpop.f32.mrf.mxu1 }
 0x23d   : > { %v2102_v13 = vpop.f32.mrf.mxu0  ;;  %11671 = vmatmul.mubr.msk.bf16.vlgmr.msra.gmra.mxu0 %vm1194_vm2, %v14969_v15 }
 0x23e   : > { %v15043_v44 = vadd.f32 %v2102_v13, %v14951_v3  ;;  %v2143_v38 = vpop.f32.mrf.mxu1  ;;  %11672 = vmatmul.mubr.msk.bf16.vlgmr.msra.gmra.mxu1 %vm1194_vm2, %v14969_v15  ;;  %5249 = vmatpush1.bf16.msra.mxu0 %v5187_v57  ;;  %v11682_v15 = vcombine.high %v5107_v25, %v5115_v51  ;;  %v5211_v57 = vand.u32 %v11681_v27, %v14006_v7  ;;  %v5582_v27 = vld [vmem:[#allocation8 + $0x498] sm:$0xff] }
 0x23f   : > { %v15048_v19 = vadd.f32 %v2143_v38, %v14956_v30  ;;  %v2104_v50 = vpop.f32.mrf.mxu0  ;;  %5290 = vmatpush1.bf16.msra.mxu1 %v5193_v17  ;;  %5266 = vmatprep.mubr.bf16.mxu0 %v15899_v36  ;;  %v11684_v30 = vcombine.high %v5108_v34, %v5116_v12  ;;  %v5217_v17 = vand.u32 %v11683_v55, %v14006_v7  ;;  %v5588_v34 = vld [vmem:[#allocation8 + $0x4c8] sm:$0xff] }
 0x240   : > { %v15052_v56 = vadd.f32 %v2104_v50, %v14960_v21  ;;  %v2145_v3 = vpop.f32.mrf.mxu1  ;;  %5307 = vmatprep.mubr.bf16.mxu1 %v15899_v36  ;;  %5330 = vmatprep.subr.bf16.mxu0 %v5202_v8  ;;  %v5214_v60 = vand.u32 %v11682_v15, %v14006_v7  ;;  %v11685_v38 = vcombine.low %v5109_v20, %v5117_v53 }
 0x241   : > { %v15056_v33 = vadd.f32 %v2145_v3, %v14963_v54  ;;  %v2106_v9 = vpop.f32.mrf.mxu0  ;;  %5371 = vmatprep.subr.bf16.mxu1 %v5208_v48  ;;  %v5220_v54 = vand.u32 %v11684_v30, %v14006_v7  ;;  %v5587_v48 = vld [vmem:[#allocation8 + $0x4c0] sm:$0xff]  ;;  %v11699_v55 = vcombine.low %v5580_v62, %v5588_v34 }
 0x242   : > { %v2147_v41 = vpop.f32.mrf.mxu1 }
 0x243   : > { %v2107_v21 = vpop.f32.mrf.mxu0 }
 0x244   : > { %v2148_v2 = vpop.f32.mrf.mxu1 }
 0x245   : > { %v2316_v28 = vpop.f32.mrf.mxu0  ;;  %11689 = vmatmul.mubr.msk.bf16.vlgmr.msra.gmra.mxu0 %vm1194_vm2, %v15061_v6 }
 0x246   : > { %v15069_v42 = vadd.f32 %v2316_v28, %v14977_v37  ;;  %v2357_v24 = vpop.f32.mrf.mxu1  ;;  %11690 = vmatmul.mubr.msk.bf16.vlgmr.msra.gmra.mxu1 %vm1194_vm2, %v15061_v6  ;;  %5331 = vmatpush1.bf16.msra.mxu0 %v5199_v1  ;;  %v5223_v1 = vand.u32 %v11685_v38, %v14006_v7  ;;  %v5584_v38 = vld [vmem:[#allocation8 + $0x4a8] sm:$0xff] }
 0x247   : > { %v15074_v23 = vadd.f32 %v2357_v24, %v14982_v49  ;;  %v2318_v5 = vpop.f32.mrf.mxu0  ;;  %5372 = vmatpush1.bf16.msra.mxu1 %v5205_v45  ;;  %5348 = vmatprep.mubr.bf16.mxu0 %v15899_v36  ;;  %v11688_v49 = vcombine.high %v5110_v47, %v5118_v63  ;;  %v5229_v45 = vand.u32 %v11687_v16, %v14006_v7  ;;  %v5590_v47 = vld [vmem:[#allocation8 + $0x4d8] sm:$0xff] }
 0x248   : > { %v15078_v31 = vadd.f32 %v2318_v5, %v14986_v59  ;;  %v2359_v37 = vpop.f32.mrf.mxu1  ;;  %5389 = vmatprep.mubr.bf16.mxu1 %v15899_v36  ;;  %5412 = vmatprep.subr.bf16.mxu0 %v5214_v60  ;;  %v5226_v59 = vand.u32 %v11686_v52, %v14006_v7  ;;  %v11703_v16 = vcombine.low %v5582_v27, %v5590_v47 }
 0x249   : > { %v15082_v29 = vadd.f32 %v2359_v37, %v14990_v22  ;;  %v2320_v10 = vpop.f32.mrf.mxu0  ;;  %5453 = vmatprep.subr.bf16.mxu1 %v5220_v54  ;;  %v5232_v13 = vand.u32 %v11688_v49, %v14006_v7  ;;  %v5579_v22 = vld [vmem:[#allocation8 + $0x480] sm:$0xff]  ;;  %v5589_v54 = vld [vmem:[#allocation8 + $0x4d0] sm:$0xff] }
 0x24a   : > { %v2361_v18 = vpop.f32.mrf.mxu1  ;;  %v11698_v15 = vcombine.high %v5579_v22, %v5587_v48  ;;  %v11697_v24 = vcombine.low %v5579_v22, %v5587_v48 }
 0x24b   : > { %v2321_v26 = vpop.f32.mrf.mxu0 }
 0x24c   : > { %v2362_v11 = vpop.f32.mrf.mxu1 }
 0x24d   : > { %v2398_v8 = vpop.f32.mrf.mxu0  ;;  %11691 = vmatmul.mubr.msk.bf16.vlgmr.msra.gmra.mxu0 %vm1194_vm2, %v15061_v6 }
 0x24e   : > { %v15091_v25 = vadd.f32 %v2398_v8, %v14999_v58  ;;  %v2439_v51 = vpop.f32.mrf.mxu1  ;;  %11692 = vmatmul.mubr.msk.bf16.vlgmr.msra.gmra.mxu1 %vm1194_vm2, %v15061_v6  ;;  %5413 = vmatpush1.bf16.msra.mxu0 %v5211_v57  ;;  %v5663_v57 = vand.u32 %v11697_v24, %v14006_v7  ;;  %v5594_v24 = vld [vmem:[#allocation8 + $0x4f8] sm:$0xff] }
 0x24f   : > { %v15096_v12 = vadd.f32 %v2439_v51, %v15004_v32  ;;  %v2400_v50 = vpop.f32.mrf.mxu0  ;;  %5454 = vmatpush1.bf16.msra.mxu1 %v5217_v17  ;;  %5430 = vmatprep.mubr.bf16.mxu0 %v15899_v36  ;;  %v11700_v32 = vcombine.high %v5580_v62, %v5588_v34  ;;  %v5669_v17 = vand.u32 %v11699_v55, %v14006_v7  ;;  %v5592_v62 = vld [vmem:[#allocation8 + $0x4e8] sm:$0xff] }
 0x250   : > { %v15100_v3 = vadd.f32 %v2400_v50, %v15008_v14  ;;  %v2441_v58 = vpop.f32.mrf.mxu1  ;;  %5471 = vmatprep.mubr.bf16.mxu1 %v15899_v36  ;;  %5494 = vmatprep.subr.bf16.mxu0 %v5226_v59  ;;  %v5666_v14 = vand.u32 %v11698_v15, %v14006_v7 }
 0x251   : > { %v15104_v9 = vadd.f32 %v2441_v58, %v15012_v39  ;;  %v2402_v30 = vpop.f32.mrf.mxu0  ;;  %5535 = vmatprep.subr.bf16.mxu1 %v5232_v13  ;;  %v5672_v28 = vand.u32 %v11700_v32, %v14006_v7  ;;  %v5581_v39 = vld [vmem:[#allocation8 + $0x490] sm:$0xff]  ;;  %v5591_v13 = vld [vmem:[#allocation8 + $0x4e0] sm:$0xff] }
 0x252   : > { %v2443_v41 = vpop.f32.mrf.mxu1  ;;  %v11702_v52 = vcombine.high %v5581_v39, %v5589_v54  ;;  %v11701_v51 = vcombine.low %v5581_v39, %v5589_v54 }
 0x253   : > { %v2403_v21 = vpop.f32.mrf.mxu0 }
 0x254   : > { %v2444_v2 = vpop.f32.mrf.mxu1  ;;  %v5675_v41 = vand.u32 %v11701_v51, %v14006_v7  ;;  %v5681_v21 = vand.u32 %v11703_v16, %v14006_v7  ;;  %v6064_v51 = vld [vmem:[#allocation8 + $0x548] sm:$0xff] }
 0x255   : > { %v2480_v60 = vpop.f32.mrf.mxu0  ;;  %11693 = vmatmul.mubr.msk.bf16.vlgmr.msra.gmra.mxu0 %vm1194_vm2, %v15061_v6 }
 0x256   : > { %v15113_v20 = vadd.f32 %v2480_v60, %v15021_v61  ;;  %v2521_v53 = vpop.f32.mrf.mxu1  ;;  %11694 = vmatmul.mubr.msk.bf16.vlgmr.msra.gmra.mxu1 %vm1194_vm2, %v15061_v6  ;;  %5495 = vmatpush1.bf16.msra.mxu0 %v5223_v1  ;;  %v15153_v1 = vpack.c.bf16 %v14295_v43, %v14295_v43  ;;  %v5585_v60 = vld [vmem:[#allocation8 + $0x4b0] sm:$0xff] }
 0x257   : > { %v15118_v63 = vadd.f32 %v2521_v53, %v15026_v4  ;;  %v2482_v5 = vpop.f32.mrf.mxu0  ;;  %5536 = vmatpush1.bf16.msra.mxu1 %v5229_v45  ;;  %5512 = vmatprep.mubr.bf16.mxu0 %v15899_v36  ;;  %v11704_v4 = vcombine.high %v5582_v27, %v5590_v47  ;;  %v5586_v53 = vld [vmem:[#allocation8 + $0x4b8] sm:$0xff] }
 0x258   : > { %v15122_v37 = vadd.f32 %v2482_v5, %v15030_v35  ;;  %v2523_v61 = vpop.f32.mrf.mxu1  ;;  %5553 = vmatprep.mubr.bf16.mxu1 %v15899_v36  ;;  %5724 = vmatprep.subr.bf16.mxu0 %v5666_v14  ;;  %v5678_v35 = vand.u32 %v11702_v52, %v14006_v7  ;;  %v11707_v5 = vcombine.low %v5584_v38, %v5592_v62 }
 0x259   : > { %v15126_v10 = vadd.f32 %v2523_v61, %v15034_v40  ;;  %v2484_v49 = vpop.f32.mrf.mxu0  ;;  %5765 = vmatprep.subr.bf16.mxu1 %v5672_v28  ;;  %v5684_v8 = vand.u32 %v11704_v4, %v14006_v7  ;;  %v5583_v40 = vld [vmem:[#allocation8 + $0x4a0] sm:$0xff]  ;;  %v5593_v28 = vld [vmem:[#allocation8 + $0x4f0] sm:$0xff] }
 0x25a   : > { %v2525_v18 = vpop.f32.mrf.mxu1  ;;  %v11705_v43 = vcombine.low %v5583_v40, %v5591_v13  ;;  %v11710_v61 = vcombine.high %v5585_v60, %v5593_v28 }
 0x25b   : > { %v2485_v26 = vpop.f32.mrf.mxu0 }
 0x25c   : > { %v2526_v11 = vpop.f32.mrf.mxu1  ;;  %v5687_v18 = vand.u32 %v11705_v43, %v14006_v7  ;;  %v5693_v26 = vand.u32 %v11707_v5, %v14006_v7  ;;  %v6066_v43 = vld [vmem:[#allocation8 + $0x558] sm:$0xff] }
 0x25d   : > { %v2562_v59 = vpop.f32.mrf.mxu0  ;;  %11695 = vmatmul.mubr.msk.bf16.vlgmr.msra.gmra.mxu0 %vm1194_vm2, %v15061_v6 }
 0x25e   : > { %v15135_v22 = vadd.f32 %v2562_v59, %v15043_v44  ;;  %v2603_v48 = vpop.f32.mrf.mxu1  ;;  %11696 = vmatmul.mubr.msk.bf16.vlgmr.msra.gmra.mxu1 %vm1194_vm2, %v15061_v6  ;;  %5725 = vmatpush1.bf16.msra.mxu0 %v5663_v57  ;;  %v11706_v6 = vcombine.high %v5583_v40, %v5591_v13  ;;  %v6063_v59 = vld [vmem:[#allocation8 + $0x540] sm:$0xff]  ;;  %v11709_v13 = vcombine.low %v5585_v60, %v5593_v28 }
 0x25f   : > { %v15140_v34 = vadd.f32 %v2603_v48, %v15048_v19  ;;  %v2564_v50 = vpop.f32.mrf.mxu0  ;;  %5766 = vmatpush1.bf16.msra.mxu1 %v5669_v17  ;;  %5742 = vmatprep.mubr.bf16.mxu0 %v15899_v36  ;;  %v11708_v19 = vcombine.high %v5584_v38, %v5592_v62  ;;  %v6056_v48 = vld [vmem:[#allocation8 + $0x508] sm:$0xff] }
 0x260   : > { %v15144_v58 = vadd.f32 %v2564_v50, %v15052_v56  ;;  %v2605_v44 = vpop.f32.mrf.mxu1  ;;  %5783 = vmatprep.mubr.bf16.mxu1 %v15899_v36  ;;  %5806 = vmatprep.subr.bf16.mxu0 %v5678_v35  ;;  %v5690_v2 = vand.u32 %v11706_v6, %v14006_v7  ;;  %v11711_v50 = vcombine.low %v5586_v53, %v5594_v24 }
 0x261   : > { %v15148_v15 = vadd.f32 %v2605_v44, %v15056_v33  ;;  %v2566_v30 = vpop.f32.mrf.mxu0  ;;  %5847 = vmatprep.subr.bf16.mxu1 %v5684_v8  ;;  %v5696_v33 = vand.u32 %v11708_v19, %v14006_v7 }
 0x262   : > { %v2607_v32 = vpop.f32.mrf.mxu1 }
 0x263   : > { %v2567_v56 = vpop.f32.mrf.mxu0  ;;  %v5699_v32 = vand.u32 %v11709_v13, %v14006_v7  ;;  %v6068_v13 = vld [vmem:[#allocation8 + $0x568] sm:$0xff] }
 0x264   : > { %v2608_v45 = vpop.f32.mrf.mxu1  ;;  %v5705_v56 = vand.u32 %v11711_v50, %v14006_v7 }
 0x265   : > { %v2792_v14 = vpop.f32.mrf.mxu0  ;;  %11713 = vmatmul.mubr.msk.bf16.vlgmr.msra.gmra.mxu0 %vm1194_vm2, %v15153_v1 }
 0x266   : > { %v15161_v39 = vadd.f32 %v2792_v14, %v15069_v42  ;;  %v2833_v54 = vpop.f32.mrf.mxu1  ;;  %11714 = vmatmul.mubr.msk.bf16.vlgmr.msra.gmra.mxu1 %vm1194_vm2, %v15153_v1  ;;  %5807 = vmatpush1.bf16.msra.mxu0 %v5675_v41  ;;  %v6065_v14 = vld [vmem:[#allocation8 + $0x550] sm:$0xff] }
 0x267   : > { %v15166_v27 = vadd.f32 %v2833_v54, %v15074_v23  ;;  %v2794_v47 = vpop.f32.mrf.mxu0  ;;  %5848 = vmatpush1.bf16.msra.mxu1 %v5681_v21  ;;  %5824 = vmatprep.mubr.bf16.mxu0 %v15899_v36  ;;  %v11712_v23 = vcombine.high %v5586_v53, %v5594_v24  ;;  %v6058_v54 = vld [vmem:[#allocation8 + $0x518] sm:$0xff] }
 0x268   : > { %v15170_v55 = vadd.f32 %v2794_v47, %v15078_v31  ;;  %v2835_v42 = vpop.f32.mrf.mxu1  ;;  %5865 = vmatprep.mubr.bf16.mxu1 %v15899_v36  ;;  %5888 = vmatprep.subr.bf16.mxu0 %v5690_v2  ;;  %v5702_v31 = vand.u32 %v11710_v61, %v14006_v7  ;;  %v11723_v47 = vcombine.low %v6056_v48, %v6064_v51 }
 0x269   : > { %v15174_v52 = vadd.f32 %v2835_v42, %v15082_v29  ;;  %v2796_v49 = vpop.f32.mrf.mxu0  ;;  %5929 = vmatprep.subr.bf16.mxu1 %v5696_v33  ;;  %v5708_v35 = vand.u32 %v11712_v23, %v14006_v7  ;;  %v6055_v29 = vld [vmem:[#allocation8 + $0x500] sm:$0xff] }
 0x26a   : > { %v2837_v4 = vpop.f32.mrf.mxu1  ;;  %v11722_v44 = vcombine.high %v6055_v29, %v6063_v59  ;;  %v11721_v28 = vcombine.low %v6055_v29, %v6063_v59 }
 0x26b   : > { %v2797_v57 = vpop.f32.mrf.mxu0 }
 0x26c   : > { %v2838_v17 = vpop.f32.mrf.mxu1  ;;  %v6139_v4 = vand.u32 %v11721_v28, %v14006_v7  ;;  %v6145_v57 = vand.u32 %v11723_v47, %v14006_v7 }
 0x26d   : > { %v2874_v11 = vpop.f32.mrf.mxu0  ;;  %11715 = vmatmul.mubr.msk.bf16.vlgmr.msra.gmra.mxu0 %vm1194_vm2, %v15153_v1 }
 0x26e   : > { %v15183_v8 = vadd.f32 %v2874_v11, %v15091_v25  ;;  %v2915_v40 = vpop.f32.mrf.mxu1  ;;  %11716 = vmatmul.mubr.msk.bf16.vlgmr.msra.gmra.mxu1 %vm1194_vm2, %v15153_v1  ;;  %5889 = vmatpush1.bf16.msra.mxu0 %v5687_v18  ;;  %v6067_v11 = vld [vmem:[#allocation8 + $0x560] sm:$0xff] }
 0x26f   : > { %v15188_v38 = vadd.f32 %v2915_v40, %v15096_v12  ;;  %v2876_v62 = vpop.f32.mrf.mxu0  ;;  %5930 = vmatpush1.bf16.msra.mxu1 %v5693_v26  ;;  %5906 = vmatprep.mubr.bf16.mxu0 %v15899_v36  ;;  %v11724_v12 = vcombine.high %v6056_v48, %v6064_v51  ;;  %v6060_v40 = vld [vmem:[#allocation8 + $0x528] sm:$0xff] }
 0x270   : > { %v15192_v16 = vadd.f32 %v2876_v62, %v15100_v3  ;;  %v2917_v25 = vpop.f32.mrf.mxu1  ;;  %5947 = vmatprep.mubr.bf16.mxu1 %v15899_v36  ;;  %5970 = vmatprep.subr.bf16.mxu0 %v5702_v31  ;;  %v6142_v3 = vand.u32 %v11722_v44, %v14006_v7  ;;  %v11727_v62 = vcombine.low %v6058_v54, %v6066_v43 }
 0x271   : > { %v15196_v6 = vadd.f32 %v2917_v25, %v15104_v9  ;;  %v2878_v30 = vpop.f32.mrf.mxu0  ;;  %6011 = vmatprep.subr.bf16.mxu1 %v5708_v35  ;;  %v6148_v2 = vand.u32 %v11724_v12, %v14006_v7  ;;  %v6057_v9 = vld [vmem:[#allocation8 + $0x510] sm:$0xff] }
 0x272   : > { %v2919_v19 = vpop.f32.mrf.mxu1  ;;  %v11726_v42 = vcombine.high %v6057_v9, %v6065_v14  ;;  %v11725_v59 = vcombine.low %v6057_v9, %v6065_v14  ;;  %v6062_v14 = vld [vmem:[#allocation8 + $0x538] sm:$0xff] }
 0x273   : > { %v2879_v41 = vpop.f32.mrf.mxu0  ;;  %v15245_v19 = vpack.c.bf16 %v14598_v46, %v14598_v46 }
 0x274   : > { %v2920_v21 = vpop.f32.mrf.mxu1  ;;  %v6151_v12 = vand.u32 %v11725_v59, %v14006_v7 }
 0x275   : > { %v2956_v45 = vpop.f32.mrf.mxu0  ;;  %11717 = vmatmul.mubr.msk.bf16.vlgmr.msra.gmra.mxu0 %vm1194_vm2, %v15153_v1 }
 0x276   : > { %v15205_v33 = vadd.f32 %v2956_v45, %v15113_v20  ;;  %v2997_v60 = vpop.f32.mrf.mxu1  ;;  %11718 = vmatmul.mubr.msk.bf16.vlgmr.msra.gmra.mxu1 %vm1194_vm2, %v15153_v1  ;;  %5971 = vmatpush1.bf16.msra.mxu0 %v5699_v32  ;;  %v6157_v32 = vand.u32 %v11727_v62, %v14006_v7  ;;  %v6069_v45 = vld [vmem:[#allocation8 + $0x570] sm:$0xff] }
 0x277   : > { %v15210_v53 = vadd.f32 %v2997_v60, %v15118_v63  ;;  %v2958_v24 = vpop.f32.mrf.mxu0  ;;  %6012 = vmatpush1.bf16.msra.mxu1 %v5705_v56  ;;  %5988 = vmatprep.mubr.bf16.mxu0 %v15899_v36  ;;  %v11728_v63 = vcombine.high %v6058_v54, %v6066_v43  ;;  %v6070_v60 = vld [vmem:[#allocation8 + $0x578] sm:$0xff]  ;;  %v11731_v43 = vcombine.low %v6060_v40, %v6068_v13 }
 0x278   : > { %v15214_v5 = vadd.f32 %v2958_v24, %v15122_v37  ;;  %v2999_v20 = vpop.f32.mrf.mxu1  ;;  %6029 = vmatprep.mubr.bf16.mxu1 %v15899_v36  ;;  %6200 = vmatprep.subr.bf16.mxu0 %v6142_v3  ;;  %v6154_v37 = vand.u32 %v11726_v42, %v14006_v7  ;;  %v6061_v3 = vld [vmem:[#allocation8 + $0x530] sm:$0xff] }
 0x279   : > { %v15218_v61 = vadd.f32 %v2999_v20, %v15126_v10  ;;  %v2960_v49 = vpop.f32.mrf.mxu0  ;;  %6241 = vmatprep.subr.bf16.mxu1 %v6148_v2  ;;  %v6160_v31 = vand.u32 %v11728_v63, %v14006_v7  ;;  %v6059_v10 = vld [vmem:[#allocation8 + $0x520] sm:$0xff]  ;;  %v11734_v47 = vcombine.high %v6061_v3, %v6069_v45 }
 0x27a   : > { %v3001_v23 = vpop.f32.mrf.mxu1  ;;  %v11729_v46 = vcombine.low %v6059_v10, %v6067_v11 }
 0x27b   : > { %v2961_v18 = vpop.f32.mrf.mxu0 }
 0x27c   : > { %v3002_v26 = vpop.f32.mrf.mxu1  ;;  %v6163_v63 = vand.u32 %v11729_v46, %v14006_v7 }
 0x27d   : > { %v3038_v17 = vpop.f32.mrf.mxu0  ;;  %11719 = vmatmul.mubr.msk.bf16.vlgmr.msra.gmra.mxu0 %vm1194_vm2, %v15153_v1 }
 0x27e   : > { %v15227_v35 = vadd.f32 %v3038_v17, %v15135_v22  ;;  %v3079_v29 = vpop.f32.mrf.mxu1  ;;  %11720 = vmatmul.mubr.msk.bf16.vlgmr.msra.gmra.mxu1 %vm1194_vm2, %v15153_v1  ;;  %6201 = vmatpush1.bf16.msra.mxu0 %v6139_v4  ;;  %v11730_v1 = vcombine.high %v6059_v10, %v6067_v11  ;;  %v6169_v4 = vand.u32 %v11731_v43, %v14006_v7  ;;  %v6532_v11 = vld [vmem:[#allocation8 + $0x588] sm:$0xff] }
 0x27f   : > { %v15232_v48 = vadd.f32 %v3079_v29, %v15140_v34  ;;  %v3040_v51 = vpop.f32.mrf.mxu0  ;;  %6242 = vmatpush1.bf16.msra.mxu1 %v6145_v57  ;;  %6218 = vmatprep.mubr.bf16.mxu0 %v15899_v36  ;;  %v11732_v34 = vcombine.high %v6060_v40, %v6068_v13  ;;  %v11733_v10 = vcombine.low %v6061_v3, %v6069_v45  ;;  %v6540_v29 = vld [vmem:[#allocation8 + $0x5c8] sm:$0xff]  ;;  %v6534_v45 = vld [vmem:[#allocation8 + $0x598] sm:$0xff] }
 0x280   : > { %v15236_v50 = vadd.f32 %v3040_v51, %v15144_v58  ;;  %v3081_v22 = vpop.f32.mrf.mxu1  ;;  %6259 = vmatprep.mubr.bf16.mxu1 %v15899_v36  ;;  %6282 = vmatprep.subr.bf16.mxu0 %v6154_v37  ;;  %v6166_v56 = vand.u32 %v11730_v1, %v14006_v7  ;;  %v6539_v37 = vld [vmem:[#allocation8 + $0x5c0] sm:$0xff]  ;;  %v11735_v13 = vcombine.low %v6062_v14, %v6070_v60 }
 0x281   : > { %v15240_v25 = vadd.f32 %v3081_v22, %v15148_v15  ;;  %v3042_v44 = vpop.f32.mrf.mxu0  ;;  %6323 = vmatprep.subr.bf16.mxu1 %v6160_v31  ;;  %v6172_v15 = vand.u32 %v11732_v34, %v14006_v7  ;;  %v6175_v34 = vand.u32 %v11733_v10, %v14006_v7 }
 0x282   : > { %v3083_v30 = vpop.f32.mrf.mxu1 }
 0x283   : > { %v3043_v58 = vpop.f32.mrf.mxu0 }
 0x284   : > { %v3084_v41 = vpop.f32.mrf.mxu1 }
 0x285   : > { %v3316_v21 = vpop.f32.mrf.mxu0  ;;  %11737 = vmatmul.mubr.msk.bf16.vlgmr.msra.gmra.mxu0 %vm1194_vm2, %v15245_v19 }
 0x286   : > { %v15253_v2 = vadd.f32 %v3316_v21, %v15161_v39  ;;  %v3357_v9 = vpop.f32.mrf.mxu1  ;;  %11738 = vmatmul.mubr.msk.bf16.vlgmr.msra.gmra.mxu1 %vm1194_vm2, %v15245_v19  ;;  %6283 = vmatpush1.bf16.msra.mxu0 %v6151_v12  ;;  %v6181_v12 = vand.u32 %v11735_v13, %v14006_v7 }
 0x287   : > { %v15258_v28 = vadd.f32 %v3357_v9, %v15166_v27  ;;  %v3318_v54 = vpop.f32.mrf.mxu0  ;;  %6324 = vmatpush1.bf16.msra.mxu1 %v6157_v32  ;;  %6300 = vmatprep.mubr.bf16.mxu0 %v15899_v36  ;;  %v11736_v27 = vcombine.high %v6062_v14, %v6070_v60  ;;  %v6542_v9 = vld [vmem:[#allocation8 + $0x5d8] sm:$0xff]  ;;  %v11747_v60 = vcombine.low %v6532_v11, %v6540_v29 }
 0x288   : > { %v15262_v24 = vadd.f32 %v3318_v54, %v15170_v55  ;;  %v3359_v39 = vpop.f32.mrf.mxu1  ;;  %6341 = vmatprep.mubr.bf16.mxu1 %v15899_v36  ;;  %6364 = vmatprep.subr.bf16.mxu0 %v6166_v56  ;;  %v6178_v55 = vand.u32 %v11734_v47, %v14006_v7  ;;  %v6541_v56 = vld [vmem:[#allocation8 + $0x5d0] sm:$0xff] }
 0x289   : > { %v15266_v20 = vadd.f32 %v3359_v39, %v15174_v52  ;;  %v3320_v42 = vpop.f32.mrf.mxu0  ;;  %6405 = vmatprep.subr.bf16.mxu1 %v6172_v15  ;;  %v6184_v26 = vand.u32 %v11736_v27, %v14006_v7  ;;  %v6531_v52 = vld [vmem:[#allocation8 + $0x580] sm:$0xff] }
 0x28a   : > { %v3361_v49 = vpop.f32.mrf.mxu1  ;;  %v11746_v62 = vcombine.high %v6531_v52, %v6539_v37  ;;  %v11745_v3 = vcombine.low %v6531_v52, %v6539_v37  ;;  %v6536_v37 = vld [vmem:[#allocation8 + $0x5a8] sm:$0xff] }
 0x28b   : > { %v3321_v23 = vpop.f32.mrf.mxu0 }
 0x28c   : > { %v3362_v18 = vpop.f32.mrf.mxu1  ;;  %v6615_v27 = vand.u32 %v11745_v3, %v14006_v7 }
 0x28d   : > { %v3398_v57 = vpop.f32.mrf.mxu0  ;;  %11739 = vmatmul.mubr.msk.bf16.vlgmr.msra.gmra.mxu0 %vm1194_vm2, %v15245_v19 }
 0x28e   : > { %v15275_v17 = vadd.f32 %v3398_v57, %v15183_v8  ;;  %v3439_v31 = vpop.f32.mrf.mxu1  ;;  %11740 = vmatmul.mubr.msk.bf16.vlgmr.msra.gmra.mxu1 %vm1194_vm2, %v15245_v19  ;;  %6365 = vmatpush1.bf16.msra.mxu0 %v6163_v63  ;;  %v6621_v63 = vand.u32 %v11747_v60, %v14006_v7 }
 0x28f   : > { %v15280_v59 = vadd.f32 %v3439_v31, %v15188_v38  ;;  %v3400_v40 = vpop.f32.mrf.mxu0  ;;  %6406 = vmatpush1.bf16.msra.mxu1 %v6169_v4  ;;  %6382 = vmatprep.mubr.bf16.mxu0 %v15899_v36  ;;  %v11748_v38 = vcombine.high %v6532_v11, %v6540_v29  ;;  %v6544_v31 = vld [vmem:[#allocation8 + $0x5e8] sm:$0xff]  ;;  %v11751_v29 = vcombine.low %v6534_v45, %v6542_v9 }
 0x290   : > { %v15284_v51 = vadd.f32 %v3400_v40, %v15192_v16  ;;  %v3441_v8 = vpop.f32.mrf.mxu1  ;;  %6423 = vmatprep.mubr.bf16.mxu1 %v15899_v36  ;;  %6446 = vmatprep.subr.bf16.mxu0 %v6178_v55  ;;  %v6618_v16 = vand.u32 %v11746_v62, %v14006_v7  ;;  %v6543_v55 = vld [vmem:[#allocation8 + $0x5e0] sm:$0xff] }
 0x291   : > { %v15288_v22 = vadd.f32 %v3441_v8, %v15196_v6  ;;  %v3402_v1 = vpop.f32.mrf.mxu0  ;;  %6487 = vmatprep.subr.bf16.mxu1 %v6184_v26  ;;  %v6624_v41 = vand.u32 %v11748_v38, %v14006_v7  ;;  %v6533_v6 = vld [vmem:[#allocation8 + $0x590] sm:$0xff]  ;;  %v15337_v38 = vpack.c.bf16 %v14716_v0, %v14716_v0 }
 0x292   : > { %v3443_v44 = vpop.f32.mrf.mxu1  ;;  %v11750_v43 = vcombine.high %v6533_v6, %v6541_v56  ;;  %v11749_v52 = vcombine.low %v6533_v6, %v6541_v56  ;;  %v6538_v6 = vld [vmem:[#allocation8 + $0x5b8] sm:$0xff] }
 0x293   : > { %v3403_v30 = vpop.f32.mrf.mxu0  ;;  %v6633_v44 = vand.u32 %v11751_v29, %v14006_v7  ;;  %v6546_v56 = vld [vmem:[#allocation8 + $0x5f8] sm:$0xff] }
 0x294   : > { %v3444_v58 = vpop.f32.mrf.mxu1  ;;  %v6627_v1 = vand.u32 %v11749_v52, %v14006_v7 }
 0x295   : > { %v3480_v32 = vpop.f32.mrf.mxu0  ;;  %11741 = vmatmul.mubr.msk.bf16.vlgmr.msra.gmra.mxu0 %vm1194_vm2, %v15245_v19  ;;  %v6537_v58 = vld [vmem:[#allocation8 + $0x5b0] sm:$0xff] }
 0x296   : > { %v15297_v21 = vadd.f32 %v3480_v32, %v15205_v33  ;;  %v3521_v15 = vpop.f32.mrf.mxu1  ;;  %11742 = vmatmul.mubr.msk.bf16.vlgmr.msra.gmra.mxu1 %vm1194_vm2, %v15245_v19  ;;  %6447 = vmatpush1.bf16.msra.mxu0 %v6175_v34 }
 0x297   : > { %v15302_v46 = vadd.f32 %v3521_v15, %v15210_v53  ;;  %v3482_v14 = vpop.f32.mrf.mxu0  ;;  %6488 = vmatpush1.bf16.msra.mxu1 %v6181_v12  ;;  %6464 = vmatprep.mubr.bf16.mxu0 %v15899_v36  ;;  %v11752_v53 = vcombine.high %v6534_v45, %v6542_v9  ;;  %v11755_v45 = vcombine.low %v6536_v37, %v6544_v31 }
 0x298   : > { %v15306_v54 = vadd.f32 %v3482_v14, %v15214_v5  ;;  %v3523_v33 = vpop.f32.mrf.mxu1  ;;  %6505 = vmatprep.mubr.bf16.mxu1 %v15899_v36  ;;  %6676 = vmatprep.subr.bf16.mxu0 %v6618_v16  ;;  %v6630_v5 = vand.u32 %v11750_v43, %v14006_v7  ;;  %v6545_v16 = vld [vmem:[#allocation8 + $0x5f0] sm:$0xff] }
 0x299   : > { %v15310_v39 = vadd.f32 %v3523_v33, %v15218_v61  ;;  %v3484_v47 = vpop.f32.mrf.mxu0  ;;  %6717 = vmatprep.subr.bf16.mxu1 %v6624_v41  ;;  %v6636_v18 = vand.u32 %v11752_v53, %v14006_v7  ;;  %v6535_v61 = vld [vmem:[#allocation8 + $0x5a0] sm:$0xff]  ;;  %v11758_v14 = vcombine.high %v6537_v58, %v6545_v16 }
 0x29a   : > { %v3525_v42 = vpop.f32.mrf.mxu1  ;;  %v11753_v0 = vcombine.low %v6535_v61, %v6543_v55 }
 0x29b   : > { %v3485_v49 = vpop.f32.mrf.mxu0  ;;  %v6645_v42 = vand.u32 %v11755_v45, %v14006_v7 }
 0x29c   : > { %v3526_v23 = vpop.f32.mrf.mxu1  ;;  %v6639_v47 = vand.u32 %v11753_v0, %v14006_v7 }
 0x29d   : > { %v3562_v4 = vpop.f32.mrf.mxu0  ;;  %11743 = vmatmul.mubr.msk.bf16.vlgmr.msra.gmra.mxu0 %vm1194_vm2, %v15245_v19 }
 0x29e   : > { %v15319_v57 = vadd.f32 %v3562_v4, %v15227_v35  ;;  %v3603_v26 = vpop.f32.mrf.mxu1  ;;  %11744 = vmatmul.mubr.msk.bf16.vlgmr.msra.gmra.mxu1 %vm1194_vm2, %v15245_v19  ;;  %6677 = vmatpush1.bf16.msra.mxu0 %v6615_v27  ;;  %v11754_v19 = vcombine.high %v6535_v61, %v6543_v55  ;;  %v11759_v61 = vcombine.low %v6538_v6, %v6546_v56 }
 0x29f   : > { %v15324_v10 = vadd.f32 %v3603_v26, %v15232_v48  ;;  %v3564_v11 = vpop.f32.mrf.mxu0  ;;  %6718 = vmatpush1.bf16.msra.mxu1 %v6621_v63  ;;  %6694 = vmatprep.mubr.bf16.mxu0 %v15899_v36  ;;  %v11756_v48 = vcombine.high %v6536_v37, %v6544_v31 }
 0x2a0   : > { %v15328_v40 = vadd.f32 %v3564_v11, %v15236_v50  ;;  %v3605_v35 = vpop.f32.mrf.mxu1  ;;  %6735 = vmatprep.mubr.bf16.mxu1 %v15899_v36  ;;  %6758 = vmatprep.subr.bf16.mxu0 %v6630_v5  ;;  %v6642_v30 = vand.u32 %v11754_v19, %v14006_v7  ;;  %v11757_v5 = vcombine.low %v6537_v58, %v6545_v16  ;;  %v12503_v58 = vld [vmem:[#allocation11 + $0x2c4] ss:$16 sps:$4 sm:$0xff]  }
 0x2a1   : > { %v15332_v13 = vadd.f32 %v3605_v35, %v15240_v25  ;;  %v3566_v8 = vpop.f32.mrf.mxu0  ;;  %6799 = vmatprep.subr.bf16.mxu1 %v6636_v18  ;;  %v6648_v25 = vand.u32 %v11756_v48, %v14006_v7  ;;  %v6657_v11 = vand.u32 %v11759_v61, %v14006_v7  ;;  %v12494_v35 = vld [vmem:[#allocation11 + $0xe4] ss:$16 sps:$4 sm:$0xff]  }
 0x2a2   : > { %v3607_v62 = vpop.f32.mrf.mxu1  ;;  %v12521_v61 = vld [vmem:[#allocation11 + $0x264] ss:$16 sps:$4 sm:$0xff]  }
 0x2a3   : > { %v3567_v50 = vpop.f32.mrf.mxu0 }
 0x2a4   : > { %v3608_v34 = vpop.f32.mrf.mxu1 }
 0x2a5   : > { %v3792_v12 = vpop.f32.mrf.mxu0  ;;  %11761 = vmatmul.mubr.msk.bf16.vlgmr.msra.gmra.mxu0 %vm1194_vm2, %v15337_v38  ;;  %v12492_v34 = vld [vmem:[#allocation11 + $0xe0] ss:$16 sps:$4 sm:$0xff]  }
 0x2a6   : > { %v15345_v32 = vadd.f32 %v3792_v12, %v15253_v2  ;;  %v3833_v41 = vpop.f32.mrf.mxu1  ;;  %11762 = vmatmul.mubr.msk.bf16.vlgmr.msra.gmra.mxu1 %vm1194_vm2, %v15337_v38  ;;  %6759 = vmatpush1.bf16.msra.mxu0 %v6627_v1  ;;  %v12500_v12 = vld [vmem:[#allocation11 + $0xc4] ss:$16 sps:$4 sm:$0xff]  }
 0x2a7   : > { %v15350_v15 = vadd.f32 %v3833_v41, %v15258_v28  ;;  %v3794_v3 = vpop.f32.mrf.mxu0  ;;  %6800 = vmatpush1.bf16.msra.mxu1 %v6633_v44  ;;  %6776 = vmatprep.mubr.bf16.mxu0 %v15899_v36  ;;  %v11760_v28 = vcombine.high %v6538_v6, %v6546_v56  ;;  %v12501_v6 = vld [vmem:[#allocation11 + $0x2c0] ss:$16 sps:$4 sm:$0xff]   ;;  %v12506_v56 = vld [vmem:[#allocation11 + $0xa4] ss:$16 sps:$4 sm:$0xff]  }
 0x2a8   : > { %v15354_v9 = vadd.f32 %v3794_v3, %v15262_v24  ;;  %v3835_v2 = vpop.f32.mrf.mxu1  ;;  %6817 = vmatprep.mubr.bf16.mxu1 %v15899_v36  ;;  %6840 = vmatprep.subr.bf16.mxu0 %v6642_v30  ;;  %v6654_v24 = vand.u32 %v11758_v14, %v14006_v7  ;;  %v12495_v30 = vld [vmem:[#allocation11 + $0x2e0] ss:$16 sps:$4 sm:$0xff]  }
 0x2a9   : > { %v15358_v60 = vadd.f32 %v3835_v2, %v15266_v20  ;;  %v3796_v33 = vpop.f32.mrf.mxu0  ;;  %6881 = vmatprep.subr.bf16.mxu1 %v6648_v25  ;;  %v6660_v63 = vand.u32 %v11760_v28, %v14006_v7  ;;  %v12507_v28 = vld [vmem:[#allocation11 + $0x2a0] ss:$16 sps:$4 sm:$0xff]  }
 0x2aa   : > { %v3837_v43 = vpop.f32.mrf.mxu1  ;;  %v12504_v33 = vld [vmem:[#allocation11 + $0xa0] ss:$16 sps:$4 sm:$0xff]  }
 0x2ab   : > { %v3797_v53 = vpop.f32.mrf.mxu0  ;;  %v12512_v43 = vld [vmem:[#allocation11 + $0x84] ss:$16 sps:$4 sm:$0xff]  }
 0x2ac   : > { %v3838_v27 = vpop.f32.mrf.mxu1  ;;  %v12515_v53 = vld [vmem:[#allocation11 + $0x284] ss:$16 sps:$4 sm:$0xff]  }
 0x2ad   : > { %v3874_v49 = vpop.f32.mrf.mxu0  ;;  %11763 = vmatmul.mubr.msk.bf16.vlgmr.msra.gmra.mxu0 %vm1194_vm2, %v15337_v38 }
 0x2ae   : > { %v15367_v20 = vadd.f32 %v3874_v49, %v15275_v17  ;;  %v3915_v23 = vpop.f32.mrf.mxu1  ;;  %11764 = vmatmul.mubr.msk.bf16.vlgmr.msra.gmra.mxu1 %vm1194_vm2, %v15337_v38  ;;  %6841 = vmatpush1.bf16.msra.mxu0 %v6639_v47 }
 0x2af   : > { %v15372_v4 = vadd.f32 %v3915_v23, %v15280_v59  ;;  %v3876_v18 = vpop.f32.mrf.mxu0  ;;  %6882 = vmatpush1.bf16.msra.mxu1 %v6645_v42  ;;  %6858 = vmatprep.mubr.bf16.mxu0 %v15899_v36  ;;  %v6651_v59 = vand.u32 %v11757_v5, %v14006_v7  ;;  %v12518_v23 = vld [vmem:[#allocation11 + $0x64] ss:$16 sps:$4 sm:$0xff]  }
 0x2b0   : > { %v15376_v55 = vadd.f32 %v3876_v18, %v15284_v51  ;;  %v3917_v26 = vpop.f32.mrf.mxu1  ;;  %6899 = vmatprep.mubr.bf16.mxu1 %v15899_v36  ;;  %6922 = vmatprep.subr.bf16.mxu0 %v6654_v24  ;;  %v12497_v51 = vld [vmem:[#allocation11 + $0x2e4] ss:$16 sps:$4 sm:$0xff]  }
 0x2b1   : > { %v15380_v17 = vadd.f32 %v3917_v26, %v15288_v22  ;;  %v3878_v52 = vpop.f32.mrf.mxu0  ;;  %6963 = vmatprep.subr.bf16.mxu1 %v6660_v63  ;;  %v12513_v63 = vld [vmem:[#allocation11 + $0x280] ss:$16 sps:$4 sm:$0xff]  }
 0x2b2   : > { %v3919_v37 = vpop.f32.mrf.mxu1 }
 0x2b3   : > { %v3879_v31 = vpop.f32.mrf.mxu0  ;;  %v12516_v37 = vld [vmem:[#allocation11 + $0x60] ss:$16 sps:$4 sm:$0xff]  }
 0x2b4   : > { %v3920_v29 = vpop.f32.mrf.mxu1  ;;  %v12524_v31 = vld [vmem:[#allocation11 + $0x44] ss:$16 sps:$4 sm:$0xff]  }
 0x2b5   : > { %v3956_v19 = vpop.f32.mrf.mxu0  ;;  %11765 = vmatmul.mubr.msk.bf16.vlgmr.msra.gmra.mxu0 %vm1194_vm2, %v15337_v38  ;;  %v12527_v29 = vld [vmem:[#allocation11 + $0x244] ss:$16 sps:$4 sm:$0xff]  }
 0x2b6   : > { %v15387_v8 = vadd.f32 %v3956_v19, %v15297_v21  ;;  %v3997_v22 = vpop.f32.mrf.mxu1  ;;  %11766 = vmatmul.mubr.msk.bf16.vlgmr.msra.gmra.mxu1 %vm1194_vm2, %v15337_v38  ;;  %6923 = vmatpush1.bf16.msra.mxu0 %v6651_v59  ;;  %v12519_v59 = vld [vmem:[#allocation11 + $0x260] ss:$16 sps:$4 sm:$0xff]  }
 0x2b7   : > { %v15392_v48 = vadd.f32 %v3997_v22, %v15302_v46  ;;  %v3958_v62 = vpop.f32.mrf.mxu0  ;;  %6964 = vmatpush1.bf16.msra.mxu1 %v6657_v11  ;;  %6940 = vmatprep.mubr.bf16.mxu0 %v15899_v36 }
 0x2b8   : > { %v15396_v7 = vadd.f32 %v3958_v62, %v15306_v54  ;;  %v3999_v1 = vpop.f32.mrf.mxu1  ;;  %6981 = vmatprep.mubr.bf16.mxu1 %v15899_v36  ;;  %10216 = vmatprep.subr.bf16.mxu0 %v12494_v35  ;;  %v12525_v62 = vld [vmem:[#allocation11 + $0x240] ss:$16 sps:$4 sm:$0xff]  }
 0x2b9   : > { %v15400_v21 = vadd.f32 %v3999_v1, %v15310_v39  ;;  %v3960_v50 = vpop.f32.mrf.mxu0  ;;  %10257 = vmatprep.subr.bf16.mxu1 %v12497_v51  ;;  %v12498_v39 = vld [vmem:[#allocation11 + $0xc0] ss:$16 sps:$4 sm:$0xff]   ;;  %v12530_v1 = vld [vmem:[#allocation11 + $0x24] ss:$16 sps:$4 sm:$0xff]  }
 0x2ba   : > { %v4001_v44 = vpop.f32.mrf.mxu1 }
 0x2bb   : > { %v3961_v46 = vpop.f32.mrf.mxu0 }
 0x2bc   : > { %v4002_v25 = vpop.f32.mrf.mxu1 }
 0x2bd   : > { %v4038_v16 = vpop.f32.mrf.mxu0  ;;  %11767 = vmatmul.mubr.msk.bf16.vlgmr.msra.gmra.mxu0 %vm1194_vm2, %v15337_v38  ;;  %v12531_v25 = vld [vmem:[#allocation11 + $0x220] ss:$16 sps:$4 sm:$0xff]  }
 0x2be   : > { %v15405_v54 = vadd.f32 %v4038_v16, %v15319_v57  ;;  %v4079_v36 = vpop.f32.mrf.mxu1  ;;  %11768 = vmatmul.mubr.msk.bf16.vlgmr.msra.gmra.mxu1 %vm1194_vm2, %v15337_v38  ;;  %10217 = vmatpush1.bf16.msra.mxu0 %v12492_v34  ;;  %v12509_v57 = vld [vmem:[#allocation11 + $0x2a4] ss:$16 sps:$4 sm:$0xff]  }
 0x2bf   : > { %v15410_v41 = vadd.f32 %v4079_v36, %v15324_v10  ;;  %v4040_v0 = vpop.f32.mrf.mxu0  ;;  %10258 = vmatpush1.bf16.msra.mxu1 %v12495_v30  ;;  %10218 = vmatprep.subr.bf16.mxu0 %v12500_v12  ;;  %v12533_v34 = vld [vmem:[#allocation11 + $0x224] ss:$16 sps:$4 sm:$0xff]   ;;  %v12528_v12 = vld [vmem:[#allocation11 + $0x20] ss:$16 sps:$4 sm:$0xff]  }
 0x2c0   : > { %v15413_v3 = vadd.f32 %v4040_v0, %v15328_v40  ;;  %v4081_v45 = vpop.f32.mrf.mxu1  ;;  %10259 = vmatprep.subr.bf16.mxu1 %v12503_v58  ;;  %v12536_v58 = vld [vmem:[#allocation11 + $0x4] ss:$16 sps:$4 sm:$0xff]  }
 0x2c1   : > { %v15416_v2 = vadd.f32 %v4081_v45, %v15332_v13  ;;  %v4042_v38 = vpop.f32.mrf.mxu0  ;;  %v12510_v13 = vld [vmem:[#allocation11 + $0x80] ss:$16 sps:$4 sm:$0xff]   ;;  %v12539_v36 = vld [vmem:[#allocation11 + $0x204] ss:$16 sps:$4 sm:$0xff]  }
 0x2c2   : > { %v4083_v14 = vpop.f32.mrf.mxu1  ;;  %10219 = vmatpush1.bf16.msra.mxu0 %v12498_v39  ;;  %v12537_v45 = vld [vmem:[#allocation11 + $0x200] ss:$16 sps:$4 sm:$0xff]  }
 0x2c3   : > { %v4043_v10 = vpop.f32.mrf.mxu0  ;;  %10260 = vmatpush1.bf16.msra.mxu1 %v12501_v6  ;;  %10220 = vmatprep.subr.bf16.mxu0 %v12506_v56 }
 0x2c4   : > { %v4084_v47 = vpop.f32.mrf.mxu1  ;;  %10261 = vmatprep.subr.bf16.mxu1 %v12509_v57  ;;  %v12542_v57 = vld [vmem:[#allocation11 + $0x1e4] ss:$16 sps:$4 sm:$0xff]  }
 0x2c5   : > { %v4268_v40 = vpop.f32.mrf.mxu0  ;;  %v12543_v47 = vld [vmem:[#allocation11 + $0x3e0] ss:$16 sps:$4 sm:$0xff]  }
 0x2c6   : > { %v15419_v42 = vadd.f32 %v4268_v40, %v15345_v32  ;;  %v4309_v27 = vpop.f32.mrf.mxu1  ;;  %10221 = vmatpush1.bf16.msra.mxu0 %v12504_v33  ;;  %v12545_v33 = vld [vmem:[#allocation11 + $0x3e4] ss:$16 sps:$4 sm:$0xff]  }
 0x2c7   : > { %v15422_v24 = vadd.f32 %v4309_v27, %v15350_v15  ;;  %v4270_v49 = vpop.f32.mrf.mxu0  ;;  %10262 = vmatpush1.bf16.msra.mxu1 %v12507_v28  ;;  %10222 = vmatprep.subr.bf16.mxu0 %v12512_v43  ;;  %v12540_v43 = vld [vmem:[#allocation11 + $0x1e0] ss:$16 sps:$4 sm:$0xff]   ;;  %v12551_v27 = vld [vmem:[#allocation11 + $0x3c4] ss:$16 sps:$4 sm:$0xff]  }
 0x2c8   : > { %v15425_v5 = vadd.f32 %v4270_v49, %v15354_v9  ;;  %v4311_v18 = vpop.f32.mrf.mxu1  ;;  %10263 = vmatprep.subr.bf16.mxu1 %v12515_v53  ;;  %v12548_v53 = vld [vmem:[#allocation11 + $0x1c4] ss:$16 sps:$4 sm:$0xff]  }
 0x2c9   : > { %v15428_v32 = vadd.f32 %v4311_v18, %v15358_v60  ;;  %v4272_v26 = vpop.f32.mrf.mxu0  ;;  %v12522_v60 = vld [vmem:[#allocation11 + $0x40] ss:$16 sps:$4 sm:$0xff]  }
 0x2ca   : > { %v4313_v52 = vpop.f32.mrf.mxu1  ;;  %10223 = vmatpush1.bf16.msra.mxu0 %v12510_v13  ;;  %v12549_v18 = vld [vmem:[#allocation11 + $0x3c0] ss:$16 sps:$4 sm:$0xff]  }
 0x2cb   : > { %v4273_v15 = vpop.f32.mrf.mxu0  ;;  %10264 = vmatpush1.bf16.msra.mxu1 %v12513_v63  ;;  %10224 = vmatprep.subr.bf16.mxu0 %v12518_v23 }
 0x2cc   : > { %v4314_v11 = vpop.f32.mrf.mxu1  ;;  %10265 = vmatprep.subr.bf16.mxu1 %v12521_v61  ;;  %v12554_v61 = vld [vmem:[#allocation11 + $0x1a4] ss:$16 sps:$4 sm:$0xff]  }
 0x2cd   : > { %v4350_v9 = vpop.f32.mrf.mxu0  ;;  %v12555_v11 = vld [vmem:[#allocation11 + $0x3a0] ss:$16 sps:$4 sm:$0xff]  }
 0x2ce   : > { %v15431_v35 = vadd.f32 %v4350_v9, %v15367_v20  ;;  %v4391_v19 = vpop.f32.mrf.mxu1  ;;  %10225 = vmatpush1.bf16.msra.mxu0 %v12516_v37  ;;  %v12557_v37 = vld [vmem:[#allocation11 + $0x3a4] ss:$16 sps:$4 sm:$0xff]  }
 0x2cf   : > { %v15434_v51 = vadd.f32 %v4391_v19, %v15372_v4  ;;  %v4352_v22 = vpop.f32.mrf.mxu0  ;;  %10266 = vmatpush1.bf16.msra.mxu1 %v12519_v59  ;;  %10226 = vmatprep.subr.bf16.mxu0 %v12524_v31  ;;  %v12552_v31 = vld [vmem:[#allocation11 + $0x1a0] ss:$16 sps:$4 sm:$0xff]   ;;  %v12563_v19 = vld [vmem:[#allocation11 + $0x384] ss:$16 sps:$4 sm:$0xff]  }
 0x2d0   : > { %v15437_v50 = vadd.f32 %v4352_v22, %v15376_v55  ;;  %v4393_v44 = vpop.f32.mrf.mxu1  ;;  %10267 = vmatprep.subr.bf16.mxu1 %v12527_v29  ;;  %v12560_v29 = vld [vmem:[#allocation11 + $0x184] ss:$16 sps:$4 sm:$0xff]  }
 0x2d1   : > { %v15440_v20 = vadd.f32 %v4393_v44, %v15380_v17  ;;  %v4354_v46 = vpop.f32.mrf.mxu0  ;;  %v12534_v17 = vld [vmem:[#allocation11] ss:$16 sps:$4 sm:$0xff]  }
 0x2d2   : > { %v4395_v30 = vpop.f32.mrf.mxu1  ;;  %10227 = vmatpush1.bf16.msra.mxu0 %v12522_v60  ;;  %v12561_v44 = vld [vmem:[#allocation11 + $0x380] ss:$16 sps:$4 sm:$0xff]  }
 0x2d3   : > { %v4355_v4 = vpop.f32.mrf.mxu0  ;;  %10268 = vmatpush1.bf16.msra.mxu1 %v12525_v62  ;;  %10228 = vmatprep.subr.bf16.mxu0 %v12530_v1 }
 0x2d4   : > { %v4396_v16 = vpop.f32.mrf.mxu1  ;;  %10269 = vmatprep.subr.bf16.mxu1 %v12533_v34  ;;  %v12566_v34 = vld [vmem:[#allocation11 + $0x164] ss:$16 sps:$4 sm:$0xff]   ;;  %v7010_v4 = vlaneseq }
 0x2d5   : > { %v4432_v55 = vpop.f32.mrf.mxu0 }
 0x2d6   : > { %v15443_v39 = vadd.f32 %v4432_v55, %v15387_v8  ;;  %v4473_v0 = vpop.f32.mrf.mxu1  ;;  %10229 = vmatpush1.bf16.msra.mxu0 %v12528_v12  ;;  %v12569_v12 = vld [vmem:[#allocation11 + $0x364] ss:$16 sps:$4 sm:$0xff]  }
 0x2d7   : > { %v15446_v6 = vadd.f32 %v4473_v0, %v15392_v48  ;;  %v4434_v56 = vpop.f32.mrf.mxu0  ;;  %10270 = vmatpush1.bf16.msra.mxu1 %v12531_v25  ;;  %10230 = vmatprep.subr.bf16.mxu0 %v12536_v58  ;;  %v12572_v55 = vld [vmem:[#allocation11 + $0x144] ss:$16 sps:$4 sm:$0xff]  }
 0x2d8   : > { %v15449_v38 = vadd.f32 %v4434_v56, %v15396_v7  ;;  %v4475_v14 = vpop.f32.mrf.mxu1  ;;  %10271 = vmatprep.subr.bf16.mxu1 %v12539_v36  ;;  %v12567_v36 = vld [vmem:[#allocation11 + $0x360] ss:$16 sps:$4 sm:$0xff]  }
 0x2d9   : > { %v15452_v8 = vadd.f32 %v4475_v14, %v15400_v21  ;;  %v4436_v10 = vpop.f32.mrf.mxu0  ;;  %v12546_v21 = vld [vmem:[#allocation11 + $0x1c0] ss:$16 sps:$4 sm:$0xff]  }
 0x2da   : > { %v4477_v28 = vpop.f32.mrf.mxu1  ;;  %10231 = vmatpush1.bf16.msra.mxu0 %v12534_v17  ;;  %v15478_v17 = vshrl.u32 %v7010_v4, 7 }
 0x2db   : > { %v4437_v48 = vpop.f32.mrf.mxu0  ;;  %10272 = vmatpush1.bf16.msra.mxu1 %v12537_v45  ;;  %10232 = vmatprep.subr.bf16.mxu0 %v12542_v57  ;;  %v12570_v57 = vld [vmem:[#allocation11 + $0x140] ss:$16 sps:$4 sm:$0xff]  }
 0x2dc   : > { %v4478_v40 = vpop.f32.mrf.mxu1  ;;  %10273 = vmatprep.subr.bf16.mxu1 %v12545_v33  ;;  %v7028_v14 = vsub.s32 4, %v15478_v17  ;;  %v12573_v28 = vld [vmem:[#allocation11 + $0x340] ss:$16 sps:$4 sm:$0xff]   ;;  %v12578_v48 = vld [vmem:[#allocation11 + $0x124] ss:$16 sps:$4 sm:$0xff]  }
 0x2dd   : > { %v4514_v7 = vpop.f32.mrf.mxu0 }
 0x2de   : > { %v15455_v13 = vadd.f32 %v4514_v7, %v15405_v54  ;;  %v4555_v49 = vpop.f32.mrf.mxu1  ;;  %10233 = vmatpush2.bf16.msra.mxu0 %v12540_v43  ;;  %v15487_v43 = vld [vmem:[#allocation9] sm:$0xff] }
 0x2df   : > { %v15458_v63 = vadd.f32 %v4555_v49, %v15410_v41  ;;  %v4516_v23 = vpop.f32.mrf.mxu0  ;;  %10274 = vmatpush2.bf16.msra.mxu1 %v12543_v47  ;;  %10234 = vmatprep.subr.bf16.mxu0 %v12548_v53  ;;  %v12581_v53 = vld [vmem:[#allocation11 + $0x324] ss:$16 sps:$4 sm:$0xff]   ;;  %v15493_v40 = vrot.slane %v15487_v43, %v7028_v14 }
 0x2e0   : > { %v15461_v26 = vadd.f32 %v4516_v23, %v15413_v3  ;;  %v4557_v52 = vpop.f32.mrf.mxu1  ;;  %10275 = vmatprep.subr.bf16.mxu1 %v12551_v27  ;;  %v7036_v27 = vsub.s32 6, %v15478_v17 }
 0x2e1   : > { %v15464_v54 = vadd.f32 %v4557_v52, %v15416_v2  ;;  %v4518_v15 = vpop.f32.mrf.mxu0  ;;  %v12558_v2 = vld [vmem:[#allocation11 + $0x180] ss:$16 sps:$4 sm:$0xff]  }
 0x2e2   : > { %v4559_v59 = vpop.f32.mrf.mxu1  ;;  %10235 = vmatpush2.bf16.msra.mxu0 %v12546_v21  ;;  %v12576_v21 = vld [vmem:[#allocation11 + $0x120] ss:$16 sps:$4 sm:$0xff]   ;;  %v15500_v23 = vrot.slane %v15487_v43, %v7036_v27 }
 0x2e3   : > { %v4519_v41 = vpop.f32.mrf.mxu0  ;;  %10276 = vmatpush2.bf16.msra.mxu1 %v12549_v18  ;;  %10236 = vmatprep.subr.bf16.mxu0 %v12554_v61  ;;  %v12579_v18 = vld [vmem:[#allocation11 + $0x320] ss:$16 sps:$4 sm:$0xff]   ;;  %v12584_v61 = vld [vmem:[#allocation11 + $0x104] ss:$16 sps:$4 sm:$0xff]  }
 0x2e4   : > { %v4560_v9 = vpop.f32.mrf.mxu1  ;;  %10277 = vmatprep.subr.bf16.mxu1 %v12557_v37  ;;  %v12587_v37 = vld [vmem:[#allocation11 + $0x304] ss:$16 sps:$4 sm:$0xff]  }
 0x2e5   : > { %v4744_v3 = vpop.f32.mrf.mxu0  ;;  %v12590_v9 = vld [vmem:[#allocation11 + $0x4e4] ss:$16 sps:$4 sm:$0xff]  }
 0x2e6   : > { %v15467_v60 = vadd.f32 %v4744_v3, %v15419_v42  ;;  %v4785_v22 = vpop.f32.mrf.mxu1  ;;  %10237 = vmatpush2.bf16.msra.mxu0 %v12552_v31  ;;  %v12582_v31 = vld [vmem:[#allocation11 + $0x100] ss:$16 sps:$4 sm:$0xff]  }
 0x2e7   : > { %v15470_v62 = vadd.f32 %v4785_v22, %v15422_v24  ;;  %v4746_v1 = vpop.f32.mrf.mxu0  ;;  %10278 = vmatpush2.bf16.msra.mxu1 %v12555_v11  ;;  %10238 = vmatprep.subr.bf16.mxu0 %v12560_v29  ;;  %v12564_v24 = vld [vmem:[#allocation11 + $0x160] ss:$16 sps:$4 sm:$0xff]   ;;  %v12593_v22 = vld [vmem:[#allocation11 + $0x6e4] ss:$16 sps:$4 sm:$0xff]  }
 0x2e8   : > { %v15473_v46 = vadd.f32 %v4746_v1, %v15425_v5  ;;  %v4787_v30 = vpop.f32.mrf.mxu1  ;;  %10279 = vmatprep.subr.bf16.mxu1 %v12563_v19  ;;  %v12575_v5 = vld [vmem:[#allocation11 + $0x344] ss:$16 sps:$4 sm:$0xff]   ;;  %v12585_v29 = vld [vmem:[#allocation11 + $0x300] ss:$16 sps:$4 sm:$0xff]  }
 0x2e9   : > { %v15476_v42 = vadd.f32 %v4787_v30, %v15428_v32  ;;  %v4748_v25 = vpop.f32.mrf.mxu0  ;;  %v15510_v30 = vld [vmem:[#allocation9 + $0x8] sm:$0xff] }
 0x2ea   : > { %v4789_v58 = vpop.f32.mrf.mxu1  ;;  %10239 = vmatpush2.bf16.msra.mxu0 %v12558_v2 }
 0x2eb   : > { %v4749_v16 = vpop.f32.mrf.mxu0  ;;  %10280 = vmatpush2.bf16.msra.mxu1 %v12561_v44  ;;  %10240 = vmatprep.subr.bf16.mxu0 %v12566_v34 }
 0x2ec   : > { %v4790_v0 = vpop.f32.mrf.mxu1  ;;  %10281 = vmatprep.subr.bf16.mxu1 %v12569_v12 }
 0x2ed   : > { %v4826_v56 = vpop.f32.mrf.mxu0 }
 0x2ee   : > { %v15481_v45 = vadd.f32 %v4826_v56, %v15431_v35  ;;  %v4867_v32 = vpop.f32.mrf.mxu1  ;;  %10241 = vmatpush2.bf16.msra.mxu0 %v12564_v24 }
 0x2ef   : > { %v15485_v33 = vadd.f32 %v4867_v32, %v15434_v51  ;;  %v4828_v10 = vpop.f32.mrf.mxu0  ;;  %10282 = vmatpush2.bf16.msra.mxu1 %v12567_v36  ;;  %10242 = vmatprep.subr.bf16.mxu0 %v12572_v55  ;;  %v7032_v55 = vsub.s32 5, %v15478_v17 }
 0x2f0   : > { %v15490_v47 = vadd.f32 %v4828_v10, %v15437_v50  ;;  %v4869_v35 = vpop.f32.mrf.mxu1  ;;  %10283 = vmatprep.subr.bf16.mxu1 %v12575_v5  ;;  %v7040_v5 = vsub.s32 7, %v15478_v17 }
 0x2f1   : > { %v15497_v51 = vadd.f32 %v4869_v35, %v15440_v20  ;;  %v4830_v7 = vpop.f32.mrf.mxu0 }
 0x2f2   : > { %v4871_v49 = vpop.f32.mrf.mxu1  ;;  %10243 = vmatpush2.bf16.msra.mxu0 %v12570_v57 }
 0x2f3   : > { %v4831_v50 = vpop.f32.mrf.mxu0  ;;  %10284 = vmatpush2.bf16.msra.mxu1 %v12573_v28  ;;  %10244 = vmatprep.subr.bf16.mxu0 %v12578_v48 }
 0x2f4   : > { %v4872_v52 = vpop.f32.mrf.mxu1  ;;  %10285 = vmatprep.subr.bf16.mxu1 %v12581_v53 }
 0x2f5   : > { %v4908_v15 = vpop.f32.mrf.mxu0 }
 0x2f6   : > { %v15503_v59 = vadd.f32 %v4908_v15, %v15443_v39  ;;  %v4949_v20 = vpop.f32.mrf.mxu1  ;;  %10245 = vmatpush2.bf16.msra.mxu0 %v12576_v21 }
 0x2f7   : > { %v15506_v41 = vadd.f32 %v4949_v20, %v15446_v6  ;;  %v4910_v11 = vpop.f32.mrf.mxu0  ;;  %10286 = vmatpush2.bf16.msra.mxu1 %v12579_v18  ;;  %10246 = vmatprep.subr.bf16.mxu0 %v12584_v61 }
 0x2f8   : > { %v5047_v19 = vadd.f32 %v4910_v11, %v15449_v38  ;;  %v4951_v3 = vpop.f32.mrf.mxu1  ;;  %10287 = vmatprep.subr.bf16.mxu1 %v12587_v37  ;;  %v15514_v38 = vrot.slane %v15510_v30, %v7028_v14 }
 0x2f9   : > { %v5049_v2 = vadd.f32 %v4951_v3, %v15452_v8  ;;  %v4912_v39 = vpop.f32.mrf.mxu0 }
 0x2fa   : > { %v4953_v1 = vpop.f32.mrf.mxu1  ;;  %10247 = vmatpush2.bf16.msra.mxu0 %v12582_v31 }
 0x2fb   : > { %v4913_v44 = vpop.f32.mrf.mxu0  ;;  %10288 = vmatpush2.bf16.msra.mxu1 %v12585_v29  ;;  %10298 = vmatprep.subr.bf16.mxu0 %v12590_v9 }
 0x2fc   : > { %v4954_v6 = vpop.f32.mrf.mxu1  ;;  %10339 = vmatprep.subr.bf16.mxu1 %v12593_v22 }
 0x2fd   : > { %v4990_v34 = vpop.f32.mrf.mxu0 }
 0x2fe   : > { %v5050_v12 = vadd.f32 %v4990_v34, %v15455_v13  ;;  %v5031_v4 = vpop.f32.mrf.mxu1  ;;  %v15522_v13 = vrot.slane %v15510_v30, %v7036_v27 }
 0x2ff   : > { %v5052_v25 = vadd.f32 %v5031_v4, %v15458_v63  ;;  %v4992_v8 = vpop.f32.mrf.mxu0  ;;  %v15527_v63 = vrot.slane %v15510_v30, %v7032_v55 }
 0x300   : > { %v5051_v58 = vadd.f32 %v4992_v8, %v15461_v26  ;;  %v5033_v24 = vpop.f32.mrf.mxu1  ;;  %v15532_v26 = vrot.slane %v15510_v30, %v7040_v5 }
 0x301   : > { %v5053_v16 = vadd.f32 %v5033_v24, %v15464_v54  ;;  %v4994_v36 = vpop.f32.mrf.mxu0 }
 0x302   : > { %v5035_v0 = vpop.f32.mrf.mxu1 }
 0x303   : > { %v4995_v56 = vpop.f32.mrf.mxu0 }
 0x304   : > { %v5036_v32 = vpop.f32.mrf.mxu1 }
 0x305   : > { %v5268_v54 = vpop.f32.mrf.mxu0 }
 0x306   : > { %v15535_v57 = vadd.f32 %v5268_v54, %v15467_v60  ;;  %v5309_v14 = vpop.f32.mrf.mxu1 }
 0x307   : > { %v15538_v10 = vadd.f32 %v5309_v14, %v15470_v62  ;;  %v5270_v28 = vpop.f32.mrf.mxu0 }
 0x308   : > { %v15541_v48 = vadd.f32 %v5270_v28, %v15473_v46  ;;  %v5311_v35 = vpop.f32.mrf.mxu1 }
 0x309   : > { %v15544_v53 = vadd.f32 %v5311_v35, %v15476_v42  ;;  %v5272_v27 = vpop.f32.mrf.mxu0 }
 0x30a   : > { %v5313_v7 = vpop.f32.mrf.mxu1 }
 0x30b   : > { %v5273_v49 = vpop.f32.mrf.mxu0 }
 0x30c   : > { %v5314_v21 = vpop.f32.mrf.mxu1 }
 0x30d   : > { %v5350_v50 = vpop.f32.mrf.mxu0 }
 0x30e   : > { %v5566_v60 = vadd.f32 %v5350_v50, %v15481_v45  ;;  %v5391_v18 = vpop.f32.mrf.mxu1 }
 0x30f   : > { %v5568_v61 = vadd.f32 %v5391_v18, %v15485_v33  ;;  %v5352_v62 = vpop.f32.mrf.mxu0 }
 0x310   : > { %v15549_v52 = vadd.f32 %v5352_v62, %v15490_v47  ;;  %v5393_v46 = vpop.f32.mrf.mxu1 }
 0x311   : > { %v15552_v37 = vadd.f32 %v5393_v46, %v15497_v51  ;;  %v5354_v42 = vpop.f32.mrf.mxu0 }
 0x312   : > { %v5395_v15 = vpop.f32.mrf.mxu1 }
 0x313   : > { %v5355_v20 = vpop.f32.mrf.mxu0 }
 0x314   : > { %v5396_v31 = vpop.f32.mrf.mxu1 }
 0x315   : > { %v5432_v11 = vpop.f32.mrf.mxu0 }
 0x316   : > { %v5570_v29 = vadd.f32 %v5432_v11, %v15503_v59  ;;  %v5473_v9 = vpop.f32.mrf.mxu1 }
 0x317   : > { %v5572_v45 = vadd.f32 %v5473_v9, %v15506_v41  ;;  %v5434_v3 = vpop.f32.mrf.mxu0 }
 0x318   : > { %v5571_v33 = vadd.f32 %v5434_v3, %v5047_v19  ;;  %v5475_v22 = vpop.f32.mrf.mxu1 }
 0x319   : > { %v5573_v39 = vadd.f32 %v5475_v22, %v5049_v2  ;;  %v5436_v47 = vpop.f32.mrf.mxu0 }
 0x31a   : > { %v5477_v1 = vpop.f32.mrf.mxu1 }
 0x31b   : > { %v5437_v44 = vpop.f32.mrf.mxu0 }
 0x31c   : > { %v5478_v6 = vpop.f32.mrf.mxu1 }
 0x31d   : > { %v5514_v51 = vpop.f32.mrf.mxu0 }
 0x31e   : > { %v5574_v34 = vadd.f32 %v5514_v51, %v5050_v12  ;;  %v5555_v4 = vpop.f32.mrf.mxu1 }
 0x31f   : > { %v5576_v8 = vadd.f32 %v5555_v4, %v5052_v25  ;;  %v5516_v24 = vpop.f32.mrf.mxu0 }
 0x320   : > { %v5575_v36 = vadd.f32 %v5516_v24, %v5051_v58  ;;  %v5557_v0 = vpop.f32.mrf.mxu1 }
 0x321   : > { %v5577_v56 = vadd.f32 %v5557_v0, %v5053_v16  ;;  %v5518_v59 = vpop.f32.mrf.mxu0 }
 0x322   : > { %v5559_v32 = vpop.f32.mrf.mxu1 }
 0x323   : > { %v5519_v54 = vpop.f32.mrf.mxu0 }
 0x324   : > { %v5560_v41 = vpop.f32.mrf.mxu1 }
 0x325   : > { %v15556_v14 = vpop.f32.mrf.mxu0 }
 0x326   : > { %v15558_v19 = vpop.f32.mrf.mxu1 }
 0x327   : > { %v15560_v2 = vpop.f32.mrf.mxu0 }
 0x328   : > { %v15562_v28 = vpop.f32.mrf.mxu1 }
 0x329   : > { %v5748_v35 = vpop.f32.mrf.mxu0 }
 0x32a   : > { %v5789_v12 = vpop.f32.mrf.mxu1 }
 0x32b   : > { %v5749_v27 = vpop.f32.mrf.mxu0 }
 0x32c   : > { %v5790_v25 = vpop.f32.mrf.mxu1 }
 0x32d   : > { %v5826_v7 = vpop.f32.mrf.mxu0 }
 0x32e   : > { %v6042_v58 = vadd.f32 %v5826_v7, %v5566_v60  ;;  %v5867_v49 = vpop.f32.mrf.mxu1 }
 0x32f   : > { %v6044_v16 = vadd.f32 %v5867_v49, %v5568_v61  ;;  %v15564_v21 = vpop.f32.mrf.mxu0 }
 0x330   : > { %v15566_v50 = vpop.f32.mrf.mxu1 }
 0x331   : > { %v5830_v18 = vpop.f32.mrf.mxu0 }
 0x332   : > { %v5871_v62 = vpop.f32.mrf.mxu1 }
 0x333   : > { %v5831_v46 = vpop.f32.mrf.mxu0 }
 0x334   : > { %v5872_v42 = vpop.f32.mrf.mxu1 }
 0x335   : > { %v5908_v15 = vpop.f32.mrf.mxu0 }
 0x336   : > { %v6046_v20 = vadd.f32 %v5908_v15, %v5570_v29  ;;  %v5949_v31 = vpop.f32.mrf.mxu1 }
 0x337   : > { %v6048_v11 = vadd.f32 %v5949_v31, %v5572_v45  ;;  %v5910_v9 = vpop.f32.mrf.mxu0 }
 0x338   : > { %v6047_v3 = vadd.f32 %v5910_v9, %v5571_v33  ;;  %v5951_v22 = vpop.f32.mrf.mxu1 }
 0x339   : > { %v6049_v47 = vadd.f32 %v5951_v22, %v5573_v39  ;;  %v5912_v1 = vpop.f32.mrf.mxu0 }
 0x33a   : > { %v5953_v60 = vpop.f32.mrf.mxu1 }
 0x33b   : > { %v5913_v44 = vpop.f32.mrf.mxu0 }
 0x33c   : > { %v5954_v61 = vpop.f32.mrf.mxu1 }
 0x33d   : > { %v5990_v6 = vpop.f32.mrf.mxu0 }
 0x33e   : > { %v6050_v51 = vadd.f32 %v5990_v6, %v5574_v34  ;;  %v6031_v4 = vpop.f32.mrf.mxu1 }
 0x33f   : > { %v6052_v24 = vadd.f32 %v6031_v4, %v5576_v8  ;;  %v5992_v0 = vpop.f32.mrf.mxu0 }
 0x340   : > { %v6051_v59 = vadd.f32 %v5992_v0, %v5575_v36  ;;  %v6033_v32 = vpop.f32.mrf.mxu1 }
 0x341   : > { %v6053_v54 = vadd.f32 %v6033_v32, %v5577_v56  ;;  %v5994_v41 = vpop.f32.mrf.mxu0 }
 0x342   : > { %v6035_v29 = vpop.f32.mrf.mxu1 }
 0x343   : > { %v5995_v35 = vpop.f32.mrf.mxu0 }
 0x344   : > { %v6036_v45 = vpop.f32.mrf.mxu1 }
 0x345   : > { %v6220_v12 = vpop.f32.mrf.mxu0 }
 0x346   : > { %v6261_v33 = vpop.f32.mrf.mxu1 }
 0x347   : > { %v6222_v27 = vpop.f32.mrf.mxu0 }
 0x348   : > { %v6263_v39 = vpop.f32.mrf.mxu1 }
 0x349   : > { %v6224_v25 = vpop.f32.mrf.mxu0 }
 0x34a   : > { %v6265_v7 = vpop.f32.mrf.mxu1 }
 0x34b   : > { %v6225_v49 = vpop.f32.mrf.mxu0 }
 0x34c   : > { %v6266_v18 = vpop.f32.mrf.mxu1 }
 0x34d   : > { %v6302_v62 = vpop.f32.mrf.mxu0  ;;  %v6038_v18 = vadd.f32 %v15556_v14, %v15535_v57  ;;  %v6041_v57 = vadd.f32 %v15562_v28, %v15544_v53 }
 0x34e   : > { %v15568_v34 = vadd.f32 %v6302_v62, %v6042_v58  ;;  %v6343_v8 = vpop.f32.mrf.mxu1 }
 0x34f   : > { %v15570_v46 = vadd.f32 %v6343_v8, %v6044_v16  ;;  %v15572_v36 = vpop.f32.mrf.mxu0 }
 0x350   : > { %v15574_v56 = vpop.f32.mrf.mxu1 }
 0x351   : > { %v6306_v42 = vpop.f32.mrf.mxu0 }
 0x352   : > { %v6347_v15 = vpop.f32.mrf.mxu1  ;;  %v6039_v42 = vadd.f32 %v15560_v2, %v15541_v48  ;;  %v6517_v48 = vadd.f32 %v6263_v39, %v6041_v57 }
 0x353   : > { %v6307_v31 = vpop.f32.mrf.mxu0  ;;  %v6514_v15 = vadd.f32 %v6220_v12, %v6038_v18  ;;  %v12588_v18 = vld [vmem:[#allocation11 + $0x4e0] ss:$16 sps:$4 sm:$0xff]  }
 0x354   : > { %v6348_v9 = vpop.f32.mrf.mxu1 }
 0x355   : > { %v6384_v22 = vpop.f32.mrf.mxu0 }
 0x356   : > { %v15576_v1 = vadd.f32 %v6384_v22, %v6046_v20  ;;  %v6425_v60 = vpop.f32.mrf.mxu1 }
 0x357   : > { %v15578_v44 = vadd.f32 %v6425_v60, %v6048_v11  ;;  %v6386_v61 = vpop.f32.mrf.mxu0  ;;  %v6515_v60 = vadd.f32 %v6222_v27, %v6039_v42 }
 0x358   : > { %v15580_v58 = vadd.f32 %v6386_v61, %v6047_v3  ;;  %v6427_v6 = vpop.f32.mrf.mxu1 }
 0x359   : > { %v15582_v16 = vadd.f32 %v6427_v6, %v6049_v47  ;;  %v6388_v4 = vpop.f32.mrf.mxu0  ;;  %v15593_v47 = vsub.s32 0, %v15478_v17 }
 0x35a   : > { %v6429_v0 = vpop.f32.mrf.mxu1 }
 0x35b   : > { %v6389_v32 = vpop.f32.mrf.mxu0  ;;  %v7013_v22 = vrot.slane %v15487_v43, %v15593_v47 }
 0x35c   : > { %v6430_v41 = vpop.f32.mrf.mxu1 }
 0x35d   : > { %v6466_v29 = vpop.f32.mrf.mxu0 }
 0x35e   : > { %v15584_v35 = vadd.f32 %v6466_v29, %v6050_v51  ;;  %v6507_v45 = vpop.f32.mrf.mxu1  ;;  %v15598_v51 = vsub.s32 2, %v15478_v17 }
 0x35f   : > { %v15586_v25 = vadd.f32 %v6507_v45, %v6052_v24  ;;  %v6468_v20 = vpop.f32.mrf.mxu0  ;;  %v15601_v24 = vsub.s32 1, %v15478_v17 }
 0x360   : > { %v15588_v7 = vadd.f32 %v6468_v20, %v6051_v59  ;;  %v6509_v11 = vpop.f32.mrf.mxu1  ;;  %v6040_v59 = vadd.f32 %v15558_v19, %v15538_v10  ;;  %v7021_v19 = vrot.slane %v15487_v43, %v15598_v51 }
 0x361   : > { %v15590_v49 = vadd.f32 %v6509_v11, %v6053_v54  ;;  %v6470_v3 = vpop.f32.mrf.mxu0  ;;  %v15606_v54 = vsub.s32 3, %v15478_v17  ;;  %v7017_v6 = vrot.slane %v15487_v43, %v15601_v24  ;;  %v6043_v11 = vadd.f32 %v15564_v21, %v15549_v52  ;;  %v12597_v17 = vld [vmem:[#allocation11 + $0x6c0] ss:$16 sps:$4 sm:$0xff]  }
 0x362   : > { %v6511_v62 = vpop.f32.mrf.mxu1  ;;  %v6516_v14 = vadd.f32 %v6261_v33, %v6040_v59 }
 0x363   : > { %v6471_v8 = vpop.f32.mrf.mxu0  ;;  %v7025_v53 = vrot.slane %v15487_v43, %v15606_v54  ;;  %v6045_v62 = vadd.f32 %v15566_v50, %v15552_v37  ;;  %v6519_v57 = vadd.f32 %v15572_v36, %v6043_v11  ;;  %v7033_v37 = vrot.slane %v15487_v43, %v7032_v55  ;;  %v12599_v50 = vld [vmem:[#allocation11 + $0x6c4] ss:$16 sps:$4 sm:$0xff]   ;;  %v12594_v55 = vld [vmem:[#allocation11 + $0x4c0] ss:$16 sps:$4 sm:$0xff]  }
 0x364   : > { %v6512_v31 = vpop.f32.mrf.mxu1  ;;  %v7041_v36 = vrot.slane %v15487_v43, %v7040_v5  ;;  %v12602_v43 = vld [vmem:[#allocation11 + $0x4a4] ss:$16 sps:$4 sm:$0xff]   ;;  %v12606_v11 = vld [vmem:[#allocation11 + $0x480] ss:$16 sps:$4 sm:$0xff]  }
 0x365   : > { %v6696_v9 = vpop.f32.mrf.mxu0  ;;  %v12596_v31 = vld [vmem:[#allocation11 + $0x4c4] ss:$16 sps:$4 sm:$0xff]  }
 0x366   : > { %v6990_v61 = vadd.f32 %v6696_v9, %v6514_v15  ;;  %v6737_v10 = vpop.f32.mrf.mxu1  ;;  %v12591_v15 = vld [vmem:[#allocation11 + $0x6e0] ss:$16 sps:$4 sm:$0xff]   ;;  %v6521_v9 = vadd.f32 %v15574_v56, %v6045_v62 }
 0x367   : > { %v6992_v2 = vadd.f32 %v6737_v10, %v6516_v14  ;;  %v6698_v12 = vpop.f32.mrf.mxu0 }
 0x368   : > { %v6991_v28 = vadd.f32 %v6698_v12, %v6515_v60  ;;  %v6739_v33 = vpop.f32.mrf.mxu1  ;;  %v7090_v4 = vadd.f32 %v7013_v22, %v6990_v61 }
 0x369   : > { %v6993_v0 = vadd.f32 %v6739_v33, %v6517_v48  ;;  %v6700_v32 = vpop.f32.mrf.mxu0  ;;  %v7092_v27 = vadd.f32 %v7021_v19, %v6992_v2 }
 0x36a   : > { %v7091_v41 = vadd.f32 %v7017_v6, %v6991_v28  ;;  %v6741_v29 = vpop.f32.mrf.mxu1  ;;  %v15626_v59 = vpack.c.bf16 %v7090_v4, %v7090_v4  ;;  %v12600_v28 = vld [vmem:[#allocation11 + $0x4a0] ss:$16 sps:$4 sm:$0xff]  }
 0x36b   : > { %v7093_v45 = vadd.f32 %v7025_v53, %v6993_v0  ;;  %v6701_v20 = vpop.f32.mrf.mxu0  ;;  %v15631_v14 = vpack.c.bf16 %v7092_v27, %v7092_v27  ;;  %v12603_v4 = vld [vmem:[#allocation11 + $0x6a0] ss:$16 sps:$4 sm:$0xff]   ;;  %v12608_v0 = vld [vmem:[#allocation11 + $0x484] ss:$16 sps:$4 sm:$0xff]  }
 0x36c   : > { %v15622_v3 = vpack.c.bf16 %v7091_v41, %v7091_v41  ;;  %v6742_v39 = vpop.f32.mrf.mxu1  ;;  %v12611_v41 = vld [vmem:[#allocation11 + $0x684] ss:$16 sps:$4 sm:$0xff]  }
 0x36d   : > { %v15628_v8 = vpack.c.bf16 %v7093_v45, %v7093_v45  ;;  %v6778_v42 = vpop.f32.mrf.mxu0 }
 0x36e   : > { %v6994_v52 = vadd.f32 %v6778_v42, %v15568_v34  ;;  %v6819_v21 = vpop.f32.mrf.mxu1  ;;  %10248 = vmatprep.mubr.bf16.mxu0 %v15622_v3  ;;  %v12617_v42 = vld [vmem:[#allocation11 + $0x664] ss:$16 sps:$4 sm:$0xff]  }
 0x36f   : > { %v6996_v22 = vadd.f32 %v6819_v21, %v15570_v46  ;;  %10289 = vmatprep.mubr.bf16.mxu1 %v15628_v8  ;;  %v6780_v60 = vpop.f32.mrf.mxu0  ;;  %10249 = vmatmul.mubr.bf16.vlgmr.msra.gmra.mxu0 %v15626_v59  ;;  %v12620_v21 = vld [vmem:[#allocation11 + $0x444] ss:$16 sps:$4 sm:$0xff]  }
 0x370   : > { %v15646_v34 = vadd.f32 %v15493_v40, %v6994_v52  ;;  %v6995_v61 = vadd.f32 %v6780_v60, %v6519_v57  ;;  %v6821_v10 = vpop.f32.mrf.mxu1  ;;  %10290 = vmatmul.mubr.bf16.vlgmr.msra.gmra.mxu1 %v15631_v14  ;;  %10299 = vmatpush1.bf16.msra.mxu0 %v12588_v18  ;;  %v12605_v40 = vld [vmem:[#allocation11 + $0x6a4] ss:$16 sps:$4 sm:$0xff]   ;;  %v12615_v52 = vld [vmem:[#allocation11 + $0x660] ss:$16 sps:$4 sm:$0xff]  }
 0x371   : > { %v15650_v46 = vadd.f32 %v15500_v23, %v6996_v22  ;;  %v6997_v56 = vadd.f32 %v6821_v10, %v6521_v9  ;;  %10340 = vmatpush1.bf16.msra.mxu1 %v12591_v15  ;;  %v6782_v19 = vpop.f32.mrf.mxu0  ;;  %10300 = vmatprep.subr.bf16.mxu0 %v12596_v31  ;;  %v12614_v18 = vld [vmem:[#allocation11 + $0x464] ss:$16 sps:$4 sm:$0xff]  }
 0x372   : > { %v7095_v5 = vadd.f32 %v7033_v37, %v6995_v61  ;;  %v6823_v6 = vpop.f32.mrf.mxu1  ;;  %10341 = vmatprep.subr.bf16.mxu1 %v12599_v50  ;;  %v12623_v9 = vld [vmem:[#allocation11 + $0x644] ss:$16 sps:$4 sm:$0xff]  }
 0x373   : > { %v7097_v48 = vadd.f32 %v7041_v36, %v6997_v56  ;;  %v6783_v2 = vpop.f32.mrf.mxu0 }
 0x374   : > { %v15652_v12 = vpack.c.bf16 %v7095_v5, %v7095_v5  ;;  %v6824_v53 = vpop.f32.mrf.mxu1  ;;  %10301 = vmatpush1.bf16.msra.mxu0 %v12594_v55  ;;  %v12618_v55 = vld [vmem:[#allocation11 + $0x440] ss:$16 sps:$4 sm:$0xff]   ;;  %v12629_v5 = vld [vmem:[#allocation11 + $0x624] ss:$16 sps:$4 sm:$0xff]  }
 0x375   : > { %v15654_v33 = vpack.c.bf16 %v7097_v48, %v7097_v48  ;;  %10342 = vmatpush1.bf16.msra.mxu1 %v12597_v17  ;;  %v6860_v23 = vpop.f32.mrf.mxu0  ;;  %10302 = vmatprep.subr.bf16.mxu0 %v12602_v43  ;;  %v12621_v17 = vld [vmem:[#allocation11 + $0x640] ss:$16 sps:$4 sm:$0xff]   ;;  %v12626_v43 = vld [vmem:[#allocation11 + $0x424] ss:$16 sps:$4 sm:$0xff]  }
 0x376   : > { %v15657_v32 = vadd.f32 %v6860_v23, %v15576_v1  ;;  %v6901_v27 = vpop.f32.mrf.mxu1  ;;  %10330 = vmatprep.mubr.bf16.mxu0 %v15652_v12  ;;  %10343 = vmatprep.subr.bf16.mxu1 %v12605_v40  ;;  %v12609_v1 = vld [vmem:[#allocation11 + $0x680] ss:$16 sps:$4 sm:$0xff]   ;;  %v12632_v48 = vld [vmem:[#allocation11 + $0x404] ss:$16 sps:$4 sm:$0xff]  }
 0x377   : > { %v15661_v29 = vadd.f32 %v6901_v27, %v15578_v44  ;;  %10371 = vmatprep.mubr.bf16.mxu1 %v15654_v33  ;;  %v15664_v45 = vpop.f32.mrf.mxu0  ;;  %v12612_v44 = vld [vmem:[#allocation11 + $0x460] ss:$16 sps:$4 sm:$0xff]   ;;  %v12635_v2 = vld [vmem:[#allocation11 + $0x604] ss:$16 sps:$4 sm:$0xff]  }
 0x378   : > { %v15666_v20 = vpop.f32.mrf.mxu1  ;;  %10303 = vmatpush1.bf16.msra.mxu0 %v12600_v28  ;;  %v12630_v53 = vld [vmem:[#allocation11 + $0x400] ss:$16 sps:$4 sm:$0xff]   ;;  %v12638_v28 = vld [vmem:[#allocation11 + $0x5e4] ss:$16 sps:$4 sm:$0xff]  }
 0x379   : > { %10344 = vmatpush1.bf16.msra.mxu1 %v12603_v4  ;;  %v6864_v39 = vpop.f32.mrf.mxu0  ;;  %10304 = vmatprep.subr.bf16.mxu0 %v12608_v0  ;;  %v12641_v23 = vld [vmem:[#allocation11 + $0x7e4] ss:$16 sps:$4 sm:$0xff]   ;;  %v12639_v4 = vld [vmem:[#allocation11 + $0x7e0] ss:$16 sps:$4 sm:$0xff]  }
 0x37a   : > { %v6905_v62 = vpop.f32.mrf.mxu1  ;;  %10345 = vmatprep.subr.bf16.mxu1 %v12611_v41  ;;  %v12644_v0 = vld [vmem:[#allocation11 + $0x5c4] ss:$16 sps:$4 sm:$0xff]   ;;  %v12642_v41 = vld [vmem:[#allocation11 + $0x5c0] ss:$16 sps:$4 sm:$0xff]  }
 0x37b   : > { %v6865_v15 = vpop.f32.mrf.mxu0  ;;  %v12647_v27 = vld [vmem:[#allocation11 + $0x7c4] ss:$16 sps:$4 sm:$0xff]   ;;  %v12651_v62 = vld [vmem:[#allocation11 + $0x7a0] ss:$16 sps:$4 sm:$0xff]  }
 0x37c   : > { %v6906_v31 = vpop.f32.mrf.mxu1  ;;  %10305 = vmatpush1.bf16.msra.mxu0 %v12606_v11  ;;  %v12645_v11 = vld [vmem:[#allocation11 + $0x7c0] ss:$16 sps:$4 sm:$0xff]   ;;  %v12650_v39 = vld [vmem:[#allocation11 + $0x5a4] ss:$16 sps:$4 sm:$0xff]  }
 0x37d   : > { %10346 = vmatpush1.bf16.msra.mxu1 %v12609_v1  ;;  %v6942_v57 = vpop.f32.mrf.mxu0  ;;  %10306 = vmatprep.subr.bf16.mxu0 %v12614_v18  ;;  %v12653_v1 = vld [vmem:[#allocation11 + $0x7a4] ss:$16 sps:$4 sm:$0xff]   ;;  %v12648_v18 = vld [vmem:[#allocation11 + $0x5a0] ss:$16 sps:$4 sm:$0xff]  }
 0x37e   : > { %v7002_v37 = vadd.f32 %v6942_v57, %v15584_v35  ;;  %v6983_v50 = vpop.f32.mrf.mxu1  ;;  %10347 = vmatprep.subr.bf16.mxu1 %v12617_v42  ;;  %v12656_v42 = vld [vmem:[#allocation11 + $0x584] ss:$16 sps:$4 sm:$0xff]   ;;  %v12654_v31 = vld [vmem:[#allocation11 + $0x580] ss:$16 sps:$4 sm:$0xff]  }
 0x37f   : > { %v7004_v22 = vadd.f32 %v6983_v50, %v15586_v25  ;;  %v6944_v60 = vpop.f32.mrf.mxu0  ;;  %v12659_v15 = vld [vmem:[#allocation11 + $0x784] ss:$16 sps:$4 sm:$0xff]  }
 0x380   : > { %v15671_v36 = vadd.f32 %v15514_v38, %v7002_v37  ;;  %v7003_v61 = vadd.f32 %v6944_v60, %v15588_v7  ;;  %v6985_v10 = vpop.f32.mrf.mxu1  ;;  %10307 = vmatpush1.bf16.msra.mxu0 %v12612_v44  ;;  %v12657_v44 = vld [vmem:[#allocation11 + $0x780] ss:$16 sps:$4 sm:$0xff]   ;;  %v12662_v57 = vld [vmem:[#allocation11 + $0x564] ss:$16 sps:$4 sm:$0xff]  }
 0x381   : > { %v15675_v56 = vadd.f32 %v15522_v13, %v7004_v22  ;;  %v7005_v19 = vadd.f32 %v6985_v10, %v15590_v49  ;;  %10348 = vmatpush1.bf16.msra.mxu1 %v12615_v52  ;;  %v6946_v35 = vpop.f32.mrf.mxu0  ;;  %10308 = vmatprep.subr.bf16.mxu0 %v12620_v21  ;;  %v12624_v13 = vld [vmem:[#allocation11 + $0x420] ss:$16 sps:$4 sm:$0xff]   ;;  %v12665_v52 = vld [vmem:[#allocation11 + $0x764] ss:$16 sps:$4 sm:$0xff]  }
 0x382   : > { %v15679_v25 = vadd.f32 %v15527_v63, %v7003_v61  ;;  %v6987_v38 = vpop.f32.mrf.mxu1  ;;  %10349 = vmatprep.subr.bf16.mxu1 %v12623_v9  ;;  %v12627_v49 = vld [vmem:[#allocation11 + $0x620] ss:$16 sps:$4 sm:$0xff]   ;;  %v12668_v50 = vld [vmem:[#allocation11 + $0x544] ss:$16 sps:$4 sm:$0xff]  }
 0x383   : > { %v15682_v7 = vadd.f32 %v15532_v26, %v7005_v19  ;;  %v6947_v6 = vpop.f32.mrf.mxu0  ;;  %v12633_v63 = vld [vmem:[#allocation11 + $0x600] ss:$16 sps:$4 sm:$0xff]   ;;  %v12671_v9 = vld [vmem:[#allocation11 + $0x744] ss:$16 sps:$4 sm:$0xff]   ;;  %v7049_v38 = vrot.slane %v15510_v30, %v15601_v24 }
 0x384   : > { %v6988_v40 = vpop.f32.mrf.mxu1  ;;  %10309 = vmatpush1.bf16.msra.mxu0 %v12618_v55  ;;  %v12636_v26 = vld [vmem:[#allocation11 + $0x5e0] ss:$16 sps:$4 sm:$0xff]   ;;  %v12674_v61 = vld [vmem:[#allocation11 + $0x524] ss:$16 sps:$4 sm:$0xff]   ;;  %v7057_v6 = vrot.slane %v15510_v30, %v15606_v54 }
 0x385   : > { %10350 = vmatpush1.bf16.msra.mxu1 %v12621_v17  ;;  %10310 = vmatprep.subr.bf16.mxu0 %v12626_v43  ;;  %v12660_v21 = vld [vmem:[#allocation11 + $0x560] ss:$16 sps:$4 sm:$0xff]   ;;  %v12677_v10 = vld [vmem:[#allocation11 + $0x724] ss:$16 sps:$4 sm:$0xff]   ;;  %v6999_v43 = vadd.f32 %v15664_v45, %v15580_v58  ;;  %v15694_v45 = vpack.c.bf16 %v15646_v34, %v15646_v34 }
 0x386   : > { %10351 = vmatprep.subr.bf16.mxu1 %v12629_v5  ;;  %v12663_v37 = vld [vmem:[#allocation11 + $0x760] ss:$16 sps:$4 sm:$0xff]   ;;  %v12680_v35 = vld [vmem:[#allocation11 + $0x504] ss:$16 sps:$4 sm:$0xff]   ;;  %v7001_v5 = vadd.f32 %v15666_v20, %v15582_v16  ;;  %v15698_v20 = vpack.c.bf16 %v15650_v46, %v15650_v46 }
 0x387   : > { %v12666_v22 = vld [vmem:[#allocation11 + $0x540] ss:$16 sps:$4 sm:$0xff]   ;;  %v12683_v17 = vld [vmem:[#allocation11 + $0x704] ss:$16 sps:$4 sm:$0xff]  }
 0x388   : > { %10311 = vmatpush1.bf16.msra.mxu0 %v12624_v13  ;;  %v12669_v60 = vld [vmem:[#allocation11 + $0x740] ss:$16 sps:$4 sm:$0xff]   ;;  %v12701_v46 = vld [vmem:[#allocation11 + $0xaa4] ss:$16 sps:$4 sm:$0xff]  }
 0x389   : > { %10352 = vmatpush1.bf16.msra.mxu1 %v12627_v49  ;;  %10312 = vmatprep.subr.bf16.mxu0 %v12632_v48  ;;  %v12672_v55 = vld [vmem:[#allocation11 + $0x520] ss:$16 sps:$4 sm:$0xff]   ;;  %v12686_v49 = vld [vmem:[#allocation11 + $0x8e4] ss:$16 sps:$4 sm:$0xff]  }
 0x38a   : > { %10353 = vmatprep.subr.bf16.mxu1 %v12635_v2  ;;  %v12675_v19 = vld [vmem:[#allocation11 + $0x720] ss:$16 sps:$4 sm:$0xff]   ;;  %v12689_v48 = vld [vmem:[#allocation11 + $0xae4] ss:$16 sps:$4 sm:$0xff]   ;;  %v7099_v2 = vadd.f32 %v7049_v38, %v6999_v43 }
 0x38b   : > { %v12678_v40 = vld [vmem:[#allocation11 + $0x500] ss:$16 sps:$4 sm:$0xff]   ;;  %v12740_v38 = vld [vmem:[#allocation11 + $0x9c4] ss:$16 sps:$4 sm:$0xff]  }
 0x38c   : > { %10313 = vmatpush1.bf16.msra.mxu0 %v12630_v53  ;;  %v12681_v13 = vld [vmem:[#allocation11 + $0x700] ss:$16 sps:$4 sm:$0xff]   ;;  %v7101_v53 = vadd.f32 %v7057_v6, %v7001_v5  ;;  %v12743_v5 = vld [vmem:[#allocation11 + $0xbc4] ss:$16 sps:$4 sm:$0xff]  }
 0x38d   : > { %10354 = vmatpush1.bf16.msra.mxu1 %v12633_v63  ;;  %10314 = vmatprep.subr.bf16.mxu0 %v12638_v28  ;;  %v12684_v58 = vld [vmem:[#allocation11 + $0x8e0] ss:$16 sps:$4 sm:$0xff]   ;;  %v12692_v63 = vld [vmem:[#allocation11 + $0x8c4] ss:$16 sps:$4 sm:$0xff]   ;;  %v15700_v28 = vpack.c.bf16 %v7099_v2, %v7099_v2 }
 0x38e   : > { %10355 = vmatprep.subr.bf16.mxu1 %v12641_v23  ;;  %v12687_v16 = vld [vmem:[#allocation11 + $0xae0] ss:$16 sps:$4 sm:$0xff]   ;;  %v12695_v23 = vld [vmem:[#allocation11 + $0xac4] ss:$16 sps:$4 sm:$0xff]  }
 0x38f   : > { %v12690_v34 = vld [vmem:[#allocation11 + $0x8c0] ss:$16 sps:$4 sm:$0xff]  }
 0x390   : > { %10315 = vmatpush2.bf16.msra.mxu0 %v12636_v26  ;;  %v15703_v26 = vpack.c.bf16 %v7101_v53, %v7101_v53  ;;  %v12735_v43 = vld [vmem:[#allocation11 + $0xbe0] ss:$16 sps:$4 sm:$0xff]   ;;  %v12752_v53 = vld [vmem:[#allocation11 + $0x984] ss:$16 sps:$4 sm:$0xff]  }
 0x391   : > { %10356 = vmatpush2.bf16.msra.mxu1 %v12639_v4  ;;  %10316 = vmatprep.subr.bf16.mxu0 %v12644_v0  ;;  %v12693_v4 = vld [vmem:[#allocation11 + $0xac0] ss:$16 sps:$4 sm:$0xff]   ;;  %v12698_v0 = vld [vmem:[#allocation11 + $0x8a4] ss:$16 sps:$4 sm:$0xff]  }
 0x392   : > { %10357 = vmatprep.subr.bf16.mxu1 %v12647_v27  ;;  %v12696_v27 = vld [vmem:[#allocation11 + $0x8a0] ss:$16 sps:$4 sm:$0xff]  }
 0x393   : > { %v12738_v6 = vld [vmem:[#allocation11 + $0x9c0] ss:$16 sps:$4 sm:$0xff]  }
 0x394   : > { %10317 = vmatpush2.bf16.msra.mxu0 %v12642_v41  ;;  %v12699_v41 = vld [vmem:[#allocation11 + $0xaa0] ss:$16 sps:$4 sm:$0xff]  }
 0x395   : > { %10358 = vmatpush2.bf16.msra.mxu1 %v12645_v11  ;;  %10318 = vmatprep.subr.bf16.mxu0 %v12650_v39  ;;  %v12704_v11 = vld [vmem:[#allocation11 + $0x884] ss:$16 sps:$4 sm:$0xff]   ;;  %v12747_v2 = vld [vmem:[#allocation11 + $0xba0] ss:$16 sps:$4 sm:$0xff]  }
 0x396   : > { %10359 = vmatprep.subr.bf16.mxu1 %v12653_v1  ;;  %v12707_v39 = vld [vmem:[#allocation11 + $0xa84] ss:$16 sps:$4 sm:$0xff]   ;;  %v12702_v1 = vld [vmem:[#allocation11 + $0x880] ss:$16 sps:$4 sm:$0xff]  }
 0x398   : > { %10319 = vmatpush2.bf16.msra.mxu0 %v12648_v18  ;;  %v12705_v18 = vld [vmem:[#allocation11 + $0xa80] ss:$16 sps:$4 sm:$0xff]  }
 0x399   : > { %10360 = vmatpush2.bf16.msra.mxu1 %v12651_v62  ;;  %10320 = vmatprep.subr.bf16.mxu0 %v12656_v42  ;;  %v12710_v62 = vld [vmem:[#allocation11 + $0x864] ss:$16 sps:$4 sm:$0xff]  }
 0x39a   : > { %10361 = vmatprep.subr.bf16.mxu1 %v12659_v15  ;;  %v12713_v42 = vld [vmem:[#allocation11 + $0xa64] ss:$16 sps:$4 sm:$0xff]   ;;  %v12708_v15 = vld [vmem:[#allocation11 + $0x860] ss:$16 sps:$4 sm:$0xff]  }
 0x39c   : > { %10321 = vmatpush2.bf16.msra.mxu0 %v12654_v31  ;;  %v12711_v31 = vld [vmem:[#allocation11 + $0xa60] ss:$16 sps:$4 sm:$0xff]  }
 0x39d   : > { %10362 = vmatpush2.bf16.msra.mxu1 %v12657_v44  ;;  %10322 = vmatprep.subr.bf16.mxu0 %v12662_v57  ;;  %v12716_v44 = vld [vmem:[#allocation11 + $0x844] ss:$16 sps:$4 sm:$0xff]  }
 0x39e   : > { %10363 = vmatprep.subr.bf16.mxu1 %v12665_v52  ;;  %v12719_v57 = vld [vmem:[#allocation11 + $0xa44] ss:$16 sps:$4 sm:$0xff]   ;;  %v12714_v52 = vld [vmem:[#allocation11 + $0x840] ss:$16 sps:$4 sm:$0xff]  }
 0x3a0   : > { %10323 = vmatpush2.bf16.msra.mxu0 %v12660_v21  ;;  %v12717_v21 = vld [vmem:[#allocation11 + $0xa40] ss:$16 sps:$4 sm:$0xff]  }
 0x3a1   : > { %10364 = vmatpush2.bf16.msra.mxu1 %v12663_v37  ;;  %10324 = vmatprep.subr.bf16.mxu0 %v12668_v50  ;;  %v12722_v37 = vld [vmem:[#allocation11 + $0x824] ss:$16 sps:$4 sm:$0xff]  }
 0x3a2   : > { %10365 = vmatprep.subr.bf16.mxu1 %v12671_v9  ;;  %v12725_v50 = vld [vmem:[#allocation11 + $0xa24] ss:$16 sps:$4 sm:$0xff]   ;;  %v12720_v9 = vld [vmem:[#allocation11 + $0x820] ss:$16 sps:$4 sm:$0xff]  }
 0x3a4   : > { %10325 = vmatpush2.bf16.msra.mxu0 %v12666_v22  ;;  %v12723_v22 = vld [vmem:[#allocation11 + $0xa20] ss:$16 sps:$4 sm:$0xff]  }
 0x3a5   : > { %10366 = vmatpush2.bf16.msra.mxu1 %v12669_v60  ;;  %10326 = vmatprep.subr.bf16.mxu0 %v12674_v61  ;;  %v12728_v60 = vld [vmem:[#allocation11 + $0x804] ss:$16 sps:$4 sm:$0xff]  }
 0x3a6   : > { %10367 = vmatprep.subr.bf16.mxu1 %v12677_v10  ;;  %v12731_v61 = vld [vmem:[#allocation11 + $0xa04] ss:$16 sps:$4 sm:$0xff]   ;;  %v12726_v10 = vld [vmem:[#allocation11 + $0x800] ss:$16 sps:$4 sm:$0xff]  }
 0x3a8   : > { %10327 = vmatpush2.bf16.msra.mxu0 %v12672_v55  ;;  %v12729_v55 = vld [vmem:[#allocation11 + $0xa00] ss:$16 sps:$4 sm:$0xff]  }
 0x3a9   : > { %10368 = vmatpush2.bf16.msra.mxu1 %v12675_v19  ;;  %10328 = vmatprep.subr.bf16.mxu0 %v12680_v35  ;;  %v12734_v19 = vld [vmem:[#allocation11 + $0x9e4] ss:$16 sps:$4 sm:$0xff]  }
 0x3aa   : > { %10369 = vmatprep.subr.bf16.mxu1 %v12683_v17  ;;  %v12737_v35 = vld [vmem:[#allocation11 + $0xbe4] ss:$16 sps:$4 sm:$0xff]   ;;  %v12732_v17 = vld [vmem:[#allocation11 + $0x9e0] ss:$16 sps:$4 sm:$0xff]  }
 0x3ac   : > { %10329 = vmatpush2.bf16.msra.mxu0 %v12678_v40  ;;  %v12741_v40 = vld [vmem:[#allocation11 + $0xbc0] ss:$16 sps:$4 sm:$0xff]  }
 0x3ad   : > { %10370 = vmatpush2.bf16.msra.mxu1 %v12681_v13  ;;  %10380 = vmatprep.subr.bf16.mxu0 %v12686_v49  ;;  %v12746_v13 = vld [vmem:[#allocation11 + $0x9a4] ss:$16 sps:$4 sm:$0xff]  }
 0x3ae   : > { %10421 = vmatprep.subr.bf16.mxu1 %v12689_v48  ;;  %v12749_v49 = vld [vmem:[#allocation11 + $0xba4] ss:$16 sps:$4 sm:$0xff]   ;;  %v12744_v48 = vld [vmem:[#allocation11 + $0x9a0] ss:$16 sps:$4 sm:$0xff]  }
 0x3af   : > { %10331 = vmatmul.mubr.bf16.vlgmr.msra.gmra.mxu0 %v15694_v45 }
 0x3b0   : > { %10372 = vmatmul.mubr.bf16.vlgmr.msra.gmra.mxu1 %v15698_v20  ;;  %10381 = vmatpush1.bf16.msra.mxu0 %v12684_v58  ;;  %v12755_v58 = vld [vmem:[#allocation11 + $0xb84] ss:$16 sps:$4 sm:$0xff]  }
 0x3b1   : > { %10412 = vmatprep.mubr.bf16.mxu0 %v15700_v28  ;;  %10422 = vmatpush1.bf16.msra.mxu1 %v12687_v16  ;;  %v12750_v16 = vld [vmem:[#allocation11 + $0x980] ss:$16 sps:$4 sm:$0xff]  }
 0x3b2   : > { %10453 = vmatprep.mubr.bf16.mxu1 %v15703_v26  ;;  %10382 = vmatprep.subr.bf16.mxu0 %v12692_v63  ;;  %v12753_v63 = vld [vmem:[#allocation11 + $0xb80] ss:$16 sps:$4 sm:$0xff]  }
 0x3b3   : > { %10423 = vmatprep.subr.bf16.mxu1 %v12695_v23  ;;  %v12758_v23 = vld [vmem:[#allocation11 + $0x964] ss:$16 sps:$4 sm:$0xff]  }
 0x3b4   : > { %10383 = vmatpush1.bf16.msra.mxu0 %v12690_v34  ;;  %v12761_v34 = vld [vmem:[#allocation11 + $0xb64] ss:$16 sps:$4 sm:$0xff]  }
 0x3b5   : > { %10424 = vmatpush1.bf16.msra.mxu1 %v12693_v4  ;;  %10384 = vmatprep.subr.bf16.mxu0 %v12698_v0  ;;  %v12756_v4 = vld [vmem:[#allocation11 + $0x960] ss:$16 sps:$4 sm:$0xff]  }
 0x3b6   : > { %10425 = vmatprep.subr.bf16.mxu1 %v12701_v46  ;;  %v12759_v0 = vld [vmem:[#allocation11 + $0xb60] ss:$16 sps:$4 sm:$0xff]   ;;  %v12764_v46 = vld [vmem:[#allocation11 + $0x944] ss:$16 sps:$4 sm:$0xff]  }
 0x3b8   : > { %10385 = vmatpush1.bf16.msra.mxu0 %v12696_v27  ;;  %v12767_v27 = vld [vmem:[#allocation11 + $0xb44] ss:$16 sps:$4 sm:$0xff]  }
 0x3b9   : > { %10426 = vmatpush1.bf16.msra.mxu1 %v12699_v41  ;;  %10386 = vmatprep.subr.bf16.mxu0 %v12704_v11  ;;  %v12762_v41 = vld [vmem:[#allocation11 + $0x940] ss:$16 sps:$4 sm:$0xff]  }
 0x3ba   : > { %10427 = vmatprep.subr.bf16.mxu1 %v12707_v39  ;;  %v12765_v11 = vld [vmem:[#allocation11 + $0xb40] ss:$16 sps:$4 sm:$0xff]   ;;  %v12770_v39 = vld [vmem:[#allocation11 + $0x924] ss:$16 sps:$4 sm:$0xff]  }
 0x3bc   : > { %10387 = vmatpush1.bf16.msra.mxu0 %v12702_v1  ;;  %v12773_v1 = vld [vmem:[#allocation11 + $0xb24] ss:$16 sps:$4 sm:$0xff]  }
 0x3bd   : > { %10428 = vmatpush1.bf16.msra.mxu1 %v12705_v18  ;;  %10388 = vmatprep.subr.bf16.mxu0 %v12710_v62  ;;  %v12768_v18 = vld [vmem:[#allocation11 + $0x920] ss:$16 sps:$4 sm:$0xff]   ;;  %v7045_v62 = vrot.slane %v15510_v30, %v15593_v47 }
 0x3be   : > { %10429 = vmatprep.subr.bf16.mxu1 %v12713_v42  ;;  %v12771_v42 = vld [vmem:[#allocation11 + $0xb20] ss:$16 sps:$4 sm:$0xff]  }
 0x3c0   : > { %10389 = vmatpush1.bf16.msra.mxu0 %v12708_v15  ;;  %v12776_v15 = vld [vmem:[#allocation11 + $0x904] ss:$16 sps:$4 sm:$0xff]  }
 0x3c1   : > { %10430 = vmatpush1.bf16.msra.mxu1 %v12711_v31  ;;  %10390 = vmatprep.subr.bf16.mxu0 %v12716_v44  ;;  %v7053_v31 = vrot.slane %v15510_v30, %v15598_v51  ;;  %v12779_v44 = vld [vmem:[#allocation11 + $0xb04] ss:$16 sps:$4 sm:$0xff]   ;;  %v12783_v30 = vld [vmem:[#allocation11 + $0xee0] ss:$16 sps:$4 sm:$0xff]  }
 0x3c2   : > { %10431 = vmatprep.subr.bf16.mxu1 %v12719_v57  ;;  %v12774_v57 = vld [vmem:[#allocation11 + $0x900] ss:$16 sps:$4 sm:$0xff]  }
 0x3c4   : > { %10391 = vmatpush1.bf16.msra.mxu0 %v12714_v52  ;;  %v7098_v52 = vadd.f32 %v7045_v62, %v15657_v32  ;;  %v15720_v32 = vpack.c.bf16 %v15679_v25, %v15679_v25  ;;  %v12797_v25 = vld [vmem:[#allocation11 + $0xea4] ss:$16 sps:$4 sm:$0xff]   ;;  %v12831_v62 = vld [vmem:[#allocation11 + $0xfe0] ss:$16 sps:$4 sm:$0xff]  }
 0x3c5   : > { %10432 = vmatpush1.bf16.msra.mxu1 %v12717_v21  ;;  %10392 = vmatprep.subr.bf16.mxu0 %v12722_v37  ;;  %v12777_v21 = vld [vmem:[#allocation11 + $0xb00] ss:$16 sps:$4 sm:$0xff]   ;;  %v12782_v37 = vld [vmem:[#allocation11 + $0xce4] ss:$16 sps:$4 sm:$0xff]  }
 0x3c6   : > { %10433 = vmatprep.subr.bf16.mxu1 %v12725_v50  ;;  %v7100_v50 = vadd.f32 %v7053_v31, %v15661_v29  ;;  %v12791_v29 = vld [vmem:[#allocation11 + $0xec4] ss:$16 sps:$4 sm:$0xff]   ;;  %v12834_v31 = vld [vmem:[#allocation11 + $0xdc0] ss:$16 sps:$4 sm:$0xff]  }
 0x3c8   : > { %10393 = vmatpush1.bf16.msra.mxu0 %v12720_v9  ;;  %v12785_v9 = vld [vmem:[#allocation11 + $0xee4] ss:$16 sps:$4 sm:$0xff]  }
 0x3c9   : > { %10434 = vmatpush1.bf16.msra.mxu1 %v12723_v22  ;;  %10394 = vmatprep.subr.bf16.mxu0 %v12728_v60  ;;  %v12780_v22 = vld [vmem:[#allocation11 + $0xce0] ss:$16 sps:$4 sm:$0xff]   ;;  %v15714_v60 = vpack.c.bf16 %v7098_v52, %v7098_v52  ;;  %v12845_v52 = vld [vmem:[#allocation11 + $0xfa4] ss:$16 sps:$4 sm:$0xff]  }
 0x3ca   : > { %10435 = vmatprep.subr.bf16.mxu1 %v12731_v61  ;;  %v15716_v61 = vpack.c.bf16 %v7100_v50, %v7100_v50  ;;  %v12848_v50 = vld [vmem:[#allocation11 + $0xd84] ss:$16 sps:$4 sm:$0xff]  }
 0x3cc   : > { %10395 = vmatpush1.bf16.msra.mxu0 %v12726_v10  ;;  %v12788_v10 = vld [vmem:[#allocation11 + $0xcc4] ss:$16 sps:$4 sm:$0xff]  }
 0x3cd   : > { %10436 = vmatpush1.bf16.msra.mxu1 %v12729_v55  ;;  %10396 = vmatprep.subr.bf16.mxu0 %v12734_v19  ;;  %v15725_v55 = vpack.c.bf16 %v15682_v7, %v15682_v7  ;;  %v12786_v19 = vld [vmem:[#allocation11 + $0xcc0] ss:$16 sps:$4 sm:$0xff]  }
 0x3ce   : > { %10437 = vmatprep.subr.bf16.mxu1 %v12737_v35  ;;  %v12789_v35 = vld [vmem:[#allocation11 + $0xec0] ss:$16 sps:$4 sm:$0xff]  }
 0x3cf   : > { %v12795_v7 = vld [vmem:[#allocation11 + $0xea0] ss:$16 sps:$4 sm:$0xff]  }
 0x3d0   : > { %10397 = vmatpush2.bf16.msra.mxu0 %v12732_v17  ;;  %v12794_v17 = vld [vmem:[#allocation11 + $0xca4] ss:$16 sps:$4 sm:$0xff]  }
 0x3d1   : > { %10438 = vmatpush2.bf16.msra.mxu1 %v12735_v43  ;;  %10398 = vmatprep.subr.bf16.mxu0 %v12740_v38  ;;  %v12792_v43 = vld [vmem:[#allocation11 + $0xca0] ss:$16 sps:$4 sm:$0xff]   ;;  %v12800_v38 = vld [vmem:[#allocation11 + $0xc84] ss:$16 sps:$4 sm:$0xff]  }
 0x3d2   : > { %10439 = vmatprep.subr.bf16.mxu1 %v12743_v5  ;;  %v12803_v5 = vld [vmem:[#allocation11 + $0xe84] ss:$16 sps:$4 sm:$0xff]  }
 0x3d4   : > { %10399 = vmatpush2.bf16.msra.mxu0 %v12738_v6  ;;  %v12798_v6 = vld [vmem:[#allocation11 + $0xc80] ss:$16 sps:$4 sm:$0xff]  }
 0x3d5   : > { %10440 = vmatpush2.bf16.msra.mxu1 %v12741_v40  ;;  %10400 = vmatprep.subr.bf16.mxu0 %v12746_v13  ;;  %v12801_v40 = vld [vmem:[#allocation11 + $0xe80] ss:$16 sps:$4 sm:$0xff]   ;;  %v12806_v13 = vld [vmem:[#allocation11 + $0xc64] ss:$16 sps:$4 sm:$0xff]  }
 0x3d6   : > { %10441 = vmatprep.subr.bf16.mxu1 %v12749_v49  ;;  %v12809_v49 = vld [vmem:[#allocation11 + $0xe64] ss:$16 sps:$4 sm:$0xff]  }
 0x3d8   : > { %10401 = vmatpush2.bf16.msra.mxu0 %v12744_v48  ;;  %v12804_v48 = vld [vmem:[#allocation11 + $0xc60] ss:$16 sps:$4 sm:$0xff]  }
 0x3d9   : > { %10442 = vmatpush2.bf16.msra.mxu1 %v12747_v2  ;;  %10402 = vmatprep.subr.bf16.mxu0 %v12752_v53  ;;  %v12807_v2 = vld [vmem:[#allocation11 + $0xe60] ss:$16 sps:$4 sm:$0xff]   ;;  %v12812_v53 = vld [vmem:[#allocation11 + $0xc44] ss:$16 sps:$4 sm:$0xff]  }
 0x3da   : > { %10443 = vmatprep.subr.bf16.mxu1 %v12755_v58  ;;  %v12815_v58 = vld [vmem:[#allocation11 + $0xe44] ss:$16 sps:$4 sm:$0xff]  }
 0x3dc   : > { %10403 = vmatpush2.bf16.msra.mxu0 %v12750_v16  ;;  %v12810_v16 = vld [vmem:[#allocation11 + $0xc40] ss:$16 sps:$4 sm:$0xff]  }
 0x3dd   : > { %10444 = vmatpush2.bf16.msra.mxu1 %v12753_v63  ;;  %10404 = vmatprep.subr.bf16.mxu0 %v12758_v23  ;;  %v12813_v63 = vld [vmem:[#allocation11 + $0xe40] ss:$16 sps:$4 sm:$0xff]   ;;  %v12818_v23 = vld [vmem:[#allocation11 + $0xc24] ss:$16 sps:$4 sm:$0xff]  }
 0x3de   : > { %10445 = vmatprep.subr.bf16.mxu1 %v12761_v34  ;;  %v12821_v34 = vld [vmem:[#allocation11 + $0xe24] ss:$16 sps:$4 sm:$0xff]  }
 0x3e0   : > { %10405 = vmatpush2.bf16.msra.mxu0 %v12756_v4  ;;  %v12816_v4 = vld [vmem:[#allocation11 + $0xc20] ss:$16 sps:$4 sm:$0xff]  }
 0x3e1   : > { %10446 = vmatpush2.bf16.msra.mxu1 %v12759_v0  ;;  %10406 = vmatprep.subr.bf16.mxu0 %v12764_v46  ;;  %v12819_v0 = vld [vmem:[#allocation11 + $0xe20] ss:$16 sps:$4 sm:$0xff]   ;;  %v12824_v46 = vld [vmem:[#allocation11 + $0xc04] ss:$16 sps:$4 sm:$0xff]  }
 0x3e2   : > { %10447 = vmatprep.subr.bf16.mxu1 %v12767_v27  ;;  %v12827_v27 = vld [vmem:[#allocation11 + $0xe04] ss:$16 sps:$4 sm:$0xff]  }
 0x3e4   : > { %10407 = vmatpush2.bf16.msra.mxu0 %v12762_v41  ;;  %v12822_v41 = vld [vmem:[#allocation11 + $0xc00] ss:$16 sps:$4 sm:$0xff]  }
 0x3e5   : > { %10448 = vmatpush2.bf16.msra.mxu1 %v12765_v11  ;;  %10408 = vmatprep.subr.bf16.mxu0 %v12770_v39  ;;  %v12825_v11 = vld [vmem:[#allocation11 + $0xe00] ss:$16 sps:$4 sm:$0xff]   ;;  %v12830_v39 = vld [vmem:[#allocation11 + $0xde4] ss:$16 sps:$4 sm:$0xff]  }
 0x3e6   : > { %10449 = vmatprep.subr.bf16.mxu1 %v12773_v1  ;;  %v12833_v1 = vld [vmem:[#allocation11 + $0xfe4] ss:$16 sps:$4 sm:$0xff]  }
 0x3e8   : > { %10409 = vmatpush2.bf16.msra.mxu0 %v12768_v18  ;;  %v12828_v18 = vld [vmem:[#allocation11 + $0xde0] ss:$16 sps:$4 sm:$0xff]  }
 0x3e9   : > { %10450 = vmatpush2.bf16.msra.mxu1 %v12771_v42  ;;  %10410 = vmatprep.subr.bf16.mxu0 %v12776_v15  ;;  %v12836_v42 = vld [vmem:[#allocation11 + $0xdc4] ss:$16 sps:$4 sm:$0xff]  }
 0x3ea   : > { %10451 = vmatprep.subr.bf16.mxu1 %v12779_v44  ;;  %v12839_v15 = vld [vmem:[#allocation11 + $0xfc4] ss:$16 sps:$4 sm:$0xff]   ;;  %v12837_v44 = vld [vmem:[#allocation11 + $0xfc0] ss:$16 sps:$4 sm:$0xff]  }
 0x3ec   : > { %10411 = vmatpush2.bf16.msra.mxu0 %v12774_v57  ;;  %v12842_v57 = vld [vmem:[#allocation11 + $0xda4] ss:$16 sps:$4 sm:$0xff]  }
 0x3ed   : > { %10452 = vmatpush2.bf16.msra.mxu1 %v12777_v21  ;;  %10462 = vmatprep.subr.bf16.mxu0 %v12782_v37  ;;  %v12840_v21 = vld [vmem:[#allocation11 + $0xda0] ss:$16 sps:$4 sm:$0xff]  }
 0x3ee   : > { %10503 = vmatprep.subr.bf16.mxu1 %v12785_v9  ;;  %v12843_v37 = vld [vmem:[#allocation11 + $0xfa0] ss:$16 sps:$4 sm:$0xff]   ;;  %v12851_v9 = vld [vmem:[#allocation11 + $0xf84] ss:$16 sps:$4 sm:$0xff]  }
 0x3ef   : > { %10413 = vmatmul.mubr.bf16.vlgmr.msra.gmra.mxu0 %v15714_v60 }
 0x3f0   : > { %10454 = vmatmul.mubr.bf16.vlgmr.msra.gmra.mxu1 %v15716_v61  ;;  %10463 = vmatpush1.bf16.msra.mxu0 %v12780_v22  ;;  %v12846_v22 = vld [vmem:[#allocation11 + $0xd80] ss:$16 sps:$4 sm:$0xff]  }
 0x3f1   : > { %10494 = vmatprep.mubr.bf16.mxu0 %v15720_v32  ;;  %10504 = vmatpush1.bf16.msra.mxu1 %v12783_v30  ;;  %v12849_v30 = vld [vmem:[#allocation11 + $0xf80] ss:$16 sps:$4 sm:$0xff]  }
 0x3f2   : > { %10535 = vmatprep.mubr.bf16.mxu1 %v15725_v55  ;;  %10464 = vmatprep.subr.bf16.mxu0 %v12788_v10  ;;  %v12854_v10 = vld [vmem:[#allocation11 + $0xd64] ss:$16 sps:$4 sm:$0xff]  }
 0x3f3   : > { %10505 = vmatprep.subr.bf16.mxu1 %v12791_v29  ;;  %v12857_v29 = vld [vmem:[#allocation11 + $0xf64] ss:$16 sps:$4 sm:$0xff]  }
 0x3f4   : > { %10465 = vmatpush1.bf16.msra.mxu0 %v12786_v19  ;;  %v12852_v19 = vld [vmem:[#allocation11 + $0xd60] ss:$16 sps:$4 sm:$0xff]  }
 0x3f5   : > { %10506 = vmatpush1.bf16.msra.mxu1 %v12789_v35  ;;  %10466 = vmatprep.subr.bf16.mxu0 %v12794_v17  ;;  %v12855_v35 = vld [vmem:[#allocation11 + $0xf60] ss:$16 sps:$4 sm:$0xff]   ;;  %v12860_v17 = vld [vmem:[#allocation11 + $0xd44] ss:$16 sps:$4 sm:$0xff]  }
 0x3f6   : > { %10507 = vmatprep.subr.bf16.mxu1 %v12797_v25  ;;  %v12863_v25 = vld [vmem:[#allocation11 + $0xf44] ss:$16 sps:$4 sm:$0xff]  }
 0x3f8   : > { %10467 = vmatpush1.bf16.msra.mxu0 %v12792_v43  ;;  %v12858_v43 = vld [vmem:[#allocation11 + $0xd40] ss:$16 sps:$4 sm:$0xff]  }
 0x3f9   : > { %10508 = vmatpush1.bf16.msra.mxu1 %v12795_v7  ;;  %10468 = vmatprep.subr.bf16.mxu0 %v12800_v38  ;;  %v12861_v7 = vld [vmem:[#allocation11 + $0xf40] ss:$16 sps:$4 sm:$0xff]   ;;  %v12866_v38 = vld [vmem:[#allocation11 + $0xd24] ss:$16 sps:$4 sm:$0xff]  }
 0x3fa   : > { %10509 = vmatprep.subr.bf16.mxu1 %v12803_v5  ;;  %v12869_v5 = vld [vmem:[#allocation11 + $0xf24] ss:$16 sps:$4 sm:$0xff]  }
 0x3fc   : > { %10469 = vmatpush1.bf16.msra.mxu0 %v12798_v6  ;;  %v12864_v6 = vld [vmem:[#allocation11 + $0xd20] ss:$16 sps:$4 sm:$0xff]  }
 0x3fd   : > { %10510 = vmatpush1.bf16.msra.mxu1 %v12801_v40  ;;  %10470 = vmatprep.subr.bf16.mxu0 %v12806_v13  ;;  %v12867_v40 = vld [vmem:[#allocation11 + $0xf20] ss:$16 sps:$4 sm:$0xff]   ;;  %v12872_v13 = vld [vmem:[#allocation11 + $0xd04] ss:$16 sps:$4 sm:$0xff]  }
 0x3fe   : > { %10511 = vmatprep.subr.bf16.mxu1 %v12809_v49  ;;  %v12875_v49 = vld [vmem:[#allocation11 + $0xf04] ss:$16 sps:$4 sm:$0xff]  }
 0x400   : > { %10471 = vmatpush1.bf16.msra.mxu0 %v12804_v48  ;;  %v12870_v48 = vld [vmem:[#allocation11 + $0xd00] ss:$16 sps:$4 sm:$0xff]  }
 0x401   : > { %10512 = vmatpush1.bf16.msra.mxu1 %v12807_v2  ;;  %10472 = vmatprep.subr.bf16.mxu0 %v12812_v53  ;;  %v12873_v2 = vld [vmem:[#allocation11 + $0xf00] ss:$16 sps:$4 sm:$0xff]   ;;  %v12878_v53 = vld [vmem:[#allocation11 + $0xec] ss:$16 sps:$4 sm:$0xff]  }
 0x402   : > { %10513 = vmatprep.subr.bf16.mxu1 %v12815_v58  ;;  %v7634_v58 = vld [vmem:[#allocation12] sm:$0xf] }
 0x404   : > { %10473 = vmatpush1.bf16.msra.mxu0 %v12810_v16  ;;  %v12881_v16 = vld [vmem:[#allocation11 + $0x2ec] ss:$16 sps:$4 sm:$0xff]  }
 0x405   : > { %10514 = vmatpush1.bf16.msra.mxu1 %v12813_v63  ;;  %10474 = vmatprep.subr.bf16.mxu0 %v12818_v23  ;;  %v12876_v63 = vld [vmem:[#allocation11 + $0xe8] ss:$16 sps:$4 sm:$0xff]   ;;  %v7639_v23 = vrot.slane %v7634_v58, %v15593_v47 }
 0x406   : > { %10515 = vmatprep.subr.bf16.mxu1 %v12821_v34  ;;  %v15733_v34 = vpack.c.bf16 %v15671_v36, %v15671_v36 }
 0x408   : > { %10475 = vmatpush1.bf16.msra.mxu0 %v12816_v4  ;;  %v12879_v4 = vld [vmem:[#allocation11 + $0x2e8] ss:$16 sps:$4 sm:$0xff]  }
 0x409   : > { %10516 = vmatpush1.bf16.msra.mxu1 %v12819_v0  ;;  %10476 = vmatprep.subr.bf16.mxu0 %v12824_v46  ;;  %v15737_v0 = vpack.c.bf16 %v15675_v56, %v15675_v56  ;;  %v7643_v46 = vrot.slane %v7634_v58, %v15601_v24  ;;  %v12885_v56 = vld [vmem:[#allocation11 + $0x2c8] ss:$16 sps:$4 sm:$0xff]  }
 0x40a   : > { %10517 = vmatprep.subr.bf16.mxu1 %v12827_v27  ;;  %v12884_v27 = vld [vmem:[#allocation11 + $0xcc] ss:$16 sps:$4 sm:$0xff]   ;;  %v12924_v58 = vld [vmem:[#allocation11 + $0x1e8] ss:$16 sps:$4 sm:$0xff]  }
 0x40c   : > { %10477 = vmatpush1.bf16.msra.mxu0 %v12822_v41 }
 0x40d   : > { %10518 = vmatpush1.bf16.msra.mxu1 %v12825_v11  ;;  %10478 = vmatprep.subr.bf16.mxu0 %v12830_v39  ;;  %v12887_v11 = vld [vmem:[#allocation11 + $0x2cc] ss:$16 sps:$4 sm:$0xff]   ;;  %v12882_v39 = vld [vmem:[#allocation11 + $0xc8] ss:$16 sps:$4 sm:$0xff]  }
 0x40e   : > { %10519 = vmatprep.subr.bf16.mxu1 %v12833_v1 }
 0x410   : > { %10479 = vmatpush2.bf16.msra.mxu0 %v12828_v18  ;;  %v12890_v18 = vld [vmem:[#allocation11 + $0xac] ss:$16 sps:$4 sm:$0xff]  }
 0x411   : > { %10520 = vmatpush2.bf16.msra.mxu1 %v12831_v62  ;;  %10480 = vmatprep.subr.bf16.mxu0 %v12836_v42 }
 0x412   : > { %10521 = vmatprep.subr.bf16.mxu1 %v12839_v15  ;;  %v12893_v15 = vld [vmem:[#allocation11 + $0x2ac] ss:$16 sps:$4 sm:$0xff]  }
 0x414   : > { %10481 = vmatpush2.bf16.msra.mxu0 %v12834_v31 }
 0x415   : > { %10522 = vmatpush2.bf16.msra.mxu1 %v12837_v44  ;;  %10482 = vmatprep.subr.bf16.mxu0 %v12842_v57 }
 0x416   : > { %10523 = vmatprep.subr.bf16.mxu1 %v12845_v52  ;;  %v12888_v52 = vld [vmem:[#allocation11 + $0xa8] ss:$16 sps:$4 sm:$0xff]  }
 0x418   : > { %10483 = vmatpush2.bf16.msra.mxu0 %v12840_v21  ;;  %v12891_v21 = vld [vmem:[#allocation11 + $0x2a8] ss:$16 sps:$4 sm:$0xff]  }
 0x419   : > { %10524 = vmatpush2.bf16.msra.mxu1 %v12843_v37  ;;  %10484 = vmatprep.subr.bf16.mxu0 %v12848_v50  ;;  %v12896_v37 = vld [vmem:[#allocation11 + $0x8c] ss:$16 sps:$4 sm:$0xff]  }
 0x41a   : > { %10525 = vmatprep.subr.bf16.mxu1 %v12851_v9  ;;  %v12899_v9 = vld [vmem:[#allocation11 + $0x28c] ss:$16 sps:$4 sm:$0xff]  }
 0x41c   : > { %10485 = vmatpush2.bf16.msra.mxu0 %v12846_v22  ;;  %v12897_v22 = vld [vmem:[#allocation11 + $0x288] ss:$16 sps:$4 sm:$0xff]  }
 0x41d   : > { %10526 = vmatpush2.bf16.msra.mxu1 %v12849_v30  ;;  %10486 = vmatprep.subr.bf16.mxu0 %v12854_v10  ;;  %v12902_v30 = vld [vmem:[#allocation11 + $0x6c] ss:$16 sps:$4 sm:$0xff]  }
 0x41e   : > { %10527 = vmatprep.subr.bf16.mxu1 %v12857_v29  ;;  %v12905_v10 = vld [vmem:[#allocation11 + $0x26c] ss:$16 sps:$4 sm:$0xff]   ;;  %v12900_v29 = vld [vmem:[#allocation11 + $0x68] ss:$16 sps:$4 sm:$0xff]  }
 0x420   : > { %10487 = vmatpush2.bf16.msra.mxu0 %v12852_v19  ;;  %v12903_v19 = vld [vmem:[#allocation11 + $0x268] ss:$16 sps:$4 sm:$0xff]  }
 0x421   : > { %10528 = vmatpush2.bf16.msra.mxu1 %v12855_v35  ;;  %10488 = vmatprep.subr.bf16.mxu0 %v12860_v17  ;;  %v12908_v35 = vld [vmem:[#allocation11 + $0x4c] ss:$16 sps:$4 sm:$0xff]  }
 0x422   : > { %10529 = vmatprep.subr.bf16.mxu1 %v12863_v25  ;;  %v12911_v17 = vld [vmem:[#allocation11 + $0x24c] ss:$16 sps:$4 sm:$0xff]   ;;  %v12906_v25 = vld [vmem:[#allocation11 + $0x48] ss:$16 sps:$4 sm:$0xff]  }
 0x424   : > { %10489 = vmatpush2.bf16.msra.mxu0 %v12858_v43  ;;  %v12909_v43 = vld [vmem:[#allocation11 + $0x248] ss:$16 sps:$4 sm:$0xff]  }
 0x425   : > { %10530 = vmatpush2.bf16.msra.mxu1 %v12861_v7  ;;  %10490 = vmatprep.subr.bf16.mxu0 %v12866_v38  ;;  %v12914_v7 = vld [vmem:[#allocation11 + $0x2c] ss:$16 sps:$4 sm:$0xff]  }
 0x426   : > { %10531 = vmatprep.subr.bf16.mxu1 %v12869_v5  ;;  %v12917_v38 = vld [vmem:[#allocation11 + $0x22c] ss:$16 sps:$4 sm:$0xff]   ;;  %v12912_v5 = vld [vmem:[#allocation11 + $0x28] ss:$16 sps:$4 sm:$0xff]  }
 0x428   : > { %10491 = vmatpush2.bf16.msra.mxu0 %v12864_v6  ;;  %v12915_v6 = vld [vmem:[#allocation11 + $0x228] ss:$16 sps:$4 sm:$0xff]  }
 0x429   : > { %10532 = vmatpush2.bf16.msra.mxu1 %v12867_v40  ;;  %10492 = vmatprep.subr.bf16.mxu0 %v12872_v13  ;;  %v12920_v40 = vld [vmem:[#allocation11 + $0xc] ss:$16 sps:$4 sm:$0xff]  }
 0x42a   : > { %10533 = vmatprep.subr.bf16.mxu1 %v12875_v49  ;;  %v12923_v13 = vld [vmem:[#allocation11 + $0x20c] ss:$16 sps:$4 sm:$0xff]   ;;  %v12918_v49 = vld [vmem:[#allocation11 + $0x8] ss:$16 sps:$4 sm:$0xff]  }
 0x42c   : > { %10493 = vmatpush2.bf16.msra.mxu0 %v12870_v48  ;;  %v12921_v48 = vld [vmem:[#allocation11 + $0x208] ss:$16 sps:$4 sm:$0xff]  }
 0x42d   : > { %10534 = vmatpush2.bf16.msra.mxu1 %v12873_v2  ;;  %10544 = vmatprep.subr.bf16.mxu0 %v12878_v53  ;;  %v12926_v2 = vld [vmem:[#allocation11 + $0x1ec] ss:$16 sps:$4 sm:$0xff]  }
 0x42e   : > { %10585 = vmatprep.subr.bf16.mxu1 %v12881_v16  ;;  %v12929_v53 = vld [vmem:[#allocation11 + $0x3ec] ss:$16 sps:$4 sm:$0xff]   ;;  %v12927_v16 = vld [vmem:[#allocation11 + $0x3e8] ss:$16 sps:$4 sm:$0xff]  }
 0x42f   : > { %10495 = vmatmul.mubr.bf16.vlgmr.msra.gmra.mxu0 %v15733_v34  ;;  %v10250_v41 = vpop.f32.mrf.mxu0 }
 0x430   : > { %10536 = vmatmul.mubr.bf16.vlgmr.msra.gmra.mxu1 %v15737_v0  ;;  %v10251_v47 = vadd.f32 %v10250_v41, %v7639_v23  ;;  %v10291_v36 = vpop.f32.mrf.mxu1  ;;  %10545 = vmatpush1.bf16.msra.mxu0 %v12876_v63  ;;  %v12932_v63 = vld [vmem:[#allocation11 + $0x1cc] ss:$16 sps:$4 sm:$0xff]  }
 0x431   : > { %10576 = vmatprep.mubr.bf16.mxu0 %v15622_v3  ;;  %10586 = vmatpush1.bf16.msra.mxu1 %v12879_v4  ;;  %v10252_v1 = vpop.f32.mrf.mxu0  ;;  %v12935_v23 = vld [vmem:[#allocation11 + $0x3cc] ss:$16 sps:$4 sm:$0xff]   ;;  %v12930_v4 = vld [vmem:[#allocation11 + $0x1c8] ss:$16 sps:$4 sm:$0xff]  }
 0x432   : > { %v15743_v62 = vadd.f32 %v10291_v36, %v10251_v47  ;;  %10617 = vmatprep.mubr.bf16.mxu1 %v15628_v8  ;;  %v10253_v24 = vadd.f32 %v10252_v1, %v7643_v46  ;;  %v10293_v42 = vpop.f32.mrf.mxu1  ;;  %10546 = vmatprep.subr.bf16.mxu0 %v12884_v27  ;;  %v12894_v8 = vld [vmem:[#allocation11 + $0x88] ss:$16 sps:$4 sm:$0xff]   ;;  %v12938_v27 = vld [vmem:[#allocation11 + $0x1ac] ss:$16 sps:$4 sm:$0xff]  }
 0x433   : > { %10587 = vmatprep.subr.bf16.mxu1 %v12887_v11  ;;  %v10254_v31 = vpop.f32.mrf.mxu0  ;;  %v12933_v46 = vld [vmem:[#allocation11 + $0x3c8] ss:$16 sps:$4 sm:$0xff]   ;;  %v12941_v41 = vld [vmem:[#allocation11 + $0x3ac] ss:$16 sps:$4 sm:$0xff]  }
 0x434   : > { %v15746_v44 = vadd.f32 %v10293_v42, %v10253_v24  ;;  %v10295_v57 = vpop.f32.mrf.mxu1  ;;  %10547 = vmatpush1.bf16.msra.mxu0 %v12882_v39  ;;  %v12936_v11 = vld [vmem:[#allocation11 + $0x1a8] ss:$16 sps:$4 sm:$0xff]   ;;  %v12944_v36 = vld [vmem:[#allocation11 + $0x18c] ss:$16 sps:$4 sm:$0xff]  }
 0x435   : > { %10588 = vmatpush1.bf16.msra.mxu1 %v12885_v56  ;;  %v10255_v3 = vpop.f32.mrf.mxu0  ;;  %10548 = vmatprep.subr.bf16.mxu0 %v12890_v18  ;;  %v12939_v47 = vld [vmem:[#allocation11 + $0x3a8] ss:$16 sps:$4 sm:$0xff]   ;;  %v12947_v39 = vld [vmem:[#allocation11 + $0x38c] ss:$16 sps:$4 sm:$0xff]  }
 0x436   : > { %v10296_v50 = vpop.f32.mrf.mxu1  ;;  %10589 = vmatprep.subr.bf16.mxu1 %v12893_v15  ;;  %v12942_v1 = vld [vmem:[#allocation11 + $0x188] ss:$16 sps:$4 sm:$0xff]   ;;  %v12950_v18 = vld [vmem:[#allocation11 + $0x16c] ss:$16 sps:$4 sm:$0xff]  }
 0x437   : > { %v12945_v56 = vld [vmem:[#allocation11 + $0x388] ss:$16 sps:$4 sm:$0xff]   ;;  %v12953_v24 = vld [vmem:[#allocation11 + $0x36c] ss:$16 sps:$4 sm:$0xff]  }
 0x438   : > { %10549 = vmatpush1.bf16.msra.mxu0 %v12888_v52  ;;  %v12948_v42 = vld [vmem:[#allocation11 + $0x168] ss:$16 sps:$4 sm:$0xff]   ;;  %v12956_v31 = vld [vmem:[#allocation11 + $0x14c] ss:$16 sps:$4 sm:$0xff]  }
 0x439   : > { %10590 = vmatpush1.bf16.msra.mxu1 %v12891_v21  ;;  %10550 = vmatprep.subr.bf16.mxu0 %v12896_v37  ;;  %v12951_v15 = vld [vmem:[#allocation11 + $0x368] ss:$16 sps:$4 sm:$0xff]   ;;  %v12959_v57 = vld [vmem:[#allocation11 + $0x34c] ss:$16 sps:$4 sm:$0xff]  }
 0x43a   : > { %10591 = vmatprep.subr.bf16.mxu1 %v12899_v9  ;;  %v12954_v52 = vld [vmem:[#allocation11 + $0x148] ss:$16 sps:$4 sm:$0xff]   ;;  %v12962_v21 = vld [vmem:[#allocation11 + $0x12c] ss:$16 sps:$4 sm:$0xff]  }
 0x43b   : > { %v12957_v3 = vld [vmem:[#allocation11 + $0x348] ss:$16 sps:$4 sm:$0xff]   ;;  %v12965_v37 = vld [vmem:[#allocation11 + $0x32c] ss:$16 sps:$4 sm:$0xff]  }
 0x43c   : > { %10551 = vmatpush1.bf16.msra.mxu0 %v12894_v8  ;;  %v12960_v50 = vld [vmem:[#allocation11 + $0x128] ss:$16 sps:$4 sm:$0xff]   ;;  %v12968_v8 = vld [vmem:[#allocation11 + $0x10c] ss:$16 sps:$4 sm:$0xff]  }
 0x43d   : > { %10592 = vmatpush1.bf16.msra.mxu1 %v12897_v22  ;;  %10552 = vmatprep.subr.bf16.mxu0 %v12902_v30  ;;  %v12963_v9 = vld [vmem:[#allocation11 + $0x328] ss:$16 sps:$4 sm:$0xff]   ;;  %v12971_v22 = vld [vmem:[#allocation11 + $0x30c] ss:$16 sps:$4 sm:$0xff]  }
 0x43e   : > { %10593 = vmatprep.subr.bf16.mxu1 %v12905_v10  ;;  %v12966_v30 = vld [vmem:[#allocation11 + $0x108] ss:$16 sps:$4 sm:$0xff]  }
 0x43f   : > { %v12969_v10 = vld [vmem:[#allocation11 + $0x308] ss:$16 sps:$4 sm:$0xff]  }
 0x440   : > { %10553 = vmatpush1.bf16.msra.mxu0 %v12900_v29  ;;  %v12974_v29 = vld [vmem:[#allocation11 + $0x4ec] ss:$16 sps:$4 sm:$0xff]  }
 0x441   : > { %10594 = vmatpush1.bf16.msra.mxu1 %v12903_v19  ;;  %10554 = vmatprep.subr.bf16.mxu0 %v12908_v35  ;;  %v12977_v19 = vld [vmem:[#allocation11 + $0x6ec] ss:$16 sps:$4 sm:$0xff]   ;;  %v12972_v35 = vld [vmem:[#allocation11 + $0x4e8] ss:$16 sps:$4 sm:$0xff]  }
 0x442   : > { %10595 = vmatprep.subr.bf16.mxu1 %v12911_v17  ;;  %v12975_v17 = vld [vmem:[#allocation11 + $0x6e8] ss:$16 sps:$4 sm:$0xff]  }
 0x444   : > { %10555 = vmatpush1.bf16.msra.mxu0 %v12906_v25  ;;  %v12980_v25 = vld [vmem:[#allocation11 + $0x4cc] ss:$16 sps:$4 sm:$0xff]  }
 0x445   : > { %10596 = vmatpush1.bf16.msra.mxu1 %v12909_v43  ;;  %10556 = vmatprep.subr.bf16.mxu0 %v12914_v7  ;;  %v12983_v7 = vld [vmem:[#allocation11 + $0x6cc] ss:$16 sps:$4 sm:$0xff]  }
 0x446   : > { %10597 = vmatprep.subr.bf16.mxu1 %v12917_v38 }
 0x448   : > { %10557 = vmatpush1.bf16.msra.mxu0 %v12912_v5 }
 0x449   : > { %10598 = vmatpush1.bf16.msra.mxu1 %v12915_v6  ;;  %10558 = vmatprep.subr.bf16.mxu0 %v12920_v40  ;;  %v12978_v6 = vld [vmem:[#allocation11 + $0x4c8] ss:$16 sps:$4 sm:$0xff]  }
 0x44a   : > { %10599 = vmatprep.subr.bf16.mxu1 %v12923_v13  ;;  %v12981_v13 = vld [vmem:[#allocation11 + $0x6c8] ss:$16 sps:$4 sm:$0xff]  }
 0x44c   : > { %10559 = vmatpush1.bf16.msra.mxu0 %v12918_v49  ;;  %v12986_v49 = vld [vmem:[#allocation11 + $0x4ac] ss:$16 sps:$4 sm:$0xff]  }
 0x44d   : > { %10600 = vmatpush1.bf16.msra.mxu1 %v12921_v48  ;;  %10560 = vmatprep.subr.bf16.mxu0 %v12926_v2 }
 0x44e   : > { %10601 = vmatprep.subr.bf16.mxu1 %v12929_v53 }
 0x450   : > { %10561 = vmatpush2.bf16.msra.mxu0 %v12924_v58 }
 0x451   : > { %10602 = vmatpush2.bf16.msra.mxu1 %v12927_v16  ;;  %10562 = vmatprep.subr.bf16.mxu0 %v12932_v63  ;;  %v12987_v63 = vld [vmem:[#allocation11 + $0x6a8] ss:$16 sps:$4 sm:$0xff]  }
 0x452   : > { %10603 = vmatprep.subr.bf16.mxu1 %v12935_v23  ;;  %v12992_v23 = vld [vmem:[#allocation11 + $0x48c] ss:$16 sps:$4 sm:$0xff]  }
 0x454   : > { %10563 = vmatpush2.bf16.msra.mxu0 %v12930_v4 }
 0x455   : > { %10604 = vmatpush2.bf16.msra.mxu1 %v12933_v46  ;;  %10564 = vmatprep.subr.bf16.mxu0 %v12938_v27  ;;  %v12993_v46 = vld [vmem:[#allocation11 + $0x688] ss:$16 sps:$4 sm:$0xff]   ;;  %v12998_v27 = vld [vmem:[#allocation11 + $0x46c] ss:$16 sps:$4 sm:$0xff]  }
 0x456   : > { %10605 = vmatprep.subr.bf16.mxu1 %v12941_v41  ;;  %v13001_v41 = vld [vmem:[#allocation11 + $0x66c] ss:$16 sps:$4 sm:$0xff]  }
 0x458   : > { %10565 = vmatpush2.bf16.msra.mxu0 %v12936_v11  ;;  %v12996_v11 = vld [vmem:[#allocation11 + $0x468] ss:$16 sps:$4 sm:$0xff]  }
 0x459   : > { %10606 = vmatpush2.bf16.msra.mxu1 %v12939_v47  ;;  %10566 = vmatprep.subr.bf16.mxu0 %v12944_v36  ;;  %v12999_v47 = vld [vmem:[#allocation11 + $0x668] ss:$16 sps:$4 sm:$0xff]   ;;  %v13004_v36 = vld [vmem:[#allocation11 + $0x44c] ss:$16 sps:$4 sm:$0xff]  }
 0x45a   : > { %10607 = vmatprep.subr.bf16.mxu1 %v12947_v39  ;;  %v13007_v39 = vld [vmem:[#allocation11 + $0x64c] ss:$16 sps:$4 sm:$0xff]  }
 0x45c   : > { %10567 = vmatpush2.bf16.msra.mxu0 %v12942_v1  ;;  %v13002_v1 = vld [vmem:[#allocation11 + $0x448] ss:$16 sps:$4 sm:$0xff]  }
 0x45d   : > { %10608 = vmatpush2.bf16.msra.mxu1 %v12945_v56  ;;  %10568 = vmatprep.subr.bf16.mxu0 %v12950_v18  ;;  %v13005_v56 = vld [vmem:[#allocation11 + $0x648] ss:$16 sps:$4 sm:$0xff]   ;;  %v13010_v18 = vld [vmem:[#allocation11 + $0x42c] ss:$16 sps:$4 sm:$0xff]  }
 0x45e   : > { %10609 = vmatprep.subr.bf16.mxu1 %v12953_v24  ;;  %v13013_v24 = vld [vmem:[#allocation11 + $0x62c] ss:$16 sps:$4 sm:$0xff]  }
 0x460   : > { %10569 = vmatpush2.bf16.msra.mxu0 %v12948_v42  ;;  %v13008_v42 = vld [vmem:[#allocation11 + $0x428] ss:$16 sps:$4 sm:$0xff]  }
 0x461   : > { %10610 = vmatpush2.bf16.msra.mxu1 %v12951_v15  ;;  %10570 = vmatprep.subr.bf16.mxu0 %v12956_v31  ;;  %v13011_v15 = vld [vmem:[#allocation11 + $0x628] ss:$16 sps:$4 sm:$0xff]   ;;  %v13016_v31 = vld [vmem:[#allocation11 + $0x40c] ss:$16 sps:$4 sm:$0xff]  }
 0x462   : > { %10611 = vmatprep.subr.bf16.mxu1 %v12959_v57  ;;  %v13019_v57 = vld [vmem:[#allocation11 + $0x60c] ss:$16 sps:$4 sm:$0xff]  }
 0x464   : > { %10571 = vmatpush2.bf16.msra.mxu0 %v12954_v52  ;;  %v13014_v52 = vld [vmem:[#allocation11 + $0x408] ss:$16 sps:$4 sm:$0xff]  }
 0x465   : > { %10612 = vmatpush2.bf16.msra.mxu1 %v12957_v3  ;;  %10572 = vmatprep.subr.bf16.mxu0 %v12962_v21  ;;  %v13017_v3 = vld [vmem:[#allocation11 + $0x608] ss:$16 sps:$4 sm:$0xff]   ;;  %v13022_v21 = vld [vmem:[#allocation11 + $0x5ec] ss:$16 sps:$4 sm:$0xff]  }
 0x466   : > { %10613 = vmatprep.subr.bf16.mxu1 %v12965_v37  ;;  %v13025_v37 = vld [vmem:[#allocation11 + $0x7ec] ss:$16 sps:$4 sm:$0xff]  }
 0x468   : > { %10573 = vmatpush2.bf16.msra.mxu0 %v12960_v50  ;;  %v13020_v50 = vld [vmem:[#allocation11 + $0x5e8] ss:$16 sps:$4 sm:$0xff]  }
 0x469   : > { %10614 = vmatpush2.bf16.msra.mxu1 %v12963_v9  ;;  %10574 = vmatprep.subr.bf16.mxu0 %v12968_v8  ;;  %v13023_v9 = vld [vmem:[#allocation11 + $0x7e8] ss:$16 sps:$4 sm:$0xff]   ;;  %v13028_v8 = vld [vmem:[#allocation11 + $0x5cc] ss:$16 sps:$4 sm:$0xff]  }
 0x46a   : > { %10615 = vmatprep.subr.bf16.mxu1 %v12971_v22  ;;  %v13031_v22 = vld [vmem:[#allocation11 + $0x7cc] ss:$16 sps:$4 sm:$0xff]  }
 0x46c   : > { %10575 = vmatpush2.bf16.msra.mxu0 %v12966_v30  ;;  %v13026_v30 = vld [vmem:[#allocation11 + $0x5c8] ss:$16 sps:$4 sm:$0xff]  }
 0x46d   : > { %10616 = vmatpush2.bf16.msra.mxu1 %v12969_v10  ;;  %10626 = vmatprep.subr.bf16.mxu0 %v12974_v29  ;;  %v13029_v10 = vld [vmem:[#allocation11 + $0x7c8] ss:$16 sps:$4 sm:$0xff]   ;;  %v13034_v29 = vld [vmem:[#allocation11 + $0x5ac] ss:$16 sps:$4 sm:$0xff]  }
 0x46e   : > { %10667 = vmatprep.subr.bf16.mxu1 %v12977_v19  ;;  %v13037_v19 = vld [vmem:[#allocation11 + $0x7ac] ss:$16 sps:$4 sm:$0xff]  }
 0x46f   : > { %v10332_v43 = vpop.f32.mrf.mxu0  ;;  %10577 = vmatmul.mubr.bf16.vlgmr.msra.gmra.mxu0 %v15626_v59 }
 0x470   : > { %v10333_v38 = vadd.f32 %v10332_v43, %v15743_v62  ;;  %v10373_v5 = vpop.f32.mrf.mxu1  ;;  %10618 = vmatmul.mubr.bf16.vlgmr.msra.gmra.mxu1 %v15631_v14  ;;  %10627 = vmatpush1.bf16.msra.mxu0 %v12972_v35  ;;  %v12989_v62 = vld [vmem:[#allocation11 + $0x6ac] ss:$16 sps:$4 sm:$0xff]   ;;  %v13032_v35 = vld [vmem:[#allocation11 + $0x5a8] ss:$16 sps:$4 sm:$0xff]  }
 0x471   : > { %10658 = vmatprep.mubr.bf16.mxu0 %v15652_v12  ;;  %10668 = vmatpush1.bf16.msra.mxu1 %v12975_v17  ;;  %v10334_v40 = vpop.f32.mrf.mxu0  ;;  %v12984_v12 = vld [vmem:[#allocation11 + $0x4a8] ss:$16 sps:$4 sm:$0xff]   ;;  %v13043_v43 = vld [vmem:[#allocation11 + $0x78c] ss:$16 sps:$4 sm:$0xff]  }
 0x472   : > { %v15752_v48 = vadd.f32 %v10373_v5, %v10333_v38  ;;  %10699 = vmatprep.mubr.bf16.mxu1 %v15654_v33  ;;  %v10335_v59 = vadd.f32 %v10334_v40, %v15746_v44  ;;  %v10375_v2 = vpop.f32.mrf.mxu1  ;;  %10628 = vmatprep.subr.bf16.mxu0 %v12980_v25  ;;  %v12995_v33 = vld [vmem:[#allocation11 + $0x68c] ss:$16 sps:$4 sm:$0xff]   ;;  %v12990_v44 = vld [vmem:[#allocation11 + $0x488] ss:$16 sps:$4 sm:$0xff]  }
 0x473   : > { %v10336_v53 = vpop.f32.mrf.mxu0  ;;  %10669 = vmatprep.subr.bf16.mxu1 %v12983_v7  ;;  %v13035_v17 = vld [vmem:[#allocation11 + $0x7a8] ss:$16 sps:$4 sm:$0xff]   ;;  %v13040_v25 = vld [vmem:[#allocation11 + $0x58c] ss:$16 sps:$4 sm:$0xff]  }
 0x474   : > { %v15756_v14 = vadd.f32 %v10375_v2, %v10335_v59  ;;  %v10377_v58 = vpop.f32.mrf.mxu1  ;;  %10629 = vmatpush1.bf16.msra.mxu0 %v12978_v6  ;;  %v13038_v7 = vld [vmem:[#allocation11 + $0x588] ss:$16 sps:$4 sm:$0xff]   ;;  %v13046_v5 = vld [vmem:[#allocation11 + $0x56c] ss:$16 sps:$4 sm:$0xff]  }
 0x475   : > { %10670 = vmatpush1.bf16.msra.mxu1 %v12981_v13  ;;  %v10337_v16 = vpop.f32.mrf.mxu0  ;;  %10630 = vmatprep.subr.bf16.mxu0 %v12986_v49  ;;  %v13041_v38 = vld [vmem:[#allocation11 + $0x788] ss:$16 sps:$4 sm:$0xff]   ;;  %v13049_v6 = vld [vmem:[#allocation11 + $0x76c] ss:$16 sps:$4 sm:$0xff]  }
 0x476   : > { %v10378_v4 = vpop.f32.mrf.mxu1  ;;  %10671 = vmatprep.subr.bf16.mxu1 %v12989_v62  ;;  %v13044_v40 = vld [vmem:[#allocation11 + $0x568] ss:$16 sps:$4 sm:$0xff]   ;;  %v13052_v49 = vld [vmem:[#allocation11 + $0x54c] ss:$16 sps:$4 sm:$0xff]  }
 0x477   : > { %v13047_v13 = vld [vmem:[#allocation11 + $0x768] ss:$16 sps:$4 sm:$0xff]   ;;  %v13055_v59 = vld [vmem:[#allocation11 + $0x74c] ss:$16 sps:$4 sm:$0xff]  }
 0x478   : > { %10631 = vmatpush1.bf16.msra.mxu0 %v12984_v12  ;;  %v13050_v2 = vld [vmem:[#allocation11 + $0x548] ss:$16 sps:$4 sm:$0xff]   ;;  %v13058_v53 = vld [vmem:[#allocation11 + $0x52c] ss:$16 sps:$4 sm:$0xff]  }
 0x479   : > { %10672 = vmatpush1.bf16.msra.mxu1 %v12987_v63  ;;  %10632 = vmatprep.subr.bf16.mxu0 %v12992_v23  ;;  %v13053_v62 = vld [vmem:[#allocation11 + $0x748] ss:$16 sps:$4 sm:$0xff]   ;;  %v13061_v58 = vld [vmem:[#allocation11 + $0x72c] ss:$16 sps:$4 sm:$0xff]  }
 0x47a   : > { %10673 = vmatprep.subr.bf16.mxu1 %v12995_v33  ;;  %v13056_v12 = vld [vmem:[#allocation11 + $0x528] ss:$16 sps:$4 sm:$0xff]   ;;  %v13064_v63 = vld [vmem:[#allocation11 + $0x50c] ss:$16 sps:$4 sm:$0xff]  }
 0x47b   : > { %v13059_v16 = vld [vmem:[#allocation11 + $0x728] ss:$16 sps:$4 sm:$0xff]   ;;  %v13067_v23 = vld [vmem:[#allocation11 + $0x70c] ss:$16 sps:$4 sm:$0xff]  }
 0x47c   : > { %10633 = vmatpush1.bf16.msra.mxu0 %v12990_v44  ;;  %v13062_v4 = vld [vmem:[#allocation11 + $0x508] ss:$16 sps:$4 sm:$0xff]   ;;  %v13070_v44 = vld [vmem:[#allocation11 + $0x8ec] ss:$16 sps:$4 sm:$0xff]  }
 0x47d   : > { %10674 = vmatpush1.bf16.msra.mxu1 %v12993_v46  ;;  %10634 = vmatprep.subr.bf16.mxu0 %v12998_v27  ;;  %v13065_v33 = vld [vmem:[#allocation11 + $0x708] ss:$16 sps:$4 sm:$0xff]   ;;  %v13073_v46 = vld [vmem:[#allocation11 + $0xaec] ss:$16 sps:$4 sm:$0xff]  }
 0x47e   : > { %10675 = vmatprep.subr.bf16.mxu1 %v13001_v41  ;;  %v13068_v27 = vld [vmem:[#allocation11 + $0x8e8] ss:$16 sps:$4 sm:$0xff]  }
 0x47f   : > { %v13071_v41 = vld [vmem:[#allocation11 + $0xae8] ss:$16 sps:$4 sm:$0xff]  }
 0x480   : > { %10635 = vmatpush1.bf16.msra.mxu0 %v12996_v11  ;;  %v13076_v11 = vld [vmem:[#allocation11 + $0x8cc] ss:$16 sps:$4 sm:$0xff]  }
 0x481   : > { %10676 = vmatpush1.bf16.msra.mxu1 %v12999_v47  ;;  %10636 = vmatprep.subr.bf16.mxu0 %v13004_v36  ;;  %v13079_v36 = vld [vmem:[#allocation11 + $0xacc] ss:$16 sps:$4 sm:$0xff]  }
 0x482   : > { %10677 = vmatprep.subr.bf16.mxu1 %v13007_v39 }
 0x484   : > { %10637 = vmatpush1.bf16.msra.mxu0 %v13002_v1  ;;  %v13074_v1 = vld [vmem:[#allocation11 + $0x8c8] ss:$16 sps:$4 sm:$0xff]  }
 0x485   : > { %10678 = vmatpush1.bf16.msra.mxu1 %v13005_v56  ;;  %10638 = vmatprep.subr.bf16.mxu0 %v13010_v18  ;;  %v13077_v18 = vld [vmem:[#allocation11 + $0xac8] ss:$16 sps:$4 sm:$0xff]  }
 0x486   : > { %10679 = vmatprep.subr.bf16.mxu1 %v13013_v24  ;;  %v13082_v24 = vld [vmem:[#allocation11 + $0x8ac] ss:$16 sps:$4 sm:$0xff]  }
 0x488   : > { %10639 = vmatpush1.bf16.msra.mxu0 %v13008_v42 }
 0x489   : > { %10680 = vmatpush1.bf16.msra.mxu1 %v13011_v15  ;;  %10640 = vmatprep.subr.bf16.mxu0 %v13016_v31 }
 0x48a   : > { %10681 = vmatprep.subr.bf16.mxu1 %v13019_v57 }
 0x48c   : > { %10641 = vmatpush1.bf16.msra.mxu0 %v13014_v52  ;;  %v13088_v52 = vld [vmem:[#allocation11 + $0x88c] ss:$16 sps:$4 sm:$0xff]  }
 0x48d   : > { %10682 = vmatpush1.bf16.msra.mxu1 %v13017_v3  ;;  %10642 = vmatprep.subr.bf16.mxu0 %v13022_v21  ;;  %v13091_v21 = vld [vmem:[#allocation11 + $0xa8c] ss:$16 sps:$4 sm:$0xff]  }
 0x48e   : > { %10683 = vmatprep.subr.bf16.mxu1 %v13025_v37  ;;  %v13086_v37 = vld [vmem:[#allocation11 + $0x888] ss:$16 sps:$4 sm:$0xff]  }
 0x490   : > { %10643 = vmatpush2.bf16.msra.mxu0 %v13020_v50  ;;  %v13094_v50 = vld [vmem:[#allocation11 + $0x86c] ss:$16 sps:$4 sm:$0xff]  }
 0x491   : > { %10684 = vmatpush2.bf16.msra.mxu1 %v13023_v9  ;;  %10644 = vmatprep.subr.bf16.mxu0 %v13028_v8  ;;  %v13097_v9 = vld [vmem:[#allocation11 + $0xa6c] ss:$16 sps:$4 sm:$0xff]   ;;  %v13092_v8 = vld [vmem:[#allocation11 + $0x868] ss:$16 sps:$4 sm:$0xff]  }
 0x492   : > { %10685 = vmatprep.subr.bf16.mxu1 %v13031_v22  ;;  %v13095_v22 = vld [vmem:[#allocation11 + $0xa68] ss:$16 sps:$4 sm:$0xff]  }
 0x494   : > { %10645 = vmatpush2.bf16.msra.mxu0 %v13026_v30  ;;  %v13100_v30 = vld [vmem:[#allocation11 + $0x84c] ss:$16 sps:$4 sm:$0xff]  }
 0x495   : > { %10686 = vmatpush2.bf16.msra.mxu1 %v13029_v10  ;;  %10646 = vmatprep.subr.bf16.mxu0 %v13034_v29  ;;  %v13103_v10 = vld [vmem:[#allocation11 + $0xa4c] ss:$16 sps:$4 sm:$0xff]   ;;  %v13098_v29 = vld [vmem:[#allocation11 + $0x848] ss:$16 sps:$4 sm:$0xff]  }
 0x496   : > { %10687 = vmatprep.subr.bf16.mxu1 %v13037_v19  ;;  %v13101_v19 = vld [vmem:[#allocation11 + $0xa48] ss:$16 sps:$4 sm:$0xff]  }
 0x498   : > { %10647 = vmatpush2.bf16.msra.mxu0 %v13032_v35  ;;  %v13106_v35 = vld [vmem:[#allocation11 + $0x82c] ss:$16 sps:$4 sm:$0xff]  }
 0x499   : > { %10688 = vmatpush2.bf16.msra.mxu1 %v13035_v17  ;;  %10648 = vmatprep.subr.bf16.mxu0 %v13040_v25  ;;  %v13109_v17 = vld [vmem:[#allocation11 + $0xa2c] ss:$16 sps:$4 sm:$0xff]   ;;  %v13104_v25 = vld [vmem:[#allocation11 + $0x828] ss:$16 sps:$4 sm:$0xff]  }
 0x49a   : > { %10689 = vmatprep.subr.bf16.mxu1 %v13043_v43  ;;  %v13107_v43 = vld [vmem:[#allocation11 + $0xa28] ss:$16 sps:$4 sm:$0xff]  }
 0x49c   : > { %10649 = vmatpush2.bf16.msra.mxu0 %v13038_v7  ;;  %v13112_v7 = vld [vmem:[#allocation11 + $0x80c] ss:$16 sps:$4 sm:$0xff]  }
 0x49d   : > { %10690 = vmatpush2.bf16.msra.mxu1 %v13041_v38  ;;  %10650 = vmatprep.subr.bf16.mxu0 %v13046_v5  ;;  %v13115_v38 = vld [vmem:[#allocation11 + $0xa0c] ss:$16 sps:$4 sm:$0xff]   ;;  %v13110_v5 = vld [vmem:[#allocation11 + $0x808] ss:$16 sps:$4 sm:$0xff]  }
 0x49e   : > { %10691 = vmatprep.subr.bf16.mxu1 %v13049_v6  ;;  %v13113_v6 = vld [vmem:[#allocation11 + $0xa08] ss:$16 sps:$4 sm:$0xff]  }
 0x4a0   : > { %10651 = vmatpush2.bf16.msra.mxu0 %v13044_v40  ;;  %v13118_v40 = vld [vmem:[#allocation11 + $0x9ec] ss:$16 sps:$4 sm:$0xff]  }
 0x4a1   : > { %10692 = vmatpush2.bf16.msra.mxu1 %v13047_v13  ;;  %10652 = vmatprep.subr.bf16.mxu0 %v13052_v49  ;;  %v13121_v13 = vld [vmem:[#allocation11 + $0xbec] ss:$16 sps:$4 sm:$0xff]   ;;  %v13116_v49 = vld [vmem:[#allocation11 + $0x9e8] ss:$16 sps:$4 sm:$0xff]  }
 0x4a2   : > { %10693 = vmatprep.subr.bf16.mxu1 %v13055_v59  ;;  %v13119_v59 = vld [vmem:[#allocation11 + $0xbe8] ss:$16 sps:$4 sm:$0xff]  }
 0x4a4   : > { %10653 = vmatpush2.bf16.msra.mxu0 %v13050_v2  ;;  %v13124_v2 = vld [vmem:[#allocation11 + $0x9cc] ss:$16 sps:$4 sm:$0xff]  }
 0x4a5   : > { %10694 = vmatpush2.bf16.msra.mxu1 %v13053_v62  ;;  %10654 = vmatprep.subr.bf16.mxu0 %v13058_v53  ;;  %v13127_v62 = vld [vmem:[#allocation11 + $0xbcc] ss:$16 sps:$4 sm:$0xff]   ;;  %v13122_v53 = vld [vmem:[#allocation11 + $0x9c8] ss:$16 sps:$4 sm:$0xff]  }
 0x4a6   : > { %10695 = vmatprep.subr.bf16.mxu1 %v13061_v58  ;;  %v13125_v58 = vld [vmem:[#allocation11 + $0xbc8] ss:$16 sps:$4 sm:$0xff]  }
 0x4a8   : > { %10655 = vmatpush2.bf16.msra.mxu0 %v13056_v12  ;;  %v13130_v12 = vld [vmem:[#allocation11 + $0x9ac] ss:$16 sps:$4 sm:$0xff]  }
 0x4a9   : > { %10696 = vmatpush2.bf16.msra.mxu1 %v13059_v16  ;;  %10656 = vmatprep.subr.bf16.mxu0 %v13064_v63  ;;  %v13133_v16 = vld [vmem:[#allocation11 + $0xbac] ss:$16 sps:$4 sm:$0xff]   ;;  %v13128_v63 = vld [vmem:[#allocation11 + $0x9a8] ss:$16 sps:$4 sm:$0xff]  }
 0x4aa   : > { %10697 = vmatprep.subr.bf16.mxu1 %v13067_v23  ;;  %v13131_v23 = vld [vmem:[#allocation11 + $0xba8] ss:$16 sps:$4 sm:$0xff]  }
 0x4ac   : > { %10657 = vmatpush2.bf16.msra.mxu0 %v13062_v4  ;;  %v13136_v4 = vld [vmem:[#allocation11 + $0x98c] ss:$16 sps:$4 sm:$0xff]  }
 0x4ad   : > { %10698 = vmatpush2.bf16.msra.mxu1 %v13065_v33  ;;  %10708 = vmatprep.subr.bf16.mxu0 %v13070_v44  ;;  %v13139_v33 = vld [vmem:[#allocation11 + $0xb8c] ss:$16 sps:$4 sm:$0xff]   ;;  %v13134_v44 = vld [vmem:[#allocation11 + $0x988] ss:$16 sps:$4 sm:$0xff]  }
 0x4ae   : > { %10749 = vmatprep.subr.bf16.mxu1 %v13073_v46  ;;  %v13137_v46 = vld [vmem:[#allocation11 + $0xb88] ss:$16 sps:$4 sm:$0xff]  }
 0x4af   : > { %v15758_v47 = vpop.f32.mrf.mxu0  ;;  %10659 = vmatmul.mubr.bf16.vlgmr.msra.gmra.mxu0 %v15694_v45  ;;  %v13085_v45 = vld [vmem:[#allocation11 + $0xaac] ss:$16 sps:$4 sm:$0xff]  }
 0x4b0   : > { %v15761_v39 = vpop.f32.mrf.mxu1  ;;  %10700 = vmatmul.mubr.bf16.vlgmr.msra.gmra.mxu1 %v15698_v20  ;;  %10709 = vmatpush1.bf16.msra.mxu0 %v13068_v27  ;;  %v13080_v20 = vld [vmem:[#allocation11 + $0x8a8] ss:$16 sps:$4 sm:$0xff]   ;;  %v13142_v27 = vld [vmem:[#allocation11 + $0x96c] ss:$16 sps:$4 sm:$0xff]  }
 0x4b1   : > { %10740 = vmatprep.mubr.bf16.mxu0 %v15700_v28  ;;  %10750 = vmatpush1.bf16.msra.mxu1 %v13071_v41  ;;  %v15765_v56 = vpop.f32.mrf.mxu0  ;;  %v13083_v28 = vld [vmem:[#allocation11 + $0xaa8] ss:$16 sps:$4 sm:$0xff]   ;;  %v13145_v41 = vld [vmem:[#allocation11 + $0xb6c] ss:$16 sps:$4 sm:$0xff]  }
 0x4b2   : > { %10781 = vmatprep.mubr.bf16.mxu1 %v15703_v26  ;;  %v15768_v42 = vpop.f32.mrf.mxu1  ;;  %10710 = vmatprep.subr.bf16.mxu0 %v13076_v11  ;;  %v13089_v26 = vld [vmem:[#allocation11 + $0xa88] ss:$16 sps:$4 sm:$0xff]  }
 0x4b3   : > { %v10418_v15 = vpop.f32.mrf.mxu0  ;;  %10751 = vmatprep.subr.bf16.mxu1 %v13079_v36  ;;  %v13140_v11 = vld [vmem:[#allocation11 + $0x968] ss:$16 sps:$4 sm:$0xff]  }
 0x4b4   : > { %v10459_v31 = vpop.f32.mrf.mxu1  ;;  %10711 = vmatpush1.bf16.msra.mxu0 %v13074_v1  ;;  %v13143_v36 = vld [vmem:[#allocation11 + $0xb68] ss:$16 sps:$4 sm:$0xff]   ;;  %v13148_v1 = vld [vmem:[#allocation11 + $0x94c] ss:$16 sps:$4 sm:$0xff]  }
 0x4b5   : > { %10752 = vmatpush1.bf16.msra.mxu1 %v13077_v18  ;;  %v10419_v57 = vpop.f32.mrf.mxu0  ;;  %10712 = vmatprep.subr.bf16.mxu0 %v13082_v24  ;;  %v13151_v18 = vld [vmem:[#allocation11 + $0xb4c] ss:$16 sps:$4 sm:$0xff]   ;;  %v13146_v24 = vld [vmem:[#allocation11 + $0x948] ss:$16 sps:$4 sm:$0xff]  }
 0x4b6   : > { %v10460_v3 = vpop.f32.mrf.mxu1  ;;  %10753 = vmatprep.subr.bf16.mxu1 %v13085_v45  ;;  %v13149_v45 = vld [vmem:[#allocation11 + $0xb48] ss:$16 sps:$4 sm:$0xff]   ;;  %v13154_v15 = vld [vmem:[#allocation11 + $0x92c] ss:$16 sps:$4 sm:$0xff]  }
 0x4b7   : > { %v13157_v31 = vld [vmem:[#allocation11 + $0xb2c] ss:$16 sps:$4 sm:$0xff]   ;;  %v13155_v57 = vld [vmem:[#allocation11 + $0xb28] ss:$16 sps:$4 sm:$0xff]  }
 0x4b8   : > { %10713 = vmatpush1.bf16.msra.mxu0 %v13080_v20  ;;  %v13152_v20 = vld [vmem:[#allocation11 + $0x928] ss:$16 sps:$4 sm:$0xff]  }
 0x4b9   : > { %10754 = vmatpush1.bf16.msra.mxu1 %v13083_v28  ;;  %10714 = vmatprep.subr.bf16.mxu0 %v13088_v52  ;;  %v13160_v28 = vld [vmem:[#allocation11 + $0x90c] ss:$16 sps:$4 sm:$0xff]   ;;  %v13158_v3 = vld [vmem:[#allocation11 + $0x908] ss:$16 sps:$4 sm:$0xff]  }
 0x4ba   : > { %10755 = vmatprep.subr.bf16.mxu1 %v13091_v21  ;;  %v13163_v52 = vld [vmem:[#allocation11 + $0xb0c] ss:$16 sps:$4 sm:$0xff]   ;;  %v13161_v21 = vld [vmem:[#allocation11 + $0xb08] ss:$16 sps:$4 sm:$0xff]  }
 0x4bc   : > { %10715 = vmatpush1.bf16.msra.mxu0 %v13086_v37  ;;  %v13166_v37 = vld [vmem:[#allocation11 + $0xcec] ss:$16 sps:$4 sm:$0xff]  }
 0x4bd   : > { %10756 = vmatpush1.bf16.msra.mxu1 %v13089_v26  ;;  %10716 = vmatprep.subr.bf16.mxu0 %v13094_v50  ;;  %v10415_v26 = vadd.f32 %v15758_v47, %v15752_v48  ;;  %v13169_v50 = vld [vmem:[#allocation11 + $0xeec] ss:$16 sps:$4 sm:$0xff]  }
 0x4be   : > { %10757 = vmatprep.subr.bf16.mxu1 %v13097_v9  ;;  %v10417_v9 = vadd.f32 %v15765_v56, %v15756_v14  ;;  %v13170_v14 = vld [vmem:[#allocation11 + $0xcc8] ss:$16 sps:$4 sm:$0xff]  }
 0x4c0   : > { %10717 = vmatpush1.bf16.msra.mxu0 %v13092_v8  ;;  %v13164_v8 = vld [vmem:[#allocation11 + $0xce8] ss:$16 sps:$4 sm:$0xff]   ;;  %v10458_v48 = vadd.f32 %v15768_v42, %v10417_v9  ;;  %v13181_v42 = vld [vmem:[#allocation11 + $0xeac] ss:$16 sps:$4 sm:$0xff]  }
 0x4c1   : > { %10758 = vmatpush1.bf16.msra.mxu1 %v13095_v22  ;;  %10718 = vmatprep.subr.bf16.mxu0 %v13100_v30  ;;  %v13167_v22 = vld [vmem:[#allocation11 + $0xee8] ss:$16 sps:$4 sm:$0xff]   ;;  %v10456_v30 = vadd.f32 %v15761_v39, %v10415_v26  ;;  %v13235_v26 = vld [vmem:[#allocation11 + $0xf8c] ss:$16 sps:$4 sm:$0xff]  }
 0x4c2   : > { %10759 = vmatprep.subr.bf16.mxu1 %v13103_v10  ;;  %v13172_v10 = vld [vmem:[#allocation11 + $0xccc] ss:$16 sps:$4 sm:$0xff]   ;;  %v13173_v39 = vld [vmem:[#allocation11 + $0xec8] ss:$16 sps:$4 sm:$0xff]  }
 0x4c3   : > { %v13233_v9 = vld [vmem:[#allocation11 + $0xf88] ss:$16 sps:$4 sm:$0xff]  }
 0x4c4   : > { %10719 = vmatpush1.bf16.msra.mxu0 %v13098_v29 }
 0x4c5   : > { %10760 = vmatpush1.bf16.msra.mxu1 %v13101_v19  ;;  %10720 = vmatprep.subr.bf16.mxu0 %v13106_v35  ;;  %v13175_v19 = vld [vmem:[#allocation11 + $0xecc] ss:$16 sps:$4 sm:$0xff]  }
 0x4c6   : > { %10761 = vmatprep.subr.bf16.mxu1 %v13109_v17  ;;  %v13178_v17 = vld [vmem:[#allocation11 + $0xcac] ss:$16 sps:$4 sm:$0xff]  }
 0x4c8   : > { %10721 = vmatpush1.bf16.msra.mxu0 %v13104_v25 }
 0x4c9   : > { %10762 = vmatpush1.bf16.msra.mxu1 %v13107_v43  ;;  %10722 = vmatprep.subr.bf16.mxu0 %v13112_v7 }
 0x4ca   : > { %10763 = vmatprep.subr.bf16.mxu1 %v13115_v38  ;;  %v13176_v38 = vld [vmem:[#allocation11 + $0xca8] ss:$16 sps:$4 sm:$0xff]  }
 0x4cc   : > { %10723 = vmatpush1.bf16.msra.mxu0 %v13110_v5 }
 0x4cd   : > { %10764 = vmatpush1.bf16.msra.mxu1 %v13113_v6  ;;  %10724 = vmatprep.subr.bf16.mxu0 %v13118_v40  ;;  %v13184_v6 = vld [vmem:[#allocation11 + $0xc8c] ss:$16 sps:$4 sm:$0xff]  }
 0x4ce   : > { %10765 = vmatprep.subr.bf16.mxu1 %v13121_v13  ;;  %v13187_v13 = vld [vmem:[#allocation11 + $0xe8c] ss:$16 sps:$4 sm:$0xff]  }
 0x4d0   : > { %10725 = vmatpush2.bf16.msra.mxu0 %v13116_v49  ;;  %v13182_v49 = vld [vmem:[#allocation11 + $0xc88] ss:$16 sps:$4 sm:$0xff]  }
 0x4d1   : > { %10766 = vmatpush2.bf16.msra.mxu1 %v13119_v59  ;;  %10726 = vmatprep.subr.bf16.mxu0 %v13124_v2  ;;  %v13185_v59 = vld [vmem:[#allocation11 + $0xe88] ss:$16 sps:$4 sm:$0xff]   ;;  %v13190_v2 = vld [vmem:[#allocation11 + $0xc6c] ss:$16 sps:$4 sm:$0xff]  }
 0x4d2   : > { %10767 = vmatprep.subr.bf16.mxu1 %v13127_v62  ;;  %v13193_v62 = vld [vmem:[#allocation11 + $0xe6c] ss:$16 sps:$4 sm:$0xff]  }
 0x4d4   : > { %10727 = vmatpush2.bf16.msra.mxu0 %v13122_v53  ;;  %v13188_v53 = vld [vmem:[#allocation11 + $0xc68] ss:$16 sps:$4 sm:$0xff]  }
 0x4d5   : > { %10768 = vmatpush2.bf16.msra.mxu1 %v13125_v58  ;;  %10728 = vmatprep.subr.bf16.mxu0 %v13130_v12  ;;  %v13191_v58 = vld [vmem:[#allocation11 + $0xe68] ss:$16 sps:$4 sm:$0xff]   ;;  %v13196_v12 = vld [vmem:[#allocation11 + $0xc4c] ss:$16 sps:$4 sm:$0xff]  }
 0x4d6   : > { %10769 = vmatprep.subr.bf16.mxu1 %v13133_v16  ;;  %v13199_v16 = vld [vmem:[#allocation11 + $0xe4c] ss:$16 sps:$4 sm:$0xff]  }
 0x4d8   : > { %10729 = vmatpush2.bf16.msra.mxu0 %v13128_v63  ;;  %v13194_v63 = vld [vmem:[#allocation11 + $0xc48] ss:$16 sps:$4 sm:$0xff]  }
 0x4d9   : > { %10770 = vmatpush2.bf16.msra.mxu1 %v13131_v23  ;;  %10730 = vmatprep.subr.bf16.mxu0 %v13136_v4  ;;  %v13197_v23 = vld [vmem:[#allocation11 + $0xe48] ss:$16 sps:$4 sm:$0xff]   ;;  %v13202_v4 = vld [vmem:[#allocation11 + $0xc2c] ss:$16 sps:$4 sm:$0xff]  }
 0x4da   : > { %10771 = vmatprep.subr.bf16.mxu1 %v13139_v33  ;;  %v13205_v33 = vld [vmem:[#allocation11 + $0xe2c] ss:$16 sps:$4 sm:$0xff]  }
 0x4dc   : > { %10731 = vmatpush2.bf16.msra.mxu0 %v13134_v44  ;;  %v13200_v44 = vld [vmem:[#allocation11 + $0xc28] ss:$16 sps:$4 sm:$0xff]  }
 0x4dd   : > { %10772 = vmatpush2.bf16.msra.mxu1 %v13137_v46  ;;  %10732 = vmatprep.subr.bf16.mxu0 %v13142_v27  ;;  %v13203_v46 = vld [vmem:[#allocation11 + $0xe28] ss:$16 sps:$4 sm:$0xff]   ;;  %v13208_v27 = vld [vmem:[#allocation11 + $0xc0c] ss:$16 sps:$4 sm:$0xff]  }
 0x4de   : > { %10773 = vmatprep.subr.bf16.mxu1 %v13145_v41  ;;  %v13211_v41 = vld [vmem:[#allocation11 + $0xe0c] ss:$16 sps:$4 sm:$0xff]  }
 0x4e0   : > { %10733 = vmatpush2.bf16.msra.mxu0 %v13140_v11  ;;  %v13206_v11 = vld [vmem:[#allocation11 + $0xc08] ss:$16 sps:$4 sm:$0xff]  }
 0x4e1   : > { %10774 = vmatpush2.bf16.msra.mxu1 %v13143_v36  ;;  %10734 = vmatprep.subr.bf16.mxu0 %v13148_v1  ;;  %v13209_v36 = vld [vmem:[#allocation11 + $0xe08] ss:$16 sps:$4 sm:$0xff]   ;;  %v13214_v1 = vld [vmem:[#allocation11 + $0xdec] ss:$16 sps:$4 sm:$0xff]  }
 0x4e2   : > { %10775 = vmatprep.subr.bf16.mxu1 %v13151_v18  ;;  %v13217_v18 = vld [vmem:[#allocation11 + $0xfec] ss:$16 sps:$4 sm:$0xff]  }
 0x4e4   : > { %10735 = vmatpush2.bf16.msra.mxu0 %v13146_v24  ;;  %v13212_v24 = vld [vmem:[#allocation11 + $0xde8] ss:$16 sps:$4 sm:$0xff]  }
 0x4e5   : > { %10776 = vmatpush2.bf16.msra.mxu1 %v13149_v45  ;;  %10736 = vmatprep.subr.bf16.mxu0 %v13154_v15  ;;  %v13215_v45 = vld [vmem:[#allocation11 + $0xfe8] ss:$16 sps:$4 sm:$0xff]   ;;  %v13220_v15 = vld [vmem:[#allocation11 + $0xdcc] ss:$16 sps:$4 sm:$0xff]  }
 0x4e6   : > { %10777 = vmatprep.subr.bf16.mxu1 %v13157_v31  ;;  %v13223_v31 = vld [vmem:[#allocation11 + $0xfcc] ss:$16 sps:$4 sm:$0xff]  }
 0x4e8   : > { %10737 = vmatpush2.bf16.msra.mxu0 %v13152_v20  ;;  %v13218_v20 = vld [vmem:[#allocation11 + $0xdc8] ss:$16 sps:$4 sm:$0xff]  }
 0x4e9   : > { %10778 = vmatpush2.bf16.msra.mxu1 %v13155_v57  ;;  %10738 = vmatprep.subr.bf16.mxu0 %v13160_v28  ;;  %v13221_v57 = vld [vmem:[#allocation11 + $0xfc8] ss:$16 sps:$4 sm:$0xff]   ;;  %v13226_v28 = vld [vmem:[#allocation11 + $0xdac] ss:$16 sps:$4 sm:$0xff]  }
 0x4ea   : > { %10779 = vmatprep.subr.bf16.mxu1 %v13163_v52  ;;  %v13229_v52 = vld [vmem:[#allocation11 + $0xfac] ss:$16 sps:$4 sm:$0xff]  }
 0x4ec   : > { %10739 = vmatpush2.bf16.msra.mxu0 %v13158_v3  ;;  %v13224_v3 = vld [vmem:[#allocation11 + $0xda8] ss:$16 sps:$4 sm:$0xff]  }
 0x4ed   : > { %10780 = vmatpush2.bf16.msra.mxu1 %v13161_v21  ;;  %10790 = vmatprep.subr.bf16.mxu0 %v13166_v37  ;;  %v13227_v21 = vld [vmem:[#allocation11 + $0xfa8] ss:$16 sps:$4 sm:$0xff]   ;;  %v13232_v37 = vld [vmem:[#allocation11 + $0xd8c] ss:$16 sps:$4 sm:$0xff]  }
 0x4ee   : > { %10831 = vmatprep.subr.bf16.mxu1 %v13169_v50  ;;  %v13230_v50 = vld [vmem:[#allocation11 + $0xd88] ss:$16 sps:$4 sm:$0xff]  }
 0x4ef   : > { %v10496_v29 = vpop.f32.mrf.mxu0  ;;  %10741 = vmatmul.mubr.bf16.vlgmr.msra.gmra.mxu0 %v15714_v60 }
 0x4f0   : > { %v10497_v47 = vadd.f32 %v10496_v29, %v10456_v30  ;;  %v10537_v35 = vpop.f32.mrf.mxu1  ;;  %10782 = vmatmul.mubr.bf16.vlgmr.msra.gmra.mxu1 %v15716_v61  ;;  %10791 = vmatpush1.bf16.msra.mxu0 %v13164_v8  ;;  %v13238_v8 = vld [vmem:[#allocation11 + $0xd6c] ss:$16 sps:$4 sm:$0xff]   ;;  %v13236_v30 = vld [vmem:[#allocation11 + $0xd68] ss:$16 sps:$4 sm:$0xff]  }
 0x4f1   : > { %10822 = vmatprep.mubr.bf16.mxu0 %v15720_v32  ;;  %10832 = vmatpush1.bf16.msra.mxu1 %v13167_v22  ;;  %v10498_v56 = vpop.f32.mrf.mxu0  ;;  %v13241_v22 = vld [vmem:[#allocation11 + $0xf6c] ss:$16 sps:$4 sm:$0xff]  }
 0x4f2   : > { %v15780_v25 = vadd.f32 %v10537_v35, %v10497_v47  ;;  %10863 = vmatprep.mubr.bf16.mxu1 %v15725_v55  ;;  %v10499_v60 = vadd.f32 %v10498_v56, %v10458_v48  ;;  %v10539_v43 = vpop.f32.mrf.mxu1  ;;  %10792 = vmatprep.subr.bf16.mxu0 %v13172_v10  ;;  %v13179_v55 = vld [vmem:[#allocation11 + $0xea8] ss:$16 sps:$4 sm:$0xff]   ;;  %v13244_v29 = vld [vmem:[#allocation11 + $0xd4c] ss:$16 sps:$4 sm:$0xff]  }
 0x4f3   : > { %v10500_v7 = vpop.f32.mrf.mxu0  ;;  %10833 = vmatprep.subr.bf16.mxu1 %v13175_v19  ;;  %v13239_v10 = vld [vmem:[#allocation11 + $0xf68] ss:$16 sps:$4 sm:$0xff]   ;;  %v13247_v19 = vld [vmem:[#allocation11 + $0xf4c] ss:$16 sps:$4 sm:$0xff]  }
 0x4f4   : > { %10872 = vst [vmem:[%s15783_s21] sm:$0xff] %v15780_v25  ;;  %v15787_v61 = vadd.f32 %v10539_v43, %v10499_v60  ;;  %v10541_v32 = vpop.f32.mrf.mxu1  ;;  %10793 = vmatpush1.bf16.msra.mxu0 %v13170_v14  ;;  %v13242_v48 = vld [vmem:[#allocation11 + $0xd48] ss:$16 sps:$4 sm:$0xff]   ;;  %v13250_v35 = vld [vmem:[#allocation11 + $0xd2c] ss:$16 sps:$4 sm:$0xff]  }
 0x4f5   : > { %10834 = vmatpush1.bf16.msra.mxu1 %v13173_v39  ;;  %v10501_v5 = vpop.f32.mrf.mxu0  ;;  %10794 = vmatprep.subr.bf16.mxu0 %v13178_v17  ;;  %v13245_v47 = vld [vmem:[#allocation11 + $0xf48] ss:$16 sps:$4 sm:$0xff]   ;;  %v13253_v14 = vld [vmem:[#allocation11 + $0xf2c] ss:$16 sps:$4 sm:$0xff]   ;;  %v13330_v32 = vld [vmem:[#allocation12] sm:$0xf] }
 0x4f6   : > { %10873 = vst [vmem:[%s15783_s21 + $0x8] sm:$0xff] %v15787_v61  ;;  %v10542_v40 = vpop.f32.mrf.mxu1  ;;  %10835 = vmatprep.subr.bf16.mxu1 %v13181_v42  ;;  %v13248_v56 = vld [vmem:[#allocation11 + $0xd28] ss:$16 sps:$4 sm:$0xff]   ;;  %v13256_v17 = vld [vmem:[#allocation11 + $0xd0c] ss:$16 sps:$4 sm:$0xff]  }
 0x4f7   : > { %v13251_v39 = vld [vmem:[#allocation11 + $0xf28] ss:$16 sps:$4 sm:$0xff]   ;;  %v13259_v60 = vld [vmem:[#allocation11 + $0xf0c] ss:$16 sps:$4 sm:$0xff]   ;;  %v10877_v40 = vpack.c.bf16 %v15787_v61, %v15787_v61 }
 0x4f8   : > { %10795 = vmatpush1.bf16.msra.mxu0 %v13176_v38  ;;  %v13254_v43 = vld [vmem:[#allocation11 + $0xd08] ss:$16 sps:$4 sm:$0xff]   ;;  %v13260_v7 = vld [vmem:[#allocation14 + $0x78] sm:$0xff]   ;;  %v7647_v38 = vrot.slane %v13330_v32, %v15598_v51  ;;  %v13265_v61 = vld [vmem:[#allocation14 + $0x28] sm:$0xff]  }
 0x4f9   : > { %10836 = vmatpush1.bf16.msra.mxu1 %v13179_v55  ;;  %10796 = vmatprep.subr.bf16.mxu0 %v13184_v6  ;;  %v13257_v42 = vld [vmem:[#allocation11 + $0xf08] ss:$16 sps:$4 sm:$0xff]   ;;  %v13261_v5 = vld [vmem:[#allocation14 + $0x38] sm:$0xff]   ;;  %v7651_v6 = vrot.slane %v13330_v32, %v15606_v54 }
 0x4fa   : > { %10837 = vmatprep.subr.bf16.mxu1 %v13187_v13  ;;  %v13262_v55 = vld [vmem:[#allocation14 + $0x70] sm:$0xff]  }
 0x4fc   : > { %10797 = vmatpush1.bf16.msra.mxu0 %v13182_v49 }
 0x4fd   : > { %10838 = vmatpush1.bf16.msra.mxu1 %v13185_v59  ;;  %10798 = vmatprep.subr.bf16.mxu0 %v13190_v2  ;;  %v13263_v2 = vld [vmem:[#allocation14 + $0x30] sm:$0xff]  }
 0x4fe   : > { %10839 = vmatprep.subr.bf16.mxu1 %v13193_v62  ;;  %v13264_v62 = vld [vmem:[#allocation14 + $0x68] sm:$0xff]  }
 0x500   : > { %10799 = vmatpush1.bf16.msra.mxu0 %v13188_v53 }
 0x501   : > { %10840 = vmatpush1.bf16.msra.mxu1 %v13191_v58  ;;  %10800 = vmatprep.subr.bf16.mxu0 %v13196_v12 }
 0x502   : > { %10841 = vmatprep.subr.bf16.mxu1 %v13199_v16 }
 0x504   : > { %10801 = vmatpush1.bf16.msra.mxu0 %v13194_v63 }
 0x505   : > { %10842 = vmatpush1.bf16.msra.mxu1 %v13197_v23  ;;  %10802 = vmatprep.subr.bf16.mxu0 %v13202_v4 }
 0x506   : > { %10843 = vmatprep.subr.bf16.mxu1 %v13205_v33  ;;  %v13276_v33 = vld [vmem:[#allocation14 + $0xf8] sm:$0xff]  }
 0x508   : > { %10803 = vmatpush1.bf16.msra.mxu0 %v13200_v44  ;;  %v13278_v44 = vld [vmem:[#allocation14 + $0xf0] sm:$0xff]  }
 0x509   : > { %10844 = vmatpush1.bf16.msra.mxu1 %v13203_v46  ;;  %10804 = vmatprep.subr.bf16.mxu0 %v13208_v27  ;;  %v13267_v46 = vld [vmem:[#allocation14 + $0x20] sm:$0xff]   ;;  %v13268_v27 = vld [vmem:[#allocation14 + $0x58] sm:$0xff]  }
 0x50a   : > { %10845 = vmatprep.subr.bf16.mxu1 %v13211_v41  ;;  %v13279_v41 = vld [vmem:[#allocation14 + $0xb0] sm:$0xff]  }
 0x50c   : > { %10805 = vmatpush1.bf16.msra.mxu0 %v13206_v11  ;;  %v13280_v11 = vld [vmem:[#allocation14 + $0xe8] sm:$0xff]  }
 0x50d   : > { %10846 = vmatpush1.bf16.msra.mxu1 %v13209_v36  ;;  %10806 = vmatprep.subr.bf16.mxu0 %v13214_v1  ;;  %v13269_v36 = vld [vmem:[#allocation14 + $0x18] sm:$0xff]   ;;  %v13270_v1 = vld [vmem:[#allocation14 + $0x50] sm:$0xff]  }
 0x50e   : > { %10847 = vmatprep.subr.bf16.mxu1 %v13217_v18  ;;  %v13281_v18 = vld [vmem:[#allocation14 + $0xa8] sm:$0xff]  }
 0x510   : > { %10807 = vmatpush2.bf16.msra.mxu0 %v13212_v24  ;;  %v13282_v24 = vld [vmem:[#allocation14 + $0xe0] sm:$0xff]  }
 0x511   : > { %10848 = vmatpush2.bf16.msra.mxu1 %v13215_v45  ;;  %10808 = vmatprep.subr.bf16.mxu0 %v13220_v15  ;;  %v13271_v45 = vld [vmem:[#allocation14 + $0x10] sm:$0xff]   ;;  %v13272_v15 = vld [vmem:[#allocation14 + $0x48] sm:$0xff]  }
 0x512   : > { %10849 = vmatprep.subr.bf16.mxu1 %v13223_v31  ;;  %v13283_v31 = vld [vmem:[#allocation14 + $0xa0] sm:$0xff]  }
 0x514   : > { %10809 = vmatpush2.bf16.msra.mxu0 %v13218_v20  ;;  %v13284_v20 = vld [vmem:[#allocation14 + $0xd8] sm:$0xff]  }
 0x515   : > { %10850 = vmatpush2.bf16.msra.mxu1 %v13221_v57  ;;  %10810 = vmatprep.subr.bf16.mxu0 %v13226_v28  ;;  %v13273_v57 = vld [vmem:[#allocation14 + $0x8] sm:$0xff]   ;;  %v13274_v28 = vld [vmem:[#allocation14 + $0x40] sm:$0xff]  }
 0x516   : > { %10851 = vmatprep.subr.bf16.mxu1 %v13229_v52  ;;  %v13285_v52 = vld [vmem:[#allocation14 + $0x98] sm:$0xff]  }
 0x518   : > { %10811 = vmatpush2.bf16.msra.mxu0 %v13224_v3  ;;  %v13286_v3 = vld [vmem:[#allocation14 + $0xd0] sm:$0xff]  }
 0x519   : > { %10852 = vmatpush2.bf16.msra.mxu1 %v13227_v21  ;;  %10812 = vmatprep.subr.bf16.mxu0 %v13232_v37  ;;  %v13275_v21 = vld [vmem:[#allocation14] sm:$0xff]   ;;  %v13287_v37 = vld [vmem:[#allocation14 + $0x90] sm:$0xff]  }
 0x51a   : > { %10853 = vmatprep.subr.bf16.mxu1 %v13235_v26  ;;  %v10876_v26 = vpack.c.bf16 %v15780_v25, %v15780_v25  ;;  %v13291_v25 = vld [vmem:[#allocation14 + $0x80] sm:$0xff]  }
 0x51c   : > { %10813 = vmatpush2.bf16.msra.mxu0 %v13230_v50 }
 0x51d   : > { %10854 = vmatpush2.bf16.msra.mxu1 %v13233_v9  ;;  %10814 = vmatprep.subr.bf16.mxu0 %v13238_v8 }
 0x51e   : > { %10855 = vmatprep.subr.bf16.mxu1 %v13241_v22 }
 0x520   : > { %10815 = vmatpush2.bf16.msra.mxu0 %v13236_v30 }
 0x521   : > { %10856 = vmatpush2.bf16.msra.mxu1 %v13239_v10  ;;  %10816 = vmatprep.subr.bf16.mxu0 %v13244_v29 }
 0x522   : > { %10857 = vmatprep.subr.bf16.mxu1 %v13247_v19  ;;  %v13288_v19 = vld [vmem:[#allocation14 + $0xc8] sm:$0xff]  }
 0x524   : > { %10817 = vmatpush2.bf16.msra.mxu0 %v13242_v48 }
 0x525   : > { %10858 = vmatpush2.bf16.msra.mxu1 %v13245_v47  ;;  %10818 = vmatprep.subr.bf16.mxu0 %v13250_v35  ;;  %v13289_v47 = vld [vmem:[#allocation14 + $0x88] sm:$0xff]  }
 0x526   : > { %10859 = vmatprep.subr.bf16.mxu1 %v13253_v14 }
 0x528   : > { %10819 = vmatpush2.bf16.msra.mxu0 %v13248_v56 }
 0x529   : > { %10860 = vmatpush2.bf16.msra.mxu1 %v13251_v39  ;;  %10820 = vmatprep.subr.bf16.mxu0 %v13256_v17  ;;  %v13290_v17 = vld [vmem:[#allocation14 + $0xc0] sm:$0xff]  }
 0x52a   : > { %10861 = vmatprep.subr.bf16.mxu1 %v13259_v60 }
 0x52c   : > { %10821 = vmatpush2.bf16.msra.mxu0 %v13254_v43 }
 0x52d   : > { %10862 = vmatpush2.bf16.msra.mxu1 %v13257_v42  ;;  %12322 = vmatprep.subr.bf16.mxu0 %v13260_v7 }
 0x52e   : > { %12344 = vmatprep.subr.bf16.mxu1 %v13276_v33 }
 0x52f   : > { %v10578_v13 = vpop.f32.mrf.mxu0  ;;  %10823 = vmatmul.mubr.bf16.vlgmr.msra.gmra.mxu0 %v15733_v34  ;;  %v13266_v34 = vld [vmem:[#allocation14 + $0x60] sm:$0xff]  }
 0x530   : > { %v10579_v49 = vadd.f32 %v10578_v13, %v7647_v38  ;;  %v10619_v59 = vpop.f32.mrf.mxu1  ;;  %10864 = vmatmul.mubr.bf16.vlgmr.msra.gmra.mxu1 %v15737_v0  ;;  %12323 = vmatpush3.bf16.msra.mxu0 %v13261_v5  ;;  %v13277_v0 = vld [vmem:[#allocation14 + $0xb8] sm:$0xff]  }
 0x531   : > { %11175 = vmatprep.mubr.bf16.mxu0 %v10877_v40  ;;  %v10580_v51 = vpop.f32.mrf.mxu0  ;;  %12324 = vmatprep.subr.bf16.mxu0 %v13262_v55 }
 0x532   : > { %v10620_v53 = vadd.f32 %v10619_v59, %v10579_v49  ;;  %v10581_v58 = vadd.f32 %v10580_v51, %v7651_v6  ;;  %v10621_v12 = vpop.f32.mrf.mxu1  ;;  %12345 = vmatpush3.bf16.msra.mxu1 %v13277_v0 }
 0x533   : > { %v10582_v54 = vpop.f32.mrf.mxu0  ;;  %12346 = vmatprep.subr.bf16.mxu1 %v13278_v44 }
 0x534   : > { %v10622_v16 = vadd.f32 %v10621_v12, %v10581_v58  ;;  %v10623_v63 = vpop.f32.mrf.mxu1  ;;  %12325 = vmatpush3.bf16.msra.mxu0 %v13263_v2 }
 0x535   : > { %v10583_v23 = vpop.f32.mrf.mxu0  ;;  %12326 = vmatprep.subr.bf16.mxu0 %v13264_v62 }
 0x536   : > { %v10624_v4 = vpop.f32.mrf.mxu1  ;;  %12347 = vmatpush3.bf16.msra.mxu1 %v13279_v41 }
 0x537   : > { %12348 = vmatprep.subr.bf16.mxu1 %v13280_v11 }
 0x538   : > { %12327 = vmatpush3.bf16.msra.mxu0 %v13265_v61 }
 0x539   : > { %12328 = vmatprep.subr.bf16.mxu0 %v13266_v34 }
 0x53a   : > { %12349 = vmatpush3.bf16.msra.mxu1 %v13281_v18 }
 0x53b   : > { %12350 = vmatprep.subr.bf16.mxu1 %v13282_v24 }
 0x53c   : > { %12329 = vmatpush3.bf16.msra.mxu0 %v13267_v46 }
 0x53d   : > { %12330 = vmatprep.subr.bf16.mxu0 %v13268_v27 }
 0x53e   : > { %12351 = vmatpush3.bf16.msra.mxu1 %v13283_v31 }
 0x53f   : > { %12352 = vmatprep.subr.bf16.mxu1 %v13284_v20 }
 0x540   : > { %12331 = vmatpush3.bf16.msra.mxu0 %v13269_v36 }
 0x541   : > { %12332 = vmatprep.subr.bf16.mxu0 %v13270_v1 }
 0x542   : > { %12353 = vmatpush3.bf16.msra.mxu1 %v13285_v52 }
 0x543   : > { %12354 = vmatprep.subr.bf16.mxu1 %v13286_v3 }
 0x544   : > { %12333 = vmatpush3.bf16.msra.mxu0 %v13271_v45 }
 0x545   : > { %12334 = vmatprep.subr.bf16.mxu0 %v13272_v15 }
 0x546   : > { %12355 = vmatpush3.bf16.msra.mxu1 %v13287_v37 }
 0x547   : > { %12356 = vmatprep.subr.bf16.mxu1 %v13288_v19 }
 0x548   : > { %12335 = vmatpush3.bf16.msra.mxu0 %v13273_v57 }
 0x549   : > { %12336 = vmatprep.subr.bf16.mxu0 %v13274_v28 }
 0x54a   : > { %12357 = vmatpush3.bf16.msra.mxu1 %v13289_v47 }
 0x54b   : > { %12358 = vmatprep.subr.bf16.mxu1 %v13290_v17 }
 0x54c   : > { %12337 = vmatpush3.bf16.msra.mxu0 %v13275_v21 }
 0x54e   : > { %12359 = vmatpush3.bf16.msra.mxu1 %v13291_v25 }
 0x54f   : > { %11176 = vmatmul.mubr.bf16.vlgmr.msra.gmra.mxu0 %v10876_v26 }
 0x56f   : > { %v10660_v50 = vpop.f32.mrf.mxu0 }
 0x570   : > { %v10661_v9 = vadd.f32 %v10660_v50, %v10620_v53  ;;  %v10701_v8 = vpop.f32.mrf.mxu1 }
 0x571   : > { %v10662_v22 = vpop.f32.mrf.mxu0 }
 0x572   : > { %v10702_v30 = vadd.f32 %v10701_v8, %v10661_v9  ;;  %v10663_v10 = vadd.f32 %v10662_v22, %v10622_v16  ;;  %v10703_v29 = vpop.f32.mrf.mxu1 }
 0x573   : > { %v10664_v48 = vpop.f32.mrf.mxu0 }
 0x574   : > { %v10704_v35 = vadd.f32 %v10703_v29, %v10663_v10  ;;  %v10705_v14 = vpop.f32.mrf.mxu1 }
 0x575   : > { %v10665_v56 = vpop.f32.mrf.mxu0 }
 0x576   : > { %v10706_v39 = vpop.f32.mrf.mxu1 }
 0x5af   : > { %v10742_v60 = vpop.f32.mrf.mxu0 }
 0x5b0   : > { %v10783_v43 = vpop.f32.mrf.mxu1  ;;  %v10743_v6 = vadd.f32 %v10742_v60, %v10702_v30 }
 0x5b1   : > { %v10744_v42 = vpop.f32.mrf.mxu0 }
 0x5b2   : > { %v10785_v7 = vpop.f32.mrf.mxu1  ;;  %v10745_v40 = vadd.f32 %v10744_v42, %v10704_v35  ;;  %v10784_v13 = vadd.f32 %v10783_v43, %v10743_v6 }
 0x5b3   : > { %v10746_v32 = vpop.f32.mrf.mxu0 }
 0x5b4   : > { %v10787_v38 = vpop.f32.mrf.mxu1  ;;  %v10786_v59 = vadd.f32 %v10785_v7, %v10745_v40 }
 0x5b5   : > { %v10747_v5 = vpop.f32.mrf.mxu0 }
 0x5b6   : > { %v10788_v55 = vpop.f32.mrf.mxu1 }
 0x5ef   : > { %v10824_v49 = vpop.f32.mrf.mxu0 }
 0x5f0   : > { %v10825_v2 = vadd.f32 %v10824_v49, %v10784_v13  ;;  %v10865_v51 = vpop.f32.mrf.mxu1 }
 0x5f1   : > { %v10826_v62 = vpop.f32.mrf.mxu0 }
 0x5f2   : > { %v10866_v53 = vadd.f32 %v10865_v51, %v10825_v2  ;;  %v10827_v58 = vadd.f32 %v10826_v62, %v10786_v59  ;;  %v10867_v12 = vpop.f32.mrf.mxu1 }
 0x5f3   : > { %v10828_v54 = vpop.f32.mrf.mxu0 }
 0x5f4   : > { %10874 = vst [vmem:[%s15783_s21 + $0x10] sm:$0xff] %v10866_v53  ;;  %v10868_v16 = vadd.f32 %v10867_v12, %v10827_v58  ;;  %v10869_v63 = vpop.f32.mrf.mxu1  ;;  %v10878_v4 = vpack.c.bf16 %v10866_v53, %v10866_v53 }
 0x5f5   : > { %v10829_v61 = vpop.f32.mrf.mxu0 }
 0x5f6   : > { %10875 = vst [vmem:[%s15783_s21 + $0x18] sm:$0xff] %v10868_v16  ;;  %v10879_v23 = vpack.c.bf16 %v10868_v16, %v10868_v16  ;;  %v10870_v34 = vpop.f32.mrf.mxu1 }
 0x5f8   : > { %11215 = vmatprep.mubr.bf16.mxu1 %v10879_v23 }
 0x5f9   : > { %11216 = vmatmul.mubr.bf16.vlgmr.msra.gmra.mxu1 %v10878_v4 }
 0x60f   : > { %v12338_v33 = vpop.f32.mrf.mxu0 }
 0x611   : > { %v12339_v0 = vpop.f32.mrf.mxu0 }
 0x612   : > { %v12340_v44 = vadd.f32 %v12339_v0, %v12338_v33 }
 0x613   : > { %v12341_v46 = vpop.f32.mrf.mxu0 }
 0x615   : > { %v12342_v27 = vpop.f32.mrf.mxu0 }
 0x616   : > { %13511 = shalt.err (!%p13508_p13)
}
 0x617   : > { %s13512_s19 = scalar_lea.hbm %s11255_s24, 512  ;;  %s13516_s28 = scalar_lea.hbm %s15871_s10, 1024 }
 0x618   : > { %p13513_p2 = scmp.ne.s32.totalorder %s11255_s24, %s13512_s19  ;;  %p13517_p6 = scmp.lt.s32.totalorder %s11255_s24, %s15871_s10 }
 0x619   : > { %p13518_p5 = scmp.lt.s32.totalorder %s13516_s28, %s13512_s19 }
 0x61a   : > { %p13514_p3 = pnand %p13513_p2, %p15902_p1 }
 0x61b   : > { %p13519_p11 = por %p13518_p5, %p13517_p6 }
 0x61c   : > { %p13515_p10 = pneg %p13514_p3 }
 0x61e   : > { %p13520_p0 = pnand %p13519_p11, %p13515_p10 }
 0x620   : > { %13523 = shalt.err (!%p13520_p0)
}
 0x621   : > { %12397 = dma.vmem_to_hbm [thread:$0]  (%p15902_p1), %s11258_s4, 512, %s11255_s24, %s11230_s14   ;;  %v12281_v41 = vld [vmem:[#allocation15] ss:$0 sm:$0xff] }
 0x622   : > { %s11445_s27 = sshll.u32 %s13921_s29, 3  ;;  %s12316_s30 = sshll.u32 %s13707_s2, 7  ;;  %v11178_v1 = vadd.f32 %v12340_v44, %v12281_v41 }
 0x623   : > { %s679_s22 = scalar_lea.vmem [#allocation17], %s11445_s27  ;;  %s15824_s21 = scalar_lea.hbm %s15870_s9, %s12316_s30 }
 0x624   : > { %s11243_s13 = sshll.u32 %s679_s22, 4  ;;  %s11225_s24 = scalar_lea.sflag [#allocation6], %s13921_s29  ;;  %s11244_s13 = int_to_ptr.vmem [resolvable:$true] %s11243_s13 }
 0x625   : > { %s13524_s4 = scalar_lea.vmem %s11244_s13, 128  ;;  %s13627_s2 = smov [#allocation17]  }
 0x626   : > { %p13525_p4 = scmp.ne.s32.totalorder %s11244_s13, %s13524_s4  ;;  %s13528_s14 = sshll.u32 %s13627_s2, 4  ;;  %s13529_s14 = int_to_ptr.vmem [resolvable:$false] %s13528_s14 }
 0x627   : > { %s13530_s28 = scalar_lea.vmem %s13529_s14, 256  ;;  %p13531_p9 = scmp.lt.s32.totalorder %s11244_s13, %s13529_s14 }
 0x628   : > { %p13526_p7 = pnand %p13525_p4, %p15902_p1  ;;  %p13532_p13 = scmp.lt.s32.totalorder %s13530_s28, %s13524_s4 }
 0x62a   : > { %p13527_p8 = pneg %p13526_p7  ;;  %p13533_p2 = por %p13532_p13, %p13531_p9 }
 0x62c   : > { %p13534_p3 = pnand %p13533_p2, %p13527_p8 }
 0x6b9   : > { %v12360_v11 = vpop.f32.mrf.mxu1 }
 0x6bb   : > { %v12361_v36 = vpop.f32.mrf.mxu1 }
 0x6bc   : > { %v12362_v18 = vadd.f32 %v12361_v36, %v12360_v11 }
 0x6bd   : > { %v12363_v24 = vpop.f32.mrf.mxu1 }
 0x6be   : > { %v11218_v45 = vadd.f32 %v12362_v18, %v11178_v1 }
 0x6bf   : > { %v12364_v15 = vpop.f32.mrf.mxu1 }
 0x6c0   : > { %11223 = vst [vmem:[%s679_s22] sm:$0xff] %v11218_v45 }
 0x6c1   : > { %13537 = shalt.err (!%p13534_p3)
}
 0x6c2   : > { %s13538_s1 = scalar_lea.hbm %s15824_s21, 128  ;;  %s13542_s27 = scalar_lea.hbm %s15870_s9, 256 }
 0x6c3   : > { %p13539_p10 = scmp.ne.s32.totalorder %s15824_s21, %s13538_s1  ;;  %p13543_p11 = scmp.lt.s32.totalorder %s15824_s21, %s15870_s9 }
 0x6c4   : > { %p13544_p0 = scmp.lt.s32.totalorder %s13542_s27, %s13538_s1 }
 0x6c5   : > { %p13540_p6 = pnand %p13539_p10, %p15902_p1 }
 0x6c6   : > { %p13545_p4 = por %p13544_p0, %p13543_p11 }
 0x6c7   : > { %p13541_p5 = pneg %p13540_p6 }
 0x6c9   : > { %p13546_p7 = pnand %p13545_p4, %p13541_p5 }
 0x6cb   : > { %13549 = shalt.err (!%p13546_p7)
}
 0x6cc   : > { %12396 = dma.vmem_to_hbm [thread:$0]  (%p15902_p1), %s11244_s13, 128, %s15824_s21, %s11225_s24  }
 0x6cd PF: > { %s11269_s19 = sand.u32 1, %s13596_s15   ;;  %p15903_p8 = scmp.ne.s32.totalorder %s15881_s26, 0 }
 0x6ce   : > { %s11270_s11 = scalar_lea.sflag [#allocation6], %s11269_s19 }
 0x6cf   : > { %p12423_p9 = pnand %p11435_p12, %p15903_p8 }
 0x6d1   : > { %p12424_p13 = pneg %p12423_p9 }
 0x6d3   : > { %13587 = dma.done.wait (%p12424_p13), %s11270_s11, 128  }
 0x6d4   : > { %13589 = vsyncadd (%p12424_p13), %s11270_s11, 4294967168  ;;  %s11279_s4 = scalar_lea.sflag [#allocation19], %s11269_s19 }
 0x6d5   : > { %13591 = dma.done.wait (%p12424_p13), %s11279_s4, 512  }
 0x6d6   : > { %13593 = vsyncadd (%p12424_p13), %s11279_s4, 4294966784  ;;  %p30_p1 = scmp.ge.s32.totalorder %s13711_s20, 4   ;;  %s15904_s15 = smov %s13600_s16 }
 0x6d7   : > { %s15905_s16 = smov %s13604_s17  ;;  %s15906_s17 = smov %s13723_s23 }
 0x6d8   : > { %s15907_s18 = smov %s13711_s20  ;;  %32 = sbr.rel (!%p30_p1) target bundleno = 14 (0xe), region = 194 }
 0x6dd   :  { %11284 = vsyncpa [#allocation5], 1 }
 0x6de   :  { %11286 = vsyncpa [#allocation5 + $0x1], 1 }
 0x6df   :  { %11287 = vsyncpa [#allocation10], 1 }
 0x6e0   :  { %11288 = vsyncpa [#allocation13], 1 }
 0x6e1   :  { %11289 = vsyncpa [#allocation16], 1 }
 0x6e2   :  { %11290 = vsyncpa [#allocation6], 1 }
 0x6e3   :  { %11292 = vsyncpa [#allocation6 + $0x1], 1 }
 0x6e4   :  { %11293 = vsyncpa [#allocation19], 1 }
 0x6e5   :  { %11295 = vsyncpa [#allocation19 + $0x1], 1 }
 0x6e6   :  { %11296 = vsyncpa [#allocation7], 1 }
 0x6e7   :  { %11298 = vsyncpa [#allocation7 + $0x1], 1 }

</bundles_post_ra>
